<compile_context>
chip_gen: v7x
topology: tpu7x:2x2x1
jax: 0.10.0
libtpu: 0.0.40
codegen_flags: <defaults>
</compile_context>

<pallas_src>
import functools

import jax
import jax.numpy as jnp
import numpy as np
from jax.experimental import pallas as pl
from jax.experimental.pallas import tpu as pltpu

NUM_CLASSES = 15


# ----------------------------------------------------------------------------
# Fused matmul Pallas kernel:  O = act(A @ B + bias [+ residual])
#   A: (tm, K) bf16, B: (K, N) bf16 (BN scale pre-folded), bias: (1, N) f32.
#   Full-K, full-N blocks; 1-D grid over M; f32 accumulation on the MXU.
# ----------------------------------------------------------------------------
def _mm_bias_kernel(a_ref, b_ref, c_ref, o_ref, *, relu):
    y = jnp.dot(a_ref[...], b_ref[...], preferred_element_type=jnp.float32)
    y = y + c_ref[...]
    if relu:
        y = jnp.maximum(y, 0.0)
    o_ref[...] = y.astype(o_ref.dtype)


def _mm_bias_res_kernel(a_ref, b_ref, c_ref, r_ref, o_ref, *, relu):
    y = jnp.dot(a_ref[...], b_ref[...], preferred_element_type=jnp.float32)
    y = y + c_ref[...] + r_ref[...].astype(jnp.float32)
    if relu:
        y = jnp.maximum(y, 0.0)
    o_ref[...] = y.astype(o_ref.dtype)


def _rup(x, m):
    return ((x + m - 1) // m) * m


def _pick_tm(m):
    # Big M tiles to amortize per-step cost; >=2 blocks when M allows so the
    # parallel axis can be sharded across both v7x TensorCores.
    if m > 1024:
        return 512
    if m > 256:
        return 256
    return _rup(m, 8)


def fused_matmul(a, b, bias, residual=None, relu=False, out_dtype=jnp.bfloat16):
    """(M,K) @ (K,N) + bias [+ residual], optional ReLU. bf16 in, f32 acc."""
    M, K = a.shape
    Kb, N = b.shape
    assert K == Kb, (K, Kb)

    tm = _pick_tm(M)
    Mp = _rup(M, tm)

    a_p = a.astype(jnp.bfloat16)
    if Mp != M:
        a_p = jnp.pad(a_p, ((0, Mp - M), (0, 0)))
    b_p = b.astype(jnp.bfloat16)
    c_p = bias.reshape(1, N).astype(jnp.float32)

    inputs = [a_p, b_p, c_p]
    in_specs = [
        pl.BlockSpec((tm, K), lambda i: (i, 0)),
        pl.BlockSpec((K, N), lambda i: (0, 0)),
        pl.BlockSpec((1, N), lambda i: (0, 0)),
    ]
    if residual is not None:
        r_p = residual.astype(jnp.bfloat16)
        if Mp != M:
            r_p = jnp.pad(r_p, ((0, Mp - M), (0, 0)))
        inputs.append(r_p)
        in_specs.append(pl.BlockSpec((tm, N), lambda i: (i, 0)))
        kernel = functools.partial(_mm_bias_res_kernel, relu=relu)
    else:
        kernel = functools.partial(_mm_bias_kernel, relu=relu)

    out = pl.pallas_call(
        kernel,
        out_shape=jax.ShapeDtypeStruct((Mp, N), out_dtype),
        grid_spec=pltpu.PrefetchScalarGridSpec(
            num_scalar_prefetch=0,
            grid=(Mp // tm,),
            in_specs=in_specs,
            out_specs=pl.BlockSpec((tm, N), lambda i: (i, 0)),
        ),
        compiler_params=pltpu.CompilerParams(
            dimension_semantics=("parallel",)),
    )(*inputs)

    if Mp != M:
        out = out[:M]
    return out


# ----------------------------------------------------------------------------
# Conv2d (NHWC): im2col in XLA glue (bf16, 1x1 convs skip it) + Pallas matmul
# with fused bias / residual-add / ReLU epilogue.
# ----------------------------------------------------------------------------
def conv2d(x, p, stride=1, padding=0, dilation=1, relu=False, residual=None,
           out_dtype=jnp.bfloat16):
    N, H, W, Cin = x.shape
    KH, KW, _, Cout = p["w"].shape
    Ho = (H + 2 * padding - dilation * (KH - 1) - 1) // stride + 1
    Wo = (W + 2 * padding - dilation * (KW - 1) - 1) // stride + 1

    if KH == 1 and KW == 1 and padding == 0:
        xs = x[:, ::stride, ::stride, :] if stride > 1 else x
        patches = xs.reshape(N * Ho * Wo, Cin)
    else:
        xp = jnp.pad(x, ((0, 0), (padding, padding), (padding, padding), (0, 0)))
        cols = []
        for kh in range(KH):
            for kw in range(KW):
                h0, w0 = kh * dilation, kw * dilation
                cols.append(
                    xp[:, h0:h0 + stride * (Ho - 1) + 1:stride,
                          w0:w0 + stride * (Wo - 1) + 1:stride, :])
        patches = jnp.concatenate(cols, axis=-1).reshape(N * Ho * Wo, KH * KW * Cin)

    wmat = p["w"].reshape(KH * KW * Cin, Cout)
    res = None if residual is None else residual.reshape(N * Ho * Wo, Cout)
    y = fused_matmul(patches, wmat, p["b"], residual=res, relu=relu,
                     out_dtype=out_dtype)
    return y.reshape(N, Ho, Wo, Cout)


def max_pool_3x3_s2(x):
    # glue: 3x3/stride-2/pad-1 max pool (elementwise max of 9 shifted views)
    N, H, W, C = x.shape
    Ho = (H + 2 - 3) // 2 + 1
    Wo = (W + 2 - 3) // 2 + 1
    xp = jnp.pad(x, ((0, 0), (1, 1), (1, 1), (0, 0)),
                 constant_values=-jnp.inf)
    out = None
    for kh in range(3):
        for kw in range(3):
            v = xp[:, kh:kh + 2 * (Ho - 1) + 1:2, kw:kw + 2 * (Wo - 1) + 1:2, :]
            out = v if out is None else jnp.maximum(out, v)
    return out


def _interp_idx(out_size, in_size):
    # align_corners=True bilinear sampling indices / weights (static, numpy)
    if out_size == 1 or in_size == 1:
        src = np.zeros((out_size,), np.float32)
    else:
        src = np.arange(out_size, dtype=np.float32) * (in_size - 1) / (out_size - 1)
    i0 = np.clip(np.floor(src).astype(np.int32), 0, in_size - 1)
    i1 = np.minimum(i0 + 1, in_size - 1)
    w = (src - i0).astype(np.float32)
    return jnp.asarray(i0), jnp.asarray(i1), jnp.asarray(w)


def upsample_bilinear(x, out_h, out_w):
    # F.interpolate(mode='bilinear', align_corners=True) as XLA gather + lerp
    N, H, W, C = x.shape
    hi0, hi1, hw = _interp_idx(out_h, H)
    wi0, wi1, ww = _interp_idx(out_w, W)
    xf = x.astype(jnp.float32)
    top = jnp.take(xf, hi0, axis=1)
    bot = jnp.take(xf, hi1, axis=1)
    yh = top * (1.0 - hw)[None, :, None, None] + bot * hw[None, :, None, None]
    left = jnp.take(yh, wi0, axis=2)
    right = jnp.take(yh, wi1, axis=2)
    y = left * (1.0 - ww)[None, None, :, None] + right * ww[None, None, :, None]
    return y.astype(x.dtype)


# ----------------------------------------------------------------------------
# Parameter init (deterministic, synthetic).  BN scale folded into the weights
# at init time; weights stored bf16, bias f32.
# ----------------------------------------------------------------------------
def _conv_bn(key, kh, kw, cin, cout):
    k1, k2, k3 = jax.random.split(key, 3)
    w = jax.random.normal(k1, (kh, kw, cin, cout), jnp.float32) / np.sqrt(kh * kw * cin)
    gamma = 1.0 + 0.1 * jax.random.normal(k2, (cout,), jnp.float32)
    beta = 0.1 * jax.random.normal(k3, (cout,), jnp.float32)
    mean = jnp.zeros((cout,), jnp.float32)
    var = jnp.ones((cout,), jnp.float32)
    scale = gamma / jnp.sqrt(var + 1e-5)
    bias = beta - mean * scale
    return {"w": (w * scale).astype(jnp.bfloat16), "b": bias}


def _conv_plain(key, kh, kw, cin, cout):
    k1, k2 = jax.random.split(key)
    w = jax.random.normal(k1, (kh, kw, cin, cout), jnp.float32) / np.sqrt(kh * kw * cin)
    b = 0.1 * jax.random.normal(k2, (cout,), jnp.float32)
    return {"w": w.astype(jnp.bfloat16), "b": b}


def _res_params(key, cin, cout):
    k1, k2, k3 = jax.random.split(key, 3)
    return {"conv1": _conv_bn(k1, 3, 3, cin, cout),
            "conv2": _conv_bn(k2, 3, 3, cout, cout),
            "down":  _conv_bn(k3, 1, 1, cin, cout)}


def init_params(key):
    ks = jax.random.split(key, 16)
    # TODO(synk): full ResNet-101 backbone reduced to one residual block per stage.
    return {
        "stem":   _conv_bn(ks[0], 7, 7, 3, 16),
        "layer1": _res_params(ks[1], 16, 32),    # low_level_feat (stride 4)
        "layer2": _res_params(ks[2], 32, 48),    # stride 8
        "layer3": _res_params(ks[3], 48, 64),    # stride 16
        "layer4": _res_params(ks[4], 64, 96),    # stride 16 (dilation 2)
        # WASP waterfall
        "aspp1":  _conv_bn(ks[5], 1, 1, 96, 32),
        "aspp2":  _conv_bn(ks[6], 3, 3, 32, 32),
        "aspp3":  _conv_bn(ks[7], 3, 3, 32, 32),
        "aspp4":  _conv_bn(ks[8], 3, 3, 32, 32),
        "gap":    _conv_bn(ks[9], 1, 1, 96, 32),
        "wproj":  _conv_bn(ks[10], 1, 1, 5 * 32, 32),
        # decoder
        "dlow":   _conv_bn(ks[11], 1, 1, 32, 16),
        "dconv1": _conv_bn(ks[12], 3, 3, 48, 32),
        "dconv2": _conv_bn(ks[13], 3, 3, 32, 32),
        # TODO(synk): exact head width of build_decoder unavailable; using num_classes.
        "dhead":  _conv_plain(ks[14], 1, 1, 32, NUM_CLASSES),
    }


def _res_block(x, p, stride=1, dilation=1):
    # shortcut add + final ReLU are fused into conv2's matmul epilogue
    y = conv2d(x, p["conv1"], stride=stride, padding=dilation,
               dilation=dilation, relu=True)
    sc = conv2d(x, p["down"], stride=stride, relu=False)
    return conv2d(y, p["conv2"], padding=dilation, dilation=dilation,
                  relu=True, residual=sc)


# ----------------------------------------------------------------------------
# unipose.forward  (stride=8 default  ->  final interpolate branch skipped)
# ----------------------------------------------------------------------------
def unipose_forward(x_nchw, p, stride=8):
    x = jnp.transpose(x_nchw, (0, 2, 3, 1)).astype(jnp.bfloat16)   # NCHW -> NHWC

    # ---- backbone ----
    h = conv2d(x, p["stem"], stride=2, padding=3, relu=True)
    h = max_pool_3x3_s2(h)                                        # stride 4
    low_level_feat = _res_block(h, p["layer1"], stride=1)
    h = _res_block(low_level_feat, p["layer2"], stride=2)         # stride 8
    h = _res_block(h, p["layer3"], stride=2)                      # stride 16
    h = _res_block(h, p["layer4"], stride=1, dilation=2)          # output_stride 16

    # ---- WASP (waterfall atrous + global pooling branch) ----
    x1 = conv2d(h,  p["aspp1"], relu=True)
    x2 = conv2d(x1, p["aspp2"], padding=6,  dilation=6,  relu=True)
    x3 = conv2d(x2, p["aspp3"], padding=12, dilation=12, relu=True)
    x4 = conv2d(x3, p["aspp4"], padding=18, dilation=18, relu=True)
    x5 = jnp.mean(h.astype(jnp.float32), axis=(1, 2), keepdims=True)
    x5 = conv2d(x5.astype(jnp.bfloat16), p["gap"], relu=True)
    # bilinear upsample from a 1x1 source is a pure broadcast
    x5 = jnp.broadcast_to(x5, (h.shape[0], h.shape[1], h.shape[2], x5.shape[-1]))
    w = jnp.concatenate([x1, x2, x3, x4, x5], axis=-1)
    w = conv2d(w, p["wproj"], relu=True)                          # Dropout(0.5)=identity (eval)

    # ---- decoder ----
    low = conv2d(low_level_feat, p["dlow"], relu=True)
    wu = upsample_bilinear(w, low.shape[1], low.shape[2])
    d = jnp.concatenate([wu, low], axis=-1)
    d = conv2d(d, p["dconv1"], padding=1, relu=True)
    d = conv2d(d, p["dconv2"], padding=1, relu=True)
    d = conv2d(d, p["dhead"], relu=False, out_dtype=jnp.float32)

    if stride != 8:   # statically skipped for the default stride=8
        d = upsample_bilinear(d, x.shape[1], x.shape[2])

    return jnp.transpose(d, (0, 3, 1, 2))                         # NHWC -> NCHW


if __name__ == "__main__":
    key = jax.random.PRNGKey(0)
    pkey, xkey = jax.random.split(key)
    params = init_params(pkey)
    x = jax.random.normal(xkey, (2, 3, 64, 64), jnp.float32)      # NCHW input

    fwd = jax.jit(unipose_forward)
    out = jax.block_until_ready(fwd(x, params))

    assert out.shape == (2, NUM_CLASSES, 16, 16), out.shape
    assert bool(jnp.all(jnp.isfinite(out)))
    print("KERNEL_OK")
</pallas_src>

<mosaic_0001>
module attributes {stable_mosaic.version = 11 : i64} {
  func.func @_mm_bias_kernel(%arg0: i32, %arg1: memref<512x147xbf16, #tpu.memory_space<vmem>>, %arg2: memref<147x16xbf16, #tpu.memory_space<vmem>>, %arg3: memref<1x16xf32, #tpu.memory_space<vmem>>, %arg4: memref<512x16xbf16, #tpu.memory_space<vmem>>) attributes {dimension_semantics = [#tpu.dimension_semantics<parallel>], iteration_bounds = array<i64: 4>, scalar_prefetch = 0 : i64, scratch_operands = 0 : i64, tpu.core_type = #tpu.core_type<tc>, window_params = [{transform_indices = @transform_0, window_bounds = array<i64: 512, 147>}, {pipeline_mode = #tpu.pipeline_mode<synchronous>, transform_indices = @transform_1, window_bounds = array<i64: 147, 16>}, {pipeline_mode = #tpu.pipeline_mode<synchronous>, transform_indices = @transform_2, window_bounds = array<i64: 1, 16>}, {transform_indices = @transform_3, window_bounds = array<i64: 512, 16>}]} {
    %c0 = arith.constant 0 : index
    %c0_0 = arith.constant 0 : index
    %0 = vector.load %arg1[%c0, %c0_0] : memref<512x147xbf16, #tpu.memory_space<vmem>>, vector<512x147xbf16>
    %c0_1 = arith.constant 0 : index
    %c0_2 = arith.constant 0 : index
    %1 = vector.load %arg2[%c0_1, %c0_2] : memref<147x16xbf16, #tpu.memory_space<vmem>>, vector<147x16xbf16>
    %cst = arith.constant dense<0.000000e+00> : vector<512x16xf32>
    %2 = tpu.matmul %0, %1, %cst {dimension_numbers = #tpu.dot_dimension_numbers<[1], [0], [0], [1], [0, 0, 1, 1], [], []>} : vector<512x147xbf16>, vector<147x16xbf16>, vector<512x16xf32> -> vector<512x16xf32>
    %c0_3 = arith.constant 0 : index
    %c0_4 = arith.constant 0 : index
    %3 = vector.load %arg3[%c0_3, %c0_4] : memref<1x16xf32, #tpu.memory_space<vmem>>, vector<1x16xf32>
    %4 = vector.broadcast %3 : vector<1x16xf32> to vector<512x16xf32>
    %5 = arith.addf %2, %4 : vector<512x16xf32>
    %cst_5 = arith.constant 0.000000e+00 : f32
    %6 = vector.broadcast %cst_5 : f32 to vector<512x16xf32>
    %7 = arith.maximumf %5, %6 : vector<512x16xf32>
    %8 = arith.truncf %7 : vector<512x16xf32> to vector<512x16xbf16>
    %c0_6 = arith.constant 0 : index
    %c0_7 = arith.constant 0 : index
    %9 = vector.load %arg4[%c0_6, %c0_7] : memref<512x16xbf16, #tpu.memory_space<vmem>>, vector<512x16xbf16>
    tpu.vector_store %arg4[%c0_6, %c0_7], %8 {strides = array<i32>} : memref<512x16xbf16, #tpu.memory_space<vmem>>, vector<512x16xbf16>,
    return
  }
  func.func @transform_0(%arg0: i32) -> (i32, i32) {
    %c0_i32 = arith.constant 0 : i32
    %c0_i32_0 = arith.constant 0 : i32
    return %arg0, %c0_i32 : i32, i32
  }
  func.func @transform_1(%arg0: i32) -> (i32, i32) {
    %c0_i32 = arith.constant 0 : i32
    %c0_i32_0 = arith.constant 0 : i32
    %c0_i32_1 = arith.constant 0 : i32
    return %c0_i32, %c0_i32_0 : i32, i32
  }
  func.func @transform_2(%arg0: i32) -> (i32, i32) {
    %c0_i32 = arith.constant 0 : i32
    %c0_i32_0 = arith.constant 0 : i32
    %c0_i32_1 = arith.constant 0 : i32
    return %c0_i32, %c0_i32_0 : i32, i32
  }
  func.func @transform_3(%arg0: i32) -> (i32, i32) {
    %c0_i32 = arith.constant 0 : i32
    %c0_i32_0 = arith.constant 0 : i32
    return %arg0, %c0_i32 : i32, i32
  }
}

module attributes {stable_mosaic.version = 11 : i64} {
  func.func @_mm_bias_kernel(%arg0: i32, %arg1: memref<256x144xbf16, #tpu.memory_space<vmem>>, %arg2: memref<144x32xbf16, #tpu.memory_space<vmem>>, %arg3: memref<1x32xf32, #tpu.memory_space<vmem>>, %arg4: memref<256x32xbf16, #tpu.memory_space<vmem>>) attributes {dimension_semantics = [#tpu.dimension_semantics<parallel>], iteration_bounds = array<i64: 2>, scalar_prefetch = 0 : i64, scratch_operands = 0 : i64, tpu.core_type = #tpu.core_type<tc>, window_params = [{transform_indices = @transform_0, window_bounds = array<i64: 256, 144>}, {pipeline_mode = #tpu.pipeline_mode<synchronous>, transform_indices = @transform_1, window_bounds = array<i64: 144, 32>}, {pipeline_mode = #tpu.pipeline_mode<synchronous>, transform_indices = @transform_2, window_bounds = array<i64: 1, 32>}, {transform_indices = @transform_3, window_bounds = array<i64: 256, 32>}]} {
    %c0 = arith.constant 0 : index
    %c0_0 = arith.constant 0 : index
    %0 = vector.load %arg1[%c0, %c0_0] : memref<256x144xbf16, #tpu.memory_space<vmem>>, vector<256x144xbf16>
    %c0_1 = arith.constant 0 : index
    %c0_2 = arith.constant 0 : index
    %1 = vector.load %arg2[%c0_1, %c0_2] : memref<144x32xbf16, #tpu.memory_space<vmem>>, vector<144x32xbf16>
    %cst = arith.constant dense<0.000000e+00> : vector<256x32xf32>
    %2 = tpu.matmul %0, %1, %cst {dimension_numbers = #tpu.dot_dimension_numbers<[1], [0], [0], [1], [0, 0, 1, 1], [], []>} : vector<256x144xbf16>, vector<144x32xbf16>, vector<256x32xf32> -> vector<256x32xf32>
    %c0_3 = arith.constant 0 : index
    %c0_4 = arith.constant 0 : index
    %3 = vector.load %arg3[%c0_3, %c0_4] : memref<1x32xf32, #tpu.memory_space<vmem>>, vector<1x32xf32>
    %4 = vector.broadcast %3 : vector<1x32xf32> to vector<256x32xf32>
    %5 = arith.addf %2, %4 : vector<256x32xf32>
    %cst_5 = arith.constant 0.000000e+00 : f32
    %6 = vector.broadcast %cst_5 : f32 to vector<256x32xf32>
    %7 = arith.maximumf %5, %6 : vector<256x32xf32>
    %8 = arith.truncf %7 : vector<256x32xf32> to vector<256x32xbf16>
    %c0_6 = arith.constant 0 : index
    %c0_7 = arith.constant 0 : index
    %9 = vector.load %arg4[%c0_6, %c0_7] : memref<256x32xbf16, #tpu.memory_space<vmem>>, vector<256x32xbf16>
    tpu.vector_store %arg4[%c0_6, %c0_7], %8 {strides = array<i32>} : memref<256x32xbf16, #tpu.memory_space<vmem>>, vector<256x32xbf16>,
    return
  }
  func.func @transform_0(%arg0: i32) -> (i32, i32) {
    %c0_i32 = arith.constant 0 : i32
    %c0_i32_0 = arith.constant 0 : i32
    return %arg0, %c0_i32 : i32, i32
  }
  func.func @transform_1(%arg0: i32) -> (i32, i32) {
    %c0_i32 = arith.constant 0 : i32
    %c0_i32_0 = arith.constant 0 : i32
    %c0_i32_1 = arith.constant 0 : i32
    return %c0_i32, %c0_i32_0 : i32, i32
  }
  func.func @transform_2(%arg0: i32) -> (i32, i32) {
    %c0_i32 = arith.constant 0 : i32
    %c0_i32_0 = arith.constant 0 : i32
    %c0_i32_1 = arith.constant 0 : i32
    return %c0_i32, %c0_i32_0 : i32, i32
  }
  func.func @transform_3(%arg0: i32) -> (i32, i32) {
    %c0_i32 = arith.constant 0 : i32
    %c0_i32_0 = arith.constant 0 : i32
    return %arg0, %c0_i32 : i32, i32
  }
}

module attributes {stable_mosaic.version = 11 : i64} {
  func.func @_mm_bias_kernel(%arg0: i32, %arg1: memref<256x16xbf16, #tpu.memory_space<vmem>>, %arg2: memref<16x32xbf16, #tpu.memory_space<vmem>>, %arg3: memref<1x32xf32, #tpu.memory_space<vmem>>, %arg4: memref<256x32xbf16, #tpu.memory_space<vmem>>) attributes {dimension_semantics = [#tpu.dimension_semantics<parallel>], iteration_bounds = array<i64: 2>, scalar_prefetch = 0 : i64, scratch_operands = 0 : i64, tpu.core_type = #tpu.core_type<tc>, window_params = [{transform_indices = @transform_0, window_bounds = array<i64: 256, 16>}, {pipeline_mode = #tpu.pipeline_mode<synchronous>, transform_indices = @transform_1, window_bounds = array<i64: 16, 32>}, {pipeline_mode = #tpu.pipeline_mode<synchronous>, transform_indices = @transform_2, window_bounds = array<i64: 1, 32>}, {transform_indices = @transform_3, window_bounds = array<i64: 256, 32>}]} {
    %c0 = arith.constant 0 : index
    %c0_0 = arith.constant 0 : index
    %0 = vector.load %arg1[%c0, %c0_0] : memref<256x16xbf16, #tpu.memory_space<vmem>>, vector<256x16xbf16>
    %c0_1 = arith.constant 0 : index
    %c0_2 = arith.constant 0 : index
    %1 = vector.load %arg2[%c0_1, %c0_2] : memref<16x32xbf16, #tpu.memory_space<vmem>>, vector<16x32xbf16>
    %cst = arith.constant dense<0.000000e+00> : vector<256x32xf32>
    %2 = tpu.matmul %0, %1, %cst {dimension_numbers = #tpu.dot_dimension_numbers<[1], [0], [0], [1], [0, 0, 1, 1], [], []>} : vector<256x16xbf16>, vector<16x32xbf16>, vector<256x32xf32> -> vector<256x32xf32>
    %c0_3 = arith.constant 0 : index
    %c0_4 = arith.constant 0 : index
    %3 = vector.load %arg3[%c0_3, %c0_4] : memref<1x32xf32, #tpu.memory_space<vmem>>, vector<1x32xf32>
    %4 = vector.broadcast %3 : vector<1x32xf32> to vector<256x32xf32>
    %5 = arith.addf %2, %4 : vector<256x32xf32>
    %6 = arith.truncf %5 : vector<256x32xf32> to vector<256x32xbf16>
    %c0_5 = arith.constant 0 : index
    %c0_6 = arith.constant 0 : index
    %7 = vector.load %arg4[%c0_5, %c0_6] : memref<256x32xbf16, #tpu.memory_space<vmem>>, vector<256x32xbf16>
    tpu.vector_store %arg4[%c0_5, %c0_6], %6 {strides = array<i32>} : memref<256x32xbf16, #tpu.memory_space<vmem>>, vector<256x32xbf16>,
    return
  }
  func.func @transform_0(%arg0: i32) -> (i32, i32) {
    %c0_i32 = arith.constant 0 : i32
    %c0_i32_0 = arith.constant 0 : i32
    return %arg0, %c0_i32 : i32, i32
  }
  func.func @transform_1(%arg0: i32) -> (i32, i32) {
    %c0_i32 = arith.constant 0 : i32
    %c0_i32_0 = arith.constant 0 : i32
    %c0_i32_1 = arith.constant 0 : i32
    return %c0_i32, %c0_i32_0 : i32, i32
  }
  func.func @transform_2(%arg0: i32) -> (i32, i32) {
    %c0_i32 = arith.constant 0 : i32
    %c0_i32_0 = arith.constant 0 : i32
    %c0_i32_1 = arith.constant 0 : i32
    return %c0_i32, %c0_i32_0 : i32, i32
  }
  func.func @transform_3(%arg0: i32) -> (i32, i32) {
    %c0_i32 = arith.constant 0 : i32
    %c0_i32_0 = arith.constant 0 : i32
    return %arg0, %c0_i32 : i32, i32
  }
}

module attributes {stable_mosaic.version = 11 : i64} {
  func.func @_mm_bias_res_kernel(%arg0: i32, %arg1: memref<256x288xbf16, #tpu.memory_space<vmem>>, %arg2: memref<288x32xbf16, #tpu.memory_space<vmem>>, %arg3: memref<1x32xf32, #tpu.memory_space<vmem>>, %arg4: memref<256x32xbf16, #tpu.memory_space<vmem>>, %arg5: memref<256x32xbf16, #tpu.memory_space<vmem>>) attributes {dimension_semantics = [#tpu.dimension_semantics<parallel>], iteration_bounds = array<i64: 2>, scalar_prefetch = 0 : i64, scratch_operands = 0 : i64, tpu.core_type = #tpu.core_type<tc>, window_params = [{transform_indices = @transform_0, window_bounds = array<i64: 256, 288>}, {pipeline_mode = #tpu.pipeline_mode<synchronous>, transform_indices = @transform_1, window_bounds = array<i64: 288, 32>}, {pipeline_mode = #tpu.pipeline_mode<synchronous>, transform_indices = @transform_2, window_bounds = array<i64: 1, 32>}, {transform_indices = @transform_3, window_bounds = array<i64: 256, 32>}, {transform_indices = @transform_4, window_bounds = array<i64: 256, 32>}]} {
    %c0 = arith.constant 0 : index
    %c0_0 = arith.constant 0 : index
    %0 = vector.load %arg1[%c0, %c0_0] : memref<256x288xbf16, #tpu.memory_space<vmem>>, vector<256x288xbf16>
    %c0_1 = arith.constant 0 : index
    %c0_2 = arith.constant 0 : index
    %1 = vector.load %arg2[%c0_1, %c0_2] : memref<288x32xbf16, #tpu.memory_space<vmem>>, vector<288x32xbf16>
    %cst = arith.constant dense<0.000000e+00> : vector<256x32xf32>
    %2 = tpu.matmul %0, %1, %cst {dimension_numbers = #tpu.dot_dimension_numbers<[1], [0], [0], [1], [0, 0, 1, 1], [], []>} : vector<256x288xbf16>, vector<288x32xbf16>, vector<256x32xf32> -> vector<256x32xf32>
    %c0_3 = arith.constant 0 : index
    %c0_4 = arith.constant 0 : index
    %3 = vector.load %arg3[%c0_3, %c0_4] : memref<1x32xf32, #tpu.memory_space<vmem>>, vector<1x32xf32>
    %4 = vector.broadcast %3 : vector<1x32xf32> to vector<256x32xf32>
    %5 = arith.addf %2, %4 : vector<256x32xf32>
    %c0_5 = arith.constant 0 : index
    %c0_6 = arith.constant 0 : index
    %6 = vector.load %arg4[%c0_5, %c0_6] : memref<256x32xbf16, #tpu.memory_space<vmem>>, vector<256x32xbf16>
    %7 = arith.extf %6 : vector<256x32xbf16> to vector<256x32xf32>
    %8 = arith.addf %5, %7 : vector<256x32xf32>
    %cst_7 = arith.constant 0.000000e+00 : f32
    %9 = vector.broadcast %cst_7 : f32 to vector<256x32xf32>
    %10 = arith.maximumf %8, %9 : vector<256x32xf32>
    %11 = arith.truncf %10 : vector<256x32xf32> to vector<256x32xbf16>
    %c0_8 = arith.constant 0 : index
    %c0_9 = arith.constant 0 : index
    %12 = vector.load %arg5[%c0_8, %c0_9] : memref<256x32xbf16, #tpu.memory_space<vmem>>, vector<256x32xbf16>
    tpu.vector_store %arg5[%c0_8, %c0_9], %11 {strides = array<i32>} : memref<256x32xbf16, #tpu.memory_space<vmem>>, vector<256x32xbf16>,
    return
  }
  func.func @transform_0(%arg0: i32) -> (i32, i32) {
    %c0_i32 = arith.constant 0 : i32
    %c0_i32_0 = arith.constant 0 : i32
    return %arg0, %c0_i32 : i32, i32
  }
  func.func @transform_1(%arg0: i32) -> (i32, i32) {
    %c0_i32 = arith.constant 0 : i32
    %c0_i32_0 = arith.constant 0 : i32
    %c0_i32_1 = arith.constant 0 : i32
    return %c0_i32, %c0_i32_0 : i32, i32
  }
  func.func @transform_2(%arg0: i32) -> (i32, i32) {
    %c0_i32 = arith.constant 0 : i32
    %c0_i32_0 = arith.constant 0 : i32
    %c0_i32_1 = arith.constant 0 : i32
    return %c0_i32, %c0_i32_0 : i32, i32
  }
  func.func @transform_3(%arg0: i32) -> (i32, i32) {
    %c0_i32 = arith.constant 0 : i32
    %c0_i32_0 = arith.constant 0 : i32
    return %arg0, %c0_i32 : i32, i32
  }
  func.func @transform_4(%arg0: i32) -> (i32, i32) {
    %c0_i32 = arith.constant 0 : i32
    %c0_i32_0 = arith.constant 0 : i32
    return %arg0, %c0_i32 : i32, i32
  }
}

module attributes {stable_mosaic.version = 11 : i64} {
  func.func @_mm_bias_kernel(%arg0: i32, %arg1: memref<128x288xbf16, #tpu.memory_space<vmem>>, %arg2: memref<288x48xbf16, #tpu.memory_space<vmem>>, %arg3: memref<1x48xf32, #tpu.memory_space<vmem>>, %arg4: memref<128x48xbf16, #tpu.memory_space<vmem>>) attributes {dimension_semantics = [#tpu.dimension_semantics<parallel>], iteration_bounds = array<i64: 1>, scalar_prefetch = 0 : i64, scratch_operands = 0 : i64, tpu.core_type = #tpu.core_type<tc>, window_params = [{transform_indices = @transform_0, window_bounds = array<i64: 128, 288>}, {pipeline_mode = #tpu.pipeline_mode<synchronous>, transform_indices = @transform_1, window_bounds = array<i64: 288, 48>}, {pipeline_mode = #tpu.pipeline_mode<synchronous>, transform_indices = @transform_2, window_bounds = array<i64: 1, 48>}, {transform_indices = @transform_3, window_bounds = array<i64: 128, 48>}]} {
    %c0 = arith.constant 0 : index
    %c0_0 = arith.constant 0 : index
    %0 = vector.load %arg1[%c0, %c0_0] : memref<128x288xbf16, #tpu.memory_space<vmem>>, vector<128x288xbf16>
    %c0_1 = arith.constant 0 : index
    %c0_2 = arith.constant 0 : index
    %1 = vector.load %arg2[%c0_1, %c0_2] : memref<288x48xbf16, #tpu.memory_space<vmem>>, vector<288x48xbf16>
    %cst = arith.constant dense<0.000000e+00> : vector<128x48xf32>
    %2 = tpu.matmul %0, %1, %cst {dimension_numbers = #tpu.dot_dimension_numbers<[1], [0], [0], [1], [0, 0, 1, 1], [], []>} : vector<128x288xbf16>, vector<288x48xbf16>, vector<128x48xf32> -> vector<128x48xf32>
    %c0_3 = arith.constant 0 : index
    %c0_4 = arith.constant 0 : index
    %3 = vector.load %arg3[%c0_3, %c0_4] : memref<1x48xf32, #tpu.memory_space<vmem>>, vector<1x48xf32>
    %4 = vector.broadcast %3 : vector<1x48xf32> to vector<128x48xf32>
    %5 = arith.addf %2, %4 : vector<128x48xf32>
    %cst_5 = arith.constant 0.000000e+00 : f32
    %6 = vector.broadcast %cst_5 : f32 to vector<128x48xf32>
    %7 = arith.maximumf %5, %6 : vector<128x48xf32>
    %8 = arith.truncf %7 : vector<128x48xf32> to vector<128x48xbf16>
    %c0_6 = arith.constant 0 : index
    %c0_7 = arith.constant 0 : index
    %9 = vector.load %arg4[%c0_6, %c0_7] : memref<128x48xbf16, #tpu.memory_space<vmem>>, vector<128x48xbf16>
    tpu.vector_store %arg4[%c0_6, %c0_7], %8 {strides = array<i32>} : memref<128x48xbf16, #tpu.memory_space<vmem>>, vector<128x48xbf16>,
    return
  }
  func.func @transform_0(%arg0: i32) -> (i32, i32) {
    %c0_i32 = arith.constant 0 : i32
    %c0_i32_0 = arith.constant 0 : i32
    return %arg0, %c0_i32 : i32, i32
  }
  func.func @transform_1(%arg0: i32) -> (i32, i32) {
    %c0_i32 = arith.constant 0 : i32
    %c0_i32_0 = arith.constant 0 : i32
    %c0_i32_1 = arith.constant 0 : i32
    return %c0_i32, %c0_i32_0 : i32, i32
  }
  func.func @transform_2(%arg0: i32) -> (i32, i32) {
    %c0_i32 = arith.constant 0 : i32
    %c0_i32_0 = arith.constant 0 : i32
    %c0_i32_1 = arith.constant 0 : i32
    return %c0_i32, %c0_i32_0 : i32, i32
  }
  func.func @transform_3(%arg0: i32) -> (i32, i32) {
    %c0_i32 = arith.constant 0 : i32
    %c0_i32_0 = arith.constant 0 : i32
    return %arg0, %c0_i32 : i32, i32
  }
}

module attributes {stable_mosaic.version = 11 : i64} {
  func.func @_mm_bias_res_kernel(%arg0: i32, %arg1: memref<128x432xbf16, #tpu.memory_space<vmem>>, %arg2: memref<432x48xbf16, #tpu.memory_space<vmem>>, %arg3: memref<1x48xf32, #tpu.memory_space<vmem>>, %arg4: memref<128x48xbf16, #tpu.memory_space<vmem>>, %arg5: memref<128x48xbf16, #tpu.memory_space<vmem>>) attributes {dimension_semantics = [#tpu.dimension_semantics<parallel>], iteration_bounds = array<i64: 1>, scalar_prefetch = 0 : i64, scratch_operands = 0 : i64, tpu.core_type = #tpu.core_type<tc>, window_params = [{transform_indices = @transform_0, window_bounds = array<i64: 128, 432>}, {pipeline_mode = #tpu.pipeline_mode<synchronous>, transform_indices = @transform_1, window_bounds = array<i64: 432, 48>}, {pipeline_mode = #tpu.pipeline_mode<synchronous>, transform_indices = @transform_2, window_bounds = array<i64: 1, 48>}, {transform_indices = @transform_3, window_bounds = array<i64: 128, 48>}, {transform_indices = @transform_4, window_bounds = array<i64: 128, 48>}]} {
    %c0 = arith.constant 0 : index
    %c0_0 = arith.constant 0 : index
    %0 = vector.load %arg1[%c0, %c0_0] : memref<128x432xbf16, #tpu.memory_space<vmem>>, vector<128x432xbf16>
    %c0_1 = arith.constant 0 : index
    %c0_2 = arith.constant 0 : index
    %1 = vector.load %arg2[%c0_1, %c0_2] : memref<432x48xbf16, #tpu.memory_space<vmem>>, vector<432x48xbf16>
    %cst = arith.constant dense<0.000000e+00> : vector<128x48xf32>
    %2 = tpu.matmul %0, %1, %cst {dimension_numbers = #tpu.dot_dimension_numbers<[1], [0], [0], [1], [0, 0, 1, 1], [], []>} : vector<128x432xbf16>, vector<432x48xbf16>, vector<128x48xf32> -> vector<128x48xf32>
    %c0_3 = arith.constant 0 : index
    %c0_4 = arith.constant 0 : index
    %3 = vector.load %arg3[%c0_3, %c0_4] : memref<1x48xf32, #tpu.memory_space<vmem>>, vector<1x48xf32>
    %4 = vector.broadcast %3 : vector<1x48xf32> to vector<128x48xf32>
    %5 = arith.addf %2, %4 : vector<128x48xf32>
    %c0_5 = arith.constant 0 : index
    %c0_6 = arith.constant 0 : index
    %6 = vector.load %arg4[%c0_5, %c0_6] : memref<128x48xbf16, #tpu.memory_space<vmem>>, vector<128x48xbf16>
    %7 = arith.extf %6 : vector<128x48xbf16> to vector<128x48xf32>
    %8 = arith.addf %5, %7 : vector<128x48xf32>
    %cst_7 = arith.constant 0.000000e+00 : f32
    %9 = vector.broadcast %cst_7 : f32 to vector<128x48xf32>
    %10 = arith.maximumf %8, %9 : vector<128x48xf32>
    %11 = arith.truncf %10 : vector<128x48xf32> to vector<128x48xbf16>
    %c0_8 = arith.constant 0 : index
    %c0_9 = arith.constant 0 : index
    %12 = vector.load %arg5[%c0_8, %c0_9] : memref<128x48xbf16, #tpu.memory_space<vmem>>, vector<128x48xbf16>
    tpu.vector_store %arg5[%c0_8, %c0_9], %11 {strides = array<i32>} : memref<128x48xbf16, #tpu.memory_space<vmem>>, vector<128x48xbf16>,
    return
  }
  func.func @transform_0(%arg0: i32) -> (i32, i32) {
    %c0_i32 = arith.constant 0 : i32
    %c0_i32_0 = arith.constant 0 : i32
    return %arg0, %c0_i32 : i32, i32
  }
  func.func @transform_1(%arg0: i32) -> (i32, i32) {
    %c0_i32 = arith.constant 0 : i32
    %c0_i32_0 = arith.constant 0 : i32
    %c0_i32_1 = arith.constant 0 : i32
    return %c0_i32, %c0_i32_0 : i32, i32
  }
  func.func @transform_2(%arg0: i32) -> (i32, i32) {
    %c0_i32 = arith.constant 0 : i32
    %c0_i32_0 = arith.constant 0 : i32
    %c0_i32_1 = arith.constant 0 : i32
    return %c0_i32, %c0_i32_0 : i32, i32
  }
  func.func @transform_3(%arg0: i32) -> (i32, i32) {
    %c0_i32 = arith.constant 0 : i32
    %c0_i32_0 = arith.constant 0 : i32
    return %arg0, %c0_i32 : i32, i32
  }
  func.func @transform_4(%arg0: i32) -> (i32, i32) {
    %c0_i32 = arith.constant 0 : i32
    %c0_i32_0 = arith.constant 0 : i32
    return %arg0, %c0_i32 : i32, i32
  }
}

module attributes {stable_mosaic.version = 11 : i64} {
  func.func @_mm_bias_kernel(%arg0: i32, %arg1: memref<128x32xbf16, #tpu.memory_space<vmem>>, %arg2: memref<32x48xbf16, #tpu.memory_space<vmem>>, %arg3: memref<1x48xf32, #tpu.memory_space<vmem>>, %arg4: memref<128x48xbf16, #tpu.memory_space<vmem>>) attributes {dimension_semantics = [#tpu.dimension_semantics<parallel>], iteration_bounds = array<i64: 1>, scalar_prefetch = 0 : i64, scratch_operands = 0 : i64, tpu.core_type = #tpu.core_type<tc>, window_params = [{transform_indices = @transform_0, window_bounds = array<i64: 128, 32>}, {pipeline_mode = #tpu.pipeline_mode<synchronous>, transform_indices = @transform_1, window_bounds = array<i64: 32, 48>}, {pipeline_mode = #tpu.pipeline_mode<synchronous>, transform_indices = @transform_2, window_bounds = array<i64: 1, 48>}, {transform_indices = @transform_3, window_bounds = array<i64: 128, 48>}]} {
    %c0 = arith.constant 0 : index
    %c0_0 = arith.constant 0 : index
    %0 = vector.load %arg1[%c0, %c0_0] : memref<128x32xbf16, #tpu.memory_space<vmem>>, vector<128x32xbf16>
    %c0_1 = arith.constant 0 : index
    %c0_2 = arith.constant 0 : index
    %1 = vector.load %arg2[%c0_1, %c0_2] : memref<32x48xbf16, #tpu.memory_space<vmem>>, vector<32x48xbf16>
    %cst = arith.constant dense<0.000000e+00> : vector<128x48xf32>
    %2 = tpu.matmul %0, %1, %cst {dimension_numbers = #tpu.dot_dimension_numbers<[1], [0], [0], [1], [0, 0, 1, 1], [], []>} : vector<128x32xbf16>, vector<32x48xbf16>, vector<128x48xf32> -> vector<128x48xf32>
    %c0_3 = arith.constant 0 : index
    %c0_4 = arith.constant 0 : index
    %3 = vector.load %arg3[%c0_3, %c0_4] : memref<1x48xf32, #tpu.memory_space<vmem>>, vector<1x48xf32>
    %4 = vector.broadcast %3 : vector<1x48xf32> to vector<128x48xf32>
    %5 = arith.addf %2, %4 : vector<128x48xf32>
    %6 = arith.truncf %5 : vector<128x48xf32> to vector<128x48xbf16>
    %c0_5 = arith.constant 0 : index
    %c0_6 = arith.constant 0 : index
    %7 = vector.load %arg4[%c0_5, %c0_6] : memref<128x48xbf16, #tpu.memory_space<vmem>>, vector<128x48xbf16>
    tpu.vector_store %arg4[%c0_5, %c0_6], %6 {strides = array<i32>} : memref<128x48xbf16, #tpu.memory_space<vmem>>, vector<128x48xbf16>,
    return
  }
  func.func @transform_0(%arg0: i32) -> (i32, i32) {
    %c0_i32 = arith.constant 0 : i32
    %c0_i32_0 = arith.constant 0 : i32
    return %arg0, %c0_i32 : i32, i32
  }
  func.func @transform_1(%arg0: i32) -> (i32, i32) {
    %c0_i32 = arith.constant 0 : i32
    %c0_i32_0 = arith.constant 0 : i32
    %c0_i32_1 = arith.constant 0 : i32
    return %c0_i32, %c0_i32_0 : i32, i32
  }
  func.func @transform_2(%arg0: i32) -> (i32, i32) {
    %c0_i32 = arith.constant 0 : i32
    %c0_i32_0 = arith.constant 0 : i32
    %c0_i32_1 = arith.constant 0 : i32
    return %c0_i32, %c0_i32_0 : i32, i32
  }
  func.func @transform_3(%arg0: i32) -> (i32, i32) {
    %c0_i32 = arith.constant 0 : i32
    %c0_i32_0 = arith.constant 0 : i32
    return %arg0, %c0_i32 : i32, i32
  }
}

module attributes {stable_mosaic.version = 11 : i64} {
  func.func @_mm_bias_kernel(%arg0: i32, %arg1: memref<32x432xbf16, #tpu.memory_space<vmem>>, %arg2: memref<432x64xbf16, #tpu.memory_space<vmem>>, %arg3: memref<1x64xf32, #tpu.memory_space<vmem>>, %arg4: memref<32x64xbf16, #tpu.memory_space<vmem>>) attributes {dimension_semantics = [#tpu.dimension_semantics<parallel>], iteration_bounds = array<i64: 1>, scalar_prefetch = 0 : i64, scratch_operands = 0 : i64, tpu.core_type = #tpu.core_type<tc>, window_params = [{transform_indices = @transform_0, window_bounds = array<i64: 32, 432>}, {pipeline_mode = #tpu.pipeline_mode<synchronous>, transform_indices = @transform_1, window_bounds = array<i64: 432, 64>}, {pipeline_mode = #tpu.pipeline_mode<synchronous>, transform_indices = @transform_2, window_bounds = array<i64: 1, 64>}, {transform_indices = @transform_3, window_bounds = array<i64: 32, 64>}]} {
    %c0 = arith.constant 0 : index
    %c0_0 = arith.constant 0 : index
    %0 = vector.load %arg1[%c0, %c0_0] : memref<32x432xbf16, #tpu.memory_space<vmem>>, vector<32x432xbf16>
    %c0_1 = arith.constant 0 : index
    %c0_2 = arith.constant 0 : index
    %1 = vector.load %arg2[%c0_1, %c0_2] : memref<432x64xbf16, #tpu.memory_space<vmem>>, vector<432x64xbf16>
    %cst = arith.constant dense<0.000000e+00> : vector<32x64xf32>
    %2 = tpu.matmul %0, %1, %cst {dimension_numbers = #tpu.dot_dimension_numbers<[1], [0], [0], [1], [0, 0, 1, 1], [], []>} : vector<32x432xbf16>, vector<432x64xbf16>, vector<32x64xf32> -> vector<32x64xf32>
    %c0_3 = arith.constant 0 : index
    %c0_4 = arith.constant 0 : index
    %3 = vector.load %arg3[%c0_3, %c0_4] : memref<1x64xf32, #tpu.memory_space<vmem>>, vector<1x64xf32>
    %4 = vector.broadcast %3 : vector<1x64xf32> to vector<32x64xf32>
    %5 = arith.addf %2, %4 : vector<32x64xf32>
    %cst_5 = arith.constant 0.000000e+00 : f32
    %6 = vector.broadcast %cst_5 : f32 to vector<32x64xf32>
    %7 = arith.maximumf %5, %6 : vector<32x64xf32>
    %8 = arith.truncf %7 : vector<32x64xf32> to vector<32x64xbf16>
    %c0_6 = arith.constant 0 : index
    %c0_7 = arith.constant 0 : index
    %9 = vector.load %arg4[%c0_6, %c0_7] : memref<32x64xbf16, #tpu.memory_space<vmem>>, vector<32x64xbf16>
    tpu.vector_store %arg4[%c0_6, %c0_7], %8 {strides = array<i32>} : memref<32x64xbf16, #tpu.memory_space<vmem>>, vector<32x64xbf16>,
    return
  }
  func.func @transform_0(%arg0: i32) -> (i32, i32) {
    %c0_i32 = arith.constant 0 : i32
    %c0_i32_0 = arith.constant 0 : i32
    return %arg0, %c0_i32 : i32, i32
  }
  func.func @transform_1(%arg0: i32) -> (i32, i32) {
    %c0_i32 = arith.constant 0 : i32
    %c0_i32_0 = arith.constant 0 : i32
    %c0_i32_1 = arith.constant 0 : i32
    return %c0_i32, %c0_i32_0 : i32, i32
  }
  func.func @transform_2(%arg0: i32) -> (i32, i32) {
    %c0_i32 = arith.constant 0 : i32
    %c0_i32_0 = arith.constant 0 : i32
    %c0_i32_1 = arith.constant 0 : i32
    return %c0_i32, %c0_i32_0 : i32, i32
  }
  func.func @transform_3(%arg0: i32) -> (i32, i32) {
    %c0_i32 = arith.constant 0 : i32
    %c0_i32_0 = arith.constant 0 : i32
    return %arg0, %c0_i32 : i32, i32
  }
}

module attributes {stable_mosaic.version = 11 : i64} {
  func.func @_mm_bias_res_kernel(%arg0: i32, %arg1: memref<32x576xbf16, #tpu.memory_space<vmem>>, %arg2: memref<576x64xbf16, #tpu.memory_space<vmem>>, %arg3: memref<1x64xf32, #tpu.memory_space<vmem>>, %arg4: memref<32x64xbf16, #tpu.memory_space<vmem>>, %arg5: memref<32x64xbf16, #tpu.memory_space<vmem>>) attributes {dimension_semantics = [#tpu.dimension_semantics<parallel>], iteration_bounds = array<i64: 1>, scalar_prefetch = 0 : i64, scratch_operands = 0 : i64, tpu.core_type = #tpu.core_type<tc>, window_params = [{transform_indices = @transform_0, window_bounds = array<i64: 32, 576>}, {pipeline_mode = #tpu.pipeline_mode<synchronous>, transform_indices = @transform_1, window_bounds = array<i64: 576, 64>}, {pipeline_mode = #tpu.pipeline_mode<synchronous>, transform_indices = @transform_2, window_bounds = array<i64: 1, 64>}, {transform_indices = @transform_3, window_bounds = array<i64: 32, 64>}, {transform_indices = @transform_4, window_bounds = array<i64: 32, 64>}]} {
    %c0 = arith.constant 0 : index
    %c0_0 = arith.constant 0 : index
    %0 = vector.load %arg1[%c0, %c0_0] : memref<32x576xbf16, #tpu.memory_space<vmem>>, vector<32x576xbf16>
    %c0_1 = arith.constant 0 : index
    %c0_2 = arith.constant 0 : index
    %1 = vector.load %arg2[%c0_1, %c0_2] : memref<576x64xbf16, #tpu.memory_space<vmem>>, vector<576x64xbf16>
    %cst = arith.constant dense<0.000000e+00> : vector<32x64xf32>
    %2 = tpu.matmul %0, %1, %cst {dimension_numbers = #tpu.dot_dimension_numbers<[1], [0], [0], [1], [0, 0, 1, 1], [], []>} : vector<32x576xbf16>, vector<576x64xbf16>, vector<32x64xf32> -> vector<32x64xf32>
    %c0_3 = arith.constant 0 : index
    %c0_4 = arith.constant 0 : index
    %3 = vector.load %arg3[%c0_3, %c0_4] : memref<1x64xf32, #tpu.memory_space<vmem>>, vector<1x64xf32>
    %4 = vector.broadcast %3 : vector<1x64xf32> to vector<32x64xf32>
    %5 = arith.addf %2, %4 : vector<32x64xf32>
    %c0_5 = arith.constant 0 : index
    %c0_6 = arith.constant 0 : index
    %6 = vector.load %arg4[%c0_5, %c0_6] : memref<32x64xbf16, #tpu.memory_space<vmem>>, vector<32x64xbf16>
    %7 = arith.extf %6 : vector<32x64xbf16> to vector<32x64xf32>
    %8 = arith.addf %5, %7 : vector<32x64xf32>
    %cst_7 = arith.constant 0.000000e+00 : f32
    %9 = vector.broadcast %cst_7 : f32 to vector<32x64xf32>
    %10 = arith.maximumf %8, %9 : vector<32x64xf32>
    %11 = arith.truncf %10 : vector<32x64xf32> to vector<32x64xbf16>
    %c0_8 = arith.constant 0 : index
    %c0_9 = arith.constant 0 : index
    %12 = vector.load %arg5[%c0_8, %c0_9] : memref<32x64xbf16, #tpu.memory_space<vmem>>, vector<32x64xbf16>
    tpu.vector_store %arg5[%c0_8, %c0_9], %11 {strides = array<i32>} : memref<32x64xbf16, #tpu.memory_space<vmem>>, vector<32x64xbf16>,
    return
  }
  func.func @transform_0(%arg0: i32) -> (i32, i32) {
    %c0_i32 = arith.constant 0 : i32
    %c0_i32_0 = arith.constant 0 : i32
    return %arg0, %c0_i32 : i32, i32
  }
  func.func @transform_1(%arg0: i32) -> (i32, i32) {
    %c0_i32 = arith.constant 0 : i32
    %c0_i32_0 = arith.constant 0 : i32
    %c0_i32_1 = arith.constant 0 : i32
    return %c0_i32, %c0_i32_0 : i32, i32
  }
  func.func @transform_2(%arg0: i32) -> (i32, i32) {
    %c0_i32 = arith.constant 0 : i32
    %c0_i32_0 = arith.constant 0 : i32
    %c0_i32_1 = arith.constant 0 : i32
    return %c0_i32, %c0_i32_0 : i32, i32
  }
  func.func @transform_3(%arg0: i32) -> (i32, i32) {
    %c0_i32 = arith.constant 0 : i32
    %c0_i32_0 = arith.constant 0 : i32
    return %arg0, %c0_i32 : i32, i32
  }
  func.func @transform_4(%arg0: i32) -> (i32, i32) {
    %c0_i32 = arith.constant 0 : i32
    %c0_i32_0 = arith.constant 0 : i32
    return %arg0, %c0_i32 : i32, i32
  }
}

module attributes {stable_mosaic.version = 11 : i64} {
  func.func @_mm_bias_kernel(%arg0: i32, %arg1: memref<32x48xbf16, #tpu.memory_space<vmem>>, %arg2: memref<48x64xbf16, #tpu.memory_space<vmem>>, %arg3: memref<1x64xf32, #tpu.memory_space<vmem>>, %arg4: memref<32x64xbf16, #tpu.memory_space<vmem>>) attributes {dimension_semantics = [#tpu.dimension_semantics<parallel>], iteration_bounds = array<i64: 1>, scalar_prefetch = 0 : i64, scratch_operands = 0 : i64, tpu.core_type = #tpu.core_type<tc>, window_params = [{transform_indices = @transform_0, window_bounds = array<i64: 32, 48>}, {pipeline_mode = #tpu.pipeline_mode<synchronous>, transform_indices = @transform_1, window_bounds = array<i64: 48, 64>}, {pipeline_mode = #tpu.pipeline_mode<synchronous>, transform_indices = @transform_2, window_bounds = array<i64: 1, 64>}, {transform_indices = @transform_3, window_bounds = array<i64: 32, 64>}]} {
    %c0 = arith.constant 0 : index
    %c0_0 = arith.constant 0 : index
    %0 = vector.load %arg1[%c0, %c0_0] : memref<32x48xbf16, #tpu.memory_space<vmem>>, vector<32x48xbf16>
    %c0_1 = arith.constant 0 : index
    %c0_2 = arith.constant 0 : index
    %1 = vector.load %arg2[%c0_1, %c0_2] : memref<48x64xbf16, #tpu.memory_space<vmem>>, vector<48x64xbf16>
    %cst = arith.constant dense<0.000000e+00> : vector<32x64xf32>
    %2 = tpu.matmul %0, %1, %cst {dimension_numbers = #tpu.dot_dimension_numbers<[1], [0], [0], [1], [0, 0, 1, 1], [], []>} : vector<32x48xbf16>, vector<48x64xbf16>, vector<32x64xf32> -> vector<32x64xf32>
    %c0_3 = arith.constant 0 : index
    %c0_4 = arith.constant 0 : index
    %3 = vector.load %arg3[%c0_3, %c0_4] : memref<1x64xf32, #tpu.memory_space<vmem>>, vector<1x64xf32>
    %4 = vector.broadcast %3 : vector<1x64xf32> to vector<32x64xf32>
    %5 = arith.addf %2, %4 : vector<32x64xf32>
    %6 = arith.truncf %5 : vector<32x64xf32> to vector<32x64xbf16>
    %c0_5 = arith.constant 0 : index
    %c0_6 = arith.constant 0 : index
    %7 = vector.load %arg4[%c0_5, %c0_6] : memref<32x64xbf16, #tpu.memory_space<vmem>>, vector<32x64xbf16>
    tpu.vector_store %arg4[%c0_5, %c0_6], %6 {strides = array<i32>} : memref<32x64xbf16, #tpu.memory_space<vmem>>, vector<32x64xbf16>,
    return
  }
  func.func @transform_0(%arg0: i32) -> (i32, i32) {
    %c0_i32 = arith.constant 0 : i32
    %c0_i32_0 = arith.constant 0 : i32
    return %arg0, %c0_i32 : i32, i32
  }
  func.func @transform_1(%arg0: i32) -> (i32, i32) {
    %c0_i32 = arith.constant 0 : i32
    %c0_i32_0 = arith.constant 0 : i32
    %c0_i32_1 = arith.constant 0 : i32
    return %c0_i32, %c0_i32_0 : i32, i32
  }
  func.func @transform_2(%arg0: i32) -> (i32, i32) {
    %c0_i32 = arith.constant 0 : i32
    %c0_i32_0 = arith.constant 0 : i32
    %c0_i32_1 = arith.constant 0 : i32
    return %c0_i32, %c0_i32_0 : i32, i32
  }
  func.func @transform_3(%arg0: i32) -> (i32, i32) {
    %c0_i32 = arith.constant 0 : i32
    %c0_i32_0 = arith.constant 0 : i32
    return %arg0, %c0_i32 : i32, i32
  }
}

module attributes {stable_mosaic.version = 11 : i64} {
  func.func @_mm_bias_kernel(%arg0: i32, %arg1: memref<32x576xbf16, #tpu.memory_space<vmem>>, %arg2: memref<576x96xbf16, #tpu.memory_space<vmem>>, %arg3: memref<1x96xf32, #tpu.memory_space<vmem>>, %arg4: memref<32x96xbf16, #tpu.memory_space<vmem>>) attributes {dimension_semantics = [#tpu.dimension_semantics<parallel>], iteration_bounds = array<i64: 1>, scalar_prefetch = 0 : i64, scratch_operands = 0 : i64, tpu.core_type = #tpu.core_type<tc>, window_params = [{transform_indices = @transform_0, window_bounds = array<i64: 32, 576>}, {pipeline_mode = #tpu.pipeline_mode<synchronous>, transform_indices = @transform_1, window_bounds = array<i64: 576, 96>}, {pipeline_mode = #tpu.pipeline_mode<synchronous>, transform_indices = @transform_2, window_bounds = array<i64: 1, 96>}, {transform_indices = @transform_3, window_bounds = array<i64: 32, 96>}]} {
    %c0 = arith.constant 0 : index
    %c0_0 = arith.constant 0 : index
    %0 = vector.load %arg1[%c0, %c0_0] : memref<32x576xbf16, #tpu.memory_space<vmem>>, vector<32x576xbf16>
    %c0_1 = arith.constant 0 : index
    %c0_2 = arith.constant 0 : index
    %1 = vector.load %arg2[%c0_1, %c0_2] : memref<576x96xbf16, #tpu.memory_space<vmem>>, vector<576x96xbf16>
    %cst = arith.constant dense<0.000000e+00> : vector<32x96xf32>
    %2 = tpu.matmul %0, %1, %cst {dimension_numbers = #tpu.dot_dimension_numbers<[1], [0], [0], [1], [0, 0, 1, 1], [], []>} : vector<32x576xbf16>, vector<576x96xbf16>, vector<32x96xf32> -> vector<32x96xf32>
    %c0_3 = arith.constant 0 : index
    %c0_4 = arith.constant 0 : index
    %3 = vector.load %arg3[%c0_3, %c0_4] : memref<1x96xf32, #tpu.memory_space<vmem>>, vector<1x96xf32>
    %4 = vector.broadcast %3 : vector<1x96xf32> to vector<32x96xf32>
    %5 = arith.addf %2, %4 : vector<32x96xf32>
    %cst_5 = arith.constant 0.000000e+00 : f32
    %6 = vector.broadcast %cst_5 : f32 to vector<32x96xf32>
    %7 = arith.maximumf %5, %6 : vector<32x96xf32>
    %8 = arith.truncf %7 : vector<32x96xf32> to vector<32x96xbf16>
    %c0_6 = arith.constant 0 : index
    %c0_7 = arith.constant 0 : index
    %9 = vector.load %arg4[%c0_6, %c0_7] : memref<32x96xbf16, #tpu.memory_space<vmem>>, vector<32x96xbf16>
    tpu.vector_store %arg4[%c0_6, %c0_7], %8 {strides = array<i32>} : memref<32x96xbf16, #tpu.memory_space<vmem>>, vector<32x96xbf16>,
    return
  }
  func.func @transform_0(%arg0: i32) -> (i32, i32) {
    %c0_i32 = arith.constant 0 : i32
    %c0_i32_0 = arith.constant 0 : i32
    return %arg0, %c0_i32 : i32, i32
  }
  func.func @transform_1(%arg0: i32) -> (i32, i32) {
    %c0_i32 = arith.constant 0 : i32
    %c0_i32_0 = arith.constant 0 : i32
    %c0_i32_1 = arith.constant 0 : i32
    return %c0_i32, %c0_i32_0 : i32, i32
  }
  func.func @transform_2(%arg0: i32) -> (i32, i32) {
    %c0_i32 = arith.constant 0 : i32
    %c0_i32_0 = arith.constant 0 : i32
    %c0_i32_1 = arith.constant 0 : i32
    return %c0_i32, %c0_i32_0 : i32, i32
  }
  func.func @transform_3(%arg0: i32) -> (i32, i32) {
    %c0_i32 = arith.constant 0 : i32
    %c0_i32_0 = arith.constant 0 : i32
    return %arg0, %c0_i32 : i32, i32
  }
}

module attributes {stable_mosaic.version = 11 : i64} {
  func.func @_mm_bias_res_kernel(%arg0: i32, %arg1: memref<32x864xbf16, #tpu.memory_space<vmem>>, %arg2: memref<864x96xbf16, #tpu.memory_space<vmem>>, %arg3: memref<1x96xf32, #tpu.memory_space<vmem>>, %arg4: memref<32x96xbf16, #tpu.memory_space<vmem>>, %arg5: memref<32x96xbf16, #tpu.memory_space<vmem>>) attributes {dimension_semantics = [#tpu.dimension_semantics<parallel>], iteration_bounds = array<i64: 1>, scalar_prefetch = 0 : i64, scratch_operands = 0 : i64, tpu.core_type = #tpu.core_type<tc>, window_params = [{transform_indices = @transform_0, window_bounds = array<i64: 32, 864>}, {pipeline_mode = #tpu.pipeline_mode<synchronous>, transform_indices = @transform_1, window_bounds = array<i64: 864, 96>}, {pipeline_mode = #tpu.pipeline_mode<synchronous>, transform_indices = @transform_2, window_bounds = array<i64: 1, 96>}, {transform_indices = @transform_3, window_bounds = array<i64: 32, 96>}, {transform_indices = @transform_4, window_bounds = array<i64: 32, 96>}]} {
    %c0 = arith.constant 0 : index
    %c0_0 = arith.constant 0 : index
    %0 = vector.load %arg1[%c0, %c0_0] : memref<32x864xbf16, #tpu.memory_space<vmem>>, vector<32x864xbf16>
    %c0_1 = arith.constant 0 : index
    %c0_2 = arith.constant 0 : index
    %1 = vector.load %arg2[%c0_1, %c0_2] : memref<864x96xbf16, #tpu.memory_space<vmem>>, vector<864x96xbf16>
    %cst = arith.constant dense<0.000000e+00> : vector<32x96xf32>
    %2 = tpu.matmul %0, %1, %cst {dimension_numbers = #tpu.dot_dimension_numbers<[1], [0], [0], [1], [0, 0, 1, 1], [], []>} : vector<32x864xbf16>, vector<864x96xbf16>, vector<32x96xf32> -> vector<32x96xf32>
    %c0_3 = arith.constant 0 : index
    %c0_4 = arith.constant 0 : index
    %3 = vector.load %arg3[%c0_3, %c0_4] : memref<1x96xf32, #tpu.memory_space<vmem>>, vector<1x96xf32>
    %4 = vector.broadcast %3 : vector<1x96xf32> to vector<32x96xf32>
    %5 = arith.addf %2, %4 : vector<32x96xf32>
    %c0_5 = arith.constant 0 : index
    %c0_6 = arith.constant 0 : index
    %6 = vector.load %arg4[%c0_5, %c0_6] : memref<32x96xbf16, #tpu.memory_space<vmem>>, vector<32x96xbf16>
    %7 = arith.extf %6 : vector<32x96xbf16> to vector<32x96xf32>
    %8 = arith.addf %5, %7 : vector<32x96xf32>
    %cst_7 = arith.constant 0.000000e+00 : f32
    %9 = vector.broadcast %cst_7 : f32 to vector<32x96xf32>
    %10 = arith.maximumf %8, %9 : vector<32x96xf32>
    %11 = arith.truncf %10 : vector<32x96xf32> to vector<32x96xbf16>
    %c0_8 = arith.constant 0 : index
    %c0_9 = arith.constant 0 : index
    %12 = vector.load %arg5[%c0_8, %c0_9] : memref<32x96xbf16, #tpu.memory_space<vmem>>, vector<32x96xbf16>
    tpu.vector_store %arg5[%c0_8, %c0_9], %11 {strides = array<i32>} : memref<32x96xbf16, #tpu.memory_space<vmem>>, vector<32x96xbf16>,
    return
  }
  func.func @transform_0(%arg0: i32) -> (i32, i32) {
    %c0_i32 = arith.constant 0 : i32
    %c0_i32_0 = arith.constant 0 : i32
    return %arg0, %c0_i32 : i32, i32
  }
  func.func @transform_1(%arg0: i32) -> (i32, i32) {
    %c0_i32 = arith.constant 0 : i32
    %c0_i32_0 = arith.constant 0 : i32
    %c0_i32_1 = arith.constant 0 : i32
    return %c0_i32, %c0_i32_0 : i32, i32
  }
  func.func @transform_2(%arg0: i32) -> (i32, i32) {
    %c0_i32 = arith.constant 0 : i32
    %c0_i32_0 = arith.constant 0 : i32
    %c0_i32_1 = arith.constant 0 : i32
    return %c0_i32, %c0_i32_0 : i32, i32
  }
  func.func @transform_3(%arg0: i32) -> (i32, i32) {
    %c0_i32 = arith.constant 0 : i32
    %c0_i32_0 = arith.constant 0 : i32
    return %arg0, %c0_i32 : i32, i32
  }
  func.func @transform_4(%arg0: i32) -> (i32, i32) {
    %c0_i32 = arith.constant 0 : i32
    %c0_i32_0 = arith.constant 0 : i32
    return %arg0, %c0_i32 : i32, i32
  }
}

module attributes {stable_mosaic.version = 11 : i64} {
  func.func @_mm_bias_kernel(%arg0: i32, %arg1: memref<32x64xbf16, #tpu.memory_space<vmem>>, %arg2: memref<64x96xbf16, #tpu.memory_space<vmem>>, %arg3: memref<1x96xf32, #tpu.memory_space<vmem>>, %arg4: memref<32x96xbf16, #tpu.memory_space<vmem>>) attributes {dimension_semantics = [#tpu.dimension_semantics<parallel>], iteration_bounds = array<i64: 1>, scalar_prefetch = 0 : i64, scratch_operands = 0 : i64, tpu.core_type = #tpu.core_type<tc>, window_params = [{transform_indices = @transform_0, window_bounds = array<i64: 32, 64>}, {pipeline_mode = #tpu.pipeline_mode<synchronous>, transform_indices = @transform_1, window_bounds = array<i64: 64, 96>}, {pipeline_mode = #tpu.pipeline_mode<synchronous>, transform_indices = @transform_2, window_bounds = array<i64: 1, 96>}, {transform_indices = @transform_3, window_bounds = array<i64: 32, 96>}]} {
    %c0 = arith.constant 0 : index
    %c0_0 = arith.constant 0 : index
    %0 = vector.load %arg1[%c0, %c0_0] : memref<32x64xbf16, #tpu.memory_space<vmem>>, vector<32x64xbf16>
    %c0_1 = arith.constant 0 : index
    %c0_2 = arith.constant 0 : index
    %1 = vector.load %arg2[%c0_1, %c0_2] : memref<64x96xbf16, #tpu.memory_space<vmem>>, vector<64x96xbf16>
    %cst = arith.constant dense<0.000000e+00> : vector<32x96xf32>
    %2 = tpu.matmul %0, %1, %cst {dimension_numbers = #tpu.dot_dimension_numbers<[1], [0], [0], [1], [0, 0, 1, 1], [], []>} : vector<32x64xbf16>, vector<64x96xbf16>, vector<32x96xf32> -> vector<32x96xf32>
    %c0_3 = arith.constant 0 : index
    %c0_4 = arith.constant 0 : index
    %3 = vector.load %arg3[%c0_3, %c0_4] : memref<1x96xf32, #tpu.memory_space<vmem>>, vector<1x96xf32>
    %4 = vector.broadcast %3 : vector<1x96xf32> to vector<32x96xf32>
    %5 = arith.addf %2, %4 : vector<32x96xf32>
    %6 = arith.truncf %5 : vector<32x96xf32> to vector<32x96xbf16>
    %c0_5 = arith.constant 0 : index
    %c0_6 = arith.constant 0 : index
    %7 = vector.load %arg4[%c0_5, %c0_6] : memref<32x96xbf16, #tpu.memory_space<vmem>>, vector<32x96xbf16>
    tpu.vector_store %arg4[%c0_5, %c0_6], %6 {strides = array<i32>} : memref<32x96xbf16, #tpu.memory_space<vmem>>, vector<32x96xbf16>,
    return
  }
  func.func @transform_0(%arg0: i32) -> (i32, i32) {
    %c0_i32 = arith.constant 0 : i32
    %c0_i32_0 = arith.constant 0 : i32
    return %arg0, %c0_i32 : i32, i32
  }
  func.func @transform_1(%arg0: i32) -> (i32, i32) {
    %c0_i32 = arith.constant 0 : i32
    %c0_i32_0 = arith.constant 0 : i32
    %c0_i32_1 = arith.constant 0 : i32
    return %c0_i32, %c0_i32_0 : i32, i32
  }
  func.func @transform_2(%arg0: i32) -> (i32, i32) {
    %c0_i32 = arith.constant 0 : i32
    %c0_i32_0 = arith.constant 0 : i32
    %c0_i32_1 = arith.constant 0 : i32
    return %c0_i32, %c0_i32_0 : i32, i32
  }
  func.func @transform_3(%arg0: i32) -> (i32, i32) {
    %c0_i32 = arith.constant 0 : i32
    %c0_i32_0 = arith.constant 0 : i32
    return %arg0, %c0_i32 : i32, i32
  }
}

module attributes {stable_mosaic.version = 11 : i64} {
  func.func @_mm_bias_kernel(%arg0: i32, %arg1: memref<32x96xbf16, #tpu.memory_space<vmem>>, %arg2: memref<96x32xbf16, #tpu.memory_space<vmem>>, %arg3: memref<1x32xf32, #tpu.memory_space<vmem>>, %arg4: memref<32x32xbf16, #tpu.memory_space<vmem>>) attributes {dimension_semantics = [#tpu.dimension_semantics<parallel>], iteration_bounds = array<i64: 1>, scalar_prefetch = 0 : i64, scratch_operands = 0 : i64, tpu.core_type = #tpu.core_type<tc>, window_params = [{transform_indices = @transform_0, window_bounds = array<i64: 32, 96>}, {pipeline_mode = #tpu.pipeline_mode<synchronous>, transform_indices = @transform_1, window_bounds = array<i64: 96, 32>}, {pipeline_mode = #tpu.pipeline_mode<synchronous>, transform_indices = @transform_2, window_bounds = array<i64: 1, 32>}, {transform_indices = @transform_3, window_bounds = array<i64: 32, 32>}]} {
    %c0 = arith.constant 0 : index
    %c0_0 = arith.constant 0 : index
    %0 = vector.load %arg1[%c0, %c0_0] : memref<32x96xbf16, #tpu.memory_space<vmem>>, vector<32x96xbf16>
    %c0_1 = arith.constant 0 : index
    %c0_2 = arith.constant 0 : index
    %1 = vector.load %arg2[%c0_1, %c0_2] : memref<96x32xbf16, #tpu.memory_space<vmem>>, vector<96x32xbf16>
    %cst = arith.constant dense<0.000000e+00> : vector<32x32xf32>
    %2 = tpu.matmul %0, %1, %cst {dimension_numbers = #tpu.dot_dimension_numbers<[1], [0], [0], [1], [0, 0, 1, 1], [], []>} : vector<32x96xbf16>, vector<96x32xbf16>, vector<32x32xf32> -> vector<32x32xf32>
    %c0_3 = arith.constant 0 : index
    %c0_4 = arith.constant 0 : index
    %3 = vector.load %arg3[%c0_3, %c0_4] : memref<1x32xf32, #tpu.memory_space<vmem>>, vector<1x32xf32>
    %4 = vector.broadcast %3 : vector<1x32xf32> to vector<32x32xf32>
    %5 = arith.addf %2, %4 : vector<32x32xf32>
    %cst_5 = arith.constant 0.000000e+00 : f32
    %6 = vector.broadcast %cst_5 : f32 to vector<32x32xf32>
    %7 = arith.maximumf %5, %6 : vector<32x32xf32>
    %8 = arith.truncf %7 : vector<32x32xf32> to vector<32x32xbf16>
    %c0_6 = arith.constant 0 : index
    %c0_7 = arith.constant 0 : index
    %9 = vector.load %arg4[%c0_6, %c0_7] : memref<32x32xbf16, #tpu.memory_space<vmem>>, vector<32x32xbf16>
    tpu.vector_store %arg4[%c0_6, %c0_7], %8 {strides = array<i32>} : memref<32x32xbf16, #tpu.memory_space<vmem>>, vector<32x32xbf16>,
    return
  }
  func.func @transform_0(%arg0: i32) -> (i32, i32) {
    %c0_i32 = arith.constant 0 : i32
    %c0_i32_0 = arith.constant 0 : i32
    return %arg0, %c0_i32 : i32, i32
  }
  func.func @transform_1(%arg0: i32) -> (i32, i32) {
    %c0_i32 = arith.constant 0 : i32
    %c0_i32_0 = arith.constant 0 : i32
    %c0_i32_1 = arith.constant 0 : i32
    return %c0_i32, %c0_i32_0 : i32, i32
  }
  func.func @transform_2(%arg0: i32) -> (i32, i32) {
    %c0_i32 = arith.constant 0 : i32
    %c0_i32_0 = arith.constant 0 : i32
    %c0_i32_1 = arith.constant 0 : i32
    return %c0_i32, %c0_i32_0 : i32, i32
  }
  func.func @transform_3(%arg0: i32) -> (i32, i32) {
    %c0_i32 = arith.constant 0 : i32
    %c0_i32_0 = arith.constant 0 : i32
    return %arg0, %c0_i32 : i32, i32
  }
}

module attributes {stable_mosaic.version = 11 : i64} {
  func.func @_mm_bias_kernel(%arg0: i32, %arg1: memref<32x288xbf16, #tpu.memory_space<vmem>>, %arg2: memref<288x32xbf16, #tpu.memory_space<vmem>>, %arg3: memref<1x32xf32, #tpu.memory_space<vmem>>, %arg4: memref<32x32xbf16, #tpu.memory_space<vmem>>) attributes {dimension_semantics = [#tpu.dimension_semantics<parallel>], iteration_bounds = array<i64: 1>, scalar_prefetch = 0 : i64, scratch_operands = 0 : i64, tpu.core_type = #tpu.core_type<tc>, window_params = [{transform_indices = @transform_0, window_bounds = array<i64: 32, 288>}, {pipeline_mode = #tpu.pipeline_mode<synchronous>, transform_indices = @transform_1, window_bounds = array<i64: 288, 32>}, {pipeline_mode = #tpu.pipeline_mode<synchronous>, transform_indices = @transform_2, window_bounds = array<i64: 1, 32>}, {transform_indices = @transform_3, window_bounds = array<i64: 32, 32>}]} {
    %c0 = arith.constant 0 : index
    %c0_0 = arith.constant 0 : index
    %0 = vector.load %arg1[%c0, %c0_0] : memref<32x288xbf16, #tpu.memory_space<vmem>>, vector<32x288xbf16>
    %c0_1 = arith.constant 0 : index
    %c0_2 = arith.constant 0 : index
    %1 = vector.load %arg2[%c0_1, %c0_2] : memref<288x32xbf16, #tpu.memory_space<vmem>>, vector<288x32xbf16>
    %cst = arith.constant dense<0.000000e+00> : vector<32x32xf32>
    %2 = tpu.matmul %0, %1, %cst {dimension_numbers = #tpu.dot_dimension_numbers<[1], [0], [0], [1], [0, 0, 1, 1], [], []>} : vector<32x288xbf16>, vector<288x32xbf16>, vector<32x32xf32> -> vector<32x32xf32>
    %c0_3 = arith.constant 0 : index
    %c0_4 = arith.constant 0 : index
    %3 = vector.load %arg3[%c0_3, %c0_4] : memref<1x32xf32, #tpu.memory_space<vmem>>, vector<1x32xf32>
    %4 = vector.broadcast %3 : vector<1x32xf32> to vector<32x32xf32>
    %5 = arith.addf %2, %4 : vector<32x32xf32>
    %cst_5 = arith.constant 0.000000e+00 : f32
    %6 = vector.broadcast %cst_5 : f32 to vector<32x32xf32>
    %7 = arith.maximumf %5, %6 : vector<32x32xf32>
    %8 = arith.truncf %7 : vector<32x32xf32> to vector<32x32xbf16>
    %c0_6 = arith.constant 0 : index
    %c0_7 = arith.constant 0 : index
    %9 = vector.load %arg4[%c0_6, %c0_7] : memref<32x32xbf16, #tpu.memory_space<vmem>>, vector<32x32xbf16>
    tpu.vector_store %arg4[%c0_6, %c0_7], %8 {strides = array<i32>} : memref<32x32xbf16, #tpu.memory_space<vmem>>, vector<32x32xbf16>,
    return
  }
  func.func @transform_0(%arg0: i32) -> (i32, i32) {
    %c0_i32 = arith.constant 0 : i32
    %c0_i32_0 = arith.constant 0 : i32
    return %arg0, %c0_i32 : i32, i32
  }
  func.func @transform_1(%arg0: i32) -> (i32, i32) {
    %c0_i32 = arith.constant 0 : i32
    %c0_i32_0 = arith.constant 0 : i32
    %c0_i32_1 = arith.constant 0 : i32
    return %c0_i32, %c0_i32_0 : i32, i32
  }
  func.func @transform_2(%arg0: i32) -> (i32, i32) {
    %c0_i32 = arith.constant 0 : i32
    %c0_i32_0 = arith.constant 0 : i32
    %c0_i32_1 = arith.constant 0 : i32
    return %c0_i32, %c0_i32_0 : i32, i32
  }
  func.func @transform_3(%arg0: i32) -> (i32, i32) {
    %c0_i32 = arith.constant 0 : i32
    %c0_i32_0 = arith.constant 0 : i32
    return %arg0, %c0_i32 : i32, i32
  }
}

module attributes {stable_mosaic.version = 11 : i64} {
  func.func @_mm_bias_kernel(%arg0: i32, %arg1: memref<8x96xbf16, #tpu.memory_space<vmem>>, %arg2: memref<96x32xbf16, #tpu.memory_space<vmem>>, %arg3: memref<1x32xf32, #tpu.memory_space<vmem>>, %arg4: memref<8x32xbf16, #tpu.memory_space<vmem>>) attributes {dimension_semantics = [#tpu.dimension_semantics<parallel>], iteration_bounds = array<i64: 1>, scalar_prefetch = 0 : i64, scratch_operands = 0 : i64, tpu.core_type = #tpu.core_type<tc>, window_params = [{transform_indices = @transform_0, window_bounds = array<i64: 8, 96>}, {pipeline_mode = #tpu.pipeline_mode<synchronous>, transform_indices = @transform_1, window_bounds = array<i64: 96, 32>}, {pipeline_mode = #tpu.pipeline_mode<synchronous>, transform_indices = @transform_2, window_bounds = array<i64: 1, 32>}, {transform_indices = @transform_3, window_bounds = array<i64: 8, 32>}]} {
    %c0 = arith.constant 0 : index
    %c0_0 = arith.constant 0 : index
    %0 = vector.load %arg1[%c0, %c0_0] : memref<8x96xbf16, #tpu.memory_space<vmem>>, vector<8x96xbf16>
    %c0_1 = arith.constant 0 : index
    %c0_2 = arith.constant 0 : index
    %1 = vector.load %arg2[%c0_1, %c0_2] : memref<96x32xbf16, #tpu.memory_space<vmem>>, vector<96x32xbf16>
    %cst = arith.constant dense<0.000000e+00> : vector<8x32xf32>
    %2 = tpu.matmul %0, %1, %cst {dimension_numbers = #tpu.dot_dimension_numbers<[1], [0], [0], [1], [0, 0, 1, 1], [], []>} : vector<8x96xbf16>, vector<96x32xbf16>, vector<8x32xf32> -> vector<8x32xf32>
    %c0_3 = arith.constant 0 : index
    %c0_4 = arith.constant 0 : index
    %3 = vector.load %arg3[%c0_3, %c0_4] : memref<1x32xf32, #tpu.memory_space<vmem>>, vector<1x32xf32>
    %4 = vector.broadcast %3 : vector<1x32xf32> to vector<8x32xf32>
    %5 = arith.addf %2, %4 : vector<8x32xf32>
    %cst_5 = arith.constant 0.000000e+00 : f32
    %6 = vector.broadcast %cst_5 : f32 to vector<8x32xf32>
    %7 = arith.maximumf %5, %6 : vector<8x32xf32>
    %8 = arith.truncf %7 : vector<8x32xf32> to vector<8x32xbf16>
    %c0_6 = arith.constant 0 : index
    %c0_7 = arith.constant 0 : index
    %9 = vector.load %arg4[%c0_6, %c0_7] : memref<8x32xbf16, #tpu.memory_space<vmem>>, vector<8x32xbf16>
    tpu.vector_store %arg4[%c0_6, %c0_7], %8 {strides = array<i32>} : memref<8x32xbf16, #tpu.memory_space<vmem>>, vector<8x32xbf16>,
    return
  }
  func.func @transform_0(%arg0: i32) -> (i32, i32) {
    %c0_i32 = arith.constant 0 : i32
    %c0_i32_0 = arith.constant 0 : i32
    return %arg0, %c0_i32 : i32, i32
  }
  func.func @transform_1(%arg0: i32) -> (i32, i32) {
    %c0_i32 = arith.constant 0 : i32
    %c0_i32_0 = arith.constant 0 : i32
    %c0_i32_1 = arith.constant 0 : i32
    return %c0_i32, %c0_i32_0 : i32, i32
  }
  func.func @transform_2(%arg0: i32) -> (i32, i32) {
    %c0_i32 = arith.constant 0 : i32
    %c0_i32_0 = arith.constant 0 : i32
    %c0_i32_1 = arith.constant 0 : i32
    return %c0_i32, %c0_i32_0 : i32, i32
  }
  func.func @transform_3(%arg0: i32) -> (i32, i32) {
    %c0_i32 = arith.constant 0 : i32
    %c0_i32_0 = arith.constant 0 : i32
    return %arg0, %c0_i32 : i32, i32
  }
}

module attributes {stable_mosaic.version = 11 : i64} {
  func.func @_mm_bias_kernel(%arg0: i32, %arg1: memref<32x160xbf16, #tpu.memory_space<vmem>>, %arg2: memref<160x32xbf16, #tpu.memory_space<vmem>>, %arg3: memref<1x32xf32, #tpu.memory_space<vmem>>, %arg4: memref<32x32xbf16, #tpu.memory_space<vmem>>) attributes {dimension_semantics = [#tpu.dimension_semantics<parallel>], iteration_bounds = array<i64: 1>, scalar_prefetch = 0 : i64, scratch_operands = 0 : i64, tpu.core_type = #tpu.core_type<tc>, window_params = [{transform_indices = @transform_0, window_bounds = array<i64: 32, 160>}, {pipeline_mode = #tpu.pipeline_mode<synchronous>, transform_indices = @transform_1, window_bounds = array<i64: 160, 32>}, {pipeline_mode = #tpu.pipeline_mode<synchronous>, transform_indices = @transform_2, window_bounds = array<i64: 1, 32>}, {transform_indices = @transform_3, window_bounds = array<i64: 32, 32>}]} {
    %c0 = arith.constant 0 : index
    %c0_0 = arith.constant 0 : index
    %0 = vector.load %arg1[%c0, %c0_0] : memref<32x160xbf16, #tpu.memory_space<vmem>>, vector<32x160xbf16>
    %c0_1 = arith.constant 0 : index
    %c0_2 = arith.constant 0 : index
    %1 = vector.load %arg2[%c0_1, %c0_2] : memref<160x32xbf16, #tpu.memory_space<vmem>>, vector<160x32xbf16>
    %cst = arith.constant dense<0.000000e+00> : vector<32x32xf32>
    %2 = tpu.matmul %0, %1, %cst {dimension_numbers = #tpu.dot_dimension_numbers<[1], [0], [0], [1], [0, 0, 1, 1], [], []>} : vector<32x160xbf16>, vector<160x32xbf16>, vector<32x32xf32> -> vector<32x32xf32>
    %c0_3 = arith.constant 0 : index
    %c0_4 = arith.constant 0 : index
    %3 = vector.load %arg3[%c0_3, %c0_4] : memref<1x32xf32, #tpu.memory_space<vmem>>, vector<1x32xf32>
    %4 = vector.broadcast %3 : vector<1x32xf32> to vector<32x32xf32>
    %5 = arith.addf %2, %4 : vector<32x32xf32>
    %cst_5 = arith.constant 0.000000e+00 : f32
    %6 = vector.broadcast %cst_5 : f32 to vector<32x32xf32>
    %7 = arith.maximumf %5, %6 : vector<32x32xf32>
    %8 = arith.truncf %7 : vector<32x32xf32> to vector<32x32xbf16>
    %c0_6 = arith.constant 0 : index
    %c0_7 = arith.constant 0 : index
    %9 = vector.load %arg4[%c0_6, %c0_7] : memref<32x32xbf16, #tpu.memory_space<vmem>>, vector<32x32xbf16>
    tpu.vector_store %arg4[%c0_6, %c0_7], %8 {strides = array<i32>} : memref<32x32xbf16, #tpu.memory_space<vmem>>, vector<32x32xbf16>,
    return
  }
  func.func @transform_0(%arg0: i32) -> (i32, i32) {
    %c0_i32 = arith.constant 0 : i32
    %c0_i32_0 = arith.constant 0 : i32
    return %arg0, %c0_i32 : i32, i32
  }
  func.func @transform_1(%arg0: i32) -> (i32, i32) {
    %c0_i32 = arith.constant 0 : i32
    %c0_i32_0 = arith.constant 0 : i32
    %c0_i32_1 = arith.constant 0 : i32
    return %c0_i32, %c0_i32_0 : i32, i32
  }
  func.func @transform_2(%arg0: i32) -> (i32, i32) {
    %c0_i32 = arith.constant 0 : i32
    %c0_i32_0 = arith.constant 0 : i32
    %c0_i32_1 = arith.constant 0 : i32
    return %c0_i32, %c0_i32_0 : i32, i32
  }
  func.func @transform_3(%arg0: i32) -> (i32, i32) {
    %c0_i32 = arith.constant 0 : i32
    %c0_i32_0 = arith.constant 0 : i32
    return %arg0, %c0_i32 : i32, i32
  }
}

module attributes {stable_mosaic.version = 11 : i64} {
  func.func @_mm_bias_kernel(%arg0: i32, %arg1: memref<256x32xbf16, #tpu.memory_space<vmem>>, %arg2: memref<32x16xbf16, #tpu.memory_space<vmem>>, %arg3: memref<1x16xf32, #tpu.memory_space<vmem>>, %arg4: memref<256x16xbf16, #tpu.memory_space<vmem>>) attributes {dimension_semantics = [#tpu.dimension_semantics<parallel>], iteration_bounds = array<i64: 2>, scalar_prefetch = 0 : i64, scratch_operands = 0 : i64, tpu.core_type = #tpu.core_type<tc>, window_params = [{transform_indices = @transform_0, window_bounds = array<i64: 256, 32>}, {pipeline_mode = #tpu.pipeline_mode<synchronous>, transform_indices = @transform_1, window_bounds = array<i64: 32, 16>}, {pipeline_mode = #tpu.pipeline_mode<synchronous>, transform_indices = @transform_2, window_bounds = array<i64: 1, 16>}, {transform_indices = @transform_3, window_bounds = array<i64: 256, 16>}]} {
    %c0 = arith.constant 0 : index
    %c0_0 = arith.constant 0 : index
    %0 = vector.load %arg1[%c0, %c0_0] : memref<256x32xbf16, #tpu.memory_space<vmem>>, vector<256x32xbf16>
    %c0_1 = arith.constant 0 : index
    %c0_2 = arith.constant 0 : index
    %1 = vector.load %arg2[%c0_1, %c0_2] : memref<32x16xbf16, #tpu.memory_space<vmem>>, vector<32x16xbf16>
    %cst = arith.constant dense<0.000000e+00> : vector<256x16xf32>
    %2 = tpu.matmul %0, %1, %cst {dimension_numbers = #tpu.dot_dimension_numbers<[1], [0], [0], [1], [0, 0, 1, 1], [], []>} : vector<256x32xbf16>, vector<32x16xbf16>, vector<256x16xf32> -> vector<256x16xf32>
    %c0_3 = arith.constant 0 : index
    %c0_4 = arith.constant 0 : index
    %3 = vector.load %arg3[%c0_3, %c0_4] : memref<1x16xf32, #tpu.memory_space<vmem>>, vector<1x16xf32>
    %4 = vector.broadcast %3 : vector<1x16xf32> to vector<256x16xf32>
    %5 = arith.addf %2, %4 : vector<256x16xf32>
    %cst_5 = arith.constant 0.000000e+00 : f32
    %6 = vector.broadcast %cst_5 : f32 to vector<256x16xf32>
    %7 = arith.maximumf %5, %6 : vector<256x16xf32>
    %8 = arith.truncf %7 : vector<256x16xf32> to vector<256x16xbf16>
    %c0_6 = arith.constant 0 : index
    %c0_7 = arith.constant 0 : index
    %9 = vector.load %arg4[%c0_6, %c0_7] : memref<256x16xbf16, #tpu.memory_space<vmem>>, vector<256x16xbf16>
    tpu.vector_store %arg4[%c0_6, %c0_7], %8 {strides = array<i32>} : memref<256x16xbf16, #tpu.memory_space<vmem>>, vector<256x16xbf16>,
    return
  }
  func.func @transform_0(%arg0: i32) -> (i32, i32) {
    %c0_i32 = arith.constant 0 : i32
    %c0_i32_0 = arith.constant 0 : i32
    return %arg0, %c0_i32 : i32, i32
  }
  func.func @transform_1(%arg0: i32) -> (i32, i32) {
    %c0_i32 = arith.constant 0 : i32
    %c0_i32_0 = arith.constant 0 : i32
    %c0_i32_1 = arith.constant 0 : i32
    return %c0_i32, %c0_i32_0 : i32, i32
  }
  func.func @transform_2(%arg0: i32) -> (i32, i32) {
    %c0_i32 = arith.constant 0 : i32
    %c0_i32_0 = arith.constant 0 : i32
    %c0_i32_1 = arith.constant 0 : i32
    return %c0_i32, %c0_i32_0 : i32, i32
  }
  func.func @transform_3(%arg0: i32) -> (i32, i32) {
    %c0_i32 = arith.constant 0 : i32
    %c0_i32_0 = arith.constant 0 : i32
    return %arg0, %c0_i32 : i32, i32
  }
}

module attributes {stable_mosaic.version = 11 : i64} {
  func.func @_mm_bias_kernel(%arg0: i32, %arg1: memref<256x432xbf16, #tpu.memory_space<vmem>>, %arg2: memref<432x32xbf16, #tpu.memory_space<vmem>>, %arg3: memref<1x32xf32, #tpu.memory_space<vmem>>, %arg4: memref<256x32xbf16, #tpu.memory_space<vmem>>) attributes {dimension_semantics = [#tpu.dimension_semantics<parallel>], iteration_bounds = array<i64: 2>, scalar_prefetch = 0 : i64, scratch_operands = 0 : i64, tpu.core_type = #tpu.core_type<tc>, window_params = [{transform_indices = @transform_0, window_bounds = array<i64: 256, 432>}, {pipeline_mode = #tpu.pipeline_mode<synchronous>, transform_indices = @transform_1, window_bounds = array<i64: 432, 32>}, {pipeline_mode = #tpu.pipeline_mode<synchronous>, transform_indices = @transform_2, window_bounds = array<i64: 1, 32>}, {transform_indices = @transform_3, window_bounds = array<i64: 256, 32>}]} {
    %c0 = arith.constant 0 : index
    %c0_0 = arith.constant 0 : index
    %0 = vector.load %arg1[%c0, %c0_0] : memref<256x432xbf16, #tpu.memory_space<vmem>>, vector<256x432xbf16>
    %c0_1 = arith.constant 0 : index
    %c0_2 = arith.constant 0 : index
    %1 = vector.load %arg2[%c0_1, %c0_2] : memref<432x32xbf16, #tpu.memory_space<vmem>>, vector<432x32xbf16>
    %cst = arith.constant dense<0.000000e+00> : vector<256x32xf32>
    %2 = tpu.matmul %0, %1, %cst {dimension_numbers = #tpu.dot_dimension_numbers<[1], [0], [0], [1], [0, 0, 1, 1], [], []>} : vector<256x432xbf16>, vector<432x32xbf16>, vector<256x32xf32> -> vector<256x32xf32>
    %c0_3 = arith.constant 0 : index
    %c0_4 = arith.constant 0 : index
    %3 = vector.load %arg3[%c0_3, %c0_4] : memref<1x32xf32, #tpu.memory_space<vmem>>, vector<1x32xf32>
    %4 = vector.broadcast %3 : vector<1x32xf32> to vector<256x32xf32>
    %5 = arith.addf %2, %4 : vector<256x32xf32>
    %cst_5 = arith.constant 0.000000e+00 : f32
    %6 = vector.broadcast %cst_5 : f32 to vector<256x32xf32>
    %7 = arith.maximumf %5, %6 : vector<256x32xf32>
    %8 = arith.truncf %7 : vector<256x32xf32> to vector<256x32xbf16>
    %c0_6 = arith.constant 0 : index
    %c0_7 = arith.constant 0 : index
    %9 = vector.load %arg4[%c0_6, %c0_7] : memref<256x32xbf16, #tpu.memory_space<vmem>>, vector<256x32xbf16>
    tpu.vector_store %arg4[%c0_6, %c0_7], %8 {strides = array<i32>} : memref<256x32xbf16, #tpu.memory_space<vmem>>, vector<256x32xbf16>,
    return
  }
  func.func @transform_0(%arg0: i32) -> (i32, i32) {
    %c0_i32 = arith.constant 0 : i32
    %c0_i32_0 = arith.constant 0 : i32
    return %arg0, %c0_i32 : i32, i32
  }
  func.func @transform_1(%arg0: i32) -> (i32, i32) {
    %c0_i32 = arith.constant 0 : i32
    %c0_i32_0 = arith.constant 0 : i32
    %c0_i32_1 = arith.constant 0 : i32
    return %c0_i32, %c0_i32_0 : i32, i32
  }
  func.func @transform_2(%arg0: i32) -> (i32, i32) {
    %c0_i32 = arith.constant 0 : i32
    %c0_i32_0 = arith.constant 0 : i32
    %c0_i32_1 = arith.constant 0 : i32
    return %c0_i32, %c0_i32_0 : i32, i32
  }
  func.func @transform_3(%arg0: i32) -> (i32, i32) {
    %c0_i32 = arith.constant 0 : i32
    %c0_i32_0 = arith.constant 0 : i32
    return %arg0, %c0_i32 : i32, i32
  }
}

module attributes {stable_mosaic.version = 11 : i64} {
  func.func @_mm_bias_kernel(%arg0: i32, %arg1: memref<256x288xbf16, #tpu.memory_space<vmem>>, %arg2: memref<288x32xbf16, #tpu.memory_space<vmem>>, %arg3: memref<1x32xf32, #tpu.memory_space<vmem>>, %arg4: memref<256x32xbf16, #tpu.memory_space<vmem>>) attributes {dimension_semantics = [#tpu.dimension_semantics<parallel>], iteration_bounds = array<i64: 2>, scalar_prefetch = 0 : i64, scratch_operands = 0 : i64, tpu.core_type = #tpu.core_type<tc>, window_params = [{transform_indices = @transform_0, window_bounds = array<i64: 256, 288>}, {pipeline_mode = #tpu.pipeline_mode<synchronous>, transform_indices = @transform_1, window_bounds = array<i64: 288, 32>}, {pipeline_mode = #tpu.pipeline_mode<synchronous>, transform_indices = @transform_2, window_bounds = array<i64: 1, 32>}, {transform_indices = @transform_3, window_bounds = array<i64: 256, 32>}]} {
    %c0 = arith.constant 0 : index
    %c0_0 = arith.constant 0 : index
    %0 = vector.load %arg1[%c0, %c0_0] : memref<256x288xbf16, #tpu.memory_space<vmem>>, vector<256x288xbf16>
    %c0_1 = arith.constant 0 : index
    %c0_2 = arith.constant 0 : index
    %1 = vector.load %arg2[%c0_1, %c0_2] : memref<288x32xbf16, #tpu.memory_space<vmem>>, vector<288x32xbf16>
    %cst = arith.constant dense<0.000000e+00> : vector<256x32xf32>
    %2 = tpu.matmul %0, %1, %cst {dimension_numbers = #tpu.dot_dimension_numbers<[1], [0], [0], [1], [0, 0, 1, 1], [], []>} : vector<256x288xbf16>, vector<288x32xbf16>, vector<256x32xf32> -> vector<256x32xf32>
    %c0_3 = arith.constant 0 : index
    %c0_4 = arith.constant 0 : index
    %3 = vector.load %arg3[%c0_3, %c0_4] : memref<1x32xf32, #tpu.memory_space<vmem>>, vector<1x32xf32>
    %4 = vector.broadcast %3 : vector<1x32xf32> to vector<256x32xf32>
    %5 = arith.addf %2, %4 : vector<256x32xf32>
    %cst_5 = arith.constant 0.000000e+00 : f32
    %6 = vector.broadcast %cst_5 : f32 to vector<256x32xf32>
    %7 = arith.maximumf %5, %6 : vector<256x32xf32>
    %8 = arith.truncf %7 : vector<256x32xf32> to vector<256x32xbf16>
    %c0_6 = arith.constant 0 : index
    %c0_7 = arith.constant 0 : index
    %9 = vector.load %arg4[%c0_6, %c0_7] : memref<256x32xbf16, #tpu.memory_space<vmem>>, vector<256x32xbf16>
    tpu.vector_store %arg4[%c0_6, %c0_7], %8 {strides = array<i32>} : memref<256x32xbf16, #tpu.memory_space<vmem>>, vector<256x32xbf16>,
    return
  }
  func.func @transform_0(%arg0: i32) -> (i32, i32) {
    %c0_i32 = arith.constant 0 : i32
    %c0_i32_0 = arith.constant 0 : i32
    return %arg0, %c0_i32 : i32, i32
  }
  func.func @transform_1(%arg0: i32) -> (i32, i32) {
    %c0_i32 = arith.constant 0 : i32
    %c0_i32_0 = arith.constant 0 : i32
    %c0_i32_1 = arith.constant 0 : i32
    return %c0_i32, %c0_i32_0 : i32, i32
  }
  func.func @transform_2(%arg0: i32) -> (i32, i32) {
    %c0_i32 = arith.constant 0 : i32
    %c0_i32_0 = arith.constant 0 : i32
    %c0_i32_1 = arith.constant 0 : i32
    return %c0_i32, %c0_i32_0 : i32, i32
  }
  func.func @transform_3(%arg0: i32) -> (i32, i32) {
    %c0_i32 = arith.constant 0 : i32
    %c0_i32_0 = arith.constant 0 : i32
    return %arg0, %c0_i32 : i32, i32
  }
}

module attributes {stable_mosaic.version = 11 : i64} {
  func.func @_mm_bias_kernel(%arg0: i32, %arg1: memref<256x32xbf16, #tpu.memory_space<vmem>>, %arg2: memref<32x15xbf16, #tpu.memory_space<vmem>>, %arg3: memref<1x15xf32, #tpu.memory_space<vmem>>, %arg4: memref<256x15xf32, #tpu.memory_space<vmem>>) attributes {dimension_semantics = [#tpu.dimension_semantics<parallel>], iteration_bounds = array<i64: 2>, scalar_prefetch = 0 : i64, scratch_operands = 0 : i64, tpu.core_type = #tpu.core_type<tc>, window_params = [{transform_indices = @transform_0, window_bounds = array<i64: 256, 32>}, {pipeline_mode = #tpu.pipeline_mode<synchronous>, transform_indices = @transform_1, window_bounds = array<i64: 32, 15>}, {pipeline_mode = #tpu.pipeline_mode<synchronous>, transform_indices = @transform_2, window_bounds = array<i64: 1, 15>}, {transform_indices = @transform_3, window_bounds = array<i64: 256, 15>}]} {
    %c0 = arith.constant 0 : index
    %c0_0 = arith.constant 0 : index
    %0 = vector.load %arg1[%c0, %c0_0] : memref<256x32xbf16, #tpu.memory_space<vmem>>, vector<256x32xbf16>
    %c0_1 = arith.constant 0 : index
    %c0_2 = arith.constant 0 : index
    %1 = vector.load %arg2[%c0_1, %c0_2] : memref<32x15xbf16, #tpu.memory_space<vmem>>, vector<32x15xbf16>
    %cst = arith.constant dense<0.000000e+00> : vector<256x15xf32>
    %2 = tpu.matmul %0, %1, %cst {dimension_numbers = #tpu.dot_dimension_numbers<[1], [0], [0], [1], [0, 0, 1, 1], [], []>} : vector<256x32xbf16>, vector<32x15xbf16>, vector<256x15xf32> -> vector<256x15xf32>
    %c0_3 = arith.constant 0 : index
    %c0_4 = arith.constant 0 : index
    %3 = vector.load %arg3[%c0_3, %c0_4] : memref<1x15xf32, #tpu.memory_space<vmem>>, vector<1x15xf32>
    %4 = vector.broadcast %3 : vector<1x15xf32> to vector<256x15xf32>
    %5 = arith.addf %2, %4 : vector<256x15xf32>
    %c0_5 = arith.constant 0 : index
    %c0_6 = arith.constant 0 : index
    %6 = vector.load %arg4[%c0_5, %c0_6] : memref<256x15xf32, #tpu.memory_space<vmem>>, vector<256x15xf32>
    tpu.vector_store %arg4[%c0_5, %c0_6], %5 {strides = array<i32>} : memref<256x15xf32, #tpu.memory_space<vmem>>, vector<256x15xf32>,
    return
  }
  func.func @transform_0(%arg0: i32) -> (i32, i32) {
    %c0_i32 = arith.constant 0 : i32
    %c0_i32_0 = arith.constant 0 : i32
    return %arg0, %c0_i32 : i32, i32
  }
  func.func @transform_1(%arg0: i32) -> (i32, i32) {
    %c0_i32 = arith.constant 0 : i32
    %c0_i32_0 = arith.constant 0 : i32
    %c0_i32_1 = arith.constant 0 : i32
    return %c0_i32, %c0_i32_0 : i32, i32
  }
  func.func @transform_2(%arg0: i32) -> (i32, i32) {
    %c0_i32 = arith.constant 0 : i32
    %c0_i32_0 = arith.constant 0 : i32
    %c0_i32_1 = arith.constant 0 : i32
    return %c0_i32, %c0_i32_0 : i32, i32
  }
  func.func @transform_3(%arg0: i32) -> (i32, i32) {
    %c0_i32 = arith.constant 0 : i32
    %c0_i32_0 = arith.constant 0 : i32
    return %arg0, %c0_i32 : i32, i32
  }
}

</mosaic_0001>

<bundles_post_ra>
// kernel: unipose_forward.23
= control target key start
LH: loop header
LB: loop body
LE: loop exit
PB: predicated region body
PF: predicated region fallthrough
CT: control target
= control target key end

     0   :  { %s1861_s12 = smov 0   ;;  %s2209_s0 = inlined_call_operand.vmem [shape: bf16[2048,147], index: 0, kind: input, shape index: {}]   ;;  %s2210_s1 = inlined_call_operand.vmem [shape: bf16[147,16], index: 1, kind: input, shape index: {}]   ;;  %s2211_s2 = inlined_call_operand.vmem [shape: f32[1,16], index: 2, kind: input, shape index: {}]   ;;  %s2212_s3 = inlined_call_operand.vmem [shape: bf16[2048,16], index: 3, kind: output, shape index: {}]  }
   0x1 LB: > { %s1447_s13 = sadd.s32 4294967295, %s1837_s12   ;;  %p1451_p0 = scmp.ge.s32.totalorder %s1837_s12, 1  ;;  %s1837_s12 = sphi %s1861_s12, %s13_s12  }
   0x2   : > { %p139_p1 = scmp.lt.s32.totalorder %s1837_s12, 5 }
   0x4   : > { %p140_p2 = pnand %p1451_p0, %p139_p1 }
   0x5   : > { %v1725_v0 = vld [vmem:[%s2210_s1] sm:$0xff] (!%p140_p2)   ;;  %v1839_v1 = vmov (!%p140_p2), 0   ;;  %v1726_v2 = vld [vmem:[%s2210_s1 + $0x8] sm:$0xff] (!%p140_p2)   ;;  %v1727_v3 = vld [vmem:[%s2210_s1 + $0x10] sm:$0xff] (!%p140_p2)   ;;  %s1452_s20 = sshll.u32 (!%p140_p2), %s1447_s13, 6  ;;  %vm613_vm0 = vcmask (!%p140_p2), 154624  }
   0x6   : > { %143 = sbr.rel (%p140_p2) target bundleno = 387 (0x183), region = 32  ;;  %717 = vmatprep.subr.bf16.mxu0 (!%p140_p2), %v1839_v1  ;;  %1695 = vmatprep.subr.bf16.mxu1 (!%p140_p2), %v1839_v1  ;;  %p165_p3 = scmp.lt.s32.totalorder (!%p140_p2), %s1452_s20, 255  ;;  %v1728_v4 = vld [vmem:[%s2210_s1 + $0x18] sm:$0xff] (!%p140_p2)   ;;  %v1729_v5 = vld [vmem:[%s2210_s1 + $0x20] sm:$0xff] (!%p140_p2)   ;;  %v1730_v8 = vld [vmem:[%s2210_s1 + $0x28] sm:$0xff] (!%p140_p2)   ;;  %vm710_vm1 = vcmask (!%p140_p2), 1040384  }
   0x7   : > { %718 = vmatpush1.bf16.msra.mxu0 (!%p140_p2), %v1725_v0  ;;  %1705 = vmatpush1.bf16.msra.mxu1 (!%p140_p2), %v1725_v0  ;;  %v1731_v9 = vld [vmem:[%s2210_s1 + $0x30] sm:$0xff] (!%p140_p2)   ;;  %v1732_v10 = vld [vmem:[%s2210_s1 + $0x38] sm:$0xff] (!%p140_p2)   ;;  %vm711_vm2 = vcmask (!%p140_p2), 1041408   ;;  %v1840_v11 = vmov (!%p140_p2), 65535   ;;  %v1733_v13 = vld [vmem:[%s2210_s1 + $0x40] sm:$0xff] (!%p140_p2)   ;;  %vm1326_vm3 = vcmask (!%p140_p2), 125952  }
   0x8   : > { %719 = vmatprep.subr.bf16.mxu0 (!%p140_p2), %v1839_v1  ;;  %1696 = vmatprep.subr.bf16.mxu1 (!%p140_p2), %v1839_v1  ;;  %v712_v12 = vsel (!%p140_p2), %vm710_vm1, 4294967295, %v1840_v11  ;;  %v1734_v14 = vld [vmem:[%s2210_s1 + $0x48] ss:$0 sps:$4 sm:$0x33] (!%p140_p2)  }
   0x9   : > { %v713_v15 = vsel (!%p140_p2), %vm711_vm2, %v712_v12, 0 }
   0xa   : > { %v715_v16 = vand.u32 (!%p140_p2), %v1734_v14, %v713_v15  ;;  %v2006_v15 = vld [vmem:[%s2211_s2] ss:$0 sm:$0xff] (!%p140_p2) }
   0xb   : > { %720 = vmatpush1.bf16.msra.mxu0 (!%p140_p2), %v1726_v2  ;;  %1706 = vmatpush1.bf16.msra.mxu1 (!%p140_p2), %v1726_v2 }
   0xc   : > { %721 = vmatprep.subr.bf16.mxu0 (!%p140_p2), %v1839_v1  ;;  %1697 = vmatprep.subr.bf16.mxu1 (!%p140_p2), %v1839_v1 }
   0xd   : > { %s2214_s20 = smov (!%p165_p3, %s1452_s20), 255 }
   0xe   : > { %s1630_s23 = sshll.u32 %s2214_s20, 3  ;;  %s1456_s15 = sshll.u32 %s2214_s20, 2 }
   0xf   : > { %722 = vmatpush1.bf16.msra.mxu0 %v1727_v3  ;;  %1707 = vmatpush1.bf16.msra.mxu1 %v1727_v3  ;;  %s1887_s26 = scalar_lea.vmem %s2209_s0, %s1630_s23  ;;  %s2016_s18 = scalar_lea.vmem %s2212_s3, %s1456_s15 }
  0x10   : > { %723 = vmatprep.subr.bf16.mxu0 %v1839_v1  ;;  %1698 = vmatprep.subr.bf16.mxu1 %v1839_v1  ;;  %v1737_v6 = vld [vmem:[%s1887_s26 + $0x4] ss:$8 sps:$4 sm:$0xff]   ;;  %v1735_v17 = vld [vmem:[%s1887_s26] ss:$8 sps:$4 sm:$0xff]   ;;  %v1741_v19 = vld [vmem:[%s1887_s26 + $0x14] ss:$8 sps:$4 sm:$0xff]  }
  0x11   : > { %v1740_v7 = vld [vmem:[%s1887_s26 + $0x104] ss:$8 sps:$4 sm:$0xff]   ;;  %1532 = vmatprep.mubr.msk.bf16.mxu0 %vm613_vm0, %v1737_v6  ;;  %v1738_v18 = vld [vmem:[%s1887_s26 + $0x100] ss:$8 sps:$4 sm:$0xff]   ;;  %v1743_v20 = vld [vmem:[%s1887_s26 + $0x114] ss:$8 sps:$4 sm:$0xff]  }
  0x12   : > { %1548 = vmatprep.mubr.msk.bf16.mxu1 %vm613_vm0, %v1740_v7  ;;  %v1745_v21 = vld [vmem:[%s1887_s26 + $0x10] ss:$8 sps:$4 sm:$0xff]   ;;  %v1747_v23 = vld [vmem:[%s1887_s26 + $0x24] ss:$8 sps:$4 sm:$0xff]   ;;  %v1751_v25 = vld [vmem:[%s1887_s26 + $0x20] ss:$8 sps:$4 sm:$0xff]  }
  0x13   : > { %724 = vmatpush1.bf16.msra.mxu0 %v1728_v4  ;;  %1708 = vmatpush1.bf16.msra.mxu1 %v1728_v4  ;;  %v1746_v22 = vld [vmem:[%s1887_s26 + $0x110] ss:$8 sps:$4 sm:$0xff]   ;;  %v1749_v24 = vld [vmem:[%s1887_s26 + $0x124] ss:$8 sps:$4 sm:$0xff]   ;;  %v1752_v26 = vld [vmem:[%s1887_s26 + $0x120] ss:$8 sps:$4 sm:$0xff]  }
  0x14   : > { %725 = vmatprep.subr.bf16.mxu0 %v1839_v1  ;;  %1699 = vmatprep.subr.bf16.mxu1 %v1839_v1  ;;  %v1753_v27 = vld [vmem:[%s1887_s26 + $0x34] ss:$8 sps:$4 sm:$0xff]   ;;  %v1757_v29 = vld [vmem:[%s1887_s26 + $0x30] ss:$8 sps:$4 sm:$0xff]   ;;  %v1759_v31 = vld [vmem:[%s1887_s26 + $0x44] ss:$8 sps:$4 sm:$0xff]  }
  0x15   : > { %v1755_v28 = vld [vmem:[%s1887_s26 + $0x134] ss:$8 sps:$4 sm:$0xff]   ;;  %v1758_v30 = vld [vmem:[%s1887_s26 + $0x130] ss:$8 sps:$4 sm:$0xff]   ;;  %v1761_v32 = vld [vmem:[%s1887_s26 + $0x144] ss:$8 sps:$4 sm:$0xff]  }
  0x16   : > { %v1763_v33 = vld [vmem:[%s1887_s26 + $0x40] ss:$8 sps:$4 sm:$0xff]   ;;  %v1765_v35 = vld [vmem:[%s1887_s26 + $0x54] ss:$8 sps:$4 sm:$0xff]   ;;  %v1769_v37 = vld [vmem:[%s1887_s26 + $0x50] ss:$8 sps:$4 sm:$0xff]  }
  0x17   : > { %726 = vmatpush1.bf16.msra.mxu0 %v1729_v5  ;;  %1709 = vmatpush1.bf16.msra.mxu1 %v1729_v5  ;;  %v1764_v34 = vld [vmem:[%s1887_s26 + $0x140] ss:$8 sps:$4 sm:$0xff]   ;;  %v1767_v36 = vld [vmem:[%s1887_s26 + $0x154] ss:$8 sps:$4 sm:$0xff]   ;;  %v1770_v38 = vld [vmem:[%s1887_s26 + $0x150] ss:$8 sps:$4 sm:$0xff]  }
  0x18   : > { %727 = vmatprep.subr.bf16.mxu0 %v1839_v1  ;;  %1700 = vmatprep.subr.bf16.mxu1 %v1839_v1  ;;  %v1771_v39 = vld [vmem:[%s1887_s26 + $0x64] ss:$8 sps:$4 sm:$0xff]   ;;  %v1775_v41 = vld [vmem:[%s1887_s26 + $0x60] ss:$8 sps:$4 sm:$0xff]   ;;  %v1777_v43 = vld [vmem:[%s1887_s26 + $0x74] ss:$8 sps:$4 sm:$0xff]  }
  0x19   : > { %v1773_v40 = vld [vmem:[%s1887_s26 + $0x164] ss:$8 sps:$4 sm:$0xff]   ;;  %v1776_v42 = vld [vmem:[%s1887_s26 + $0x160] ss:$8 sps:$4 sm:$0xff]   ;;  %v1779_v44 = vld [vmem:[%s1887_s26 + $0x174] ss:$8 sps:$4 sm:$0xff]  }
  0x1a   : > { %v1781_v45 = vld [vmem:[%s1887_s26 + $0x70] ss:$8 sps:$4 sm:$0xff]   ;;  %v1783_v47 = vld [vmem:[%s1887_s26 + $0x84] ss:$8 sps:$4 sm:$0xff]   ;;  %v1787_v49 = vld [vmem:[%s1887_s26 + $0x80] ss:$8 sps:$4 sm:$0xff]  }
  0x1b   : > { %728 = vmatpush1.bf16.msra.mxu0 %v1730_v8  ;;  %1710 = vmatpush1.bf16.msra.mxu1 %v1730_v8  ;;  %v1782_v46 = vld [vmem:[%s1887_s26 + $0x170] ss:$8 sps:$4 sm:$0xff]   ;;  %v1785_v48 = vld [vmem:[%s1887_s26 + $0x184] ss:$8 sps:$4 sm:$0xff]   ;;  %v1788_v50 = vld [vmem:[%s1887_s26 + $0x180] ss:$8 sps:$4 sm:$0xff]  }
  0x1c   : > { %729 = vmatprep.subr.bf16.mxu0 %v1839_v1  ;;  %1701 = vmatprep.subr.bf16.mxu1 %v1839_v1  ;;  %v1789_v51 = vld [vmem:[%s1887_s26 + $0x94] ss:$8 sps:$4 sm:$0xff]   ;;  %v1793_v53 = vld [vmem:[%s1887_s26 + $0x90] ss:$8 sps:$4 sm:$0xff]   ;;  %v1795_v55 = vld [vmem:[%s1887_s26 + $0xa4] ss:$8 sps:$4 sm:$0xff]  }
  0x1d   : > { %v1791_v52 = vld [vmem:[%s1887_s26 + $0x194] ss:$8 sps:$4 sm:$0xff]   ;;  %v1794_v54 = vld [vmem:[%s1887_s26 + $0x190] ss:$8 sps:$4 sm:$0xff]   ;;  %v1797_v56 = vld [vmem:[%s1887_s26 + $0x1a4] ss:$8 sps:$4 sm:$0xff]  }
  0x1e   : > { %v1799_v57 = vld [vmem:[%s1887_s26 + $0xa0] ss:$8 sps:$4 sm:$0xff]   ;;  %v1801_v59 = vld [vmem:[%s1887_s26 + $0xb4] ss:$8 sps:$4 sm:$0xff]   ;;  %v1805_v61 = vld [vmem:[%s1887_s26 + $0xb0] ss:$8 sps:$4 sm:$0xff]  }
  0x1f   : > { %730 = vmatpush1.bf16.msra.mxu0 %v1731_v9  ;;  %1711 = vmatpush1.bf16.msra.mxu1 %v1731_v9  ;;  %v1800_v58 = vld [vmem:[%s1887_s26 + $0x1a0] ss:$8 sps:$4 sm:$0xff]   ;;  %v1803_v60 = vld [vmem:[%s1887_s26 + $0x1b4] ss:$8 sps:$4 sm:$0xff]   ;;  %v1806_v62 = vld [vmem:[%s1887_s26 + $0x1b0] ss:$8 sps:$4 sm:$0xff]  }
  0x20   : > { %731 = vmatprep.subr.bf16.mxu0 %v1839_v1  ;;  %1702 = vmatprep.subr.bf16.mxu1 %v1839_v1  ;;  %v1807_v63 = vld [vmem:[%s1887_s26 + $0xc4] ss:$8 sps:$4 sm:$0xff]   ;;  %v1812_v2 = vld [vmem:[%s1887_s26 + $0x1c0] ss:$8 sps:$4 sm:$0xff]   ;;  %v1813_v3 = vld [vmem:[%s1887_s26 + $0xd4] ss:$8 sps:$4 sm:$0xff]  }
  0x21   : > { %v1809_v0 = vld [vmem:[%s1887_s26 + $0x1c4] ss:$8 sps:$4 sm:$0xff]   ;;  %v1815_v4 = vld [vmem:[%s1887_s26 + $0x1d4] ss:$8 sps:$4 sm:$0xff]   ;;  %v1817_v5 = vld [vmem:[%s1887_s26 + $0xd0] ss:$8 sps:$4 sm:$0xff]  }
  0x22   : > { %v1818_v6 = vld [vmem:[%s1887_s26 + $0x1d0] ss:$8 sps:$4 sm:$0xff]   ;;  %v1819_v7 = vld [vmem:[%s1887_s26 + $0xe4] ss:$8 sps:$4 sm:$0xff]   ;;  %v1823_v9 = vld [vmem:[%s1887_s26 + $0xe0] ss:$8 sps:$4 sm:$0xff]  }
  0x23   : > { %732 = vmatpush1.bf16.msra.mxu0 %v1732_v10  ;;  %1712 = vmatpush1.bf16.msra.mxu1 %v1732_v10  ;;  %v1821_v8 = vld [vmem:[%s1887_s26 + $0x1e4] ss:$8 sps:$4 sm:$0xff]   ;;  %v1824_v10 = vld [vmem:[%s1887_s26 + $0x1e0] ss:$8 sps:$4 sm:$0xff]   ;;  %v1825_v11 = vld [vmem:[%s1887_s26 + $0xf4] ss:$8 sps:$4 sm:$0xff]  }
  0x24   : > { %733 = vmatprep.subr.bf16.mxu0 %v1839_v1  ;;  %1703 = vmatprep.subr.bf16.mxu1 %v1839_v1  ;;  %v1827_v12 = vld [vmem:[%s1887_s26 + $0x1f4] ss:$8 sps:$4 sm:$0xff]   ;;  %v1830_v14 = vld [vmem:[%s1887_s26 + $0x1f0] ss:$8 sps:$4 sm:$0xff]  }
  0x27   : > { %734 = vmatpush1.bf16.msra.mxu0 %v1733_v13  ;;  %1713 = vmatpush1.bf16.msra.mxu1 %v1733_v13  ;;  %v1829_v13 = vld [vmem:[%s1887_s26 + $0xf0] ss:$8 sps:$4 sm:$0xff]  }
  0x28   : > { %735 = vmatprep.subr.bf16.mxu0 %v1839_v1  ;;  %1704 = vmatprep.subr.bf16.mxu1 %v1839_v1  ;;  %v1811_v1 = vld [vmem:[%s1887_s26 + $0xc0] ss:$8 sps:$4 sm:$0xff]  }
  0x2b   : > { %736 = vmatpush1.bf16.msra.mxu0 %v715_v16  ;;  %1714 = vmatpush1.bf16.msra.mxu1 %v715_v16 }
  0x2e   : > { %750 = vmatmul.mubr.bf16.vlgmr.msra.gmra.mrb[0].mxu0 %v1735_v17  ;;  %878 = vmatmul.mubr.bf16.vlgmr.msra.gmra.mrb[0].mxu1 %v1738_v18 }
  0x2f   : > { %1533 = vmatprep.mubr.msk.bf16.mxu0 %vm613_vm0, %v1741_v19  ;;  %1549 = vmatprep.mubr.msk.bf16.mxu1 %vm613_vm0, %v1743_v20 }
  0x36   : > { %758 = vmatmul.mubr.bf16.gmra.mrb[4].mxu0 %v1745_v21  ;;  %886 = vmatmul.mubr.bf16.gmra.mrb[4].mxu1 %v1746_v22 }
  0x37   : > { %1534 = vmatprep.mubr.msk.bf16.mxu0 %vm613_vm0, %v1747_v23  ;;  %1550 = vmatprep.mubr.msk.bf16.mxu1 %vm613_vm0, %v1749_v24 }
  0x3e   : > { %766 = vmatmul.mubr.bf16.gmra.mrb[8].mxu0 %v1751_v25  ;;  %894 = vmatmul.mubr.bf16.gmra.mrb[8].mxu1 %v1752_v26 }
  0x3f   : > { %1535 = vmatprep.mubr.msk.bf16.mxu0 %vm613_vm0, %v1753_v27  ;;  %1551 = vmatprep.mubr.msk.bf16.mxu1 %vm613_vm0, %v1755_v28 }
  0x46   : > { %774 = vmatmul.mubr.bf16.gmra.mrb[12].mxu0 %v1757_v29  ;;  %902 = vmatmul.mubr.bf16.gmra.mrb[12].mxu1 %v1758_v30 }
  0x47   : > { %1536 = vmatprep.mubr.msk.bf16.mxu0 %vm613_vm0, %v1759_v31  ;;  %1552 = vmatprep.mubr.msk.bf16.mxu1 %vm613_vm0, %v1761_v32 }
  0x4e   : > { %782 = vmatmul.mubr.bf16.gmra.mrb[16].mxu0 %v1763_v33  ;;  %910 = vmatmul.mubr.bf16.gmra.mrb[16].mxu1 %v1764_v34 }
  0x4f   : > { %1537 = vmatprep.mubr.msk.bf16.mxu0 %vm613_vm0, %v1765_v35  ;;  %1553 = vmatprep.mubr.msk.bf16.mxu1 %vm613_vm0, %v1767_v36 }
  0x56   : > { %790 = vmatmul.mubr.bf16.gmra.mrb[20].mxu0 %v1769_v37  ;;  %918 = vmatmul.mubr.bf16.gmra.mrb[20].mxu1 %v1770_v38 }
  0x57   : > { %1538 = vmatprep.mubr.msk.bf16.mxu0 %vm613_vm0, %v1771_v39  ;;  %1554 = vmatprep.mubr.msk.bf16.mxu1 %vm613_vm0, %v1773_v40 }
  0x5e   : > { %798 = vmatmul.mubr.bf16.gmra.mrb[24].mxu0 %v1775_v41  ;;  %926 = vmatmul.mubr.bf16.gmra.mrb[24].mxu1 %v1776_v42 }
  0x5f   : > { %1539 = vmatprep.mubr.msk.bf16.mxu0 %vm613_vm0, %v1777_v43  ;;  %1555 = vmatprep.mubr.msk.bf16.mxu1 %vm613_vm0, %v1779_v44 }
  0x66   : > { %806 = vmatmul.mubr.bf16.gmra.mrb[28].mxu0 %v1781_v45  ;;  %934 = vmatmul.mubr.bf16.gmra.mrb[28].mxu1 %v1782_v46 }
  0x67   : > { %1540 = vmatprep.mubr.msk.bf16.mxu0 %vm613_vm0, %v1783_v47  ;;  %1556 = vmatprep.mubr.msk.bf16.mxu1 %vm613_vm0, %v1785_v48 }
  0x6e   : > { %814 = vmatmul.mubr.bf16.gmra.mrb[32].mxu0 %v1787_v49  ;;  %942 = vmatmul.mubr.bf16.gmra.mrb[32].mxu1 %v1788_v50 }
  0x6f   : > { %1541 = vmatprep.mubr.msk.bf16.mxu0 %vm613_vm0, %v1789_v51  ;;  %1557 = vmatprep.mubr.msk.bf16.mxu1 %vm613_vm0, %v1791_v52 }
  0x76   : > { %822 = vmatmul.mubr.bf16.gmra.mrb[36].mxu0 %v1793_v53  ;;  %950 = vmatmul.mubr.bf16.gmra.mrb[36].mxu1 %v1794_v54 }
  0x77   : > { %1542 = vmatprep.mubr.msk.bf16.mxu0 %vm613_vm0, %v1795_v55  ;;  %1558 = vmatprep.mubr.msk.bf16.mxu1 %vm613_vm0, %v1797_v56 }
  0x7e   : > { %830 = vmatmul.mubr.bf16.gmra.mrb[40].mxu0 %v1799_v57  ;;  %958 = vmatmul.mubr.bf16.gmra.mrb[40].mxu1 %v1800_v58 }
  0x7f   : > { %1543 = vmatprep.mubr.msk.bf16.mxu0 %vm613_vm0, %v1801_v59  ;;  %1559 = vmatprep.mubr.msk.bf16.mxu1 %vm613_vm0, %v1803_v60 }
  0x86   : > { %838 = vmatmul.mubr.bf16.gmra.mrb[44].mxu0 %v1805_v61  ;;  %966 = vmatmul.mubr.bf16.gmra.mrb[44].mxu1 %v1806_v62 }
  0x87   : > { %1544 = vmatprep.mubr.msk.bf16.mxu0 %vm613_vm0, %v1807_v63  ;;  %1560 = vmatprep.mubr.msk.bf16.mxu1 %vm613_vm0, %v1809_v0 }
  0x8e   : > { %846 = vmatmul.mubr.bf16.gmra.mrb[48].mxu0 %v1811_v1  ;;  %974 = vmatmul.mubr.bf16.gmra.mrb[48].mxu1 %v1812_v2 }
  0x8f   : > { %1545 = vmatprep.mubr.msk.bf16.mxu0 %vm613_vm0, %v1813_v3  ;;  %1561 = vmatprep.mubr.msk.bf16.mxu1 %vm613_vm0, %v1815_v4 }
  0x96   : > { %854 = vmatmul.mubr.bf16.gmra.mrb[52].mxu0 %v1817_v5  ;;  %982 = vmatmul.mubr.bf16.gmra.mrb[52].mxu1 %v1818_v6 }
  0x97   : > { %1546 = vmatprep.mubr.msk.bf16.mxu0 %vm613_vm0, %v1819_v7  ;;  %1562 = vmatprep.mubr.msk.bf16.mxu1 %vm613_vm0, %v1821_v8 }
  0x9e   : > { %862 = vmatmul.mubr.bf16.gmra.mrb[56].mxu0 %v1823_v9  ;;  %990 = vmatmul.mubr.bf16.gmra.mrb[56].mxu1 %v1824_v10 }
  0x9f   : > { %1547 = vmatprep.mubr.msk.bf16.mxu0 %vm613_vm0, %v1825_v11  ;;  %1563 = vmatprep.mubr.msk.bf16.mxu1 %vm613_vm0, %v1827_v12 }
  0xa6   : > { %870 = vmatmul.mubr.bf16.gmra.mrb[60].mxu0 %v1829_v13  ;;  %998 = vmatmul.mubr.bf16.gmra.mrb[60].mxu1 %v1830_v14 }
 0x101   : > { %v751_v16 = vpop.f32.mrb[0].mxu0  ;;  %v879_v17 = vpop.f32.mrb[0].mxu1 }
 0x102   : > { %v752_v18 = vadd.f32 %v2006_v15, %v751_v16  ;;  %v880_v19 = vadd.f32 %v2006_v15, %v879_v17  ;;  %v753_v20 = vpop.f32.mrb[1].mxu0  ;;  %v881_v21 = vpop.f32.mrb[1].mxu1 }
 0x103   : > { %v754_v22 = vpop.f32.mrb[2].mxu0  ;;  %v882_v23 = vpop.f32.mrb[2].mxu1 }
 0x104   : > { %v1006_v24 = vmax.f32 %v752_v18, 0.0  ;;  %v1038_v25 = vmax.f32 %v880_v19, 0.0  ;;  %v755_v26 = vadd.f32 %v2006_v15, %v754_v22  ;;  %v883_v27 = vadd.f32 %v2006_v15, %v882_v23  ;;  %v756_v28 = vpop.f32.mrb[3].mxu0  ;;  %v884_v29 = vpop.f32.mrb[3].mxu1 }
 0x106   : > { %v1631_v30 = vpack.c.bf16 %v1006_v24, %v1006_v24  ;;  %v1663_v31 = vpack.c.bf16 %v1038_v25, %v1038_v25  ;;  %v1007_v32 = vmax.f32 %v755_v26, 0.0  ;;  %v1039_v33 = vmax.f32 %v883_v27, 0.0 }
 0x108   : > { %1327 = vst.msk [vmem:[%s2016_s18] sm:$0xf] %vm1326_vm3, %v1631_v30  ;;  %1359 = vst.msk [vmem:[%s2016_s18 + $0x80] sm:$0xf] %vm1326_vm3, %v1663_v31  ;;  %v1632_v34 = vpack.c.bf16 %v1007_v32, %v1007_v32  ;;  %v1664_v35 = vpack.c.bf16 %v1039_v33, %v1039_v33 }
 0x109   : > { %v759_v36 = vpop.f32.mrb[4].mxu0  ;;  %v887_v37 = vpop.f32.mrb[4].mxu1 }
 0x10a   : > { %1328 = vst.msk [vmem:[%s2016_s18 + $0x4] sm:$0xf] %vm1326_vm3, %v1632_v34  ;;  %1360 = vst.msk [vmem:[%s2016_s18 + $0x84] sm:$0xf] %vm1326_vm3, %v1664_v35  ;;  %v760_v38 = vadd.f32 %v2006_v15, %v759_v36  ;;  %v888_v39 = vadd.f32 %v2006_v15, %v887_v37  ;;  %v761_v40 = vpop.f32.mrb[5].mxu0  ;;  %v889_v41 = vpop.f32.mrb[5].mxu1 }
 0x10b   : > { %v762_v42 = vpop.f32.mrb[6].mxu0  ;;  %v890_v43 = vpop.f32.mrb[6].mxu1 }
 0x10c   : > { %v1008_v44 = vmax.f32 %v760_v38, 0.0  ;;  %v1040_v45 = vmax.f32 %v888_v39, 0.0  ;;  %v763_v46 = vadd.f32 %v2006_v15, %v762_v42  ;;  %v891_v47 = vadd.f32 %v2006_v15, %v890_v43  ;;  %v764_v48 = vpop.f32.mrb[7].mxu0  ;;  %v892_v49 = vpop.f32.mrb[7].mxu1 }
 0x10e   : > { %v1633_v50 = vpack.c.bf16 %v1008_v44, %v1008_v44  ;;  %v1665_v51 = vpack.c.bf16 %v1040_v45, %v1040_v45  ;;  %v1009_v52 = vmax.f32 %v763_v46, 0.0  ;;  %v1041_v53 = vmax.f32 %v891_v47, 0.0 }
 0x110   : > { %1329 = vst.msk [vmem:[%s2016_s18 + $0x8] sm:$0xf] %vm1326_vm3, %v1633_v50  ;;  %1361 = vst.msk [vmem:[%s2016_s18 + $0x88] sm:$0xf] %vm1326_vm3, %v1665_v51  ;;  %v1634_v54 = vpack.c.bf16 %v1009_v52, %v1009_v52  ;;  %v1666_v55 = vpack.c.bf16 %v1041_v53, %v1041_v53 }
 0x111   : > { %v767_v56 = vpop.f32.mrb[8].mxu0  ;;  %v895_v57 = vpop.f32.mrb[8].mxu1 }
 0x112   : > { %1330 = vst.msk [vmem:[%s2016_s18 + $0xc] sm:$0xf] %vm1326_vm3, %v1634_v54  ;;  %1362 = vst.msk [vmem:[%s2016_s18 + $0x8c] sm:$0xf] %vm1326_vm3, %v1666_v55  ;;  %v768_v58 = vadd.f32 %v2006_v15, %v767_v56  ;;  %v896_v59 = vadd.f32 %v2006_v15, %v895_v57  ;;  %v769_v60 = vpop.f32.mrb[9].mxu0  ;;  %v897_v61 = vpop.f32.mrb[9].mxu1 }
 0x113   : > { %v770_v62 = vpop.f32.mrb[10].mxu0  ;;  %v898_v63 = vpop.f32.mrb[10].mxu1 }
 0x114   : > { %v1010_v0 = vmax.f32 %v768_v58, 0.0  ;;  %v1042_v1 = vmax.f32 %v896_v59, 0.0  ;;  %v771_v2 = vadd.f32 %v2006_v15, %v770_v62  ;;  %v899_v3 = vadd.f32 %v2006_v15, %v898_v63  ;;  %v772_v4 = vpop.f32.mrb[11].mxu0  ;;  %v900_v5 = vpop.f32.mrb[11].mxu1 }
 0x116   : > { %v1635_v6 = vpack.c.bf16 %v1010_v0, %v1010_v0  ;;  %v1667_v7 = vpack.c.bf16 %v1042_v1, %v1042_v1  ;;  %v1011_v8 = vmax.f32 %v771_v2, 0.0  ;;  %v1043_v9 = vmax.f32 %v899_v3, 0.0 }
 0x118   : > { %1331 = vst.msk [vmem:[%s2016_s18 + $0x10] sm:$0xf] %vm1326_vm3, %v1635_v6  ;;  %1363 = vst.msk [vmem:[%s2016_s18 + $0x90] sm:$0xf] %vm1326_vm3, %v1667_v7  ;;  %v1636_v10 = vpack.c.bf16 %v1011_v8, %v1011_v8  ;;  %v1668_v11 = vpack.c.bf16 %v1043_v9, %v1043_v9 }
 0x119   : > { %v775_v12 = vpop.f32.mrb[12].mxu0  ;;  %v903_v13 = vpop.f32.mrb[12].mxu1 }
 0x11a   : > { %1332 = vst.msk [vmem:[%s2016_s18 + $0x14] sm:$0xf] %vm1326_vm3, %v1636_v10  ;;  %1364 = vst.msk [vmem:[%s2016_s18 + $0x94] sm:$0xf] %vm1326_vm3, %v1668_v11  ;;  %v776_v14 = vadd.f32 %v2006_v15, %v775_v12  ;;  %v904_v16 = vadd.f32 %v2006_v15, %v903_v13  ;;  %v777_v17 = vpop.f32.mrb[13].mxu0  ;;  %v905_v18 = vpop.f32.mrb[13].mxu1 }
 0x11b   : > { %v778_v19 = vpop.f32.mrb[14].mxu0  ;;  %v906_v20 = vpop.f32.mrb[14].mxu1 }
 0x11c   : > { %v1012_v21 = vmax.f32 %v776_v14, 0.0  ;;  %v1044_v22 = vmax.f32 %v904_v16, 0.0  ;;  %v779_v23 = vadd.f32 %v2006_v15, %v778_v19  ;;  %v907_v24 = vadd.f32 %v2006_v15, %v906_v20  ;;  %v780_v25 = vpop.f32.mrb[15].mxu0  ;;  %v908_v26 = vpop.f32.mrb[15].mxu1 }
 0x11e   : > { %v1637_v27 = vpack.c.bf16 %v1012_v21, %v1012_v21  ;;  %v1669_v28 = vpack.c.bf16 %v1044_v22, %v1044_v22  ;;  %v1013_v29 = vmax.f32 %v779_v23, 0.0  ;;  %v1045_v30 = vmax.f32 %v907_v24, 0.0 }
 0x120   : > { %1333 = vst.msk [vmem:[%s2016_s18 + $0x18] sm:$0xf] %vm1326_vm3, %v1637_v27  ;;  %1365 = vst.msk [vmem:[%s2016_s18 + $0x98] sm:$0xf] %vm1326_vm3, %v1669_v28  ;;  %v1638_v31 = vpack.c.bf16 %v1013_v29, %v1013_v29  ;;  %v1670_v32 = vpack.c.bf16 %v1045_v30, %v1045_v30 }
 0x121   : > { %v783_v33 = vpop.f32.mrb[16].mxu0  ;;  %v911_v34 = vpop.f32.mrb[16].mxu1 }
 0x122   : > { %1334 = vst.msk [vmem:[%s2016_s18 + $0x1c] sm:$0xf] %vm1326_vm3, %v1638_v31  ;;  %1366 = vst.msk [vmem:[%s2016_s18 + $0x9c] sm:$0xf] %vm1326_vm3, %v1670_v32  ;;  %v784_v35 = vadd.f32 %v2006_v15, %v783_v33  ;;  %v912_v36 = vadd.f32 %v2006_v15, %v911_v34  ;;  %v785_v37 = vpop.f32.mrb[17].mxu0  ;;  %v913_v38 = vpop.f32.mrb[17].mxu1 }
 0x123   : > { %v786_v39 = vpop.f32.mrb[18].mxu0  ;;  %v914_v40 = vpop.f32.mrb[18].mxu1 }
 0x124   : > { %v1014_v41 = vmax.f32 %v784_v35, 0.0  ;;  %v1046_v42 = vmax.f32 %v912_v36, 0.0  ;;  %v787_v43 = vadd.f32 %v2006_v15, %v786_v39  ;;  %v915_v44 = vadd.f32 %v2006_v15, %v914_v40  ;;  %v788_v45 = vpop.f32.mrb[19].mxu0  ;;  %v916_v46 = vpop.f32.mrb[19].mxu1 }
 0x126   : > { %v1639_v47 = vpack.c.bf16 %v1014_v41, %v1014_v41  ;;  %v1671_v48 = vpack.c.bf16 %v1046_v42, %v1046_v42  ;;  %v1015_v49 = vmax.f32 %v787_v43, 0.0  ;;  %v1047_v50 = vmax.f32 %v915_v44, 0.0 }
 0x128   : > { %1335 = vst.msk [vmem:[%s2016_s18 + $0x20] sm:$0xf] %vm1326_vm3, %v1639_v47  ;;  %1367 = vst.msk [vmem:[%s2016_s18 + $0xa0] sm:$0xf] %vm1326_vm3, %v1671_v48  ;;  %v1640_v51 = vpack.c.bf16 %v1015_v49, %v1015_v49  ;;  %v1672_v52 = vpack.c.bf16 %v1047_v50, %v1047_v50 }
 0x129   : > { %v791_v53 = vpop.f32.mrb[20].mxu0  ;;  %v919_v54 = vpop.f32.mrb[20].mxu1 }
 0x12a   : > { %1336 = vst.msk [vmem:[%s2016_s18 + $0x24] sm:$0xf] %vm1326_vm3, %v1640_v51  ;;  %1368 = vst.msk [vmem:[%s2016_s18 + $0xa4] sm:$0xf] %vm1326_vm3, %v1672_v52  ;;  %v792_v55 = vadd.f32 %v2006_v15, %v791_v53  ;;  %v920_v56 = vadd.f32 %v2006_v15, %v919_v54  ;;  %v793_v57 = vpop.f32.mrb[21].mxu0  ;;  %v921_v58 = vpop.f32.mrb[21].mxu1 }
 0x12b   : > { %v794_v59 = vpop.f32.mrb[22].mxu0  ;;  %v922_v60 = vpop.f32.mrb[22].mxu1 }
 0x12c   : > { %v1016_v61 = vmax.f32 %v792_v55, 0.0  ;;  %v1048_v62 = vmax.f32 %v920_v56, 0.0  ;;  %v795_v63 = vadd.f32 %v2006_v15, %v794_v59  ;;  %v923_v0 = vadd.f32 %v2006_v15, %v922_v60  ;;  %v796_v1 = vpop.f32.mrb[23].mxu0  ;;  %v924_v2 = vpop.f32.mrb[23].mxu1 }
 0x12e   : > { %v1641_v3 = vpack.c.bf16 %v1016_v61, %v1016_v61  ;;  %v1673_v4 = vpack.c.bf16 %v1048_v62, %v1048_v62  ;;  %v1017_v5 = vmax.f32 %v795_v63, 0.0  ;;  %v1049_v6 = vmax.f32 %v923_v0, 0.0 }
 0x130   : > { %1337 = vst.msk [vmem:[%s2016_s18 + $0x28] sm:$0xf] %vm1326_vm3, %v1641_v3  ;;  %1369 = vst.msk [vmem:[%s2016_s18 + $0xa8] sm:$0xf] %vm1326_vm3, %v1673_v4  ;;  %v1642_v7 = vpack.c.bf16 %v1017_v5, %v1017_v5  ;;  %v1674_v8 = vpack.c.bf16 %v1049_v6, %v1049_v6 }
 0x131   : > { %v799_v9 = vpop.f32.mrb[24].mxu0  ;;  %v927_v10 = vpop.f32.mrb[24].mxu1 }
 0x132   : > { %1338 = vst.msk [vmem:[%s2016_s18 + $0x2c] sm:$0xf] %vm1326_vm3, %v1642_v7  ;;  %1370 = vst.msk [vmem:[%s2016_s18 + $0xac] sm:$0xf] %vm1326_vm3, %v1674_v8  ;;  %v800_v11 = vadd.f32 %v2006_v15, %v799_v9  ;;  %v928_v12 = vadd.f32 %v2006_v15, %v927_v10  ;;  %v801_v13 = vpop.f32.mrb[25].mxu0  ;;  %v929_v14 = vpop.f32.mrb[25].mxu1 }
 0x133   : > { %v802_v16 = vpop.f32.mrb[26].mxu0  ;;  %v930_v17 = vpop.f32.mrb[26].mxu1 }
 0x134   : > { %v1018_v18 = vmax.f32 %v800_v11, 0.0  ;;  %v1050_v19 = vmax.f32 %v928_v12, 0.0  ;;  %v803_v20 = vadd.f32 %v2006_v15, %v802_v16  ;;  %v931_v21 = vadd.f32 %v2006_v15, %v930_v17  ;;  %v804_v22 = vpop.f32.mrb[27].mxu0  ;;  %v932_v23 = vpop.f32.mrb[27].mxu1 }
 0x136   : > { %v1643_v24 = vpack.c.bf16 %v1018_v18, %v1018_v18  ;;  %v1675_v25 = vpack.c.bf16 %v1050_v19, %v1050_v19  ;;  %v1019_v26 = vmax.f32 %v803_v20, 0.0  ;;  %v1051_v27 = vmax.f32 %v931_v21, 0.0 }
 0x138   : > { %1339 = vst.msk [vmem:[%s2016_s18 + $0x30] sm:$0xf] %vm1326_vm3, %v1643_v24  ;;  %1371 = vst.msk [vmem:[%s2016_s18 + $0xb0] sm:$0xf] %vm1326_vm3, %v1675_v25  ;;  %v1644_v28 = vpack.c.bf16 %v1019_v26, %v1019_v26  ;;  %v1676_v29 = vpack.c.bf16 %v1051_v27, %v1051_v27 }
 0x139   : > { %v807_v30 = vpop.f32.mrb[28].mxu0  ;;  %v935_v31 = vpop.f32.mrb[28].mxu1 }
 0x13a   : > { %1340 = vst.msk [vmem:[%s2016_s18 + $0x34] sm:$0xf] %vm1326_vm3, %v1644_v28  ;;  %1372 = vst.msk [vmem:[%s2016_s18 + $0xb4] sm:$0xf] %vm1326_vm3, %v1676_v29  ;;  %v808_v32 = vadd.f32 %v2006_v15, %v807_v30  ;;  %v936_v33 = vadd.f32 %v2006_v15, %v935_v31  ;;  %v809_v34 = vpop.f32.mrb[29].mxu0  ;;  %v937_v35 = vpop.f32.mrb[29].mxu1 }
 0x13b   : > { %v810_v36 = vpop.f32.mrb[30].mxu0  ;;  %v938_v37 = vpop.f32.mrb[30].mxu1 }
 0x13c   : > { %v1020_v38 = vmax.f32 %v808_v32, 0.0  ;;  %v1052_v39 = vmax.f32 %v936_v33, 0.0  ;;  %v811_v40 = vadd.f32 %v2006_v15, %v810_v36  ;;  %v939_v41 = vadd.f32 %v2006_v15, %v938_v37  ;;  %v812_v42 = vpop.f32.mrb[31].mxu0  ;;  %v940_v43 = vpop.f32.mrb[31].mxu1 }
 0x13e   : > { %v1645_v44 = vpack.c.bf16 %v1020_v38, %v1020_v38  ;;  %v1677_v45 = vpack.c.bf16 %v1052_v39, %v1052_v39  ;;  %v1021_v46 = vmax.f32 %v811_v40, 0.0  ;;  %v1053_v47 = vmax.f32 %v939_v41, 0.0 }
 0x140   : > { %1341 = vst.msk [vmem:[%s2016_s18 + $0x38] sm:$0xf] %vm1326_vm3, %v1645_v44  ;;  %1373 = vst.msk [vmem:[%s2016_s18 + $0xb8] sm:$0xf] %vm1326_vm3, %v1677_v45  ;;  %v1646_v48 = vpack.c.bf16 %v1021_v46, %v1021_v46  ;;  %v1678_v49 = vpack.c.bf16 %v1053_v47, %v1053_v47 }
 0x141   : > { %v815_v50 = vpop.f32.mrb[32].mxu0  ;;  %v943_v51 = vpop.f32.mrb[32].mxu1 }
 0x142   : > { %1342 = vst.msk [vmem:[%s2016_s18 + $0x3c] sm:$0xf] %vm1326_vm3, %v1646_v48  ;;  %1374 = vst.msk [vmem:[%s2016_s18 + $0xbc] sm:$0xf] %vm1326_vm3, %v1678_v49  ;;  %v816_v52 = vadd.f32 %v2006_v15, %v815_v50  ;;  %v944_v53 = vadd.f32 %v2006_v15, %v943_v51  ;;  %v817_v54 = vpop.f32.mrb[33].mxu0  ;;  %v945_v55 = vpop.f32.mrb[33].mxu1 }
 0x143   : > { %v818_v56 = vpop.f32.mrb[34].mxu0  ;;  %v946_v57 = vpop.f32.mrb[34].mxu1 }
 0x144   : > { %v1022_v58 = vmax.f32 %v816_v52, 0.0  ;;  %v1054_v59 = vmax.f32 %v944_v53, 0.0  ;;  %v819_v60 = vadd.f32 %v2006_v15, %v818_v56  ;;  %v947_v61 = vadd.f32 %v2006_v15, %v946_v57  ;;  %v820_v62 = vpop.f32.mrb[35].mxu0  ;;  %v948_v63 = vpop.f32.mrb[35].mxu1 }
 0x146   : > { %v1647_v0 = vpack.c.bf16 %v1022_v58, %v1022_v58  ;;  %v1679_v1 = vpack.c.bf16 %v1054_v59, %v1054_v59  ;;  %v1023_v2 = vmax.f32 %v819_v60, 0.0  ;;  %v1055_v3 = vmax.f32 %v947_v61, 0.0 }
 0x148   : > { %1343 = vst.msk [vmem:[%s2016_s18 + $0x40] sm:$0xf] %vm1326_vm3, %v1647_v0  ;;  %1375 = vst.msk [vmem:[%s2016_s18 + $0xc0] sm:$0xf] %vm1326_vm3, %v1679_v1  ;;  %v1648_v4 = vpack.c.bf16 %v1023_v2, %v1023_v2  ;;  %v1680_v5 = vpack.c.bf16 %v1055_v3, %v1055_v3 }
 0x149   : > { %v823_v6 = vpop.f32.mrb[36].mxu0  ;;  %v951_v7 = vpop.f32.mrb[36].mxu1 }
 0x14a   : > { %1344 = vst.msk [vmem:[%s2016_s18 + $0x44] sm:$0xf] %vm1326_vm3, %v1648_v4  ;;  %1376 = vst.msk [vmem:[%s2016_s18 + $0xc4] sm:$0xf] %vm1326_vm3, %v1680_v5  ;;  %v824_v8 = vadd.f32 %v2006_v15, %v823_v6  ;;  %v952_v9 = vadd.f32 %v2006_v15, %v951_v7  ;;  %v825_v10 = vpop.f32.mrb[37].mxu0  ;;  %v953_v11 = vpop.f32.mrb[37].mxu1 }
 0x14b   : > { %v826_v12 = vpop.f32.mrb[38].mxu0  ;;  %v954_v13 = vpop.f32.mrb[38].mxu1 }
 0x14c   : > { %v1024_v14 = vmax.f32 %v824_v8, 0.0  ;;  %v1056_v16 = vmax.f32 %v952_v9, 0.0  ;;  %v827_v17 = vadd.f32 %v2006_v15, %v826_v12  ;;  %v955_v18 = vadd.f32 %v2006_v15, %v954_v13  ;;  %v828_v19 = vpop.f32.mrb[39].mxu0  ;;  %v956_v20 = vpop.f32.mrb[39].mxu1 }
 0x14e   : > { %v1649_v21 = vpack.c.bf16 %v1024_v14, %v1024_v14  ;;  %v1681_v22 = vpack.c.bf16 %v1056_v16, %v1056_v16  ;;  %v1025_v23 = vmax.f32 %v827_v17, 0.0  ;;  %v1057_v24 = vmax.f32 %v955_v18, 0.0 }
 0x150   : > { %1345 = vst.msk [vmem:[%s2016_s18 + $0x48] sm:$0xf] %vm1326_vm3, %v1649_v21  ;;  %1377 = vst.msk [vmem:[%s2016_s18 + $0xc8] sm:$0xf] %vm1326_vm3, %v1681_v22  ;;  %v1650_v25 = vpack.c.bf16 %v1025_v23, %v1025_v23  ;;  %v1682_v26 = vpack.c.bf16 %v1057_v24, %v1057_v24 }
 0x151   : > { %v831_v27 = vpop.f32.mrb[40].mxu0  ;;  %v959_v28 = vpop.f32.mrb[40].mxu1 }
 0x152   : > { %1346 = vst.msk [vmem:[%s2016_s18 + $0x4c] sm:$0xf] %vm1326_vm3, %v1650_v25  ;;  %1378 = vst.msk [vmem:[%s2016_s18 + $0xcc] sm:$0xf] %vm1326_vm3, %v1682_v26  ;;  %v832_v29 = vadd.f32 %v2006_v15, %v831_v27  ;;  %v960_v30 = vadd.f32 %v2006_v15, %v959_v28  ;;  %v833_v31 = vpop.f32.mrb[41].mxu0  ;;  %v961_v32 = vpop.f32.mrb[41].mxu1 }
 0x153   : > { %v834_v33 = vpop.f32.mrb[42].mxu0  ;;  %v962_v34 = vpop.f32.mrb[42].mxu1 }
 0x154   : > { %v1026_v35 = vmax.f32 %v832_v29, 0.0  ;;  %v1058_v36 = vmax.f32 %v960_v30, 0.0  ;;  %v835_v37 = vadd.f32 %v2006_v15, %v834_v33  ;;  %v963_v38 = vadd.f32 %v2006_v15, %v962_v34  ;;  %v836_v39 = vpop.f32.mrb[43].mxu0  ;;  %v964_v40 = vpop.f32.mrb[43].mxu1 }
 0x156   : > { %v1651_v41 = vpack.c.bf16 %v1026_v35, %v1026_v35  ;;  %v1683_v42 = vpack.c.bf16 %v1058_v36, %v1058_v36  ;;  %v1027_v43 = vmax.f32 %v835_v37, 0.0  ;;  %v1059_v44 = vmax.f32 %v963_v38, 0.0 }
 0x158   : > { %1347 = vst.msk [vmem:[%s2016_s18 + $0x50] sm:$0xf] %vm1326_vm3, %v1651_v41  ;;  %1379 = vst.msk [vmem:[%s2016_s18 + $0xd0] sm:$0xf] %vm1326_vm3, %v1683_v42  ;;  %v1652_v45 = vpack.c.bf16 %v1027_v43, %v1027_v43  ;;  %v1684_v46 = vpack.c.bf16 %v1059_v44, %v1059_v44 }
 0x159   : > { %v839_v47 = vpop.f32.mrb[44].mxu0  ;;  %v967_v48 = vpop.f32.mrb[44].mxu1 }
 0x15a   : > { %1348 = vst.msk [vmem:[%s2016_s18 + $0x54] sm:$0xf] %vm1326_vm3, %v1652_v45  ;;  %1380 = vst.msk [vmem:[%s2016_s18 + $0xd4] sm:$0xf] %vm1326_vm3, %v1684_v46  ;;  %v840_v49 = vadd.f32 %v2006_v15, %v839_v47  ;;  %v968_v50 = vadd.f32 %v2006_v15, %v967_v48  ;;  %v841_v51 = vpop.f32.mrb[45].mxu0  ;;  %v969_v52 = vpop.f32.mrb[45].mxu1 }
 0x15b   : > { %v842_v53 = vpop.f32.mrb[46].mxu0  ;;  %v970_v54 = vpop.f32.mrb[46].mxu1 }
 0x15c   : > { %v1028_v55 = vmax.f32 %v840_v49, 0.0  ;;  %v1060_v56 = vmax.f32 %v968_v50, 0.0  ;;  %v843_v57 = vadd.f32 %v2006_v15, %v842_v53  ;;  %v971_v58 = vadd.f32 %v2006_v15, %v970_v54  ;;  %v844_v59 = vpop.f32.mrb[47].mxu0  ;;  %v972_v60 = vpop.f32.mrb[47].mxu1 }
 0x15e   : > { %v1653_v61 = vpack.c.bf16 %v1028_v55, %v1028_v55  ;;  %v1685_v62 = vpack.c.bf16 %v1060_v56, %v1060_v56  ;;  %v1029_v63 = vmax.f32 %v843_v57, 0.0  ;;  %v1061_v0 = vmax.f32 %v971_v58, 0.0 }
 0x160   : > { %1349 = vst.msk [vmem:[%s2016_s18 + $0x58] sm:$0xf] %vm1326_vm3, %v1653_v61  ;;  %1381 = vst.msk [vmem:[%s2016_s18 + $0xd8] sm:$0xf] %vm1326_vm3, %v1685_v62  ;;  %v1654_v1 = vpack.c.bf16 %v1029_v63, %v1029_v63  ;;  %v1686_v2 = vpack.c.bf16 %v1061_v0, %v1061_v0 }
 0x161   : > { %v847_v3 = vpop.f32.mrb[48].mxu0  ;;  %v975_v4 = vpop.f32.mrb[48].mxu1 }
 0x162   : > { %1350 = vst.msk [vmem:[%s2016_s18 + $0x5c] sm:$0xf] %vm1326_vm3, %v1654_v1  ;;  %1382 = vst.msk [vmem:[%s2016_s18 + $0xdc] sm:$0xf] %vm1326_vm3, %v1686_v2  ;;  %v848_v5 = vadd.f32 %v2006_v15, %v847_v3  ;;  %v976_v6 = vadd.f32 %v2006_v15, %v975_v4  ;;  %v849_v7 = vpop.f32.mrb[49].mxu0  ;;  %v977_v8 = vpop.f32.mrb[49].mxu1 }
 0x163   : > { %v850_v9 = vpop.f32.mrb[50].mxu0  ;;  %v978_v10 = vpop.f32.mrb[50].mxu1 }
 0x164   : > { %v1030_v11 = vmax.f32 %v848_v5, 0.0  ;;  %v1062_v12 = vmax.f32 %v976_v6, 0.0  ;;  %v851_v13 = vadd.f32 %v2006_v15, %v850_v9  ;;  %v979_v14 = vadd.f32 %v2006_v15, %v978_v10  ;;  %v852_v16 = vpop.f32.mrb[51].mxu0  ;;  %v980_v17 = vpop.f32.mrb[51].mxu1 }
 0x166   : > { %v1655_v18 = vpack.c.bf16 %v1030_v11, %v1030_v11  ;;  %v1687_v19 = vpack.c.bf16 %v1062_v12, %v1062_v12  ;;  %v1031_v20 = vmax.f32 %v851_v13, 0.0  ;;  %v1063_v21 = vmax.f32 %v979_v14, 0.0 }
 0x168   : > { %1351 = vst.msk [vmem:[%s2016_s18 + $0x60] sm:$0xf] %vm1326_vm3, %v1655_v18  ;;  %1383 = vst.msk [vmem:[%s2016_s18 + $0xe0] sm:$0xf] %vm1326_vm3, %v1687_v19  ;;  %v1656_v22 = vpack.c.bf16 %v1031_v20, %v1031_v20  ;;  %v1688_v23 = vpack.c.bf16 %v1063_v21, %v1063_v21 }
 0x169   : > { %v855_v24 = vpop.f32.mrb[52].mxu0  ;;  %v983_v25 = vpop.f32.mrb[52].mxu1 }
 0x16a   : > { %1352 = vst.msk [vmem:[%s2016_s18 + $0x64] sm:$0xf] %vm1326_vm3, %v1656_v22  ;;  %1384 = vst.msk [vmem:[%s2016_s18 + $0xe4] sm:$0xf] %vm1326_vm3, %v1688_v23  ;;  %v856_v26 = vadd.f32 %v2006_v15, %v855_v24  ;;  %v984_v27 = vadd.f32 %v2006_v15, %v983_v25  ;;  %v857_v28 = vpop.f32.mrb[53].mxu0  ;;  %v985_v29 = vpop.f32.mrb[53].mxu1 }
 0x16b   : > { %v858_v30 = vpop.f32.mrb[54].mxu0  ;;  %v986_v31 = vpop.f32.mrb[54].mxu1 }
 0x16c   : > { %v1032_v32 = vmax.f32 %v856_v26, 0.0  ;;  %v1064_v33 = vmax.f32 %v984_v27, 0.0  ;;  %v859_v34 = vadd.f32 %v2006_v15, %v858_v30  ;;  %v987_v35 = vadd.f32 %v2006_v15, %v986_v31  ;;  %v860_v36 = vpop.f32.mrb[55].mxu0  ;;  %v988_v37 = vpop.f32.mrb[55].mxu1 }
 0x16e   : > { %v1657_v38 = vpack.c.bf16 %v1032_v32, %v1032_v32  ;;  %v1689_v39 = vpack.c.bf16 %v1064_v33, %v1064_v33  ;;  %v1033_v40 = vmax.f32 %v859_v34, 0.0  ;;  %v1065_v41 = vmax.f32 %v987_v35, 0.0 }
 0x170   : > { %1353 = vst.msk [vmem:[%s2016_s18 + $0x68] sm:$0xf] %vm1326_vm3, %v1657_v38  ;;  %1385 = vst.msk [vmem:[%s2016_s18 + $0xe8] sm:$0xf] %vm1326_vm3, %v1689_v39  ;;  %v1658_v42 = vpack.c.bf16 %v1033_v40, %v1033_v40  ;;  %v1690_v43 = vpack.c.bf16 %v1065_v41, %v1065_v41 }
 0x171   : > { %v863_v44 = vpop.f32.mrb[56].mxu0  ;;  %v991_v45 = vpop.f32.mrb[56].mxu1 }
 0x172   : > { %1354 = vst.msk [vmem:[%s2016_s18 + $0x6c] sm:$0xf] %vm1326_vm3, %v1658_v42  ;;  %1386 = vst.msk [vmem:[%s2016_s18 + $0xec] sm:$0xf] %vm1326_vm3, %v1690_v43  ;;  %v864_v46 = vadd.f32 %v2006_v15, %v863_v44  ;;  %v992_v47 = vadd.f32 %v2006_v15, %v991_v45  ;;  %v865_v48 = vpop.f32.mrb[57].mxu0  ;;  %v993_v49 = vpop.f32.mrb[57].mxu1 }
 0x173   : > { %v866_v50 = vpop.f32.mrb[58].mxu0  ;;  %v994_v51 = vpop.f32.mrb[58].mxu1 }
 0x174   : > { %v1034_v52 = vmax.f32 %v864_v46, 0.0  ;;  %v1066_v53 = vmax.f32 %v992_v47, 0.0  ;;  %v867_v54 = vadd.f32 %v2006_v15, %v866_v50  ;;  %v995_v55 = vadd.f32 %v2006_v15, %v994_v51  ;;  %v868_v56 = vpop.f32.mrb[59].mxu0  ;;  %v996_v57 = vpop.f32.mrb[59].mxu1 }
 0x176   : > { %v1659_v58 = vpack.c.bf16 %v1034_v52, %v1034_v52  ;;  %v1691_v59 = vpack.c.bf16 %v1066_v53, %v1066_v53  ;;  %v1035_v60 = vmax.f32 %v867_v54, 0.0  ;;  %v1067_v61 = vmax.f32 %v995_v55, 0.0 }
 0x178   : > { %1355 = vst.msk [vmem:[%s2016_s18 + $0x70] sm:$0xf] %vm1326_vm3, %v1659_v58  ;;  %1387 = vst.msk [vmem:[%s2016_s18 + $0xf0] sm:$0xf] %vm1326_vm3, %v1691_v59  ;;  %v1660_v62 = vpack.c.bf16 %v1035_v60, %v1035_v60  ;;  %v1692_v63 = vpack.c.bf16 %v1067_v61, %v1067_v61 }
 0x179   : > { %v871_v0 = vpop.f32.mrb[60].mxu0  ;;  %v999_v1 = vpop.f32.mrb[60].mxu1 }
 0x17a   : > { %1356 = vst.msk [vmem:[%s2016_s18 + $0x74] sm:$0xf] %vm1326_vm3, %v1660_v62  ;;  %1388 = vst.msk [vmem:[%s2016_s18 + $0xf4] sm:$0xf] %vm1326_vm3, %v1692_v63  ;;  %v872_v2 = vadd.f32 %v2006_v15, %v871_v0  ;;  %v1000_v3 = vadd.f32 %v2006_v15, %v999_v1  ;;  %v873_v4 = vpop.f32.mrb[61].mxu0  ;;  %v1001_v5 = vpop.f32.mrb[61].mxu1 }
 0x17b   : > { %v874_v6 = vpop.f32.mrb[62].mxu0  ;;  %v1002_v7 = vpop.f32.mrb[62].mxu1 }
 0x17c   : > { %v1036_v8 = vmax.f32 %v872_v2, 0.0  ;;  %v1068_v9 = vmax.f32 %v1000_v3, 0.0  ;;  %v875_v10 = vadd.f32 %v2006_v15, %v874_v6  ;;  %v1003_v11 = vadd.f32 %v2006_v15, %v1002_v7  ;;  %v876_v12 = vpop.f32.mrb[63].mxu0  ;;  %v1004_v13 = vpop.f32.mrb[63].mxu1 }
 0x17e   : > { %v1661_v14 = vpack.c.bf16 %v1036_v8, %v1036_v8  ;;  %v1693_v16 = vpack.c.bf16 %v1068_v9, %v1068_v9  ;;  %v1037_v17 = vmax.f32 %v875_v10, 0.0  ;;  %v1069_v18 = vmax.f32 %v1003_v11, 0.0 }
 0x180   : > { %1357 = vst.msk [vmem:[%s2016_s18 + $0x78] sm:$0xf] %vm1326_vm3, %v1661_v14  ;;  %1389 = vst.msk [vmem:[%s2016_s18 + $0xf8] sm:$0xf] %vm1326_vm3, %v1693_v16  ;;  %v1662_v19 = vpack.c.bf16 %v1037_v17, %v1037_v17  ;;  %v1694_v20 = vpack.c.bf16 %v1069_v18, %v1069_v18 }
 0x182   : > { %1358 = vst.msk [vmem:[%s2016_s18 + $0x7c] sm:$0xf] %vm1326_vm3, %v1662_v19  ;;  %1390 = vst.msk [vmem:[%s2016_s18 + $0xfc] sm:$0xf] %vm1326_vm3, %v1694_v20 }
 0x183 PF: > { %s13_s12 = sadd.s32 1, %s1837_s12  }
 0x184   : > { %p10_p4 = scmp.ge.s32.totalorder %s13_s12, 6  }
 0x186   :  { %12 = sbr.rel (!%p10_p4) target bundleno = 1 (0x1), region = 62 }

// kernel: unipose_forward.24
= control target key start
LH: loop header
LB: loop body
LE: loop exit
PB: predicated region body
PF: predicated region fallthrough
CT: control target
= control target key end

     0   :  { %s1140_s12 = smov 0   ;;  %s1341_s0 = inlined_call_operand.vmem [shape: bf16[512,144], index: 0, kind: input, shape index: {}]   ;;  %s1342_s1 = inlined_call_operand.vmem [shape: bf16[144,32], index: 1, kind: input, shape index: {}]   ;;  %s1343_s2 = inlined_call_operand.vmem [shape: f32[1,32], index: 2, kind: input, shape index: {}]   ;;  %s1344_s3 = inlined_call_operand.vmem [shape: bf16[512,32], index: 3, kind: output, shape index: {}]  }
   0x1 LB: > { %s892_s13 = sadd.s32 4294967295, %s1117_s12   ;;  %p896_p0 = scmp.ge.s32.totalorder %s1117_s12, 1  ;;  %s1117_s12 = sphi %s1140_s12, %s13_s12  }
   0x2   : > { %p139_p1 = scmp.lt.s32.totalorder %s1117_s12, 3 }
   0x4   : > { %p140_p2 = pnand %p896_p0, %p139_p1 }
   0x5   : > { %v1054_v0 = vld [vmem:[%s1342_s1] sm:$0xff] (!%p140_p2)   ;;  %v1119_v1 = vmov (!%p140_p2), 0   ;;  %s897_s16 = sshll.u32 (!%p140_p2), %s892_s13, 5  ;;  %v1055_v2 = vld [vmem:[%s1342_s1 + $0x8] sm:$0xff] (!%p140_p2)   ;;  %v1056_v3 = vld [vmem:[%s1342_s1 + $0x10] sm:$0xff] (!%p140_p2)   ;;  %vm433_vm0 = vcmask (!%p140_p2), 130048  }
   0x6   : > { %143 = sbr.rel (%p140_p2) target bundleno = 319 (0x13f), region = 32  ;;  %482 = vmatprep.subr.bf16.mxu0 (!%p140_p2), %v1119_v1  ;;  %1027 = vmatprep.subr.bf16.mxu1 (!%p140_p2), %v1119_v1  ;;  %p165_p3 = scmp.lt.s32.totalorder (!%p140_p2), %s897_s16, 63  ;;  %v1057_v4 = vld [vmem:[%s1342_s1 + $0x18] sm:$0xff] (!%p140_p2)   ;;  %v1058_v7 = vld [vmem:[%s1342_s1 + $0x20] sm:$0xff] (!%p140_p2)   ;;  %v1059_v8 = vld [vmem:[%s1342_s1 + $0x28] sm:$0xff] (!%p140_p2)   ;;  %vm803_vm1 = vcmask (!%p140_p2), 257024  }
   0x7   : > { %483 = vmatpush1.bf16.msra.mxu0 (!%p140_p2), %v1054_v0  ;;  %1036 = vmatpush1.bf16.msra.mxu1 (!%p140_p2), %v1054_v0  ;;  %v1060_v9 = vld [vmem:[%s1342_s1 + $0x30] sm:$0xff] (!%p140_p2)   ;;  %v1061_v10 = vld [vmem:[%s1342_s1 + $0x38] sm:$0xff] (!%p140_p2)   ;;  %v1062_v11 = vld [vmem:[%s1342_s1 + $0x40] sm:$0xff] (!%p140_p2)  }
   0x8   : > { %484 = vmatprep.subr.bf16.mxu0 (!%p140_p2), %v1119_v1  ;;  %1028 = vmatprep.subr.bf16.mxu1 (!%p140_p2), %v1119_v1  ;;  %v1234_v42 = vld [vmem:[%s1343_s2] ss:$0 sm:$0xff] (!%p140_p2) }
   0xb   : > { %485 = vmatpush1.bf16.msra.mxu0 (!%p140_p2), %v1055_v2  ;;  %1037 = vmatpush1.bf16.msra.mxu1 (!%p140_p2), %v1055_v2 }
   0xc   : > { %486 = vmatprep.subr.bf16.mxu0 (!%p140_p2), %v1119_v1  ;;  %1029 = vmatprep.subr.bf16.mxu1 (!%p140_p2), %v1119_v1 }
   0xd   : > { %s1346_s16 = smov (!%p165_p3, %s897_s16), 63 }
   0xe   : > { %s994_s21 = sshll.u32 %s1346_s16, 3  ;;  %s901_s13 = sshll.u32 %s1346_s16, 2 }
   0xf   : > { %s1163_s24 = scalar_lea.vmem %s1341_s0, %s994_s21  ;;  %487 = vmatpush1.bf16.msra.mxu0 %v1056_v3  ;;  %1038 = vmatpush1.bf16.msra.mxu1 %v1056_v3  ;;  %s1244_s16 = scalar_lea.vmem %s1344_s3, %s901_s13 }
  0x10   : > { %v1065_v5 = vld [vmem:[%s1163_s24 + $0x4] ss:$8 sps:$4 sm:$0xff]   ;;  %488 = vmatprep.subr.bf16.mxu0 %v1119_v1  ;;  %1030 = vmatprep.subr.bf16.mxu1 %v1119_v1  ;;  %v1063_v12 = vld [vmem:[%s1163_s24] ss:$8 sps:$4 sm:$0xff]   ;;  %v1069_v14 = vld [vmem:[%s1163_s24 + $0x14] ss:$8 sps:$4 sm:$0xff]  }
  0x11   : > { %v1068_v6 = vld [vmem:[%s1163_s24 + $0x84] ss:$8 sps:$4 sm:$0xff]   ;;  %944 = vmatprep.mubr.msk.bf16.mxu0 %vm433_vm0, %v1065_v5  ;;  %v1066_v13 = vld [vmem:[%s1163_s24 + $0x80] ss:$8 sps:$4 sm:$0xff]   ;;  %v1071_v15 = vld [vmem:[%s1163_s24 + $0x94] ss:$8 sps:$4 sm:$0xff]  }
  0x12   : > { %952 = vmatprep.mubr.msk.bf16.mxu1 %vm433_vm0, %v1068_v6  ;;  %v1073_v16 = vld [vmem:[%s1163_s24 + $0x10] ss:$8 sps:$4 sm:$0xff]   ;;  %v1075_v18 = vld [vmem:[%s1163_s24 + $0x24] ss:$8 sps:$4 sm:$0xff]   ;;  %v1079_v20 = vld [vmem:[%s1163_s24 + $0x20] ss:$8 sps:$4 sm:$0xff]  }
  0x13   : > { %489 = vmatpush1.bf16.msra.mxu0 %v1057_v4  ;;  %1039 = vmatpush1.bf16.msra.mxu1 %v1057_v4  ;;  %v1074_v17 = vld [vmem:[%s1163_s24 + $0x90] ss:$8 sps:$4 sm:$0xff]   ;;  %v1077_v19 = vld [vmem:[%s1163_s24 + $0xa4] ss:$8 sps:$4 sm:$0xff]   ;;  %v1080_v21 = vld [vmem:[%s1163_s24 + $0xa0] ss:$8 sps:$4 sm:$0xff]  }
  0x14   : > { %490 = vmatprep.subr.bf16.mxu0 %v1119_v1  ;;  %1031 = vmatprep.subr.bf16.mxu1 %v1119_v1  ;;  %v1081_v22 = vld [vmem:[%s1163_s24 + $0x34] ss:$8 sps:$4 sm:$0xff]   ;;  %v1085_v24 = vld [vmem:[%s1163_s24 + $0x30] ss:$8 sps:$4 sm:$0xff]   ;;  %v1087_v26 = vld [vmem:[%s1163_s24 + $0x44] ss:$8 sps:$4 sm:$0xff]  }
  0x15   : > { %v1083_v23 = vld [vmem:[%s1163_s24 + $0xb4] ss:$8 sps:$4 sm:$0xff]   ;;  %v1086_v25 = vld [vmem:[%s1163_s24 + $0xb0] ss:$8 sps:$4 sm:$0xff]   ;;  %v1089_v27 = vld [vmem:[%s1163_s24 + $0xc4] ss:$8 sps:$4 sm:$0xff]  }
  0x16   : > { %v1091_v28 = vld [vmem:[%s1163_s24 + $0x40] ss:$8 sps:$4 sm:$0xff]   ;;  %v1093_v30 = vld [vmem:[%s1163_s24 + $0x54] ss:$8 sps:$4 sm:$0xff]   ;;  %v1097_v32 = vld [vmem:[%s1163_s24 + $0x50] ss:$8 sps:$4 sm:$0xff]  }
  0x17   : > { %491 = vmatpush1.bf16.msra.mxu0 %v1058_v7  ;;  %1040 = vmatpush1.bf16.msra.mxu1 %v1058_v7  ;;  %v1092_v29 = vld [vmem:[%s1163_s24 + $0xc0] ss:$8 sps:$4 sm:$0xff]   ;;  %v1095_v31 = vld [vmem:[%s1163_s24 + $0xd4] ss:$8 sps:$4 sm:$0xff]   ;;  %v1098_v33 = vld [vmem:[%s1163_s24 + $0xd0] ss:$8 sps:$4 sm:$0xff]  }
  0x18   : > { %492 = vmatprep.subr.bf16.mxu0 %v1119_v1  ;;  %1032 = vmatprep.subr.bf16.mxu1 %v1119_v1  ;;  %v1099_v34 = vld [vmem:[%s1163_s24 + $0x64] ss:$8 sps:$4 sm:$0xff]   ;;  %v1103_v36 = vld [vmem:[%s1163_s24 + $0x60] ss:$8 sps:$4 sm:$0xff]   ;;  %v1105_v38 = vld [vmem:[%s1163_s24 + $0x74] ss:$8 sps:$4 sm:$0xff]  }
  0x19   : > { %v1101_v35 = vld [vmem:[%s1163_s24 + $0xe4] ss:$8 sps:$4 sm:$0xff]   ;;  %v1104_v37 = vld [vmem:[%s1163_s24 + $0xe0] ss:$8 sps:$4 sm:$0xff]   ;;  %v1107_v39 = vld [vmem:[%s1163_s24 + $0xf4] ss:$8 sps:$4 sm:$0xff]  }
  0x1a   : > { %v1109_v40 = vld [vmem:[%s1163_s24 + $0x70] ss:$8 sps:$4 sm:$0xff]  }
  0x1b   : > { %493 = vmatpush1.bf16.msra.mxu0 %v1059_v8  ;;  %1041 = vmatpush1.bf16.msra.mxu1 %v1059_v8  ;;  %v1110_v41 = vld [vmem:[%s1163_s24 + $0xf0] ss:$8 sps:$4 sm:$0xff]  }
  0x1c   : > { %494 = vmatprep.subr.bf16.mxu0 %v1119_v1  ;;  %1033 = vmatprep.subr.bf16.mxu1 %v1119_v1 }
  0x1f   : > { %495 = vmatpush1.bf16.msra.mxu0 %v1060_v9  ;;  %1042 = vmatpush1.bf16.msra.mxu1 %v1060_v9 }
  0x20   : > { %496 = vmatprep.subr.bf16.mxu0 %v1119_v1  ;;  %1034 = vmatprep.subr.bf16.mxu1 %v1119_v1 }
  0x23   : > { %497 = vmatpush1.bf16.msra.mxu0 %v1061_v10  ;;  %1043 = vmatpush1.bf16.msra.mxu1 %v1061_v10 }
  0x24   : > { %498 = vmatprep.subr.bf16.mxu0 %v1119_v1  ;;  %1035 = vmatprep.subr.bf16.mxu1 %v1119_v1 }
  0x27   : > { %499 = vmatpush1.bf16.msra.mxu0 %v1062_v11  ;;  %1044 = vmatpush1.bf16.msra.mxu1 %v1062_v11 }
  0x2a   : > { %515 = vmatmul.mubr.bf16.vlgmr.msra.gmra.mrb[0].mxu0 %v1063_v12  ;;  %579 = vmatmul.mubr.bf16.vlgmr.msra.gmra.mrb[0].mxu1 %v1066_v13 }
  0x2b   : > { %945 = vmatprep.mubr.msk.bf16.mxu0 %vm433_vm0, %v1069_v14  ;;  %953 = vmatprep.mubr.msk.bf16.mxu1 %vm433_vm0, %v1071_v15 }
  0x32   : > { %523 = vmatmul.mubr.bf16.gmra.mrb[4].mxu0 %v1073_v16  ;;  %587 = vmatmul.mubr.bf16.gmra.mrb[4].mxu1 %v1074_v17 }
  0x33   : > { %946 = vmatprep.mubr.msk.bf16.mxu0 %vm433_vm0, %v1075_v18  ;;  %954 = vmatprep.mubr.msk.bf16.mxu1 %vm433_vm0, %v1077_v19 }
  0x3a   : > { %531 = vmatmul.mubr.bf16.gmra.mrb[8].mxu0 %v1079_v20  ;;  %595 = vmatmul.mubr.bf16.gmra.mrb[8].mxu1 %v1080_v21 }
  0x3b   : > { %947 = vmatprep.mubr.msk.bf16.mxu0 %vm433_vm0, %v1081_v22  ;;  %955 = vmatprep.mubr.msk.bf16.mxu1 %vm433_vm0, %v1083_v23 }
  0x42   : > { %539 = vmatmul.mubr.bf16.gmra.mrb[12].mxu0 %v1085_v24  ;;  %603 = vmatmul.mubr.bf16.gmra.mrb[12].mxu1 %v1086_v25 }
  0x43   : > { %948 = vmatprep.mubr.msk.bf16.mxu0 %vm433_vm0, %v1087_v26  ;;  %956 = vmatprep.mubr.msk.bf16.mxu1 %vm433_vm0, %v1089_v27 }
  0x4a   : > { %547 = vmatmul.mubr.bf16.gmra.mrb[16].mxu0 %v1091_v28  ;;  %611 = vmatmul.mubr.bf16.gmra.mrb[16].mxu1 %v1092_v29 }
  0x4b   : > { %949 = vmatprep.mubr.msk.bf16.mxu0 %vm433_vm0, %v1093_v30  ;;  %957 = vmatprep.mubr.msk.bf16.mxu1 %vm433_vm0, %v1095_v31 }
  0x52   : > { %555 = vmatmul.mubr.bf16.gmra.mrb[20].mxu0 %v1097_v32  ;;  %619 = vmatmul.mubr.bf16.gmra.mrb[20].mxu1 %v1098_v33 }
  0x53   : > { %950 = vmatprep.mubr.msk.bf16.mxu0 %vm433_vm0, %v1099_v34  ;;  %958 = vmatprep.mubr.msk.bf16.mxu1 %vm433_vm0, %v1101_v35 }
  0x5a   : > { %563 = vmatmul.mubr.bf16.gmra.mrb[24].mxu0 %v1103_v36  ;;  %627 = vmatmul.mubr.bf16.gmra.mrb[24].mxu1 %v1104_v37 }
  0x5b   : > { %951 = vmatprep.mubr.msk.bf16.mxu0 %vm433_vm0, %v1105_v38  ;;  %959 = vmatprep.mubr.msk.bf16.mxu1 %vm433_vm0, %v1107_v39 }
  0x62   : > { %571 = vmatmul.mubr.bf16.gmra.mrb[28].mxu0 %v1109_v40  ;;  %635 = vmatmul.mubr.bf16.gmra.mrb[28].mxu1 %v1110_v41 }
  0xfd   : > { %v516_v43 = vpop.f32.mrb[0].mxu0  ;;  %v580_v44 = vpop.f32.mrb[0].mxu1 }
  0xfe   : > { %v517_v45 = vadd.f32 %v1234_v42, %v516_v43  ;;  %v581_v46 = vadd.f32 %v1234_v42, %v580_v44  ;;  %v518_v47 = vpop.f32.mrb[1].mxu0  ;;  %v582_v48 = vpop.f32.mrb[1].mxu1 }
  0xff   : > { %v519_v49 = vpop.f32.mrb[2].mxu0  ;;  %v583_v50 = vpop.f32.mrb[2].mxu1 }
 0x100   : > { %v643_v51 = vmax.f32 %v517_v45, 0.0  ;;  %v659_v52 = vmax.f32 %v581_v46, 0.0  ;;  %v520_v53 = vadd.f32 %v1234_v42, %v519_v49  ;;  %v584_v54 = vadd.f32 %v1234_v42, %v583_v50  ;;  %v521_v55 = vpop.f32.mrb[3].mxu0  ;;  %v585_v56 = vpop.f32.mrb[3].mxu1 }
 0x102   : > { %v995_v57 = vpack.c.bf16 %v643_v51, %v643_v51  ;;  %v1011_v58 = vpack.c.bf16 %v659_v52, %v659_v52  ;;  %v644_v59 = vmax.f32 %v520_v53, 0.0  ;;  %v660_v60 = vmax.f32 %v584_v54, 0.0 }
 0x104   : > { %804 = vst.msk [vmem:[%s1244_s16] sm:$0xf] %vm803_vm1, %v995_v57  ;;  %820 = vst.msk [vmem:[%s1244_s16 + $0x40] sm:$0xf] %vm803_vm1, %v1011_v58  ;;  %v996_v61 = vpack.c.bf16 %v644_v59, %v644_v59  ;;  %v1012_v62 = vpack.c.bf16 %v660_v60, %v660_v60 }
 0x105   : > { %v524_v63 = vpop.f32.mrb[4].mxu0  ;;  %v588_v0 = vpop.f32.mrb[4].mxu1 }
 0x106   : > { %805 = vst.msk [vmem:[%s1244_s16 + $0x4] sm:$0xf] %vm803_vm1, %v996_v61  ;;  %821 = vst.msk [vmem:[%s1244_s16 + $0x44] sm:$0xf] %vm803_vm1, %v1012_v62  ;;  %v525_v1 = vadd.f32 %v1234_v42, %v524_v63  ;;  %v589_v2 = vadd.f32 %v1234_v42, %v588_v0  ;;  %v526_v3 = vpop.f32.mrb[5].mxu0  ;;  %v590_v4 = vpop.f32.mrb[5].mxu1 }
 0x107   : > { %v527_v5 = vpop.f32.mrb[6].mxu0  ;;  %v591_v6 = vpop.f32.mrb[6].mxu1 }
 0x108   : > { %v645_v7 = vmax.f32 %v525_v1, 0.0  ;;  %v661_v8 = vmax.f32 %v589_v2, 0.0  ;;  %v528_v9 = vadd.f32 %v1234_v42, %v527_v5  ;;  %v592_v10 = vadd.f32 %v1234_v42, %v591_v6  ;;  %v529_v11 = vpop.f32.mrb[7].mxu0  ;;  %v593_v12 = vpop.f32.mrb[7].mxu1 }
 0x10a   : > { %v997_v13 = vpack.c.bf16 %v645_v7, %v645_v7  ;;  %v1013_v14 = vpack.c.bf16 %v661_v8, %v661_v8  ;;  %v646_v15 = vmax.f32 %v528_v9, 0.0  ;;  %v662_v16 = vmax.f32 %v592_v10, 0.0 }
 0x10c   : > { %806 = vst.msk [vmem:[%s1244_s16 + $0x8] sm:$0xf] %vm803_vm1, %v997_v13  ;;  %822 = vst.msk [vmem:[%s1244_s16 + $0x48] sm:$0xf] %vm803_vm1, %v1013_v14  ;;  %v998_v17 = vpack.c.bf16 %v646_v15, %v646_v15  ;;  %v1014_v18 = vpack.c.bf16 %v662_v16, %v662_v16 }
 0x10d   : > { %v532_v19 = vpop.f32.mrb[8].mxu0  ;;  %v596_v20 = vpop.f32.mrb[8].mxu1 }
 0x10e   : > { %807 = vst.msk [vmem:[%s1244_s16 + $0xc] sm:$0xf] %vm803_vm1, %v998_v17  ;;  %823 = vst.msk [vmem:[%s1244_s16 + $0x4c] sm:$0xf] %vm803_vm1, %v1014_v18  ;;  %v533_v21 = vadd.f32 %v1234_v42, %v532_v19  ;;  %v597_v22 = vadd.f32 %v1234_v42, %v596_v20  ;;  %v534_v23 = vpop.f32.mrb[9].mxu0  ;;  %v598_v24 = vpop.f32.mrb[9].mxu1 }
 0x10f   : > { %v535_v25 = vpop.f32.mrb[10].mxu0  ;;  %v599_v26 = vpop.f32.mrb[10].mxu1 }
 0x110   : > { %v647_v27 = vmax.f32 %v533_v21, 0.0  ;;  %v663_v28 = vmax.f32 %v597_v22, 0.0  ;;  %v536_v29 = vadd.f32 %v1234_v42, %v535_v25  ;;  %v600_v30 = vadd.f32 %v1234_v42, %v599_v26  ;;  %v537_v31 = vpop.f32.mrb[11].mxu0  ;;  %v601_v32 = vpop.f32.mrb[11].mxu1 }
 0x112   : > { %v999_v33 = vpack.c.bf16 %v647_v27, %v647_v27  ;;  %v1015_v34 = vpack.c.bf16 %v663_v28, %v663_v28  ;;  %v648_v35 = vmax.f32 %v536_v29, 0.0  ;;  %v664_v36 = vmax.f32 %v600_v30, 0.0 }
 0x114   : > { %808 = vst.msk [vmem:[%s1244_s16 + $0x10] sm:$0xf] %vm803_vm1, %v999_v33  ;;  %824 = vst.msk [vmem:[%s1244_s16 + $0x50] sm:$0xf] %vm803_vm1, %v1015_v34  ;;  %v1000_v37 = vpack.c.bf16 %v648_v35, %v648_v35  ;;  %v1016_v38 = vpack.c.bf16 %v664_v36, %v664_v36 }
 0x115   : > { %v540_v39 = vpop.f32.mrb[12].mxu0  ;;  %v604_v40 = vpop.f32.mrb[12].mxu1 }
 0x116   : > { %809 = vst.msk [vmem:[%s1244_s16 + $0x14] sm:$0xf] %vm803_vm1, %v1000_v37  ;;  %825 = vst.msk [vmem:[%s1244_s16 + $0x54] sm:$0xf] %vm803_vm1, %v1016_v38  ;;  %v541_v41 = vadd.f32 %v1234_v42, %v540_v39  ;;  %v605_v43 = vadd.f32 %v1234_v42, %v604_v40  ;;  %v542_v44 = vpop.f32.mrb[13].mxu0  ;;  %v606_v45 = vpop.f32.mrb[13].mxu1 }
 0x117   : > { %v543_v46 = vpop.f32.mrb[14].mxu0  ;;  %v607_v47 = vpop.f32.mrb[14].mxu1 }
 0x118   : > { %v649_v48 = vmax.f32 %v541_v41, 0.0  ;;  %v665_v49 = vmax.f32 %v605_v43, 0.0  ;;  %v544_v50 = vadd.f32 %v1234_v42, %v543_v46  ;;  %v608_v51 = vadd.f32 %v1234_v42, %v607_v47  ;;  %v545_v52 = vpop.f32.mrb[15].mxu0  ;;  %v609_v53 = vpop.f32.mrb[15].mxu1 }
 0x11a   : > { %v1001_v54 = vpack.c.bf16 %v649_v48, %v649_v48  ;;  %v1017_v55 = vpack.c.bf16 %v665_v49, %v665_v49  ;;  %v650_v56 = vmax.f32 %v544_v50, 0.0  ;;  %v666_v57 = vmax.f32 %v608_v51, 0.0 }
 0x11c   : > { %810 = vst.msk [vmem:[%s1244_s16 + $0x18] sm:$0xf] %vm803_vm1, %v1001_v54  ;;  %826 = vst.msk [vmem:[%s1244_s16 + $0x58] sm:$0xf] %vm803_vm1, %v1017_v55  ;;  %v1002_v58 = vpack.c.bf16 %v650_v56, %v650_v56  ;;  %v1018_v59 = vpack.c.bf16 %v666_v57, %v666_v57 }
 0x11d   : > { %v548_v60 = vpop.f32.mrb[16].mxu0  ;;  %v612_v61 = vpop.f32.mrb[16].mxu1 }
 0x11e   : > { %811 = vst.msk [vmem:[%s1244_s16 + $0x1c] sm:$0xf] %vm803_vm1, %v1002_v58  ;;  %827 = vst.msk [vmem:[%s1244_s16 + $0x5c] sm:$0xf] %vm803_vm1, %v1018_v59  ;;  %v549_v62 = vadd.f32 %v1234_v42, %v548_v60  ;;  %v613_v63 = vadd.f32 %v1234_v42, %v612_v61  ;;  %v550_v0 = vpop.f32.mrb[17].mxu0  ;;  %v614_v1 = vpop.f32.mrb[17].mxu1 }
 0x11f   : > { %v551_v2 = vpop.f32.mrb[18].mxu0  ;;  %v615_v3 = vpop.f32.mrb[18].mxu1 }
 0x120   : > { %v651_v4 = vmax.f32 %v549_v62, 0.0  ;;  %v667_v5 = vmax.f32 %v613_v63, 0.0  ;;  %v552_v6 = vadd.f32 %v1234_v42, %v551_v2  ;;  %v616_v7 = vadd.f32 %v1234_v42, %v615_v3  ;;  %v553_v8 = vpop.f32.mrb[19].mxu0  ;;  %v617_v9 = vpop.f32.mrb[19].mxu1 }
 0x122   : > { %v1003_v10 = vpack.c.bf16 %v651_v4, %v651_v4  ;;  %v1019_v11 = vpack.c.bf16 %v667_v5, %v667_v5  ;;  %v652_v12 = vmax.f32 %v552_v6, 0.0  ;;  %v668_v13 = vmax.f32 %v616_v7, 0.0 }
 0x124   : > { %812 = vst.msk [vmem:[%s1244_s16 + $0x20] sm:$0xf] %vm803_vm1, %v1003_v10  ;;  %828 = vst.msk [vmem:[%s1244_s16 + $0x60] sm:$0xf] %vm803_vm1, %v1019_v11  ;;  %v1004_v14 = vpack.c.bf16 %v652_v12, %v652_v12  ;;  %v1020_v15 = vpack.c.bf16 %v668_v13, %v668_v13 }
 0x125   : > { %v556_v16 = vpop.f32.mrb[20].mxu0  ;;  %v620_v17 = vpop.f32.mrb[20].mxu1 }
 0x126   : > { %813 = vst.msk [vmem:[%s1244_s16 + $0x24] sm:$0xf] %vm803_vm1, %v1004_v14  ;;  %829 = vst.msk [vmem:[%s1244_s16 + $0x64] sm:$0xf] %vm803_vm1, %v1020_v15  ;;  %v557_v18 = vadd.f32 %v1234_v42, %v556_v16  ;;  %v621_v19 = vadd.f32 %v1234_v42, %v620_v17  ;;  %v558_v20 = vpop.f32.mrb[21].mxu0  ;;  %v622_v21 = vpop.f32.mrb[21].mxu1 }
 0x127   : > { %v559_v22 = vpop.f32.mrb[22].mxu0  ;;  %v623_v23 = vpop.f32.mrb[22].mxu1 }
 0x128   : > { %v653_v24 = vmax.f32 %v557_v18, 0.0  ;;  %v669_v25 = vmax.f32 %v621_v19, 0.0  ;;  %v560_v26 = vadd.f32 %v1234_v42, %v559_v22  ;;  %v624_v27 = vadd.f32 %v1234_v42, %v623_v23  ;;  %v561_v28 = vpop.f32.mrb[23].mxu0  ;;  %v625_v29 = vpop.f32.mrb[23].mxu1 }
 0x12a   : > { %v1005_v30 = vpack.c.bf16 %v653_v24, %v653_v24  ;;  %v1021_v31 = vpack.c.bf16 %v669_v25, %v669_v25  ;;  %v654_v32 = vmax.f32 %v560_v26, 0.0  ;;  %v670_v33 = vmax.f32 %v624_v27, 0.0 }
 0x12c   : > { %814 = vst.msk [vmem:[%s1244_s16 + $0x28] sm:$0xf] %vm803_vm1, %v1005_v30  ;;  %830 = vst.msk [vmem:[%s1244_s16 + $0x68] sm:$0xf] %vm803_vm1, %v1021_v31  ;;  %v1006_v34 = vpack.c.bf16 %v654_v32, %v654_v32  ;;  %v1022_v35 = vpack.c.bf16 %v670_v33, %v670_v33 }
 0x12d   : > { %v564_v36 = vpop.f32.mrb[24].mxu0  ;;  %v628_v37 = vpop.f32.mrb[24].mxu1 }
 0x12e   : > { %815 = vst.msk [vmem:[%s1244_s16 + $0x2c] sm:$0xf] %vm803_vm1, %v1006_v34  ;;  %831 = vst.msk [vmem:[%s1244_s16 + $0x6c] sm:$0xf] %vm803_vm1, %v1022_v35  ;;  %v565_v38 = vadd.f32 %v1234_v42, %v564_v36  ;;  %v629_v39 = vadd.f32 %v1234_v42, %v628_v37  ;;  %v566_v40 = vpop.f32.mrb[25].mxu0  ;;  %v630_v41 = vpop.f32.mrb[25].mxu1 }
 0x12f   : > { %v567_v43 = vpop.f32.mrb[26].mxu0  ;;  %v631_v44 = vpop.f32.mrb[26].mxu1 }
 0x130   : > { %v655_v45 = vmax.f32 %v565_v38, 0.0  ;;  %v671_v46 = vmax.f32 %v629_v39, 0.0  ;;  %v568_v47 = vadd.f32 %v1234_v42, %v567_v43  ;;  %v632_v48 = vadd.f32 %v1234_v42, %v631_v44  ;;  %v569_v49 = vpop.f32.mrb[27].mxu0  ;;  %v633_v50 = vpop.f32.mrb[27].mxu1 }
 0x132   : > { %v1007_v51 = vpack.c.bf16 %v655_v45, %v655_v45  ;;  %v1023_v52 = vpack.c.bf16 %v671_v46, %v671_v46  ;;  %v656_v53 = vmax.f32 %v568_v47, 0.0  ;;  %v672_v54 = vmax.f32 %v632_v48, 0.0 }
 0x134   : > { %816 = vst.msk [vmem:[%s1244_s16 + $0x30] sm:$0xf] %vm803_vm1, %v1007_v51  ;;  %832 = vst.msk [vmem:[%s1244_s16 + $0x70] sm:$0xf] %vm803_vm1, %v1023_v52  ;;  %v1008_v55 = vpack.c.bf16 %v656_v53, %v656_v53  ;;  %v1024_v56 = vpack.c.bf16 %v672_v54, %v672_v54 }
 0x135   : > { %v572_v57 = vpop.f32.mrb[28].mxu0  ;;  %v636_v58 = vpop.f32.mrb[28].mxu1 }
 0x136   : > { %817 = vst.msk [vmem:[%s1244_s16 + $0x34] sm:$0xf] %vm803_vm1, %v1008_v55  ;;  %833 = vst.msk [vmem:[%s1244_s16 + $0x74] sm:$0xf] %vm803_vm1, %v1024_v56  ;;  %v573_v59 = vadd.f32 %v1234_v42, %v572_v57  ;;  %v637_v60 = vadd.f32 %v1234_v42, %v636_v58  ;;  %v574_v61 = vpop.f32.mrb[29].mxu0  ;;  %v638_v62 = vpop.f32.mrb[29].mxu1 }
 0x137   : > { %v575_v63 = vpop.f32.mrb[30].mxu0  ;;  %v639_v0 = vpop.f32.mrb[30].mxu1 }
 0x138   : > { %v657_v1 = vmax.f32 %v573_v59, 0.0  ;;  %v673_v2 = vmax.f32 %v637_v60, 0.0  ;;  %v576_v3 = vadd.f32 %v1234_v42, %v575_v63  ;;  %v640_v4 = vadd.f32 %v1234_v42, %v639_v0  ;;  %v577_v5 = vpop.f32.mrb[31].mxu0  ;;  %v641_v6 = vpop.f32.mrb[31].mxu1 }
 0x13a   : > { %v1009_v7 = vpack.c.bf16 %v657_v1, %v657_v1  ;;  %v1025_v8 = vpack.c.bf16 %v673_v2, %v673_v2  ;;  %v658_v9 = vmax.f32 %v576_v3, 0.0  ;;  %v674_v10 = vmax.f32 %v640_v4, 0.0 }
 0x13c   : > { %818 = vst.msk [vmem:[%s1244_s16 + $0x38] sm:$0xf] %vm803_vm1, %v1009_v7  ;;  %834 = vst.msk [vmem:[%s1244_s16 + $0x78] sm:$0xf] %vm803_vm1, %v1025_v8  ;;  %v1010_v11 = vpack.c.bf16 %v658_v9, %v658_v9  ;;  %v1026_v12 = vpack.c.bf16 %v674_v10, %v674_v10 }
 0x13e   : > { %819 = vst.msk [vmem:[%s1244_s16 + $0x3c] sm:$0xf] %vm803_vm1, %v1010_v11  ;;  %835 = vst.msk [vmem:[%s1244_s16 + $0x7c] sm:$0xf] %vm803_vm1, %v1026_v12 }
 0x13f PF: > { %s13_s12 = sadd.s32 1, %s1117_s12  }
 0x140   : > { %p10_p4 = scmp.ge.s32.totalorder %s13_s12, 4  }
 0x142   :  { %12 = sbr.rel (!%p10_p4) target bundleno = 1 (0x1), region = 62 }

// kernel: unipose_forward.25
= control target key start
LH: loop header
LB: loop body
LE: loop exit
PB: predicated region body
PF: predicated region fallthrough
CT: control target
= control target key end

     0   :  { %s944_s12 = smov 0   ;;  %s1108_s0 = inlined_call_operand.vmem [shape: bf16[512,16], index: 0, kind: input, shape index: {}]   ;;  %s1109_s1 = inlined_call_operand.vmem [shape: bf16[16,32], index: 1, kind: input, shape index: {}]   ;;  %s1110_s2 = inlined_call_operand.vmem [shape: f32[1,32], index: 2, kind: input, shape index: {}]   ;;  %s1111_s3 = inlined_call_operand.vmem [shape: bf16[512,32], index: 3, kind: output, shape index: {}]  }
   0x1 LB: > { %s729_s13 = sadd.s32 4294967295, %s922_s12   ;;  %p733_p0 = scmp.ge.s32.totalorder %s922_s12, 1  ;;  %s922_s12 = sphi %s944_s12, %s13_s12  }
   0x2   : > { %p138_p1 = scmp.lt.s32.totalorder %s922_s12, 3 }
   0x4   : > { %p139_p2 = pnand %p733_p0, %p138_p1 }
   0x5   : > { %v899_v0 = vld [vmem:[%s1109_s1] sm:$0xff] (!%p139_p2)   ;;  %s734_s16 = sshll.u32 (!%p139_p2), %s729_s13, 5  ;;  %vm302_vm0 = vcmask (!%p139_p2), 130048   ;;  %vm640_vm1 = vcmask (!%p139_p2), 257024  }
   0x6   : > { %142 = sbr.rel (%p139_p2) target bundleno = 263 (0x107), region = 32  ;;  %p163_p3 = scmp.lt.s32.totalorder (!%p139_p2), %s734_s16, 63  ;;  %855 = vmatprep.subr.bf16.mxu0 (!%p139_p2), %v899_v0  ;;  %889 = vmatprep.subr.bf16.mxu1 (!%p139_p2), %v899_v0  ;;  %v1000_v17 = vld [vmem:[%s1110_s2] ss:$0 sm:$0xff] (!%p139_p2) }
   0x7   : > { %856 = vmatpush3.bf16.msra.mxu0 (!%p139_p2), %v899_v0  ;;  %890 = vmatpush3.bf16.msra.mxu1 (!%p139_p2), %v899_v0 }
   0xd   : > { %s1113_s16 = smov (!%p163_p3, %s734_s16), 63 }
   0xe   : > { %s735_s17 = sshll.u32 %s1113_s16, 2 }
   0xf   : > { %s963_s20 = scalar_lea.vmem %s1108_s0, %s735_s17  ;;  %s1008_s25 = scalar_lea.vmem %s1111_s3, %s735_s17 }
  0x10   : > { %v900_v1 = vld [vmem:[%s963_s20] sm:$0xff]   ;;  %v902_v3 = vld [vmem:[%s963_s20 + $0x8] sm:$0xff]   ;;  %v904_v5 = vld [vmem:[%s963_s20 + $0x10] sm:$0xff]  }
  0x11   : > { %v901_v2 = vld [vmem:[%s963_s20 + $0x40] sm:$0xff]   ;;  %857 = vmatprep.mubr.msk.bf16.mxu0 %vm302_vm0, %v900_v1  ;;  %v903_v4 = vld [vmem:[%s963_s20 + $0x48] sm:$0xff]   ;;  %v905_v6 = vld [vmem:[%s963_s20 + $0x50] sm:$0xff]  }
  0x12   : > { %873 = vmatprep.mubr.msk.bf16.mxu1 %vm302_vm0, %v901_v2  ;;  %858 = vmatmul.mubr.msk.bf16.vlgmr.msra.gmra.mrb[0].mxu0 %vm302_vm0, %v902_v3  ;;  %v906_v7 = vld [vmem:[%s963_s20 + $0x18] sm:$0xff]   ;;  %v908_v9 = vld [vmem:[%s963_s20 + $0x20] sm:$0xff]   ;;  %v910_v11 = vld [vmem:[%s963_s20 + $0x28] sm:$0xff]  }
  0x13   : > { %874 = vmatmul.mubr.msk.bf16.vlgmr.msra.gmra.mrb[0].mxu1 %vm302_vm0, %v903_v4  ;;  %861 = vmatprep.mubr.msk.bf16.mxu0 %vm302_vm0, %v904_v5  ;;  %v907_v8 = vld [vmem:[%s963_s20 + $0x58] sm:$0xff]   ;;  %v909_v10 = vld [vmem:[%s963_s20 + $0x60] sm:$0xff]   ;;  %v911_v12 = vld [vmem:[%s963_s20 + $0x68] sm:$0xff]  }
  0x14   : > { %877 = vmatprep.mubr.msk.bf16.mxu1 %vm302_vm0, %v905_v6  ;;  %v912_v13 = vld [vmem:[%s963_s20 + $0x30] sm:$0xff]   ;;  %v914_v15 = vld [vmem:[%s963_s20 + $0x38] sm:$0xff]  }
  0x15   : > { %v913_v14 = vld [vmem:[%s963_s20 + $0x70] sm:$0xff]   ;;  %v915_v16 = vld [vmem:[%s963_s20 + $0x78] sm:$0xff]  }
  0x1a   : > { %862 = vmatmul.mubr.msk.bf16.gmra.mrb[4].mxu0 %vm302_vm0, %v906_v7 }
  0x1b   : > { %878 = vmatmul.mubr.msk.bf16.gmra.mrb[4].mxu1 %vm302_vm0, %v907_v8  ;;  %865 = vmatprep.mubr.msk.bf16.mxu0 %vm302_vm0, %v908_v9 }
  0x1c   : > { %881 = vmatprep.mubr.msk.bf16.mxu1 %vm302_vm0, %v909_v10 }
  0x22   : > { %866 = vmatmul.mubr.msk.bf16.gmra.mrb[8].mxu0 %vm302_vm0, %v910_v11 }
  0x23   : > { %882 = vmatmul.mubr.msk.bf16.gmra.mrb[8].mxu1 %vm302_vm0, %v911_v12  ;;  %869 = vmatprep.mubr.msk.bf16.mxu0 %vm302_vm0, %v912_v13 }
  0x24   : > { %885 = vmatprep.mubr.msk.bf16.mxu1 %vm302_vm0, %v913_v14 }
  0x2a   : > { %870 = vmatmul.mubr.msk.bf16.gmra.mrb[12].mxu0 %vm302_vm0, %v914_v15 }
  0x2b   : > { %886 = vmatmul.mubr.msk.bf16.gmra.mrb[12].mxu1 %vm302_vm0, %v915_v16 }
  0xe5   : > { %v859_v18 = vpop.f32.mrb[0].mxu0 }
  0xe6   : > { %v394_v19 = vadd.f32 %v859_v18, %v1000_v17  ;;  %v875_v20 = vpop.f32.mrb[0].mxu1  ;;  %v385_v21 = vpop.f32.mrb[1].mxu0 }
  0xe7   : > { %v458_v22 = vadd.f32 %v875_v20, %v1000_v17  ;;  %v386_v23 = vadd.f32 %v1000_v17, %v385_v21  ;;  %v449_v24 = vpop.f32.mrb[1].mxu1  ;;  %v860_v25 = vpop.f32.mrb[2].mxu0 }
  0xe8   : > { %v808_v26 = vpack.c.bf16 %v394_v19, %v394_v19  ;;  %v450_v27 = vadd.f32 %v1000_v17, %v449_v24  ;;  %v397_v28 = vadd.f32 %v860_v25, %v1000_v17  ;;  %v876_v29 = vpop.f32.mrb[2].mxu1  ;;  %v388_v30 = vpop.f32.mrb[3].mxu0 }
  0xe9   : > { %v824_v31 = vpack.c.bf16 %v458_v22, %v458_v22  ;;  %v806_v32 = vpack.c.bf16 %v386_v23, %v386_v23  ;;  %v461_v33 = vadd.f32 %v876_v29, %v1000_v17  ;;  %v389_v34 = vadd.f32 %v1000_v17, %v388_v30  ;;  %v452_v35 = vpop.f32.mrb[3].mxu1 }
  0xea   : > { %643 = vst.msk [vmem:[%s1008_s25 + $0x8] sm:$0xf] %vm640_vm1, %v808_v26  ;;  %v822_v36 = vpack.c.bf16 %v450_v27, %v450_v27  ;;  %v809_v37 = vpack.c.bf16 %v397_v28, %v397_v28  ;;  %v453_v38 = vadd.f32 %v1000_v17, %v452_v35 }
  0xeb   : > { %659 = vst.msk [vmem:[%s1008_s25 + $0x48] sm:$0xf] %vm640_vm1, %v824_v31  ;;  %641 = vst.msk [vmem:[%s1008_s25] sm:$0xf] %vm640_vm1, %v806_v32  ;;  %v825_v39 = vpack.c.bf16 %v461_v33, %v461_v33  ;;  %v807_v40 = vpack.c.bf16 %v389_v34, %v389_v34 }
  0xec   : > { %657 = vst.msk [vmem:[%s1008_s25 + $0x40] sm:$0xf] %vm640_vm1, %v822_v36  ;;  %644 = vst.msk [vmem:[%s1008_s25 + $0xc] sm:$0xf] %vm640_vm1, %v809_v37  ;;  %v823_v41 = vpack.c.bf16 %v453_v38, %v453_v38 }
  0xed   : > { %660 = vst.msk [vmem:[%s1008_s25 + $0x4c] sm:$0xf] %vm640_vm1, %v825_v39  ;;  %642 = vst.msk [vmem:[%s1008_s25 + $0x4] sm:$0xf] %vm640_vm1, %v807_v40  ;;  %v863_v42 = vpop.f32.mrb[4].mxu0 }
  0xee   : > { %658 = vst.msk [vmem:[%s1008_s25 + $0x44] sm:$0xf] %vm640_vm1, %v823_v41  ;;  %v410_v43 = vadd.f32 %v863_v42, %v1000_v17  ;;  %v879_v44 = vpop.f32.mrb[4].mxu1  ;;  %v401_v45 = vpop.f32.mrb[5].mxu0 }
  0xef   : > { %v474_v46 = vadd.f32 %v879_v44, %v1000_v17  ;;  %v402_v47 = vadd.f32 %v1000_v17, %v401_v45  ;;  %v465_v48 = vpop.f32.mrb[5].mxu1  ;;  %v864_v49 = vpop.f32.mrb[6].mxu0 }
  0xf0   : > { %v812_v50 = vpack.c.bf16 %v410_v43, %v410_v43  ;;  %v466_v51 = vadd.f32 %v1000_v17, %v465_v48  ;;  %v413_v52 = vadd.f32 %v864_v49, %v1000_v17  ;;  %v880_v53 = vpop.f32.mrb[6].mxu1  ;;  %v404_v54 = vpop.f32.mrb[7].mxu0 }
  0xf1   : > { %v828_v55 = vpack.c.bf16 %v474_v46, %v474_v46  ;;  %v810_v56 = vpack.c.bf16 %v402_v47, %v402_v47  ;;  %v477_v57 = vadd.f32 %v880_v53, %v1000_v17  ;;  %v405_v58 = vadd.f32 %v1000_v17, %v404_v54  ;;  %v468_v59 = vpop.f32.mrb[7].mxu1 }
  0xf2   : > { %647 = vst.msk [vmem:[%s1008_s25 + $0x18] sm:$0xf] %vm640_vm1, %v812_v50  ;;  %v826_v60 = vpack.c.bf16 %v466_v51, %v466_v51  ;;  %v813_v61 = vpack.c.bf16 %v413_v52, %v413_v52  ;;  %v469_v62 = vadd.f32 %v1000_v17, %v468_v59 }
  0xf3   : > { %663 = vst.msk [vmem:[%s1008_s25 + $0x58] sm:$0xf] %vm640_vm1, %v828_v55  ;;  %645 = vst.msk [vmem:[%s1008_s25 + $0x10] sm:$0xf] %vm640_vm1, %v810_v56  ;;  %v829_v63 = vpack.c.bf16 %v477_v57, %v477_v57  ;;  %v811_v0 = vpack.c.bf16 %v405_v58, %v405_v58 }
  0xf4   : > { %661 = vst.msk [vmem:[%s1008_s25 + $0x50] sm:$0xf] %vm640_vm1, %v826_v60  ;;  %648 = vst.msk [vmem:[%s1008_s25 + $0x1c] sm:$0xf] %vm640_vm1, %v813_v61  ;;  %v827_v1 = vpack.c.bf16 %v469_v62, %v469_v62 }
  0xf5   : > { %664 = vst.msk [vmem:[%s1008_s25 + $0x5c] sm:$0xf] %vm640_vm1, %v829_v63  ;;  %646 = vst.msk [vmem:[%s1008_s25 + $0x14] sm:$0xf] %vm640_vm1, %v811_v0  ;;  %v867_v2 = vpop.f32.mrb[8].mxu0 }
  0xf6   : > { %662 = vst.msk [vmem:[%s1008_s25 + $0x54] sm:$0xf] %vm640_vm1, %v827_v1  ;;  %v426_v3 = vadd.f32 %v867_v2, %v1000_v17  ;;  %v883_v4 = vpop.f32.mrb[8].mxu1  ;;  %v417_v5 = vpop.f32.mrb[9].mxu0 }
  0xf7   : > { %v490_v6 = vadd.f32 %v883_v4, %v1000_v17  ;;  %v418_v7 = vadd.f32 %v1000_v17, %v417_v5  ;;  %v481_v8 = vpop.f32.mrb[9].mxu1  ;;  %v868_v9 = vpop.f32.mrb[10].mxu0 }
  0xf8   : > { %v816_v10 = vpack.c.bf16 %v426_v3, %v426_v3  ;;  %v482_v11 = vadd.f32 %v1000_v17, %v481_v8  ;;  %v429_v12 = vadd.f32 %v868_v9, %v1000_v17  ;;  %v884_v13 = vpop.f32.mrb[10].mxu1  ;;  %v420_v14 = vpop.f32.mrb[11].mxu0 }
  0xf9   : > { %v832_v15 = vpack.c.bf16 %v490_v6, %v490_v6  ;;  %v814_v16 = vpack.c.bf16 %v418_v7, %v418_v7  ;;  %v493_v18 = vadd.f32 %v884_v13, %v1000_v17  ;;  %v421_v19 = vadd.f32 %v1000_v17, %v420_v14  ;;  %v484_v20 = vpop.f32.mrb[11].mxu1 }
  0xfa   : > { %651 = vst.msk [vmem:[%s1008_s25 + $0x28] sm:$0xf] %vm640_vm1, %v816_v10  ;;  %v830_v21 = vpack.c.bf16 %v482_v11, %v482_v11  ;;  %v817_v22 = vpack.c.bf16 %v429_v12, %v429_v12  ;;  %v485_v23 = vadd.f32 %v1000_v17, %v484_v20 }
  0xfb   : > { %667 = vst.msk [vmem:[%s1008_s25 + $0x68] sm:$0xf] %vm640_vm1, %v832_v15  ;;  %649 = vst.msk [vmem:[%s1008_s25 + $0x20] sm:$0xf] %vm640_vm1, %v814_v16  ;;  %v833_v24 = vpack.c.bf16 %v493_v18, %v493_v18  ;;  %v815_v25 = vpack.c.bf16 %v421_v19, %v421_v19 }
  0xfc   : > { %665 = vst.msk [vmem:[%s1008_s25 + $0x60] sm:$0xf] %vm640_vm1, %v830_v21  ;;  %652 = vst.msk [vmem:[%s1008_s25 + $0x2c] sm:$0xf] %vm640_vm1, %v817_v22  ;;  %v831_v26 = vpack.c.bf16 %v485_v23, %v485_v23 }
  0xfd   : > { %668 = vst.msk [vmem:[%s1008_s25 + $0x6c] sm:$0xf] %vm640_vm1, %v833_v24  ;;  %650 = vst.msk [vmem:[%s1008_s25 + $0x24] sm:$0xf] %vm640_vm1, %v815_v25  ;;  %v871_v27 = vpop.f32.mrb[12].mxu0 }
  0xfe   : > { %666 = vst.msk [vmem:[%s1008_s25 + $0x64] sm:$0xf] %vm640_vm1, %v831_v26  ;;  %v442_v28 = vadd.f32 %v871_v27, %v1000_v17  ;;  %v887_v29 = vpop.f32.mrb[12].mxu1  ;;  %v433_v30 = vpop.f32.mrb[13].mxu0 }
  0xff   : > { %v506_v31 = vadd.f32 %v887_v29, %v1000_v17  ;;  %v434_v32 = vadd.f32 %v1000_v17, %v433_v30  ;;  %v497_v33 = vpop.f32.mrb[13].mxu1  ;;  %v872_v34 = vpop.f32.mrb[14].mxu0 }
 0x100   : > { %v820_v35 = vpack.c.bf16 %v442_v28, %v442_v28  ;;  %v498_v36 = vadd.f32 %v1000_v17, %v497_v33  ;;  %v445_v37 = vadd.f32 %v872_v34, %v1000_v17  ;;  %v888_v38 = vpop.f32.mrb[14].mxu1  ;;  %v436_v39 = vpop.f32.mrb[15].mxu0 }
 0x101   : > { %v836_v40 = vpack.c.bf16 %v506_v31, %v506_v31  ;;  %v818_v41 = vpack.c.bf16 %v434_v32, %v434_v32  ;;  %v509_v42 = vadd.f32 %v888_v38, %v1000_v17  ;;  %v437_v43 = vadd.f32 %v1000_v17, %v436_v39  ;;  %v500_v44 = vpop.f32.mrb[15].mxu1 }
 0x102   : > { %655 = vst.msk [vmem:[%s1008_s25 + $0x38] sm:$0xf] %vm640_vm1, %v820_v35  ;;  %v834_v45 = vpack.c.bf16 %v498_v36, %v498_v36  ;;  %v821_v46 = vpack.c.bf16 %v445_v37, %v445_v37  ;;  %v501_v47 = vadd.f32 %v1000_v17, %v500_v44 }
 0x103   : > { %671 = vst.msk [vmem:[%s1008_s25 + $0x78] sm:$0xf] %vm640_vm1, %v836_v40  ;;  %653 = vst.msk [vmem:[%s1008_s25 + $0x30] sm:$0xf] %vm640_vm1, %v818_v41  ;;  %v837_v48 = vpack.c.bf16 %v509_v42, %v509_v42  ;;  %v819_v49 = vpack.c.bf16 %v437_v43, %v437_v43 }
 0x104   : > { %669 = vst.msk [vmem:[%s1008_s25 + $0x70] sm:$0xf] %vm640_vm1, %v834_v45  ;;  %656 = vst.msk [vmem:[%s1008_s25 + $0x3c] sm:$0xf] %vm640_vm1, %v821_v46  ;;  %v835_v50 = vpack.c.bf16 %v501_v47, %v501_v47 }
 0x105   : > { %672 = vst.msk [vmem:[%s1008_s25 + $0x7c] sm:$0xf] %vm640_vm1, %v837_v48  ;;  %654 = vst.msk [vmem:[%s1008_s25 + $0x34] sm:$0xf] %vm640_vm1, %v819_v49 }
 0x106   : > { %670 = vst.msk [vmem:[%s1008_s25 + $0x74] sm:$0xf] %vm640_vm1, %v835_v50 }
 0x107 PF: > { %s13_s12 = sadd.s32 1, %s922_s12  }
 0x108   : > { %p10_p4 = scmp.ge.s32.totalorder %s13_s12, 4  }
 0x10a   :  { %12 = sbr.rel (!%p10_p4) target bundleno = 1 (0x1), region = 62 }

// kernel: unipose_forward.26
= control target key start
LH: loop header
LB: loop body
LE: loop exit
PB: predicated region body
PF: predicated region fallthrough
CT: control target
= control target key end

     0   :  { %s1955_s15 = smov 0   ;;  %s2304_s0 = inlined_call_operand.vmem [shape: bf16[512,288], index: 0, kind: input, shape index: {}]   ;;  %s2305_s1 = inlined_call_operand.vmem [shape: bf16[288,32], index: 1, kind: input, shape index: {}]   ;;  %s2306_s2 = inlined_call_operand.vmem [shape: f32[1,32], index: 2, kind: input, shape index: {}]   ;;  %s2307_s3 = inlined_call_operand.vmem [shape: bf16[512,32], index: 3, kind: input, shape index: {}]   ;;  %s2308_s4 = inlined_call_operand.vmem [shape: bf16[512,32], index: 4, kind: output, shape index: {}]  }
   0x1 LB: > { %s1410_s16 = sadd.s32 4294967295, %s1928_s15   ;;  %p1414_p0 = scmp.ge.s32.totalorder %s1928_s15, 1  ;;  %s1928_s15 = sphi %s1955_s15, %s14_s15  }
   0x2   : > { %p175_p1 = scmp.lt.s32.totalorder %s1928_s15, 3 }
   0x4   : > { %p176_p2 = pnand %p1414_p0, %p175_p1 }
   0x5   : > { %v1840_v0 = vld [vmem:[%s2305_s1 + $0x40] sm:$0xff] (!%p176_p2)   ;;  %s1415_s19 = sshll.u32 (!%p176_p2), %s1410_s16, 5  ;;  %v1842_v2 = vld [vmem:[%s2305_s1 + $0x48] sm:$0xff] (!%p176_p2)   ;;  %v1844_v4 = vld [vmem:[%s2305_s1 + $0x50] sm:$0xff] (!%p176_p2)   ;;  %vm682_vm0 = vcmask (!%p176_p2), 261120   ;;  %vm1309_vm1 = vcmask (!%p176_p2), 257024  }
   0x6   : > { %179 = sbr.rel (%p176_p2) target bundleno = 354 (0x162), region = 36  ;;  %v1841_v1 = vld [vmem:[%s2305_s1] sm:$0xff] (!%p176_p2)   ;;  %1649 = vmatprep.subr.bf16.mxu0 (!%p176_p2), %v1840_v0  ;;  %1815 = vmatprep.subr.bf16.mxu1 (!%p176_p2), %v1840_v0  ;;  %p208_p3 = scmp.lt.s32.totalorder (!%p176_p2), %s1415_s19, 63  ;;  %v1843_v3 = vld [vmem:[%s2305_s1 + $0x8] sm:$0xff] (!%p176_p2)   ;;  %v1845_v5 = vld [vmem:[%s2305_s1 + $0x10] sm:$0xff] (!%p176_p2)  }
   0x7   : > { %1650 = vmatpush3.bf16.msra.mxu0 (!%p176_p2), %v1841_v1  ;;  %1823 = vmatpush3.bf16.msra.mxu1 (!%p176_p2), %v1841_v1  ;;  %v1846_v6 = vld [vmem:[%s2305_s1 + $0x58] sm:$0xff] (!%p176_p2)   ;;  %v1848_v8 = vld [vmem:[%s2305_s1 + $0x60] sm:$0xff] (!%p176_p2)   ;;  %v1850_v10 = vld [vmem:[%s2305_s1 + $0x68] sm:$0xff] (!%p176_p2)  }
   0x8   : > { %1651 = vmatprep.subr.bf16.mxu0 (!%p176_p2), %v1842_v2  ;;  %1816 = vmatprep.subr.bf16.mxu1 (!%p176_p2), %v1842_v2  ;;  %v1847_v7 = vld [vmem:[%s2305_s1 + $0x18] sm:$0xff] (!%p176_p2)   ;;  %v1849_v9 = vld [vmem:[%s2305_s1 + $0x20] sm:$0xff] (!%p176_p2)   ;;  %v1851_v13 = vld [vmem:[%s2305_s1 + $0x28] sm:$0xff] (!%p176_p2)  }
   0x9   : > { %v1852_v14 = vld [vmem:[%s2305_s1 + $0x70] sm:$0xff] (!%p176_p2)   ;;  %v1854_v16 = vld [vmem:[%s2305_s1 + $0x78] sm:$0xff] (!%p176_p2)   ;;  %v1862_v18 = vld [vmem:[%s2305_s1 + $0x80] sm:$0xff] (!%p176_p2)  }
   0xa   : > { %v1853_v15 = vld [vmem:[%s2305_s1 + $0x30] sm:$0xff] (!%p176_p2)   ;;  %v1855_v17 = vld [vmem:[%s2305_s1 + $0x38] sm:$0xff] (!%p176_p2)   ;;  %v1875_v23 = vld [vmem:[%s2305_s1 + $0x88] sm:$0xff] (!%p176_p2)  }
   0xb   : > { %1652 = vmatpush3.bf16.msra.mxu0 (!%p176_p2), %v1843_v3  ;;  %1824 = vmatpush3.bf16.msra.mxu1 (!%p176_p2), %v1843_v3 }
   0xc   : > { %1653 = vmatprep.subr.bf16.mxu0 (!%p176_p2), %v1844_v4  ;;  %1817 = vmatprep.subr.bf16.mxu1 (!%p176_p2), %v1844_v4 }
   0xd   : > { %s2310_s19 = smov (!%p208_p3, %s1415_s19), 63 }
   0xe   : > { %s1831_s6 = smul.u32 12, %s2310_s19  ;;  %s1418_s8 = sshll.u32 %s2310_s19, 2 }
   0xf   : > { %1654 = vmatpush3.bf16.msra.mxu0 %v1845_v5  ;;  %1825 = vmatpush3.bf16.msra.mxu1 %v1845_v5  ;;  %s2111_s11 = scalar_lea.vmem %s2307_s3, %s1418_s8  ;;  %s2139_s17 = scalar_lea.vmem %s2308_s4, %s1418_s8 }
  0x10   : > { %1655 = vmatprep.subr.bf16.mxu0 %v1846_v6  ;;  %1818 = vmatprep.subr.bf16.mxu1 %v1846_v6  ;;  %s1996_s13 = scalar_lea.vmem %s2304_s0, %s1831_s6 }
  0x11   : > { %v1858_v11 = vld [vmem:[%s1996_s13 + $0x4] ss:$12 sps:$4 sm:$0xff]   ;;  %v1856_v19 = vld [vmem:[%s1996_s13] ss:$12 sps:$4 sm:$0xff]   ;;  %v1863_v21 = vld [vmem:[%s1996_s13 + $0x1c] ss:$12 sps:$4 sm:$0xff]  }
  0x12   : > { %v1861_v12 = vld [vmem:[%s1996_s13 + $0x124] ss:$12 sps:$4 sm:$0xff]   ;;  %763 = vmatprep.mubr.bf16.mxu0 %v1858_v11  ;;  %v1859_v20 = vld [vmem:[%s1996_s13 + $0x120] ss:$12 sps:$4 sm:$0xff]   ;;  %v1865_v22 = vld [vmem:[%s1996_s13 + $0x13c] ss:$12 sps:$4 sm:$0xff]  }
  0x13   : > { %1656 = vmatpush3.bf16.msra.mxu0 %v1847_v7  ;;  %1826 = vmatpush3.bf16.msra.mxu1 %v1847_v7  ;;  %v1867_v24 = vld [vmem:[%s1996_s13 + $0x18] ss:$12 sps:$4 sm:$0xff]   ;;  %v1869_v26 = vld [vmem:[%s1996_s13 + $0x34] ss:$12 sps:$4 sm:$0xff]   ;;  %v1873_v28 = vld [vmem:[%s1996_s13 + $0x30] ss:$12 sps:$4 sm:$0xff]  }
  0x14   : > { %1657 = vmatprep.subr.bf16.mxu0 %v1848_v8  ;;  %1819 = vmatprep.subr.bf16.mxu1 %v1848_v8  ;;  %v1868_v25 = vld [vmem:[%s1996_s13 + $0x138] ss:$12 sps:$4 sm:$0xff]   ;;  %v1871_v27 = vld [vmem:[%s1996_s13 + $0x154] ss:$12 sps:$4 sm:$0xff]   ;;  %v1874_v29 = vld [vmem:[%s1996_s13 + $0x150] ss:$12 sps:$4 sm:$0xff]  }
  0x15   : > { %859 = vmatprep.mubr.bf16.mxu1 %v1861_v12  ;;  %v1876_v30 = vld [vmem:[%s1996_s13 + $0x4c] ss:$12 sps:$4 sm:$0xff]   ;;  %v1880_v32 = vld [vmem:[%s1996_s13 + $0x48] ss:$12 sps:$4 sm:$0xff]   ;;  %v1882_v34 = vld [vmem:[%s1996_s13 + $0x64] ss:$12 sps:$4 sm:$0xff]  }
  0x16   : > { %v1878_v31 = vld [vmem:[%s1996_s13 + $0x16c] ss:$12 sps:$4 sm:$0xff]   ;;  %v1881_v33 = vld [vmem:[%s1996_s13 + $0x168] ss:$12 sps:$4 sm:$0xff]   ;;  %v1891_v41 = vld [vmem:[%s1996_s13 + $0x50] ss:$12 sps:$4 sm:$0xff]  }
  0x17   : > { %1658 = vmatpush3.bf16.msra.mxu0 %v1849_v9  ;;  %1827 = vmatpush3.bf16.msra.mxu1 %v1849_v9  ;;  %v1884_v35 = vld [vmem:[%s1996_s13 + $0x8] ss:$12 sps:$4 sm:$0xff]   ;;  %v1885_v36 = vld [vmem:[%s1996_s13 + $0x60] ss:$12 sps:$4 sm:$0xff]   ;;  %v1889_v39 = vld [vmem:[%s1996_s13 + $0x38] ss:$12 sps:$4 sm:$0xff]  }
  0x18   : > { %1659 = vmatprep.subr.bf16.mxu0 %v1850_v10  ;;  %1820 = vmatprep.subr.bf16.mxu1 %v1850_v10  ;;  %v1886_v37 = vld [vmem:[%s1996_s13 + $0x20] ss:$12 sps:$4 sm:$0xff]   ;;  %v1887_v38 = vld [vmem:[%s1996_s13 + $0x7c] ss:$12 sps:$4 sm:$0xff]   ;;  %v1890_v40 = vld [vmem:[%s1996_s13 + $0x78] ss:$12 sps:$4 sm:$0xff]  }
  0x19   : > { %v1892_v42 = vld [vmem:[%s1996_s13 + $0x94] ss:$12 sps:$4 sm:$0xff]   ;;  %v1895_v44 = vld [vmem:[%s1996_s13 + $0x90] ss:$12 sps:$4 sm:$0xff]   ;;  %v1897_v46 = vld [vmem:[%s1996_s13 + $0xac] ss:$12 sps:$4 sm:$0xff]  }
  0x1a   : > { %v1894_v43 = vld [vmem:[%s1996_s13 + $0x68] ss:$12 sps:$4 sm:$0xff]   ;;  %v1896_v45 = vld [vmem:[%s1996_s13 + $0x80] ss:$12 sps:$4 sm:$0xff]   ;;  %v1899_v47 = vld [vmem:[%s1996_s13 + $0x98] ss:$12 sps:$4 sm:$0xff]  }
  0x1b   : > { %1660 = vmatpush3.bf16.msra.mxu0 %v1851_v13  ;;  %1828 = vmatpush3.bf16.msra.mxu1 %v1851_v13  ;;  %v1900_v48 = vld [vmem:[%s1996_s13 + $0xa8] ss:$12 sps:$4 sm:$0xff]   ;;  %v1901_v49 = vld [vmem:[%s1996_s13 + $0xb0] ss:$12 sps:$4 sm:$0xff]   ;;  %v1905_v52 = vld [vmem:[%s1996_s13 + $0xc0] ss:$12 sps:$4 sm:$0xff]  }
  0x1c   : > { %1661 = vmatprep.subr.bf16.mxu0 %v1852_v14  ;;  %1821 = vmatprep.subr.bf16.mxu1 %v1852_v14  ;;  %v1902_v50 = vld [vmem:[%s1996_s13 + $0xc4] ss:$12 sps:$4 sm:$0xff]   ;;  %v1904_v51 = vld [vmem:[%s1996_s13 + $0xc8] ss:$12 sps:$4 sm:$0xff]   ;;  %v1906_v53 = vld [vmem:[%s1996_s13 + $0xe0] ss:$12 sps:$4 sm:$0xff]  }
  0x1d   : > { %v1907_v54 = vld [vmem:[%s1996_s13 + $0xdc] ss:$12 sps:$4 sm:$0xff]   ;;  %v1909_v55 = vld [vmem:[%s1996_s13 + $0xf8] ss:$12 sps:$4 sm:$0xff]   ;;  %v1912_v58 = vld [vmem:[%s1996_s13 + $0xf4] ss:$12 sps:$4 sm:$0xff]  }
  0x1e   : > { %v1910_v56 = vld [vmem:[%s1996_s13 + $0xd8] ss:$12 sps:$4 sm:$0xff]   ;;  %v1911_v57 = vld [vmem:[%s1996_s13 + $0x110] ss:$12 sps:$4 sm:$0xff]   ;;  %v1914_v59 = vld [vmem:[%s1996_s13 + $0x128] ss:$12 sps:$4 sm:$0xff]  }
  0x1f   : > { %1662 = vmatpush3.bf16.msra.mxu0 %v1853_v15  ;;  %1829 = vmatpush3.bf16.msra.mxu1 %v1853_v15  ;;  %v1915_v60 = vld [vmem:[%s1996_s13 + $0xf0] ss:$12 sps:$4 sm:$0xff]   ;;  %v1916_v61 = vld [vmem:[%s1996_s13 + $0x140] ss:$12 sps:$4 sm:$0xff]   ;;  %v1919_v63 = vld [vmem:[%s1996_s13 + $0x158] ss:$12 sps:$4 sm:$0xff]  }
  0x20   : > { %1663 = vmatprep.subr.bf16.mxu0 %v1854_v16  ;;  %1822 = vmatprep.subr.bf16.mxu1 %v1854_v16  ;;  %v1917_v62 = vld [vmem:[%s1996_s13 + $0x10c] ss:$12 sps:$4 sm:$0xff]   ;;  %v1920_v0 = vld [vmem:[%s1996_s13 + $0x108] ss:$12 sps:$4 sm:$0xff]   ;;  %v1921_v1 = vld [vmem:[%s1996_s13 + $0x170] ss:$12 sps:$4 sm:$0xff]  }
  0x23   : > { %1664 = vmatpush3.bf16.msra.mxu0 %v1855_v17  ;;  %1830 = vmatpush3.bf16.msra.mxu1 %v1855_v17 }
  0x24   : > { %1779 = vmatprep.subr.bf16.mxu1 %v1862_v18 }
  0x26   : > { %764 = vmatmul.mubr.bf16.vlgmr.msra.gmra.mrb[0].mxu0 %v1856_v19  ;;  %860 = vmatmul.mubr.bf16.vlgmr.msra.gmra.mrb[0].mxu1 %v1859_v20 }
  0x27   : > { %1780 = vmatpush3.bf16.msra.mxu1 %v1862_v18  ;;  %771 = vmatprep.mubr.bf16.mxu0 %v1863_v21 }
  0x28   : > { %867 = vmatprep.mubr.bf16.mxu1 %v1865_v22  ;;  %1781 = vmatprep.subr.bf16.mxu1 %v1875_v23 }
  0x2b   : > { %1782 = vmatpush3.bf16.msra.mxu1 %v1875_v23 }
  0x2e   : > { %772 = vmatmul.mubr.bf16.gmra.mrb[4].mxu0 %v1867_v24  ;;  %868 = vmatmul.mubr.bf16.gmra.mrb[4].mxu1 %v1868_v25 }
  0x2f   : > { %779 = vmatprep.mubr.bf16.mxu0 %v1869_v26  ;;  %875 = vmatprep.mubr.bf16.mxu1 %v1871_v27 }
  0x36   : > { %780 = vmatmul.mubr.bf16.gmra.mrb[8].mxu0 %v1873_v28  ;;  %876 = vmatmul.mubr.bf16.gmra.mrb[8].mxu1 %v1874_v29 }
  0x37   : > { %787 = vmatprep.mubr.bf16.mxu0 %v1876_v30  ;;  %883 = vmatprep.mubr.bf16.mxu1 %v1878_v31 }
  0x3e   : > { %788 = vmatmul.mubr.bf16.gmra.mrb[12].mxu0 %v1880_v32  ;;  %884 = vmatmul.mubr.bf16.gmra.mrb[12].mxu1 %v1881_v33 }
  0x3f   : > { %795 = vmatprep.mubr.bf16.mxu0 %v1882_v34  ;;  %1783 = vmatprep.mubr.msk.bf16.mxu1 %vm682_vm0, %v1884_v35 }
  0x46   : > { %796 = vmatmul.mubr.bf16.gmra.mrb[16].mxu0 %v1885_v36  ;;  %1784 = vmatmul.mubr.msk.bf16.vlgmr.msra.gmra.mrb[16].mxu1 %vm682_vm0, %v1886_v37 }
  0x47   : > { %803 = vmatprep.mubr.bf16.mxu0 %v1887_v38  ;;  %1787 = vmatprep.mubr.msk.bf16.mxu1 %vm682_vm0, %v1889_v39 }
  0x4e   : > { %804 = vmatmul.mubr.bf16.gmra.mrb[20].mxu0 %v1890_v40  ;;  %1788 = vmatmul.mubr.msk.bf16.gmra.mrb[20].mxu1 %vm682_vm0, %v1891_v41 }
  0x4f   : > { %811 = vmatprep.mubr.bf16.mxu0 %v1892_v42  ;;  %1791 = vmatprep.mubr.msk.bf16.mxu1 %vm682_vm0, %v1894_v43 }
  0x56   : > { %812 = vmatmul.mubr.bf16.gmra.mrb[24].mxu0 %v1895_v44  ;;  %1792 = vmatmul.mubr.msk.bf16.gmra.mrb[24].mxu1 %vm682_vm0, %v1896_v45 }
  0x57   : > { %819 = vmatprep.mubr.bf16.mxu0 %v1897_v46  ;;  %1795 = vmatprep.mubr.msk.bf16.mxu1 %vm682_vm0, %v1899_v47 }
  0x5e   : > { %820 = vmatmul.mubr.bf16.gmra.mrb[28].mxu0 %v1900_v48  ;;  %1796 = vmatmul.mubr.msk.bf16.gmra.mrb[28].mxu1 %vm682_vm0, %v1901_v49 }
  0x5f   : > { %827 = vmatprep.mubr.bf16.mxu0 %v1902_v50  ;;  %1799 = vmatprep.mubr.msk.bf16.mxu1 %vm682_vm0, %v1904_v51  ;;  %v1634_v50 = vld [vmem:[%s2111_s11 + $0x8] sm:$0xff]   ;;  %v2121_v51 = vld [vmem:[%s2306_s2] ss:$0 sm:$0xff] }
  0x66   : > { %828 = vmatmul.mubr.bf16.gmra.mrb[32].mxu0 %v1905_v52  ;;  %1800 = vmatmul.mubr.msk.bf16.gmra.mrb[32].mxu1 %vm682_vm0, %v1906_v53  ;;  %v1571_v52 = vld [vmem:[%s2111_s11] sm:$0xff]  }
  0x67   : > { %835 = vmatprep.mubr.bf16.mxu0 %v1907_v54  ;;  %1803 = vmatprep.mubr.msk.bf16.mxu1 %vm682_vm0, %v1909_v55  ;;  %v1576_v54 = vunpack.c.l.bf16 %v1634_v50 }
  0x6e   : > { %836 = vmatmul.mubr.bf16.gmra.mrb[36].mxu0 %v1910_v56  ;;  %1804 = vmatmul.mubr.msk.bf16.gmra.mrb[36].mxu1 %vm682_vm0, %v1911_v57 }
  0x6f   : > { %843 = vmatprep.mubr.bf16.mxu0 %v1912_v58  ;;  %1807 = vmatprep.mubr.msk.bf16.mxu1 %vm682_vm0, %v1914_v59  ;;  %v1572_v58 = vunpack.c.l.bf16 %v1571_v52 }
  0x76   : > { %844 = vmatmul.mubr.bf16.gmra.mrb[40].mxu0 %v1915_v60  ;;  %1808 = vmatmul.mubr.msk.bf16.gmra.mrb[40].mxu1 %vm682_vm0, %v1916_v61 }
  0x77   : > { %851 = vmatprep.mubr.bf16.mxu0 %v1917_v62  ;;  %1811 = vmatprep.mubr.msk.bf16.mxu1 %vm682_vm0, %v1919_v63  ;;  %v1577_v63 = vunpack.c.h.bf16 %v1634_v50 }
  0x7e   : > { %852 = vmatmul.mubr.bf16.gmra.mrb[44].mxu0 %v1920_v0  ;;  %1812 = vmatmul.mubr.msk.bf16.gmra.mrb[44].mxu1 %vm682_vm0, %v1921_v1 }
  0xf9   : > { %v1665_v2 = vpop.f32.mrb[0].mxu0  ;;  %v1737_v3 = vpop.f32.mrb[0].mxu1 }
  0xfa   : > { %v1666_v4 = vpop.f32.mrb[1].mxu0  ;;  %v1738_v5 = vpop.f32.mrb[1].mxu1 }
  0xfb   : > { %v1667_v6 = vadd.f32 %v1666_v4, %v1665_v2  ;;  %v1668_v7 = vpop.f32.mrb[2].mxu0  ;;  %v2089_v8 = vadd.f32 %v1738_v5, %v1737_v3  ;;  %v1740_v9 = vpop.f32.mrb[2].mxu1  ;;  %v1573_v5 = vunpack.c.h.bf16 %v1571_v52 }
  0xfc   : > { %v1669_v10 = vpop.f32.mrb[3].mxu0  ;;  %v1741_v11 = vpop.f32.mrb[3].mxu1 }
  0xfd   : > { %v1670_v12 = vadd.f32 %v1669_v10, %v1668_v7  ;;  %v2091_v13 = vadd.f32 %v1741_v11, %v1740_v9  ;;  %v766_v57 = vadd.f32 %v1667_v6, %v2121_v51  ;;  %v1636_v11 = vld [vmem:[%s2111_s11 + $0x18] sm:$0xff]  }
  0xff   : > { %v769_v4 = vadd.f32 %v1670_v12, %v2121_v51 }
 0x101   : > { %v1671_v14 = vpop.f32.mrb[4].mxu0  ;;  %v1743_v15 = vpop.f32.mrb[4].mxu1 }
 0x102   : > { %v1672_v16 = vpop.f32.mrb[5].mxu0  ;;  %v1744_v17 = vpop.f32.mrb[5].mxu1 }
 0x103   : > { %v1673_v18 = vadd.f32 %v1672_v16, %v1671_v14  ;;  %v1674_v19 = vpop.f32.mrb[6].mxu0  ;;  %v2093_v20 = vadd.f32 %v1744_v17, %v1743_v15  ;;  %v1746_v21 = vpop.f32.mrb[6].mxu1  ;;  %v1635_v17 = vld [vmem:[%s2111_s11 + $0x10] sm:$0xff]  }
 0x104   : > { %v1675_v22 = vpop.f32.mrb[7].mxu0  ;;  %v1747_v23 = vpop.f32.mrb[7].mxu1 }
 0x105   : > { %v1676_v24 = vadd.f32 %v1675_v22, %v1674_v19  ;;  %v2095_v25 = vadd.f32 %v1747_v23, %v1746_v21  ;;  %v774_v53 = vadd.f32 %v1673_v18, %v2121_v51  ;;  %v1584_v22 = vunpack.c.l.bf16 %v1636_v11 }
 0x107   : > { %v777_v62 = vadd.f32 %v1676_v24, %v2121_v51 }
 0x109   : > { %v1677_v26 = vpop.f32.mrb[8].mxu0  ;;  %v1749_v27 = vpop.f32.mrb[8].mxu1 }
 0x10a   : > { %v1678_v28 = vpop.f32.mrb[9].mxu0  ;;  %v1750_v29 = vpop.f32.mrb[9].mxu1 }
 0x10b   : > { %v2097_v30 = vadd.f32 %v1678_v28, %v1677_v26  ;;  %v1680_v31 = vpop.f32.mrb[10].mxu0  ;;  %v2099_v32 = vadd.f32 %v1750_v29, %v1749_v27  ;;  %v1752_v33 = vpop.f32.mrb[10].mxu1  ;;  %v1580_v27 = vunpack.c.l.bf16 %v1635_v17 }
 0x10c   : > { %v1681_v34 = vpop.f32.mrb[11].mxu0  ;;  %v1753_v35 = vpop.f32.mrb[11].mxu1 }
 0x10d   : > { %v2101_v36 = vadd.f32 %v1681_v34, %v1680_v31  ;;  %v2103_v37 = vadd.f32 %v1753_v35, %v1752_v33  ;;  %v782_v34 = vadd.f32 %v2097_v30, %v2121_v51  ;;  %v1585_v35 = vunpack.c.h.bf16 %v1636_v11 }
 0x10f   : > { %v785_v52 = vadd.f32 %v2101_v36, %v2121_v51 }
 0x111   : > { %v1683_v38 = vpop.f32.mrb[12].mxu0  ;;  %v1755_v39 = vpop.f32.mrb[12].mxu1 }
 0x112   : > { %v1684_v40 = vpop.f32.mrb[13].mxu0  ;;  %v1756_v41 = vpop.f32.mrb[13].mxu1 }
 0x113   : > { %v1685_v42 = vadd.f32 %v1684_v40, %v1683_v38  ;;  %v1686_v43 = vpop.f32.mrb[14].mxu0  ;;  %v2113_v44 = vadd.f32 %v1756_v41, %v1755_v39  ;;  %v1758_v45 = vpop.f32.mrb[14].mxu1 }
 0x114   : > { %v1687_v46 = vpop.f32.mrb[15].mxu0  ;;  %v1759_v47 = vpop.f32.mrb[15].mxu1 }
 0x115   : > { %v1688_v48 = vadd.f32 %v1687_v46, %v1686_v43  ;;  %v2115_v49 = vadd.f32 %v1759_v47, %v1758_v45  ;;  %v790_v26 = vadd.f32 %v1685_v42, %v2121_v51  ;;  %v1581_v43 = vunpack.c.h.bf16 %v1635_v17 }
 0x117   : > { %v793_v42 = vadd.f32 %v1688_v48, %v2121_v51 }
 0x119   : > { %v1689_v55 = vpop.f32.mrb[16].mxu0  ;;  %v1785_v56 = vpop.f32.mrb[16].mxu1 }
 0x11a   : > { %v935_v59 = vadd.f32 %v1785_v56, %v774_v53  ;;  %v1690_v60 = vpop.f32.mrb[17].mxu0  ;;  %v926_v61 = vpop.f32.mrb[17].mxu1 }
 0x11b   : > { %v2127_v0 = vadd.f32 %v1690_v60, %v1689_v55  ;;  %v927_v1 = vadd.f32 %v926_v61, %v766_v57  ;;  %v1692_v2 = vpop.f32.mrb[18].mxu0  ;;  %v1786_v3 = vpop.f32.mrb[18].mxu1  ;;  %v1638_v57 = vld [vmem:[%s2111_s11 + $0x28] sm:$0xff]   ;;  %v1637_v60 = vld [vmem:[%s2111_s11 + $0x20] sm:$0xff]  }
 0x11c   : > { %v1119_v7 = vadd.f32 %v1576_v54, %v935_v59  ;;  %v938_v6 = vadd.f32 %v1786_v3, %v777_v62  ;;  %v1693_v9 = vpop.f32.mrb[19].mxu0  ;;  %v929_v10 = vpop.f32.mrb[19].mxu1 }
 0x11d   : > { %v1117_v14 = vadd.f32 %v1572_v58, %v927_v1  ;;  %v2131_v15 = vadd.f32 %v1693_v9, %v1692_v2  ;;  %v930_v16 = vadd.f32 %v929_v10, %v769_v4  ;;  %v1592_v2 = vunpack.c.l.bf16 %v1638_v57 }
 0x11e   : > { %v1151_v18 = vmax.f32 %v1119_v7, 0.0  ;;  %v1120_v19 = vadd.f32 %v1577_v63, %v938_v6  ;;  %v798_v11 = vadd.f32 %v2127_v0, %v2121_v51 }
 0x11f   : > { %v1149_v12 = vmax.f32 %v1117_v14, 0.0  ;;  %v1118_v21 = vadd.f32 %v1573_v5, %v930_v16  ;;  %v1588_v5 = vunpack.c.l.bf16 %v1637_v60  ;;  %v1593_v14 = vunpack.c.h.bf16 %v1638_v57 }
 0x120   : > { %v1540_v23 = vpack.c.bf16 %v1151_v18, %v1151_v18  ;;  %v1152_v24 = vmax.f32 %v1120_v19, 0.0 }
 0x121   : > { %v1538_v28 = vpack.c.bf16 %v1149_v12, %v1149_v12  ;;  %v1150_v29 = vmax.f32 %v1118_v21, 0.0  ;;  %v1695_v31 = vpop.f32.mrb[20].mxu0  ;;  %v1789_v33 = vpop.f32.mrb[20].mxu1  ;;  %v1589_v21 = vunpack.c.h.bf16 %v1637_v60 }
 0x122   : > { %1312 = vst.msk [vmem:[%s2139_s17 + $0x8] sm:$0xf] %vm1309_vm1, %v1540_v23  ;;  %v1541_v38 = vpack.c.bf16 %v1152_v24, %v1152_v24  ;;  %v951_v39 = vadd.f32 %v1789_v33, %v790_v26  ;;  %v1696_v40 = vpop.f32.mrb[21].mxu0  ;;  %v942_v41 = vpop.f32.mrb[21].mxu1 }
 0x123   : > { %1310 = vst.msk [vmem:[%s2139_s17] sm:$0xf] %vm1309_vm1, %v1538_v28  ;;  %v1539_v45 = vpack.c.bf16 %v1150_v29, %v1150_v29  ;;  %v1697_v46 = vadd.f32 %v1696_v40, %v1695_v31  ;;  %v943_v47 = vadd.f32 %v942_v41, %v782_v34  ;;  %v1698_v30 = vpop.f32.mrb[22].mxu0  ;;  %v1790_v50 = vpop.f32.mrb[22].mxu1  ;;  %v1639_v41 = vld [vmem:[%s2111_s11 + $0x30] sm:$0xff]  }
 0x124   : > { %1313 = vst.msk [vmem:[%s2139_s17 + $0xc] sm:$0xf] %vm1309_vm1, %v1541_v38  ;;  %v1123_v53 = vadd.f32 %v1584_v22, %v951_v39  ;;  %v954_v54 = vadd.f32 %v1790_v50, %v793_v42  ;;  %v1699_v55 = vpop.f32.mrb[23].mxu0  ;;  %v945_v56 = vpop.f32.mrb[23].mxu1 }
 0x125   : > { %1311 = vst.msk [vmem:[%s2139_s17 + $0x4] sm:$0xf] %vm1309_vm1, %v1539_v45  ;;  %v1121_v48 = vadd.f32 %v1580_v27, %v943_v47  ;;  %v1700_v58 = vadd.f32 %v1699_v55, %v1698_v30  ;;  %v946_v59 = vadd.f32 %v945_v56, %v785_v52  ;;  %v806_v4 = vadd.f32 %v1697_v46, %v2121_v51  ;;  %v1640_v52 = vld [vmem:[%s2111_s11 + $0x38] sm:$0xff]  }
 0x126   : > { %v1155_v61 = vmax.f32 %v1123_v53, 0.0  ;;  %v1124_v62 = vadd.f32 %v1585_v35, %v954_v54  ;;  %v801_v27 = vadd.f32 %v2131_v15, %v2121_v51  ;;  %v1596_v54 = vunpack.c.l.bf16 %v1639_v41 }
 0x127   : > { %v1153_v63 = vmax.f32 %v1121_v48, 0.0  ;;  %v1122_v1 = vadd.f32 %v1581_v43, %v946_v59  ;;  %v809_v12 = vadd.f32 %v1700_v58, %v2121_v51  ;;  %v1597_v48 = vunpack.c.h.bf16 %v1639_v41 }
 0x128   : > { %v1544_v36 = vpack.c.bf16 %v1155_v61, %v1155_v61  ;;  %v1156_v3 = vmax.f32 %v1124_v62, 0.0 }
 0x129   : > { %v1542_v7 = vpack.c.bf16 %v1153_v63, %v1153_v63  ;;  %v1154_v6 = vmax.f32 %v1122_v1, 0.0  ;;  %v1701_v9 = vpop.f32.mrb[24].mxu0  ;;  %v1793_v10 = vpop.f32.mrb[24].mxu1  ;;  %v1600_v1 = vunpack.c.l.bf16 %v1640_v52 }
 0x12a   : > { %1316 = vst.msk [vmem:[%s2139_s17 + $0x18] sm:$0xf] %vm1309_vm1, %v1544_v36  ;;  %v1545_v16 = vpack.c.bf16 %v1156_v3, %v1156_v3  ;;  %v967_v17 = vadd.f32 %v1793_v10, %v806_v4  ;;  %v1702_v18 = vpop.f32.mrb[25].mxu0  ;;  %v958_v19 = vpop.f32.mrb[25].mxu1 }
 0x12b   : > { %1314 = vst.msk [vmem:[%s2139_s17 + $0x10] sm:$0xf] %vm1309_vm1, %v1542_v7  ;;  %v1543_v22 = vpack.c.bf16 %v1154_v6, %v1154_v6  ;;  %v1703_v23 = vadd.f32 %v1702_v18, %v1701_v9  ;;  %v959_v24 = vadd.f32 %v958_v19, %v798_v11  ;;  %v1704_v26 = vpop.f32.mrb[26].mxu0  ;;  %v1794_v0 = vpop.f32.mrb[26].mxu1  ;;  %v1601_v6 = vunpack.c.h.bf16 %v1640_v52 }
 0x12c   : > { %1317 = vst.msk [vmem:[%s2139_s17 + $0x1c] sm:$0xf] %vm1309_vm1, %v1545_v16  ;;  %v1127_v28 = vadd.f32 %v1592_v2, %v967_v17  ;;  %v970_v29 = vadd.f32 %v1794_v0, %v809_v12  ;;  %v1705_v31 = vpop.f32.mrb[27].mxu0  ;;  %v961_v33 = vpop.f32.mrb[27].mxu1 }
 0x12d   : > { %1315 = vst.msk [vmem:[%s2139_s17 + $0x14] sm:$0xf] %vm1309_vm1, %v1543_v22  ;;  %v1125_v34 = vadd.f32 %v1588_v5, %v959_v24  ;;  %v1706_v35 = vadd.f32 %v1705_v31, %v1704_v26  ;;  %v962_v38 = vadd.f32 %v961_v33, %v801_v27  ;;  %v814_v53 = vadd.f32 %v1703_v23, %v2121_v51  ;;  %v1641_v22 = vld [vmem:[%s2111_s11 + $0x40] sm:$0xff]  }
 0x12e   : > { %v1159_v39 = vmax.f32 %v1127_v28, 0.0  ;;  %v1128_v40 = vadd.f32 %v1593_v14, %v970_v29  ;;  %v1604_v33 = vunpack.c.l.bf16 %v1641_v22 }
 0x12f   : > { %v1157_v42 = vmax.f32 %v1125_v34, 0.0  ;;  %v1126_v43 = vadd.f32 %v1589_v21, %v962_v38  ;;  %v817_v63 = vadd.f32 %v1706_v35, %v2121_v51 }
 0x130   : > { %v1548_v15 = vpack.c.bf16 %v1159_v39, %v1159_v39  ;;  %v1160_v45 = vmax.f32 %v1128_v40, 0.0 }
 0x131   : > { %v1546_v46 = vpack.c.bf16 %v1157_v42, %v1157_v42  ;;  %v1158_v47 = vmax.f32 %v1126_v43, 0.0  ;;  %v1707_v30 = vpop.f32.mrb[28].mxu0  ;;  %v1797_v50 = vpop.f32.mrb[28].mxu1 }
 0x132   : > { %1320 = vst.msk [vmem:[%s2139_s17 + $0x28] sm:$0xf] %vm1309_vm1, %v1548_v15  ;;  %v1549_v55 = vpack.c.bf16 %v1160_v45, %v1160_v45  ;;  %v1708_v56 = vpop.f32.mrb[29].mxu0  ;;  %v974_v57 = vpop.f32.mrb[29].mxu1  ;;  %v1605_v45 = vunpack.c.h.bf16 %v1641_v22 }
 0x133   : > { %1318 = vst.msk [vmem:[%s2139_s17 + $0x20] sm:$0xf] %vm1309_vm1, %v1546_v46  ;;  %v1547_v58 = vpack.c.bf16 %v1158_v47, %v1158_v47  ;;  %v1709_v59 = vadd.f32 %v1708_v56, %v1707_v30  ;;  %v975_v60 = vadd.f32 %v974_v57, %v814_v53  ;;  %v1710_v61 = vpop.f32.mrb[30].mxu0  ;;  %v1798_v62 = vpop.f32.mrb[30].mxu1 }
 0x134   : > { %1321 = vst.msk [vmem:[%s2139_s17 + $0x2c] sm:$0xf] %vm1309_vm1, %v1549_v55  ;;  %v1711_v2 = vpop.f32.mrb[31].mxu0  ;;  %v977_v36 = vpop.f32.mrb[31].mxu1 }
 0x135   : > { %1319 = vst.msk [vmem:[%s2139_s17 + $0x24] sm:$0xf] %vm1309_vm1, %v1547_v58  ;;  %v822_v3 = vadd.f32 %v1709_v59, %v2121_v51  ;;  %v1129_v4 = vadd.f32 %v1596_v54, %v975_v60  ;;  %v1712_v5 = vadd.f32 %v1711_v2, %v1710_v61  ;;  %v978_v7 = vadd.f32 %v977_v36, %v817_v63  ;;  %v1646_v59 = vld [vmem:[%s2111_s11 + $0x68] sm:$0xff]   ;;  %v2205_v60 = vld [vmem:[%s2111_s11 + $0x60] sm:$0xff]  }
 0x137   : > { %v983_v9 = vadd.f32 %v1797_v50, %v822_v3  ;;  %v1161_v10 = vmax.f32 %v1129_v4, 0.0  ;;  %v825_v11 = vadd.f32 %v1712_v5, %v2121_v51  ;;  %v1130_v14 = vadd.f32 %v1597_v48, %v978_v7  ;;  %v1642_v50 = vld [vmem:[%s2111_s11 + $0x48] sm:$0xff]   ;;  %v2211_v4 = vld [vmem:[%s2111_s11 + $0x50] sm:$0xff]   ;;  %v2214_v5 = vld [vmem:[%s2111_s11 + $0x78] sm:$0xff]  }
 0x138   : > { %v1608_v61 = vunpack.c.l.bf16 %v1642_v50  ;;  %v1609_v7 = vunpack.c.h.bf16 %v1642_v50  ;;  %v1613_v22 = vunpack.c.h.bf16 %v2211_v4 }
 0x139   : > { %v1131_v16 = vadd.f32 %v1600_v1, %v983_v9  ;;  %v1550_v17 = vpack.c.bf16 %v1161_v10, %v1161_v10  ;;  %v986_v18 = vadd.f32 %v1798_v62, %v825_v11  ;;  %v1162_v19 = vmax.f32 %v1130_v14, 0.0  ;;  %v1713_v12 = vpop.f32.mrb[32].mxu0  ;;  %v1801_v21 = vpop.f32.mrb[32].mxu1  ;;  %v2218_v11 = vld [vmem:[%s2111_s11 + $0x70] sm:$0xff]  }
 0x13a   : > { %v1714_v23 = vpop.f32.mrb[33].mxu0  ;;  %v990_v24 = vpop.f32.mrb[33].mxu1  ;;  %v1620_v9 = vunpack.c.l.bf16 %v2205_v60  ;;  %v1625_v10 = vunpack.c.h.bf16 %v1646_v59 }
 0x13b   : > { %v1163_v26 = vmax.f32 %v1131_v16, 0.0  ;;  %1322 = vst.msk [vmem:[%s2139_s17 + $0x30] sm:$0xf] %vm1309_vm1, %v1550_v17  ;;  %v1132_v0 = vadd.f32 %v1601_v6, %v986_v18  ;;  %v1551_v27 = vpack.c.bf16 %v1162_v19, %v1162_v19  ;;  %v1715_v28 = vadd.f32 %v1714_v23, %v1713_v12  ;;  %v1716_v29 = vpop.f32.mrb[34].mxu0  ;;  %v1802_v31 = vpop.f32.mrb[34].mxu1 }
 0x13c   : > { %v1717_v34 = vpop.f32.mrb[35].mxu0  ;;  %v993_v35 = vpop.f32.mrb[35].mxu1  ;;  %v1624_v6 = vunpack.c.l.bf16 %v1646_v59  ;;  %v1621_v18 = vunpack.c.h.bf16 %v2205_v60  ;;  %v870_v19 = vadd.f32 %v2093_v20, %v2121_v51  ;;  %v1612_v12 = vunpack.c.l.bf16 %v2211_v4 }
 0x13d   : > { %v1552_v38 = vpack.c.bf16 %v1163_v26, %v1163_v26  ;;  %v1164_v39 = vmax.f32 %v1132_v0, 0.0  ;;  %1323 = vst.msk [vmem:[%s2139_s17 + $0x34] sm:$0xf] %vm1309_vm1, %v1551_v27  ;;  %v830_v40 = vadd.f32 %v1715_v28, %v2121_v51  ;;  %v1718_v41 = vadd.f32 %v1717_v34, %v1716_v29  ;;  %v2234_v28 = vld [vmem:[%s2111_s11 + $0x58] sm:$0xff]  }
 0x13e   : > { %v1632_v23 = vunpack.c.l.bf16 %v2214_v5  ;;  %v1628_v29 = vunpack.c.l.bf16 %v2218_v11 }
 0x13f   : > { %1324 = vst.msk [vmem:[%s2139_s17 + $0x38] sm:$0xf] %vm1309_vm1, %v1552_v38  ;;  %v1553_v42 = vpack.c.bf16 %v1164_v39, %v1164_v39  ;;  %v991_v43 = vadd.f32 %v990_v24, %v830_v40  ;;  %v833_v15 = vadd.f32 %v1718_v41, %v2121_v51  ;;  %v1633_v38 = vunpack.c.h.bf16 %v2214_v5 }
 0x140   : > { %v1629_v39 = vunpack.c.h.bf16 %v2218_v11 }
 0x141   : > { %1325 = vst.msk [vmem:[%s2139_s17 + $0x3c] sm:$0xf] %vm1309_vm1, %v1553_v42  ;;  %v1133_v46 = vadd.f32 %v1604_v33, %v991_v43  ;;  %v994_v47 = vadd.f32 %v993_v35, %v833_v15  ;;  %v1719_v30 = vpop.f32.mrb[36].mxu0  ;;  %v2197_v52 = vpop.f32.mrb[36].mxu1  ;;  %v873_v35 = vadd.f32 %v2095_v25, %v2121_v51  ;;  %v1616_v25 = vunpack.c.l.bf16 %v2234_v28 }
 0x142   : > { %v1720_v53 = vpop.f32.mrb[37].mxu0  ;;  %v2199_v54 = vpop.f32.mrb[37].mxu1 }
 0x143   : > { %v1165_v55 = vmax.f32 %v1133_v46, 0.0  ;;  %v1134_v56 = vadd.f32 %v1605_v45, %v994_v47  ;;  %v1721_v57 = vadd.f32 %v1720_v53, %v1719_v30  ;;  %v1722_v48 = vpop.f32.mrb[38].mxu0  ;;  %v2201_v58 = vpop.f32.mrb[38].mxu1  ;;  %v865_v47 = vadd.f32 %v2091_v13, %v2121_v51 }
 0x144   : > { %v1723_v62 = vpop.f32.mrb[39].mxu0  ;;  %v2207_v63 = vpop.f32.mrb[39].mxu1 }
 0x145   : > { %v1554_v1 = vpack.c.bf16 %v1165_v55, %v1165_v55  ;;  %v1166_v2 = vmax.f32 %v1134_v56, 0.0  ;;  %v838_v36 = vadd.f32 %v1721_v57, %v2121_v51  ;;  %v1724_v3 = vadd.f32 %v1723_v62, %v1722_v48 }
 0x147   : > { %1326 = vst.msk [vmem:[%s2139_s17 + $0x40] sm:$0xf] %vm1309_vm1, %v1554_v1  ;;  %v1555_v14 = vpack.c.bf16 %v1166_v2, %v1166_v2  ;;  %v999_v16 = vadd.f32 %v1801_v21, %v838_v36  ;;  %v841_v17 = vadd.f32 %v1724_v3, %v2121_v51  ;;  %v862_v21 = vadd.f32 %v2089_v8, %v2121_v51 }
 0x148   : > { %v886_v1 = vadd.f32 %v2113_v44, %v2121_v51 }
 0x149   : > { %1327 = vst.msk [vmem:[%s2139_s17 + $0x44] sm:$0xf] %vm1309_vm1, %v1555_v14  ;;  %v1135_v24 = vadd.f32 %v1608_v61, %v999_v16  ;;  %v1002_v26 = vadd.f32 %v1802_v31, %v841_v17  ;;  %v1725_v0 = vpop.f32.mrb[40].mxu0  ;;  %v1809_v27 = vpop.f32.mrb[40].mxu1  ;;  %v878_v16 = vadd.f32 %v2099_v32, %v2121_v51 }
 0x14a   : > { %v1031_v20 = vadd.f32 %v1809_v27, %v870_v19  ;;  %v1726_v33 = vpop.f32.mrb[41].mxu0  ;;  %v1022_v34 = vpop.f32.mrb[41].mxu1 }
 0x14b   : > { %v1167_v31 = vmax.f32 %v1135_v24, 0.0  ;;  %v1136_v40 = vadd.f32 %v1609_v7, %v1002_v26  ;;  %v1727_v41 = vadd.f32 %v1726_v33, %v1725_v0  ;;  %v1023_v42 = vadd.f32 %v1022_v34, %v862_v21  ;;  %v1728_v43 = vpop.f32.mrb[42].mxu0  ;;  %v1810_v8 = vpop.f32.mrb[42].mxu1 }
 0x14c   : > { %v1143_v15 = vadd.f32 %v1624_v6, %v1031_v20  ;;  %v1034_v45 = vadd.f32 %v1810_v8, %v873_v35  ;;  %v1729_v46 = vpop.f32.mrb[43].mxu0  ;;  %v1025_v30 = vpop.f32.mrb[43].mxu1 }
 0x14d   : > { %v1556_v50 = vpack.c.bf16 %v1167_v31, %v1167_v31  ;;  %v1168_v53 = vmax.f32 %v1136_v40, 0.0  ;;  %v846_v55 = vadd.f32 %v1727_v41, %v2121_v51  ;;  %v1141_v56 = vadd.f32 %v1620_v9, %v1023_v42 }
 0x14e   : > { %v1175_v57 = vmax.f32 %v1143_v15, 0.0  ;;  %v1144_v48 = vadd.f32 %v1625_v10, %v1034_v45  ;;  %v1730_v59 = vadd.f32 %v1729_v46, %v1728_v43  ;;  %v1026_v60 = vadd.f32 %v1025_v30, %v865_v47 }
 0x14f   : > { %1328 = vst.msk [vmem:[%s2139_s17 + $0x48] sm:$0xf] %vm1309_vm1, %v1556_v50  ;;  %v1557_v61 = vpack.c.bf16 %v1168_v53, %v1168_v53  ;;  %v1007_v62 = vadd.f32 %v2199_v54, %v846_v55  ;;  %v1173_v13 = vmax.f32 %v1141_v56, 0.0  ;;  %v889_v54 = vadd.f32 %v2115_v49, %v2121_v51 }
 0x150   : > { %v1564_v2 = vpack.c.bf16 %v1175_v57, %v1175_v57  ;;  %v1176_v36 = vmax.f32 %v1144_v48, 0.0  ;;  %v849_v3 = vadd.f32 %v1730_v59, %v2121_v51  ;;  %v1142_v7 = vadd.f32 %v1621_v18, %v1026_v60 }
 0x151   : > { %1329 = vst.msk [vmem:[%s2139_s17 + $0x4c] sm:$0xf] %vm1309_vm1, %v1557_v61  ;;  %v1137_v6 = vadd.f32 %v1612_v12, %v1007_v62  ;;  %v1562_v9 = vpack.c.bf16 %v1173_v13, %v1173_v13  ;;  %v1731_v10 = vpop.f32.mrb[44].mxu0  ;;  %v1813_v14 = vpop.f32.mrb[44].mxu1  ;;  %v881_v49 = vadd.f32 %v2103_v37, %v2121_v51 }
 0x152   : > { %1336 = vst.msk [vmem:[%s2139_s17 + $0x68] sm:$0xf] %vm1309_vm1, %v1564_v2  ;;  %v1565_v44 = vpack.c.bf16 %v1176_v36, %v1176_v36  ;;  %v1010_v17 = vadd.f32 %v2207_v63, %v849_v3  ;;  %v1174_v18 = vmax.f32 %v1142_v7, 0.0  ;;  %v1047_v19 = vadd.f32 %v1813_v14, %v886_v1  ;;  %v1732_v24 = vpop.f32.mrb[45].mxu0  ;;  %v1038_v26 = vpop.f32.mrb[45].mxu1 }
 0x153   : > { %v1169_v12 = vmax.f32 %v1137_v6, 0.0  ;;  %1334 = vst.msk [vmem:[%s2139_s17 + $0x60] sm:$0xf] %vm1309_vm1, %v1562_v9  ;;  %v1733_v0 = vadd.f32 %v1732_v24, %v1731_v10  ;;  %v1039_v27 = vadd.f32 %v1038_v26, %v878_v16  ;;  %v1734_v32 = vpop.f32.mrb[46].mxu0  ;;  %v1814_v21 = vpop.f32.mrb[46].mxu1 }
 0x154   : > { %1337 = vst.msk [vmem:[%s2139_s17 + $0x6c] sm:$0xf] %vm1309_vm1, %v1565_v44  ;;  %v1138_v63 = vadd.f32 %v1613_v22, %v1010_v17  ;;  %v1563_v20 = vpack.c.bf16 %v1174_v18, %v1174_v18  ;;  %v1147_v33 = vadd.f32 %v1632_v23, %v1047_v19  ;;  %v1050_v34 = vadd.f32 %v1814_v21, %v889_v54  ;;  %v1735_v35 = vpop.f32.mrb[47].mxu0  ;;  %v1041_v31 = vpop.f32.mrb[47].mxu1 }
 0x155   : > { %v1558_v40 = vpack.c.bf16 %v1169_v12, %v1169_v12  ;;  %v854_v41 = vadd.f32 %v1733_v0, %v2121_v51  ;;  %v1145_v42 = vadd.f32 %v1628_v29, %v1039_v27  ;;  %v1736_v37 = vadd.f32 %v1735_v35, %v1734_v32 }
 0x156   : > { %v1170_v43 = vmax.f32 %v1138_v63, 0.0  ;;  %1335 = vst.msk [vmem:[%s2139_s17 + $0x64] sm:$0xf] %vm1309_vm1, %v1563_v20  ;;  %v1179_v4 = vmax.f32 %v1147_v33, 0.0  ;;  %v1148_v22 = vadd.f32 %v1633_v38, %v1050_v34  ;;  %v1042_v23 = vadd.f32 %v1041_v31, %v881_v49 }
 0x157   : > { %1330 = vst.msk [vmem:[%s2139_s17 + $0x50] sm:$0xf] %vm1309_vm1, %v1558_v40  ;;  %v1015_v8 = vadd.f32 %v2197_v52, %v854_v41  ;;  %v1177_v15 = vmax.f32 %v1145_v42, 0.0  ;;  %v857_v45 = vadd.f32 %v1736_v37, %v2121_v51  ;;  %v1617_v29 = vunpack.c.h.bf16 %v2234_v28 }
 0x158   : > { %v1559_v46 = vpack.c.bf16 %v1170_v43, %v1170_v43  ;;  %v1568_v47 = vpack.c.bf16 %v1179_v4, %v1179_v4  ;;  %v1180_v30 = vmax.f32 %v1148_v22, 0.0  ;;  %v1146_v5 = vadd.f32 %v1629_v39, %v1042_v23 }
 0x159   : > { %v1139_v38 = vadd.f32 %v1616_v25, %v1015_v8  ;;  %v1566_v50 = vpack.c.bf16 %v1177_v15, %v1177_v15  ;;  %v1018_v52 = vadd.f32 %v2201_v58, %v857_v45 }
 0x15a   : > { %1331 = vst.msk [vmem:[%s2139_s17 + $0x54] sm:$0xf] %vm1309_vm1, %v1559_v46  ;;  %1340 = vst.msk [vmem:[%s2139_s17 + $0x78] sm:$0xf] %vm1309_vm1, %v1568_v47  ;;  %v1569_v51 = vpack.c.bf16 %v1180_v30, %v1180_v30  ;;  %v1178_v53 = vmax.f32 %v1146_v5, 0.0 }
 0x15b   : > { %v1171_v55 = vmax.f32 %v1139_v38, 0.0  ;;  %1338 = vst.msk [vmem:[%s2139_s17 + $0x70] sm:$0xf] %vm1309_vm1, %v1566_v50  ;;  %v1140_v11 = vadd.f32 %v1617_v29, %v1018_v52 }
 0x15c   : > { %1341 = vst.msk [vmem:[%s2139_s17 + $0x7c] sm:$0xf] %vm1309_vm1, %v1569_v51  ;;  %v1567_v39 = vpack.c.bf16 %v1178_v53, %v1178_v53 }
 0x15d   : > { %v1560_v28 = vpack.c.bf16 %v1171_v55, %v1171_v55  ;;  %v1172_v56 = vmax.f32 %v1140_v11, 0.0 }
 0x15e   : > { %1339 = vst.msk [vmem:[%s2139_s17 + $0x74] sm:$0xf] %vm1309_vm1, %v1567_v39 }
 0x15f   : > { %1332 = vst.msk [vmem:[%s2139_s17 + $0x58] sm:$0xf] %vm1309_vm1, %v1560_v28  ;;  %v1561_v58 = vpack.c.bf16 %v1172_v56, %v1172_v56 }
 0x161   : > { %1333 = vst.msk [vmem:[%s2139_s17 + $0x5c] sm:$0xf] %vm1309_vm1, %v1561_v58 }
 0x162 PF: > { %s14_s15 = sadd.s32 1, %s1928_s15  }
 0x163   : > { %p11_p4 = scmp.ge.s32.totalorder %s14_s15, 4  }
 0x165   :  { %13 = sbr.rel (!%p11_p4) target bundleno = 1 (0x1), region = 69 }

// kernel: unipose_forward.27
= control target key start
LH: loop header
LB: loop body
LE: loop exit
PB: predicated region body
PF: predicated region fallthrough
CT: control target
= control target key end

     0   :  { %vm318_vm0 = vcmask 261120   ;;  %vm617_vm1 = vcmask 388096   ;;  %s1132_s1 = inlined_call_operand.vmem [shape: bf16[288,48], index: 1, kind: input, shape index: {}]   ;;  %s1133_s0 = inlined_call_operand.vmem [shape: bf16[128,288], index: 0, kind: input, shape index: {}]   ;;  %s1134_s2 = inlined_call_operand.vmem [shape: f32[1,48], index: 2, kind: input, shape index: {}]   ;;  %s1135_s3 = inlined_call_operand.vmem [shape: bf16[128,48], index: 3, kind: output, shape index: {}]  }
   0x1   :  { %v831_v0 = vld [vmem:[%s1132_s1 + $0x40] sm:$0xff]   ;;  %v833_v2 = vld [vmem:[%s1132_s1 + $0x48] sm:$0xff]   ;;  %v835_v4 = vld [vmem:[%s1132_s1 + $0x50] sm:$0xff]  }
   0x2   :  { %v832_v1 = vld [vmem:[%s1132_s1] sm:$0xff]   ;;  %721 = vmatprep.subr.bf16.mxu0 %v831_v0  ;;  %815 = vmatprep.subr.bf16.mxu1 %v831_v0  ;;  %v834_v3 = vld [vmem:[%s1132_s1 + $0x8] sm:$0xff]   ;;  %v836_v5 = vld [vmem:[%s1132_s1 + $0x10] sm:$0xff]  }
   0x3   :  { %722 = vmatpush3.bf16.msra.mxu0 %v832_v1  ;;  %823 = vmatpush3.bf16.msra.mxu1 %v832_v1  ;;  %v837_v6 = vld [vmem:[%s1132_s1 + $0x58] sm:$0xff]   ;;  %v839_v8 = vld [vmem:[%s1132_s1 + $0x60] sm:$0xff]   ;;  %v841_v10 = vld [vmem:[%s1132_s1 + $0x68] sm:$0xff]  }
   0x4   :  { %723 = vmatprep.subr.bf16.mxu0 %v833_v2  ;;  %816 = vmatprep.subr.bf16.mxu1 %v833_v2  ;;  %v838_v7 = vld [vmem:[%s1132_s1 + $0x18] sm:$0xff]   ;;  %v840_v9 = vld [vmem:[%s1132_s1 + $0x20] sm:$0xff]   ;;  %v842_v13 = vld [vmem:[%s1132_s1 + $0x28] sm:$0xff]  }
   0x5   :  { %v849_v11 = vld [vmem:[%s1133_s0 + $0x4] ss:$12 sps:$4 sm:$0xff]   ;;  %v852_v12 = vld [vmem:[%s1133_s0 + $0x94] ss:$12 sps:$4 sm:$0xff]   ;;  %v845_v16 = vld [vmem:[%s1132_s1 + $0x78] sm:$0xff]  }
   0x6   :  { %v843_v14 = vld [vmem:[%s1132_s1 + $0x70] sm:$0xff]   ;;  %375 = vmatprep.mubr.bf16.mxu0 %v849_v11  ;;  %423 = vmatprep.mubr.bf16.mxu1 %v852_v12  ;;  %v846_v17 = vld [vmem:[%s1132_s1 + $0x38] sm:$0xff]   ;;  %v847_v18 = vld [vmem:[%s1133_s0] ss:$12 sps:$4 sm:$0xff]  }
   0x7   :  { %724 = vmatpush3.bf16.msra.mxu0 %v834_v3  ;;  %824 = vmatpush3.bf16.msra.mxu1 %v834_v3  ;;  %v844_v15 = vld [vmem:[%s1132_s1 + $0x30] sm:$0xff]   ;;  %v853_v19 = vld [vmem:[%s1132_s1 + $0x80] sm:$0xff]   ;;  %v854_v21 = vld [vmem:[%s1133_s0 + $0x1c] ss:$12 sps:$4 sm:$0xff]  }
   0x8   :  { %725 = vmatprep.subr.bf16.mxu0 %v835_v4  ;;  %817 = vmatprep.subr.bf16.mxu1 %v835_v4  ;;  %v850_v20 = vld [vmem:[%s1133_s0 + $0x90] ss:$12 sps:$4 sm:$0xff]   ;;  %v856_v22 = vld [vmem:[%s1133_s0 + $0xac] ss:$12 sps:$4 sm:$0xff]   ;;  %v859_v25 = vld [vmem:[%s1133_s0 + $0xa8] ss:$12 sps:$4 sm:$0xff]  }
   0x9   :  { %v860_v23 = vld [vmem:[%s1132_s1 + $0x88] sm:$0xff]   ;;  %v858_v24 = vld [vmem:[%s1133_s0 + $0x18] ss:$12 sps:$4 sm:$0xff]   ;;  %v861_v26 = vld [vmem:[%s1133_s0 + $0x34] ss:$12 sps:$4 sm:$0xff]  }
   0xa   :  { %v863_v27 = vld [vmem:[%s1133_s0 + $0x8] ss:$12 sps:$4 sm:$0xff]   ;;  %v864_v28 = vld [vmem:[%s1133_s0 + $0x30] ss:$12 sps:$4 sm:$0xff]   ;;  %v865_v29 = vld [vmem:[%s1133_s0 + $0x20] ss:$12 sps:$4 sm:$0xff]  }
   0xb   :  { %726 = vmatpush3.bf16.msra.mxu0 %v836_v5  ;;  %825 = vmatpush3.bf16.msra.mxu1 %v836_v5  ;;  %v866_v30 = vld [vmem:[%s1133_s0 + $0x4c] ss:$12 sps:$4 sm:$0xff]   ;;  %v869_v32 = vld [vmem:[%s1133_s0 + $0x48] ss:$12 sps:$4 sm:$0xff]   ;;  %v870_v33 = vld [vmem:[%s1133_s0 + $0x50] ss:$12 sps:$4 sm:$0xff]  }
   0xc   :  { %727 = vmatprep.subr.bf16.mxu0 %v837_v6  ;;  %818 = vmatprep.subr.bf16.mxu1 %v837_v6  ;;  %v868_v31 = vld [vmem:[%s1133_s0 + $0x38] ss:$12 sps:$4 sm:$0xff]   ;;  %v873_v35 = vld [vmem:[%s1133_s0 + $0x68] ss:$12 sps:$4 sm:$0xff]   ;;  %v874_v36 = vld [vmem:[%s1133_s0 + $0x60] ss:$12 sps:$4 sm:$0xff]  }
   0xd   :  { %v871_v34 = vld [vmem:[%s1133_s0 + $0x64] ss:$12 sps:$4 sm:$0xff]   ;;  %v875_v37 = vld [vmem:[%s1133_s0 + $0x80] ss:$12 sps:$4 sm:$0xff]   ;;  %v876_v38 = vld [vmem:[%s1133_s0 + $0x7c] ss:$12 sps:$4 sm:$0xff]  }
   0xe   :  { %v878_v39 = vld [vmem:[%s1133_s0 + $0x98] ss:$12 sps:$4 sm:$0xff]   ;;  %v880_v41 = vld [vmem:[%s1133_s0 + $0xb0] ss:$12 sps:$4 sm:$0xff]   ;;  %v1046_v2 = vld [vmem:[%s1134_s2] ss:$0 sm:$0xff] }
   0xf   :  { %728 = vmatpush3.bf16.msra.mxu0 %v838_v7  ;;  %826 = vmatpush3.bf16.msra.mxu1 %v838_v7  ;;  %v879_v40 = vld [vmem:[%s1133_s0 + $0x78] ss:$12 sps:$4 sm:$0xff]  }
  0x10   :  { %729 = vmatprep.subr.bf16.mxu0 %v839_v8  ;;  %819 = vmatprep.subr.bf16.mxu1 %v839_v8 }
  0x13   :  { %730 = vmatpush3.bf16.msra.mxu0 %v840_v9  ;;  %827 = vmatpush3.bf16.msra.mxu1 %v840_v9 }
  0x14   :  { %731 = vmatprep.subr.bf16.mxu0 %v841_v10  ;;  %820 = vmatprep.subr.bf16.mxu1 %v841_v10 }
  0x17   :  { %732 = vmatpush3.bf16.msra.mxu0 %v842_v13  ;;  %828 = vmatpush3.bf16.msra.mxu1 %v842_v13 }
  0x18   :  { %733 = vmatprep.subr.bf16.mxu0 %v843_v14  ;;  %821 = vmatprep.subr.bf16.mxu1 %v843_v14 }
  0x1b   :  { %734 = vmatpush3.bf16.msra.mxu0 %v844_v15  ;;  %829 = vmatpush3.bf16.msra.mxu1 %v844_v15 }
  0x1c   :  { %735 = vmatprep.subr.bf16.mxu0 %v845_v16  ;;  %822 = vmatprep.subr.bf16.mxu1 %v845_v16 }
  0x1f   :  { %736 = vmatpush3.bf16.msra.mxu0 %v846_v17  ;;  %830 = vmatpush3.bf16.msra.mxu1 %v846_v17 }
  0x20   :  { %795 = vmatprep.subr.bf16.mxu1 %v853_v19 }
  0x22   :  { %376 = vmatmul.mubr.bf16.vlgmr.msra.gmra.mrb[0].mxu0 %v847_v18  ;;  %424 = vmatmul.mubr.bf16.vlgmr.msra.gmra.mrb[0].mxu1 %v850_v20 }
  0x23   :  { %796 = vmatpush3.bf16.msra.mxu1 %v853_v19  ;;  %383 = vmatprep.mubr.bf16.mxu0 %v854_v21 }
  0x24   :  { %431 = vmatprep.mubr.bf16.mxu1 %v856_v22  ;;  %797 = vmatprep.subr.bf16.mxu1 %v860_v23 }
  0x27   :  { %798 = vmatpush3.bf16.msra.mxu1 %v860_v23 }
  0x2a   :  { %384 = vmatmul.mubr.bf16.gmra.mrb[4].mxu0 %v858_v24  ;;  %432 = vmatmul.mubr.bf16.gmra.mrb[4].mxu1 %v859_v25 }
  0x2b   :  { %391 = vmatprep.mubr.bf16.mxu0 %v861_v26  ;;  %799 = vmatprep.mubr.msk.bf16.mxu1 %vm318_vm0, %v863_v27 }
  0x32   :  { %392 = vmatmul.mubr.bf16.gmra.mrb[8].mxu0 %v864_v28  ;;  %800 = vmatmul.mubr.msk.bf16.vlgmr.msra.gmra.mrb[8].mxu1 %vm318_vm0, %v865_v29 }
  0x33   :  { %399 = vmatprep.mubr.bf16.mxu0 %v866_v30  ;;  %803 = vmatprep.mubr.msk.bf16.mxu1 %vm318_vm0, %v868_v31 }
  0x3a   :  { %400 = vmatmul.mubr.bf16.gmra.mrb[12].mxu0 %v869_v32  ;;  %804 = vmatmul.mubr.msk.bf16.gmra.mrb[12].mxu1 %vm318_vm0, %v870_v33 }
  0x3b   :  { %407 = vmatprep.mubr.bf16.mxu0 %v871_v34  ;;  %807 = vmatprep.mubr.msk.bf16.mxu1 %vm318_vm0, %v873_v35 }
  0x42   :  { %408 = vmatmul.mubr.bf16.gmra.mrb[16].mxu0 %v874_v36  ;;  %808 = vmatmul.mubr.msk.bf16.gmra.mrb[16].mxu1 %vm318_vm0, %v875_v37 }
  0x43   :  { %415 = vmatprep.mubr.bf16.mxu0 %v876_v38  ;;  %811 = vmatprep.mubr.msk.bf16.mxu1 %vm318_vm0, %v878_v39 }
  0x4a   :  { %416 = vmatmul.mubr.bf16.gmra.mrb[20].mxu0 %v879_v40  ;;  %812 = vmatmul.mubr.msk.bf16.gmra.mrb[20].mxu1 %vm318_vm0, %v880_v41 }
  0xf5   :  { %v737_v42 = vpop.f32.mrb[0].mxu0  ;;  %v773_v43 = vpop.f32.mrb[0].mxu1 }
  0xf6   :  { %v738_v44 = vpop.f32.mrb[1].mxu0  ;;  %v774_v45 = vpop.f32.mrb[1].mxu1 }
  0xf7   :  { %v739_v46 = vadd.f32 %v738_v44, %v737_v42  ;;  %v740_v47 = vpop.f32.mrb[2].mxu0  ;;  %v1035_v48 = vadd.f32 %v774_v45, %v773_v43  ;;  %v776_v49 = vpop.f32.mrb[2].mxu1 }
  0xf8   :  { %v741_v50 = vpop.f32.mrb[3].mxu0  ;;  %v777_v51 = vpop.f32.mrb[3].mxu1 }
  0xf9   :  { %v742_v52 = vadd.f32 %v741_v50, %v740_v47  ;;  %v1037_v53 = vadd.f32 %v777_v51, %v776_v49  ;;  %v378_v6 = vadd.f32 %v739_v46, %v1046_v2 }
  0xfb   :  { %v381_v15 = vadd.f32 %v742_v52, %v1046_v2 }
  0xfd   :  { %v743_v54 = vpop.f32.mrb[4].mxu0  ;;  %v779_v55 = vpop.f32.mrb[4].mxu1 }
  0xfe   :  { %v744_v56 = vpop.f32.mrb[5].mxu0  ;;  %v780_v57 = vpop.f32.mrb[5].mxu1 }
  0xff   :  { %v745_v58 = vadd.f32 %v744_v56, %v743_v54  ;;  %v746_v59 = vpop.f32.mrb[6].mxu0  ;;  %v1039_v60 = vadd.f32 %v780_v57, %v779_v55  ;;  %v782_v61 = vpop.f32.mrb[6].mxu1 }
 0x100   :  { %v747_v62 = vpop.f32.mrb[7].mxu0  ;;  %v783_v63 = vpop.f32.mrb[7].mxu1 }
 0x101   :  { %v748_v0 = vadd.f32 %v747_v62, %v746_v59  ;;  %v1041_v1 = vadd.f32 %v783_v63, %v782_v61  ;;  %v386_v3 = vadd.f32 %v745_v58, %v1046_v2 }
 0x103   :  { %v389_v10 = vadd.f32 %v748_v0, %v1046_v2 }
 0x105   :  { %v749_v4 = vpop.f32.mrb[8].mxu0  ;;  %v801_v5 = vpop.f32.mrb[8].mxu1 }
 0x106   :  { %v483_v7 = vadd.f32 %v801_v5, %v386_v3  ;;  %v750_v8 = vpop.f32.mrb[9].mxu0  ;;  %v474_v9 = vpop.f32.mrb[9].mxu1 }
 0x107   :  { %v751_v11 = vadd.f32 %v750_v8, %v749_v4  ;;  %v475_v12 = vadd.f32 %v474_v9, %v378_v6  ;;  %v752_v13 = vpop.f32.mrb[10].mxu0  ;;  %v802_v14 = vpop.f32.mrb[10].mxu1  ;;  %v434_v9 = vadd.f32 %v1039_v60, %v1046_v2 }
 0x108   :  { %v539_v16 = vmax.f32 %v483_v7, 0.0  ;;  %v486_v17 = vadd.f32 %v802_v14, %v389_v10  ;;  %v753_v18 = vpop.f32.mrb[11].mxu0  ;;  %v477_v19 = vpop.f32.mrb[11].mxu1  ;;  %v426_v14 = vadd.f32 %v1035_v48, %v1046_v2 }
 0x109   :  { %v537_v20 = vmax.f32 %v475_v12, 0.0  ;;  %v754_v21 = vadd.f32 %v753_v18, %v752_v13  ;;  %v478_v22 = vadd.f32 %v477_v19, %v381_v15  ;;  %v394_v31 = vadd.f32 %v751_v11, %v1046_v2 }
 0x10a   :  { %v707_v23 = vpack.c.bf16 %v539_v16, %v539_v16  ;;  %v540_v24 = vmax.f32 %v486_v17, 0.0  ;;  %v437_v18 = vadd.f32 %v1041_v1, %v1046_v2 }
 0x10b   :  { %v705_v25 = vpack.c.bf16 %v537_v20, %v537_v20  ;;  %v538_v26 = vmax.f32 %v478_v22, 0.0  ;;  %v397_v38 = vadd.f32 %v754_v21, %v1046_v2 }
 0x10c   :  { %620 = vst.msk [vmem:[%s1135_s3 + $0x8] sm:$0xf] %vm617_vm1, %v707_v23  ;;  %v708_v27 = vpack.c.bf16 %v540_v24, %v540_v24 }
 0x10d   :  { %618 = vst.msk [vmem:[%s1135_s3] sm:$0xf] %vm617_vm1, %v705_v25  ;;  %v706_v28 = vpack.c.bf16 %v538_v26, %v538_v26  ;;  %v755_v29 = vpop.f32.mrb[12].mxu0  ;;  %v805_v30 = vpop.f32.mrb[12].mxu1 }
 0x10e   :  { %621 = vst.msk [vmem:[%s1135_s3 + $0xc] sm:$0xf] %vm617_vm1, %v708_v27  ;;  %v756_v32 = vpop.f32.mrb[13].mxu0  ;;  %v490_v33 = vpop.f32.mrb[13].mxu1  ;;  %v429_v27 = vadd.f32 %v1037_v53, %v1046_v2 }
 0x10f   :  { %619 = vst.msk [vmem:[%s1135_s3 + $0x4] sm:$0xf] %vm617_vm1, %v706_v28  ;;  %v757_v34 = vadd.f32 %v756_v32, %v755_v29  ;;  %v491_v35 = vadd.f32 %v490_v33, %v394_v31  ;;  %v758_v36 = vpop.f32.mrb[14].mxu0  ;;  %v806_v37 = vpop.f32.mrb[14].mxu1 }
 0x110   :  { %v759_v39 = vpop.f32.mrb[15].mxu0  ;;  %v493_v40 = vpop.f32.mrb[15].mxu1 }
 0x111   :  { %v402_v41 = vadd.f32 %v757_v34, %v1046_v2  ;;  %v541_v42 = vmax.f32 %v491_v35, 0.0  ;;  %v760_v43 = vadd.f32 %v759_v39, %v758_v36  ;;  %v494_v44 = vadd.f32 %v493_v40, %v397_v38 }
 0x113   :  { %v499_v45 = vadd.f32 %v805_v30, %v402_v41  ;;  %v709_v46 = vpack.c.bf16 %v541_v42, %v541_v42  ;;  %v405_v47 = vadd.f32 %v760_v43, %v1046_v2  ;;  %v542_v49 = vmax.f32 %v494_v44, 0.0 }
 0x115   :  { %v543_v50 = vmax.f32 %v499_v45, 0.0  ;;  %622 = vst.msk [vmem:[%s1135_s3 + $0x10] sm:$0xf] %vm617_vm1, %v709_v46  ;;  %v502_v51 = vadd.f32 %v806_v37, %v405_v47  ;;  %v710_v52 = vpack.c.bf16 %v542_v49, %v542_v49  ;;  %v761_v54 = vpop.f32.mrb[16].mxu0  ;;  %v809_v55 = vpop.f32.mrb[16].mxu1 }
 0x116   :  { %v762_v56 = vpop.f32.mrb[17].mxu0  ;;  %v506_v57 = vpop.f32.mrb[17].mxu1 }
 0x117   :  { %v711_v58 = vpack.c.bf16 %v543_v50, %v543_v50  ;;  %v544_v59 = vmax.f32 %v502_v51, 0.0  ;;  %623 = vst.msk [vmem:[%s1135_s3 + $0x14] sm:$0xf] %vm617_vm1, %v710_v52  ;;  %v763_v61 = vadd.f32 %v762_v56, %v761_v54  ;;  %v764_v62 = vpop.f32.mrb[18].mxu0  ;;  %v810_v63 = vpop.f32.mrb[18].mxu1 }
 0x118   :  { %v765_v0 = vpop.f32.mrb[19].mxu0  ;;  %v509_v3 = vpop.f32.mrb[19].mxu1 }
 0x119   :  { %624 = vst.msk [vmem:[%s1135_s3 + $0x18] sm:$0xf] %vm617_vm1, %v711_v58  ;;  %v712_v4 = vpack.c.bf16 %v544_v59, %v544_v59  ;;  %v410_v5 = vadd.f32 %v763_v61, %v1046_v2  ;;  %v766_v6 = vadd.f32 %v765_v0, %v764_v62 }
 0x11b   :  { %625 = vst.msk [vmem:[%s1135_s3 + $0x1c] sm:$0xf] %vm617_vm1, %v712_v4  ;;  %v507_v7 = vadd.f32 %v506_v57, %v410_v5  ;;  %v413_v8 = vadd.f32 %v766_v6, %v1046_v2 }
 0x11d   :  { %v545_v10 = vmax.f32 %v507_v7, 0.0  ;;  %v510_v11 = vadd.f32 %v509_v3, %v413_v8  ;;  %v767_v12 = vpop.f32.mrb[20].mxu0  ;;  %v813_v13 = vpop.f32.mrb[20].mxu1 }
 0x11e   :  { %v531_v15 = vadd.f32 %v813_v13, %v434_v9  ;;  %v768_v16 = vpop.f32.mrb[21].mxu0  ;;  %v522_v17 = vpop.f32.mrb[21].mxu1 }
 0x11f   :  { %v713_v19 = vpack.c.bf16 %v545_v10, %v545_v10  ;;  %v546_v20 = vmax.f32 %v510_v11, 0.0  ;;  %v769_v21 = vadd.f32 %v768_v16, %v767_v12  ;;  %v523_v22 = vadd.f32 %v522_v17, %v426_v14  ;;  %v770_v23 = vpop.f32.mrb[22].mxu0  ;;  %v814_v24 = vpop.f32.mrb[22].mxu1 }
 0x120   :  { %v551_v60 = vmax.f32 %v531_v15, 0.0  ;;  %v534_v25 = vadd.f32 %v814_v24, %v437_v18  ;;  %v771_v26 = vpop.f32.mrb[23].mxu0  ;;  %v525_v28 = vpop.f32.mrb[23].mxu1 }
 0x121   :  { %626 = vst.msk [vmem:[%s1135_s3 + $0x20] sm:$0xf] %vm617_vm1, %v713_v19  ;;  %v714_v48 = vpack.c.bf16 %v546_v20, %v546_v20  ;;  %v418_v1 = vadd.f32 %v769_v21, %v1046_v2  ;;  %v549_v29 = vmax.f32 %v523_v22, 0.0  ;;  %v772_v30 = vadd.f32 %v771_v26, %v770_v23 }
 0x122   :  { %v719_v31 = vpack.c.bf16 %v551_v60, %v551_v60  ;;  %v552_v32 = vmax.f32 %v534_v25, 0.0  ;;  %v526_v33 = vadd.f32 %v525_v28, %v429_v27 }
 0x123   :  { %627 = vst.msk [vmem:[%s1135_s3 + $0x24] sm:$0xf] %vm617_vm1, %v714_v48  ;;  %v515_v53 = vadd.f32 %v809_v55, %v418_v1  ;;  %v717_v34 = vpack.c.bf16 %v549_v29, %v549_v29  ;;  %v421_v35 = vadd.f32 %v772_v30, %v1046_v2 }
 0x124   :  { %632 = vst.msk [vmem:[%s1135_s3 + $0x38] sm:$0xf] %vm617_vm1, %v719_v31  ;;  %v720_v36 = vpack.c.bf16 %v552_v32, %v552_v32  ;;  %v550_v37 = vmax.f32 %v526_v33, 0.0 }
 0x125   :  { %v547_v38 = vmax.f32 %v515_v53, 0.0  ;;  %630 = vst.msk [vmem:[%s1135_s3 + $0x30] sm:$0xf] %vm617_vm1, %v717_v34  ;;  %v518_v39 = vadd.f32 %v810_v63, %v421_v35 }
 0x126   :  { %633 = vst.msk [vmem:[%s1135_s3 + $0x3c] sm:$0xf] %vm617_vm1, %v720_v36  ;;  %v718_v2 = vpack.c.bf16 %v550_v37, %v550_v37 }
 0x127   :  { %v715_v40 = vpack.c.bf16 %v547_v38, %v547_v38  ;;  %v548_v41 = vmax.f32 %v518_v39, 0.0 }
 0x128   :  { %631 = vst.msk [vmem:[%s1135_s3 + $0x34] sm:$0xf] %vm617_vm1, %v718_v2 }
 0x129   :  { %628 = vst.msk [vmem:[%s1135_s3 + $0x28] sm:$0xf] %vm617_vm1, %v715_v40  ;;  %v716_v42 = vpack.c.bf16 %v548_v41, %v548_v41 }
 0x12b   :  { %629 = vst.msk [vmem:[%s1135_s3 + $0x2c] sm:$0xf] %vm617_vm1, %v716_v42 }

// kernel: unipose_forward.28
= control target key start
LH: loop header
LB: loop body
LE: loop exit
PB: predicated region body
PF: predicated region fallthrough
CT: control target
= control target key end

     0   :  { %vm94_vm0 = vcmask 261120   ;;  %vm280_vm1 = vcmask 388096   ;;  %s521_s1 = inlined_call_operand.vmem [shape: bf16[32,48], index: 1, kind: input, shape index: {}]   ;;  %s522_s0 = inlined_call_operand.vmem [shape: bf16[128,32], index: 0, kind: input, shape index: {}]   ;;  %s523_s2 = inlined_call_operand.vmem [shape: f32[1,48], index: 2, kind: input, shape index: {}]   ;;  %s524_s3 = inlined_call_operand.vmem [shape: bf16[128,48], index: 3, kind: output, shape index: {}]  }
   0x1   :  { %v386_v0 = vld [vmem:[%s521_s1] sm:$0xff]   ;;  %v387_v1 = vld [vmem:[%s521_s1 + $0x8] sm:$0xff]   ;;  %v392_v6 = vld [vmem:[%s522_s0 + $0x10] sm:$0xff]  }
   0x2   :  { %362 = vmatprep.subr.bf16.mxu0 %v386_v0  ;;  %382 = vmatprep.subr.bf16.mxu1 %v386_v0  ;;  %v388_v2 = vld [vmem:[%s522_s0] sm:$0xff]   ;;  %v390_v4 = vld [vmem:[%s522_s0 + $0x8] sm:$0xff]   ;;  %v393_v7 = vld [vmem:[%s522_s0 + $0x30] sm:$0xff]  }
   0x3   :  { %363 = vmatpush3.bf16.msra.mxu0 %v386_v0  ;;  %384 = vmatpush3.bf16.msra.mxu1 %v386_v0  ;;  %v389_v3 = vld [vmem:[%s522_s0 + $0x20] sm:$0xff]   ;;  %v391_v5 = vld [vmem:[%s522_s0 + $0x28] sm:$0xff]   ;;  %v394_v8 = vld [vmem:[%s522_s0 + $0x18] sm:$0xff]  }
   0x4   :  { %364 = vmatprep.subr.bf16.mxu0 %v387_v1  ;;  %383 = vmatprep.subr.bf16.mxu1 %v387_v1  ;;  %v395_v9 = vld [vmem:[%s522_s0 + $0x38] sm:$0xff]   ;;  %v301_v10 = vld [vmem:[%s523_s2] ss:$0 sm:$0xff] }
   0x5   :  { %366 = vmatprep.mubr.msk.bf16.mxu0 %vm94_vm0, %v388_v2  ;;  %374 = vmatprep.mubr.msk.bf16.mxu1 %vm94_vm0, %v389_v3 }
   0x7   :  { %365 = vmatpush3.bf16.msra.mxu0 %v387_v1  ;;  %385 = vmatpush3.bf16.msra.mxu1 %v387_v1 }
   0xa   :  { %367 = vmatmul.mubr.msk.bf16.vlgmr.msra.gmra.mrb[0].mxu0 %vm94_vm0, %v390_v4  ;;  %375 = vmatmul.mubr.msk.bf16.vlgmr.msra.gmra.mrb[0].mxu1 %vm94_vm0, %v391_v5 }
   0xb   :  { %370 = vmatprep.mubr.msk.bf16.mxu0 %vm94_vm0, %v392_v6  ;;  %378 = vmatprep.mubr.msk.bf16.mxu1 %vm94_vm0, %v393_v7 }
  0x12   :  { %371 = vmatmul.mubr.msk.bf16.gmra.mrb[4].mxu0 %vm94_vm0, %v394_v8  ;;  %379 = vmatmul.mubr.msk.bf16.gmra.mrb[4].mxu1 %vm94_vm0, %v395_v9 }
  0xdd   :  { %v368_v11 = vpop.f32.mrb[0].mxu0  ;;  %v376_v12 = vpop.f32.mrb[0].mxu1 }
  0xde   :  { %v162_v13 = vadd.f32 %v368_v11, %v301_v10  ;;  %v194_v14 = vadd.f32 %v376_v12, %v301_v10  ;;  %v153_v15 = vpop.f32.mrb[1].mxu0  ;;  %v185_v16 = vpop.f32.mrb[1].mxu1 }
  0xdf   :  { %v154_v17 = vadd.f32 %v301_v10, %v153_v15  ;;  %v186_v18 = vadd.f32 %v301_v10, %v185_v16  ;;  %v369_v19 = vpop.f32.mrb[2].mxu0  ;;  %v377_v20 = vpop.f32.mrb[2].mxu1 }
  0xe0   :  { %v338_v21 = vpack.c.bf16 %v162_v13, %v162_v13  ;;  %v346_v22 = vpack.c.bf16 %v194_v14, %v194_v14  ;;  %v165_v23 = vadd.f32 %v369_v19, %v301_v10  ;;  %v197_v24 = vadd.f32 %v377_v20, %v301_v10  ;;  %v156_v25 = vpop.f32.mrb[3].mxu0  ;;  %v188_v26 = vpop.f32.mrb[3].mxu1 }
  0xe1   :  { %v336_v27 = vpack.c.bf16 %v154_v17, %v154_v17  ;;  %v344_v28 = vpack.c.bf16 %v186_v18, %v186_v18  ;;  %v157_v29 = vadd.f32 %v301_v10, %v156_v25  ;;  %v189_v30 = vadd.f32 %v301_v10, %v188_v26 }
  0xe2   :  { %283 = vst.msk [vmem:[%s524_s3 + $0x8] sm:$0xf] %vm280_vm1, %v338_v21  ;;  %291 = vst.msk [vmem:[%s524_s3 + $0x28] sm:$0xf] %vm280_vm1, %v346_v22  ;;  %v339_v31 = vpack.c.bf16 %v165_v23, %v165_v23  ;;  %v347_v32 = vpack.c.bf16 %v197_v24, %v197_v24 }
  0xe3   :  { %281 = vst.msk [vmem:[%s524_s3] sm:$0xf] %vm280_vm1, %v336_v27  ;;  %289 = vst.msk [vmem:[%s524_s3 + $0x20] sm:$0xf] %vm280_vm1, %v344_v28  ;;  %v337_v33 = vpack.c.bf16 %v157_v29, %v157_v29  ;;  %v345_v34 = vpack.c.bf16 %v189_v30, %v189_v30 }
  0xe4   :  { %284 = vst.msk [vmem:[%s524_s3 + $0xc] sm:$0xf] %vm280_vm1, %v339_v31  ;;  %292 = vst.msk [vmem:[%s524_s3 + $0x2c] sm:$0xf] %vm280_vm1, %v347_v32 }
  0xe5   :  { %282 = vst.msk [vmem:[%s524_s3 + $0x4] sm:$0xf] %vm280_vm1, %v337_v33  ;;  %290 = vst.msk [vmem:[%s524_s3 + $0x24] sm:$0xf] %vm280_vm1, %v345_v34  ;;  %v372_v35 = vpop.f32.mrb[4].mxu0  ;;  %v380_v36 = vpop.f32.mrb[4].mxu1 }
  0xe6   :  { %v178_v37 = vadd.f32 %v372_v35, %v301_v10  ;;  %v210_v38 = vadd.f32 %v380_v36, %v301_v10  ;;  %v169_v39 = vpop.f32.mrb[5].mxu0  ;;  %v201_v40 = vpop.f32.mrb[5].mxu1 }
  0xe7   :  { %v170_v41 = vadd.f32 %v301_v10, %v169_v39  ;;  %v202_v42 = vadd.f32 %v301_v10, %v201_v40  ;;  %v373_v43 = vpop.f32.mrb[6].mxu0  ;;  %v381_v44 = vpop.f32.mrb[6].mxu1 }
  0xe8   :  { %v342_v45 = vpack.c.bf16 %v178_v37, %v178_v37  ;;  %v350_v46 = vpack.c.bf16 %v210_v38, %v210_v38  ;;  %v181_v47 = vadd.f32 %v373_v43, %v301_v10  ;;  %v213_v48 = vadd.f32 %v381_v44, %v301_v10  ;;  %v172_v49 = vpop.f32.mrb[7].mxu0  ;;  %v204_v50 = vpop.f32.mrb[7].mxu1 }
  0xe9   :  { %v340_v51 = vpack.c.bf16 %v170_v41, %v170_v41  ;;  %v348_v52 = vpack.c.bf16 %v202_v42, %v202_v42  ;;  %v173_v53 = vadd.f32 %v301_v10, %v172_v49  ;;  %v205_v54 = vadd.f32 %v301_v10, %v204_v50 }
  0xea   :  { %287 = vst.msk [vmem:[%s524_s3 + $0x18] sm:$0xf] %vm280_vm1, %v342_v45  ;;  %295 = vst.msk [vmem:[%s524_s3 + $0x38] sm:$0xf] %vm280_vm1, %v350_v46  ;;  %v343_v55 = vpack.c.bf16 %v181_v47, %v181_v47  ;;  %v351_v56 = vpack.c.bf16 %v213_v48, %v213_v48 }
  0xeb   :  { %285 = vst.msk [vmem:[%s524_s3 + $0x10] sm:$0xf] %vm280_vm1, %v340_v51  ;;  %293 = vst.msk [vmem:[%s524_s3 + $0x30] sm:$0xf] %vm280_vm1, %v348_v52  ;;  %v341_v57 = vpack.c.bf16 %v173_v53, %v173_v53  ;;  %v349_v58 = vpack.c.bf16 %v205_v54, %v205_v54 }
  0xec   :  { %288 = vst.msk [vmem:[%s524_s3 + $0x1c] sm:$0xf] %vm280_vm1, %v343_v55  ;;  %296 = vst.msk [vmem:[%s524_s3 + $0x3c] sm:$0xf] %vm280_vm1, %v351_v56 }
  0xed   :  { %286 = vst.msk [vmem:[%s524_s3 + $0x14] sm:$0xf] %vm280_vm1, %v341_v57  ;;  %294 = vst.msk [vmem:[%s524_s3 + $0x34] sm:$0xf] %vm280_vm1, %v349_v58 }

// kernel: unipose_forward.29
= control target key start
LH: loop header
LB: loop body
LE: loop exit
PB: predicated region body
PF: predicated region fallthrough
CT: control target
= control target key end

     0   :  { %v1072_v0 = vmov 0   ;;  %vm425_vm0 = vcmask 392192   ;;  %vm772_vm1 = vcmask 388096   ;;  %s1403_s1 = inlined_call_operand.vmem [shape: bf16[432,48], index: 1, kind: input, shape index: {}]   ;;  %s1404_s0 = inlined_call_operand.vmem [shape: bf16[128,432], index: 0, kind: input, shape index: {}]   ;;  %s1405_s2 = inlined_call_operand.vmem [shape: f32[1,48], index: 2, kind: input, shape index: {}]   ;;  %s1406_s3 = inlined_call_operand.vmem [shape: bf16[128,48], index: 3, kind: input, shape index: {}]   ;;  %s1407_s4 = inlined_call_operand.vmem [shape: bf16[128,48], index: 4, kind: output, shape index: {}]  }
   0x1   :  { %547 = vmatprep.subr.bf16.mxu1 %v1072_v0  ;;  %v997_v1 = vld [vmem:[%s1403_s1 + $0x80] sm:$0xff]   ;;  %v1000_v4 = vld [vmem:[%s1403_s1 + $0x88] sm:$0xff]   ;;  %v1003_v7 = vld [vmem:[%s1403_s1 + $0x90] sm:$0xff]  }
   0x2   :  { %v998_v2 = vld [vmem:[%s1403_s1 + $0x40] sm:$0xff]   ;;  %548 = vmatpush1.bf16.msra.mxu1 %v997_v1  ;;  %v1001_v5 = vld [vmem:[%s1403_s1 + $0x48] sm:$0xff]   ;;  %v1004_v8 = vld [vmem:[%s1403_s1 + $0x50] sm:$0xff]  }
   0x3   :  { %v999_v3 = vld [vmem:[%s1403_s1] sm:$0xff]   ;;  %932 = vmatprep.subr.bf16.mxu0 %v998_v2  ;;  %549 = vmatprep.subr.bf16.mxu1 %v1072_v0  ;;  %v1002_v6 = vld [vmem:[%s1403_s1 + $0x8] sm:$0xff]   ;;  %v1005_v9 = vld [vmem:[%s1403_s1 + $0x10] sm:$0xff]  }
   0x4   :  { %933 = vmatpush3.bf16.msra.mxu0 %v999_v3  ;;  %v1006_v10 = vld [vmem:[%s1403_s1 + $0x98] sm:$0xff]   ;;  %v1010_v13 = vld [vmem:[%s1403_s1 + $0x60] sm:$0xff]   ;;  %v1013_v16 = vld [vmem:[%s1403_s1 + $0x68] sm:$0xff]  }
   0x5   :  { %934 = vmatprep.subr.bf16.mxu0 %v1001_v5  ;;  %v1007_v11 = vld [vmem:[%s1403_s1 + $0x58] sm:$0xff]   ;;  %v1009_v14 = vld [vmem:[%s1403_s1 + $0xa0] sm:$0xff]   ;;  %v1012_v17 = vld [vmem:[%s1403_s1 + $0xa8] sm:$0xff]  }
   0x6   :  { %550 = vmatpush1.bf16.msra.mxu1 %v1000_v4  ;;  %v1008_v12 = vld [vmem:[%s1403_s1 + $0x18] sm:$0xff]   ;;  %v1011_v15 = vld [vmem:[%s1403_s1 + $0x20] sm:$0xff]   ;;  %v1014_v18 = vld [vmem:[%s1403_s1 + $0x28] sm:$0xff]  }
   0x7   :  { %551 = vmatprep.subr.bf16.mxu1 %v1072_v0  ;;  %v1016_v19 = vld [vmem:[%s1403_s1 + $0x70] sm:$0xff]   ;;  %v1018_v22 = vld [vmem:[%s1403_s1 + $0xb8] sm:$0xff]   ;;  %v1021_v26 = vld [vmem:[%s1403_s1 + $0xc0] sm:$0xff]  }
   0x8   :  { %935 = vmatpush3.bf16.msra.mxu0 %v1002_v6  ;;  %v1015_v20 = vld [vmem:[%s1403_s1 + $0xb0] sm:$0xff]   ;;  %v1019_v23 = vld [vmem:[%s1403_s1 + $0x78] sm:$0xff]   ;;  %v1025_v30 = vld [vmem:[%s1403_s1 + $0xc8] sm:$0xff]  }
   0x9   :  { %936 = vmatprep.subr.bf16.mxu0 %v1004_v8  ;;  %v1017_v21 = vld [vmem:[%s1403_s1 + $0x30] sm:$0xff]   ;;  %v1020_v25 = vld [vmem:[%s1403_s1 + $0x38] sm:$0xff]   ;;  %v1297_v2 = vld [vmem:[%s1405_s2] ss:$0 sm:$0xff] }
   0xa   :  { %552 = vmatpush1.bf16.msra.mxu1 %v1003_v7  ;;  %v1024_v24 = vld [vmem:[%s1404_s0 + $0x4] ss:$16 sps:$4 sm:$0xff]   ;;  %v1031_v27 = vld [vmem:[%s1404_s0 + $0xc] ss:$16 sps:$4 sm:$0xff]   ;;  %v1022_v28 = vld [vmem:[%s1404_s0] ss:$16 sps:$4 sm:$0xff]  }
   0xb   :  { %553 = vmatprep.subr.bf16.mxu1 %v1072_v0  ;;  %482 = vmatprep.mubr.bf16.mxu0 %v1024_v24  ;;  %v1027_v29 = vld [vmem:[%s1404_s0 + $0x24] ss:$16 sps:$4 sm:$0xff]   ;;  %v1032_v32 = vld [vmem:[%s1404_s0 + $0x20] ss:$16 sps:$4 sm:$0xff]   ;;  %v1029_v34 = vld [vmem:[%s1404_s0 + $0x8] ss:$16 sps:$4 sm:$0xff]  }
   0xc   :  { %937 = vmatpush3.bf16.msra.mxu0 %v1005_v9  ;;  %853 = vmatprep.mubr.msk.bf16.mxu1 %vm425_vm0, %v1031_v27  ;;  %v1026_v31 = vld [vmem:[%s1403_s1 + $0xd0] sm:$0xff]   ;;  %v1035_v35 = vld [vmem:[%s1404_s0 + $0x2c] ss:$16 sps:$4 sm:$0xff]   ;;  %v1038_v38 = vld [vmem:[%s1404_s0 + $0x28] ss:$16 sps:$4 sm:$0xff]  }
   0xd   :  { %938 = vmatprep.subr.bf16.mxu0 %v1007_v11  ;;  %v1033_v33 = vld [vmem:[%s1404_s0 + $0x44] ss:$16 sps:$4 sm:$0xff]   ;;  %v1037_v36 = vld [vmem:[%s1404_s0 + $0x40] ss:$16 sps:$4 sm:$0xff]   ;;  %v1041_v39 = vld [vmem:[%s1404_s0 + $0x4c] ss:$16 sps:$4 sm:$0xff]  }
   0xe   :  { %554 = vmatpush1.bf16.msra.mxu1 %v1006_v10  ;;  %v1039_v37 = vld [vmem:[%s1404_s0 + $0x64] ss:$16 sps:$4 sm:$0xff]   ;;  %v1043_v40 = vld [vmem:[%s1404_s0 + $0x60] ss:$16 sps:$4 sm:$0xff]   ;;  %v1044_v42 = vld [vmem:[%s1404_s0 + $0x48] ss:$16 sps:$4 sm:$0xff]  }
   0xf   :  { %555 = vmatprep.subr.bf16.mxu1 %v1072_v0  ;;  %v1045_v41 = vld [vmem:[%s1404_s0 + $0x84] ss:$16 sps:$4 sm:$0xff]   ;;  %v1047_v43 = vld [vmem:[%s1404_s0 + $0x6c] ss:$16 sps:$4 sm:$0xff]   ;;  %v1049_v44 = vld [vmem:[%s1404_s0 + $0x80] ss:$16 sps:$4 sm:$0xff]  }
  0x10   :  { %939 = vmatpush3.bf16.msra.mxu0 %v1008_v12  ;;  %v1051_v45 = vld [vmem:[%s1404_s0 + $0xa4] ss:$16 sps:$4 sm:$0xff]   ;;  %v1050_v46 = vld [vmem:[%s1404_s0 + $0x68] ss:$16 sps:$4 sm:$0xff]   ;;  %v1053_v47 = vld [vmem:[%s1404_s0 + $0x8c] ss:$16 sps:$4 sm:$0xff]  }
  0x11   :  { %940 = vmatprep.subr.bf16.mxu0 %v1010_v13  ;;  %v1055_v48 = vld [vmem:[%s1404_s0 + $0xa0] ss:$16 sps:$4 sm:$0xff]   ;;  %v1057_v49 = vld [vmem:[%s1404_s0 + $0xc4] ss:$16 sps:$4 sm:$0xff]   ;;  %v1056_v50 = vld [vmem:[%s1404_s0 + $0x88] ss:$16 sps:$4 sm:$0xff]  }
  0x12   :  { %556 = vmatpush1.bf16.msra.mxu1 %v1009_v14  ;;  %v1059_v51 = vld [vmem:[%s1404_s0 + $0xac] ss:$16 sps:$4 sm:$0xff]   ;;  %v1061_v52 = vld [vmem:[%s1404_s0 + $0xc0] ss:$16 sps:$4 sm:$0xff]   ;;  %v1063_v53 = vld [vmem:[%s1404_s0 + $0xe4] ss:$16 sps:$4 sm:$0xff]  }
  0x13   :  { %557 = vmatprep.subr.bf16.mxu1 %v1072_v0  ;;  %v1062_v54 = vld [vmem:[%s1404_s0 + $0xa8] ss:$16 sps:$4 sm:$0xff]   ;;  %v1065_v55 = vld [vmem:[%s1404_s0 + $0xcc] ss:$16 sps:$4 sm:$0xff]   ;;  %v1067_v56 = vld [vmem:[%s1404_s0 + $0xe0] ss:$16 sps:$4 sm:$0xff]  }
  0x14   :  { %941 = vmatpush3.bf16.msra.mxu0 %v1011_v15  ;;  %v1068_v57 = vld [vmem:[%s1404_s0 + $0xc8] ss:$16 sps:$4 sm:$0xff]   ;;  %v1069_v58 = vld [vmem:[%s1404_s0 + $0xec] ss:$16 sps:$4 sm:$0xff]   ;;  %v894_v3 = vld [vmem:[%s1406_s3] sm:$0xff]  }
  0x15   :  { %942 = vmatprep.subr.bf16.mxu0 %v1013_v16  ;;  %v1071_v59 = vld [vmem:[%s1404_s0 + $0xe8] ss:$16 sps:$4 sm:$0xff]   ;;  %v895_v6 = vunpack.c.l.bf16 %v894_v3  ;;  %v896_v14 = vunpack.c.h.bf16 %v894_v3 }
  0x16   :  { %558 = vmatpush1.bf16.msra.mxu1 %v1012_v17 }
  0x17   :  { %559 = vmatprep.subr.bf16.mxu1 %v1072_v0 }
  0x18   :  { %943 = vmatpush3.bf16.msra.mxu0 %v1014_v18 }
  0x19   :  { %944 = vmatprep.subr.bf16.mxu0 %v1016_v19 }
  0x1a   :  { %560 = vmatpush1.bf16.msra.mxu1 %v1015_v20 }
  0x1b   :  { %561 = vmatprep.subr.bf16.mxu1 %v1072_v0 }
  0x1c   :  { %945 = vmatpush3.bf16.msra.mxu0 %v1017_v21  ;;  %v925_v21 = vld [vmem:[%s1406_s3 + $0x8] sm:$0xff]  }
  0x1d   :  { %946 = vmatprep.subr.bf16.mxu0 %v1019_v23 }
  0x1e   :  { %562 = vmatpush1.bf16.msra.mxu1 %v1018_v22 }
  0x1f   :  { %563 = vmatprep.subr.bf16.mxu1 %v1072_v0 }
  0x20   :  { %947 = vmatpush3.bf16.msra.mxu0 %v1020_v25 }
  0x22   :  { %564 = vmatpush1.bf16.msra.mxu1 %v1021_v26 }
  0x23   :  { %483 = vmatmul.mubr.bf16.vlgmr.msra.gmra.mrb[0].mxu0 %v1022_v28  ;;  %565 = vmatprep.subr.bf16.mxu1 %v1072_v0  ;;  %v899_v28 = vunpack.c.l.bf16 %v925_v21 }
  0x24   :  { %490 = vmatprep.mubr.bf16.mxu0 %v1027_v29 }
  0x26   :  { %566 = vmatpush1.bf16.msra.mxu1 %v1025_v30 }
  0x27   :  { %567 = vmatprep.subr.bf16.mxu1 %v1072_v0 }
  0x2a   :  { %568 = vmatpush1.bf16.msra.mxu1 %v1026_v31 }
  0x2b   :  { %491 = vmatmul.mubr.bf16.gmra.mrb[4].mxu0 %v1032_v32 }
  0x2c   :  { %498 = vmatprep.mubr.bf16.mxu0 %v1033_v33 }
  0x2d   :  { %580 = vmatmul.mubr.bf16.vlgmr.msra.gmra.mrb[0].mxu1 %v1029_v34 }
  0x2e   :  { %854 = vmatprep.mubr.msk.bf16.mxu1 %vm425_vm0, %v1035_v35 }
  0x33   :  { %499 = vmatmul.mubr.bf16.gmra.mrb[8].mxu0 %v1037_v36 }
  0x34   :  { %506 = vmatprep.mubr.bf16.mxu0 %v1039_v37  ;;  %v900_v37 = vunpack.c.h.bf16 %v925_v21 }
  0x35   :  { %588 = vmatmul.mubr.bf16.gmra.mrb[4].mxu1 %v1038_v38 }
  0x36   :  { %855 = vmatprep.mubr.msk.bf16.mxu1 %vm425_vm0, %v1041_v39 }
  0x3b   :  { %507 = vmatmul.mubr.bf16.gmra.mrb[12].mxu0 %v1043_v40 }
  0x3c   :  { %514 = vmatprep.mubr.bf16.mxu0 %v1045_v41 }
  0x3d   :  { %596 = vmatmul.mubr.bf16.gmra.mrb[8].mxu1 %v1044_v42 }
  0x3e   :  { %856 = vmatprep.mubr.msk.bf16.mxu1 %vm425_vm0, %v1047_v43 }
  0x43   :  { %515 = vmatmul.mubr.bf16.gmra.mrb[16].mxu0 %v1049_v44  ;;  %v926_v44 = vld [vmem:[%s1406_s3 + $0x10] sm:$0xff]  }
  0x44   :  { %522 = vmatprep.mubr.bf16.mxu0 %v1051_v45 }
  0x45   :  { %604 = vmatmul.mubr.bf16.gmra.mrb[12].mxu1 %v1050_v46 }
  0x46   :  { %857 = vmatprep.mubr.msk.bf16.mxu1 %vm425_vm0, %v1053_v47 }
  0x4b   :  { %523 = vmatmul.mubr.bf16.gmra.mrb[20].mxu0 %v1055_v48 }
  0x4c   :  { %530 = vmatprep.mubr.bf16.mxu0 %v1057_v49 }
  0x4d   :  { %612 = vmatmul.mubr.bf16.gmra.mrb[16].mxu1 %v1056_v50 }
  0x4e   :  { %858 = vmatprep.mubr.msk.bf16.mxu1 %vm425_vm0, %v1059_v51  ;;  %v903_v51 = vunpack.c.l.bf16 %v926_v44 }
  0x53   :  { %531 = vmatmul.mubr.bf16.gmra.mrb[24].mxu0 %v1061_v52 }
  0x54   :  { %538 = vmatprep.mubr.bf16.mxu0 %v1063_v53 }
  0x55   :  { %620 = vmatmul.mubr.bf16.gmra.mrb[20].mxu1 %v1062_v54 }
  0x56   :  { %859 = vmatprep.mubr.msk.bf16.mxu1 %vm425_vm0, %v1065_v55 }
  0x5b   :  { %539 = vmatmul.mubr.bf16.gmra.mrb[28].mxu0 %v1067_v56 }
  0x5d   :  { %628 = vmatmul.mubr.bf16.gmra.mrb[24].mxu1 %v1068_v57 }
  0x5e   :  { %860 = vmatprep.mubr.msk.bf16.mxu1 %vm425_vm0, %v1069_v58 }
  0x65   :  { %636 = vmatmul.mubr.bf16.gmra.mrb[28].mxu1 %v1071_v59 }
  0xf6   :  { %v948_v60 = vpop.f32.mrb[0].mxu0 }
  0xf7   :  { %v949_v61 = vpop.f32.mrb[1].mxu0 }
  0xf8   :  { %v950_v62 = vadd.f32 %v949_v61, %v948_v60  ;;  %v951_v63 = vpop.f32.mrb[2].mxu0  ;;  %v904_v60 = vunpack.c.h.bf16 %v926_v44 }
  0xf9   :  { %v952_v0 = vpop.f32.mrb[3].mxu0 }
  0xfa   :  { %v953_v1 = vadd.f32 %v952_v0, %v951_v63  ;;  %v485_v4 = vadd.f32 %v950_v62, %v1297_v2 }
  0xfc   :  { %v488_v13 = vadd.f32 %v953_v1, %v1297_v2 }
  0xfe   :  { %v954_v5 = vpop.f32.mrb[4].mxu0 }
  0xff   :  { %v955_v7 = vpop.f32.mrb[5].mxu0 }
 0x100   :  { %v581_v8 = vpop.f32.mrb[0].mxu1  ;;  %v956_v9 = vadd.f32 %v955_v7, %v954_v5  ;;  %v957_v10 = vpop.f32.mrb[6].mxu0 }
 0x101   :  { %v582_v11 = vadd.f32 %v581_v8, %v485_v4  ;;  %v583_v12 = vpop.f32.mrb[1].mxu1  ;;  %v958_v15 = vpop.f32.mrb[7].mxu0  ;;  %v927_v4 = vld [vmem:[%s1406_s3 + $0x18] sm:$0xff]  }
 0x102   :  { %v584_v16 = vpop.f32.mrb[2].mxu1  ;;  %v959_v17 = vadd.f32 %v958_v15, %v957_v10  ;;  %v493_v24 = vadd.f32 %v956_v9, %v1297_v2 }
 0x103   :  { %v676_v18 = vadd.f32 %v895_v6, %v582_v11  ;;  %v585_v19 = vadd.f32 %v584_v16, %v488_v13  ;;  %v586_v20 = vpop.f32.mrb[3].mxu1  ;;  %v907_v11 = vunpack.c.l.bf16 %v927_v4 }
 0x104   :  { %v496_v36 = vadd.f32 %v959_v17, %v1297_v2  ;;  %v908_v20 = vunpack.c.h.bf16 %v927_v4 }
 0x105   :  { %v692_v22 = vmax.f32 %v676_v18, 0.0  ;;  %v677_v23 = vadd.f32 %v896_v14, %v585_v19 }
 0x106   :  { %v960_v25 = vpop.f32.mrb[8].mxu0 }
 0x107   :  { %v877_v26 = vpack.c.bf16 %v692_v22, %v692_v22  ;;  %v693_v27 = vmax.f32 %v677_v23, 0.0  ;;  %v961_v29 = vpop.f32.mrb[9].mxu0 }
 0x108   :  { %v589_v30 = vpop.f32.mrb[4].mxu1  ;;  %v962_v31 = vadd.f32 %v961_v29, %v960_v25  ;;  %v963_v32 = vpop.f32.mrb[10].mxu0 }
 0x109   :  { %773 = vst.msk [vmem:[%s1407_s4] sm:$0xf] %vm772_vm1, %v877_v26  ;;  %v878_v33 = vpack.c.bf16 %v693_v27, %v693_v27  ;;  %v590_v34 = vadd.f32 %v589_v30, %v493_v24  ;;  %v591_v35 = vpop.f32.mrb[5].mxu1  ;;  %v964_v38 = vpop.f32.mrb[11].mxu0  ;;  %v928_v27 = vld [vmem:[%s1406_s3 + $0x20] sm:$0xff]  }
 0x10a   :  { %v592_v39 = vpop.f32.mrb[6].mxu1  ;;  %v965_v40 = vadd.f32 %v964_v38, %v963_v32  ;;  %v501_v47 = vadd.f32 %v962_v31, %v1297_v2 }
 0x10b   :  { %774 = vst.msk [vmem:[%s1407_s4 + $0x4] sm:$0xf] %vm772_vm1, %v878_v33  ;;  %v678_v41 = vadd.f32 %v899_v28, %v590_v34  ;;  %v593_v42 = vadd.f32 %v592_v39, %v496_v36  ;;  %v594_v43 = vpop.f32.mrb[7].mxu1  ;;  %v911_v34 = vunpack.c.l.bf16 %v928_v27 }
 0x10c   :  { %v504_v59 = vadd.f32 %v965_v40, %v1297_v2  ;;  %v912_v43 = vunpack.c.h.bf16 %v928_v27 }
 0x10d   :  { %v694_v45 = vmax.f32 %v678_v41, 0.0  ;;  %v679_v46 = vadd.f32 %v900_v37, %v593_v42 }
 0x10e   :  { %v966_v48 = vpop.f32.mrb[12].mxu0 }
 0x10f   :  { %v879_v49 = vpack.c.bf16 %v694_v45, %v694_v45  ;;  %v695_v50 = vmax.f32 %v679_v46, 0.0  ;;  %v967_v52 = vpop.f32.mrb[13].mxu0 }
 0x110   :  { %v597_v53 = vpop.f32.mrb[8].mxu1  ;;  %v968_v54 = vadd.f32 %v967_v52, %v966_v48  ;;  %v969_v55 = vpop.f32.mrb[14].mxu0 }
 0x111   :  { %775 = vst.msk [vmem:[%s1407_s4 + $0x8] sm:$0xf] %vm772_vm1, %v879_v49  ;;  %v880_v56 = vpack.c.bf16 %v695_v50, %v695_v50  ;;  %v598_v57 = vadd.f32 %v597_v53, %v501_v47  ;;  %v599_v58 = vpop.f32.mrb[9].mxu1  ;;  %v970_v61 = vpop.f32.mrb[15].mxu0  ;;  %v929_v50 = vld [vmem:[%s1406_s3 + $0x28] sm:$0xff]  }
 0x112   :  { %v600_v62 = vpop.f32.mrb[10].mxu1  ;;  %v971_v63 = vadd.f32 %v970_v61, %v969_v55  ;;  %v509_v7 = vadd.f32 %v968_v54, %v1297_v2 }
 0x113   :  { %776 = vst.msk [vmem:[%s1407_s4 + $0xc] sm:$0xf] %vm772_vm1, %v880_v56  ;;  %v680_v0 = vadd.f32 %v903_v51, %v598_v57  ;;  %v601_v1 = vadd.f32 %v600_v62, %v504_v59  ;;  %v602_v3 = vpop.f32.mrb[11].mxu1  ;;  %v915_v57 = vunpack.c.l.bf16 %v929_v50 }
 0x114   :  { %v512_v19 = vadd.f32 %v971_v63, %v1297_v2  ;;  %v916_v3 = vunpack.c.h.bf16 %v929_v50 }
 0x115   :  { %v696_v5 = vmax.f32 %v680_v0, 0.0  ;;  %v681_v6 = vadd.f32 %v904_v60, %v601_v1 }
 0x116   :  { %v972_v8 = vpop.f32.mrb[16].mxu0 }
 0x117   :  { %v881_v9 = vpack.c.bf16 %v696_v5, %v696_v5  ;;  %v697_v10 = vmax.f32 %v681_v6, 0.0  ;;  %v973_v12 = vpop.f32.mrb[17].mxu0 }
 0x118   :  { %v605_v13 = vpop.f32.mrb[12].mxu1  ;;  %v974_v14 = vadd.f32 %v973_v12, %v972_v8  ;;  %v975_v15 = vpop.f32.mrb[18].mxu0 }
 0x119   :  { %777 = vst.msk [vmem:[%s1407_s4 + $0x10] sm:$0xf] %vm772_vm1, %v881_v9  ;;  %v882_v16 = vpack.c.bf16 %v697_v10, %v697_v10  ;;  %v606_v17 = vadd.f32 %v605_v13, %v509_v7  ;;  %v607_v18 = vpop.f32.mrb[13].mxu1  ;;  %v976_v21 = vpop.f32.mrb[19].mxu0  ;;  %v930_v10 = vld [vmem:[%s1406_s3 + $0x30] sm:$0xff]  }
 0x11a   :  { %v608_v22 = vpop.f32.mrb[14].mxu1  ;;  %v977_v23 = vadd.f32 %v976_v21, %v975_v15  ;;  %v517_v30 = vadd.f32 %v974_v14, %v1297_v2 }
 0x11b   :  { %778 = vst.msk [vmem:[%s1407_s4 + $0x14] sm:$0xf] %vm772_vm1, %v882_v16  ;;  %v682_v24 = vadd.f32 %v907_v11, %v606_v17  ;;  %v609_v25 = vadd.f32 %v608_v22, %v512_v19  ;;  %v610_v26 = vpop.f32.mrb[15].mxu1  ;;  %v919_v17 = vunpack.c.l.bf16 %v930_v10 }
 0x11c   :  { %v520_v42 = vadd.f32 %v977_v23, %v1297_v2  ;;  %v920_v26 = vunpack.c.h.bf16 %v930_v10 }
 0x11d   :  { %v698_v28 = vmax.f32 %v682_v24, 0.0  ;;  %v683_v29 = vadd.f32 %v908_v20, %v609_v25 }
 0x11e   :  { %v978_v31 = vpop.f32.mrb[20].mxu0 }
 0x11f   :  { %v883_v32 = vpack.c.bf16 %v698_v28, %v698_v28  ;;  %v699_v33 = vmax.f32 %v683_v29, 0.0  ;;  %v979_v35 = vpop.f32.mrb[21].mxu0 }
 0x120   :  { %v613_v36 = vpop.f32.mrb[16].mxu1  ;;  %v980_v37 = vadd.f32 %v979_v35, %v978_v31  ;;  %v981_v38 = vpop.f32.mrb[22].mxu0 }
 0x121   :  { %779 = vst.msk [vmem:[%s1407_s4 + $0x18] sm:$0xf] %vm772_vm1, %v883_v32  ;;  %v884_v39 = vpack.c.bf16 %v699_v33, %v699_v33  ;;  %v614_v40 = vadd.f32 %v613_v36, %v517_v30  ;;  %v615_v41 = vpop.f32.mrb[17].mxu1  ;;  %v982_v44 = vpop.f32.mrb[23].mxu0  ;;  %v931_v33 = vld [vmem:[%s1406_s3 + $0x38] sm:$0xff]  }
 0x122   :  { %v616_v45 = vpop.f32.mrb[18].mxu1  ;;  %v983_v46 = vadd.f32 %v982_v44, %v981_v38  ;;  %v525_v53 = vadd.f32 %v980_v37, %v1297_v2 }
 0x123   :  { %780 = vst.msk [vmem:[%s1407_s4 + $0x1c] sm:$0xf] %vm772_vm1, %v884_v39  ;;  %v684_v47 = vadd.f32 %v911_v34, %v614_v40  ;;  %v617_v48 = vadd.f32 %v616_v45, %v520_v42  ;;  %v618_v49 = vpop.f32.mrb[19].mxu1  ;;  %v923_v39 = vunpack.c.l.bf16 %v931_v33  ;;  %v924_v45 = vunpack.c.h.bf16 %v931_v33 }
 0x124   :  { %v528_v1 = vadd.f32 %v983_v46, %v1297_v2 }
 0x125   :  { %v700_v51 = vmax.f32 %v684_v47, 0.0  ;;  %v685_v52 = vadd.f32 %v912_v43, %v617_v48 }
 0x126   :  { %v984_v54 = vpop.f32.mrb[24].mxu0 }
 0x127   :  { %v885_v55 = vpack.c.bf16 %v700_v51, %v700_v51  ;;  %v701_v56 = vmax.f32 %v685_v52, 0.0  ;;  %v985_v58 = vpop.f32.mrb[25].mxu0 }
 0x128   :  { %v621_v59 = vpop.f32.mrb[20].mxu1  ;;  %v986_v60 = vadd.f32 %v985_v58, %v984_v54  ;;  %v987_v61 = vpop.f32.mrb[26].mxu0 }
 0x129   :  { %781 = vst.msk [vmem:[%s1407_s4 + $0x20] sm:$0xf] %vm772_vm1, %v885_v55  ;;  %v886_v62 = vpack.c.bf16 %v701_v56, %v701_v56  ;;  %v622_v63 = vadd.f32 %v621_v59, %v525_v53  ;;  %v623_v0 = vpop.f32.mrb[21].mxu1  ;;  %v988_v4 = vpop.f32.mrb[27].mxu0 }
 0x12a   :  { %v624_v5 = vpop.f32.mrb[22].mxu1  ;;  %v989_v6 = vadd.f32 %v988_v4, %v987_v61  ;;  %v533_v13 = vadd.f32 %v986_v60, %v1297_v2 }
 0x12b   :  { %782 = vst.msk [vmem:[%s1407_s4 + $0x24] sm:$0xf] %vm772_vm1, %v886_v62  ;;  %v686_v7 = vadd.f32 %v915_v57, %v622_v63  ;;  %v625_v8 = vadd.f32 %v624_v5, %v528_v1  ;;  %v626_v9 = vpop.f32.mrb[23].mxu1 }
 0x12c   :  { %v536_v25 = vadd.f32 %v989_v6, %v1297_v2 }
 0x12d   :  { %v702_v11 = vmax.f32 %v686_v7, 0.0  ;;  %v687_v12 = vadd.f32 %v916_v3, %v625_v8 }
 0x12e   :  { %v990_v14 = vpop.f32.mrb[28].mxu0 }
 0x12f   :  { %v887_v15 = vpack.c.bf16 %v702_v11, %v702_v11  ;;  %v703_v16 = vmax.f32 %v687_v12, 0.0  ;;  %v991_v18 = vpop.f32.mrb[29].mxu0 }
 0x130   :  { %v629_v19 = vpop.f32.mrb[24].mxu1  ;;  %v992_v20 = vadd.f32 %v991_v18, %v990_v14  ;;  %v993_v21 = vpop.f32.mrb[30].mxu0 }
 0x131   :  { %783 = vst.msk [vmem:[%s1407_s4 + $0x28] sm:$0xf] %vm772_vm1, %v887_v15  ;;  %v888_v22 = vpack.c.bf16 %v703_v16, %v703_v16  ;;  %v630_v23 = vadd.f32 %v629_v19, %v533_v13  ;;  %v631_v24 = vpop.f32.mrb[25].mxu1  ;;  %v994_v27 = vpop.f32.mrb[31].mxu0 }
 0x132   :  { %v632_v28 = vpop.f32.mrb[26].mxu1  ;;  %v995_v29 = vadd.f32 %v994_v27, %v993_v21  ;;  %v541_v36 = vadd.f32 %v992_v20, %v1297_v2 }
 0x133   :  { %784 = vst.msk [vmem:[%s1407_s4 + $0x2c] sm:$0xf] %vm772_vm1, %v888_v22  ;;  %v688_v30 = vadd.f32 %v919_v17, %v630_v23  ;;  %v633_v31 = vadd.f32 %v632_v28, %v536_v25  ;;  %v634_v32 = vpop.f32.mrb[27].mxu1 }
 0x134   :  { %v544_v44 = vadd.f32 %v995_v29, %v1297_v2 }
 0x135   :  { %v704_v34 = vmax.f32 %v688_v30, 0.0  ;;  %v689_v35 = vadd.f32 %v920_v26, %v633_v31 }
 0x137   :  { %v889_v37 = vpack.c.bf16 %v704_v34, %v704_v34  ;;  %v705_v38 = vmax.f32 %v689_v35, 0.0 }
 0x138   :  { %v637_v40 = vpop.f32.mrb[28].mxu1 }
 0x139   :  { %785 = vst.msk [vmem:[%s1407_s4 + $0x30] sm:$0xf] %vm772_vm1, %v889_v37  ;;  %v890_v41 = vpack.c.bf16 %v705_v38, %v705_v38  ;;  %v638_v42 = vadd.f32 %v637_v40, %v541_v36  ;;  %v639_v43 = vpop.f32.mrb[29].mxu1 }
 0x13a   :  { %v640_v46 = vpop.f32.mrb[30].mxu1 }
 0x13b   :  { %786 = vst.msk [vmem:[%s1407_s4 + $0x34] sm:$0xf] %vm772_vm1, %v890_v41  ;;  %v690_v47 = vadd.f32 %v923_v39, %v638_v42  ;;  %v641_v48 = vadd.f32 %v640_v46, %v544_v44  ;;  %v642_v49 = vpop.f32.mrb[31].mxu1 }
 0x13d   :  { %v706_v50 = vmax.f32 %v690_v47, 0.0  ;;  %v691_v51 = vadd.f32 %v924_v45, %v641_v48 }
 0x13f   :  { %v891_v52 = vpack.c.bf16 %v706_v50, %v706_v50  ;;  %v707_v53 = vmax.f32 %v691_v51, 0.0 }
 0x141   :  { %787 = vst.msk [vmem:[%s1407_s4 + $0x38] sm:$0xf] %vm772_vm1, %v891_v52  ;;  %v892_v2 = vpack.c.bf16 %v707_v53, %v707_v53 }
 0x143   :  { %788 = vst.msk [vmem:[%s1407_s4 + $0x3c] sm:$0xf] %vm772_vm1, %v892_v2 }

// kernel: unipose_forward.30
= control target key start
LH: loop header
LB: loop body
LE: loop exit
PB: predicated region body
PF: predicated region fallthrough
CT: control target
= control target key end

     0   :  { %v532_v0 = vmov 0   ;;  %vm284_vm0 = vcmask 392192   ;;  %vm409_vm1 = vcmask 519168   ;;  %s690_s1 = inlined_call_operand.vmem [shape: bf16[432,64], index: 1, kind: input, shape index: {}]   ;;  %s691_s0 = inlined_call_operand.vmem [shape: bf16[32,432], index: 0, kind: input, shape index: {}]   ;;  %s692_s2 = inlined_call_operand.vmem [shape: f32[1,64], index: 2, kind: input, shape index: {}]   ;;  %s693_s3 = inlined_call_operand.vmem [shape: bf16[32,64], index: 3, kind: output, shape index: {}]  }
   0x1   :  { %340 = vmatprep.subr.bf16.mxu1 %v532_v0  ;;  %v493_v1 = vld [vmem:[%s690_s1 + $0x80] sm:$0xff]   ;;  %v496_v4 = vld [vmem:[%s690_s1 + $0x88] sm:$0xff]   ;;  %v499_v7 = vld [vmem:[%s690_s1 + $0x90] sm:$0xff]  }
   0x2   :  { %v494_v2 = vld [vmem:[%s690_s1 + $0x40] sm:$0xff]   ;;  %341 = vmatpush1.bf16.msra.mxu1 %v493_v1  ;;  %v497_v5 = vld [vmem:[%s690_s1 + $0x48] sm:$0xff]   ;;  %v500_v8 = vld [vmem:[%s690_s1 + $0x50] sm:$0xff]  }
   0x3   :  { %v495_v3 = vld [vmem:[%s690_s1] sm:$0xff]   ;;  %464 = vmatprep.subr.bf16.mxu0 %v494_v2  ;;  %342 = vmatprep.subr.bf16.mxu1 %v532_v0  ;;  %v498_v6 = vld [vmem:[%s690_s1 + $0x8] sm:$0xff]   ;;  %v501_v9 = vld [vmem:[%s690_s1 + $0x10] sm:$0xff]  }
   0x4   :  { %465 = vmatpush3.bf16.msra.mxu0 %v495_v3  ;;  %v502_v10 = vld [vmem:[%s690_s1 + $0x98] sm:$0xff]   ;;  %v506_v13 = vld [vmem:[%s690_s1 + $0x60] sm:$0xff]   ;;  %v509_v16 = vld [vmem:[%s690_s1 + $0x68] sm:$0xff]  }
   0x5   :  { %466 = vmatprep.subr.bf16.mxu0 %v497_v5  ;;  %v503_v11 = vld [vmem:[%s690_s1 + $0x58] sm:$0xff]   ;;  %v505_v14 = vld [vmem:[%s690_s1 + $0xa0] sm:$0xff]   ;;  %v508_v17 = vld [vmem:[%s690_s1 + $0xa8] sm:$0xff]  }
   0x6   :  { %343 = vmatpush1.bf16.msra.mxu1 %v496_v4  ;;  %v504_v12 = vld [vmem:[%s690_s1 + $0x18] sm:$0xff]   ;;  %v507_v15 = vld [vmem:[%s690_s1 + $0x20] sm:$0xff]   ;;  %v510_v18 = vld [vmem:[%s690_s1 + $0x28] sm:$0xff]  }
   0x7   :  { %344 = vmatprep.subr.bf16.mxu1 %v532_v0  ;;  %v512_v19 = vld [vmem:[%s690_s1 + $0x70] sm:$0xff]   ;;  %v514_v22 = vld [vmem:[%s690_s1 + $0xb8] sm:$0xff]   ;;  %v517_v26 = vld [vmem:[%s690_s1 + $0xc0] sm:$0xff]  }
   0x8   :  { %467 = vmatpush3.bf16.msra.mxu0 %v498_v6  ;;  %v511_v20 = vld [vmem:[%s690_s1 + $0xb0] sm:$0xff]   ;;  %v515_v23 = vld [vmem:[%s690_s1 + $0x78] sm:$0xff]   ;;  %v521_v30 = vld [vmem:[%s690_s1 + $0xc8] sm:$0xff]  }
   0x9   :  { %468 = vmatprep.subr.bf16.mxu0 %v500_v8  ;;  %v513_v21 = vld [vmem:[%s690_s1 + $0x30] sm:$0xff]   ;;  %v516_v25 = vld [vmem:[%s690_s1 + $0x38] sm:$0xff]   ;;  %v418_v42 = vld [vmem:[%s692_s2] ss:$0 sm:$0xff] }
   0xa   :  { %345 = vmatpush1.bf16.msra.mxu1 %v499_v7  ;;  %v520_v24 = vld [vmem:[%s691_s0 + $0x4] ss:$16 sps:$4 sm:$0xff]   ;;  %v527_v27 = vld [vmem:[%s691_s0 + $0xc] ss:$16 sps:$4 sm:$0xff]   ;;  %v518_v28 = vld [vmem:[%s691_s0] ss:$16 sps:$4 sm:$0xff]  }
   0xb   :  { %346 = vmatprep.subr.bf16.mxu1 %v532_v0  ;;  %323 = vmatprep.mubr.bf16.mxu0 %v520_v24  ;;  %v523_v29 = vld [vmem:[%s691_s0 + $0x24] ss:$16 sps:$4 sm:$0xff]   ;;  %v528_v32 = vld [vmem:[%s691_s0 + $0x20] ss:$16 sps:$4 sm:$0xff]   ;;  %v525_v33 = vld [vmem:[%s691_s0 + $0x8] ss:$16 sps:$4 sm:$0xff]  }
   0xc   :  { %469 = vmatpush3.bf16.msra.mxu0 %v501_v9  ;;  %454 = vmatprep.mubr.msk.bf16.mxu1 %vm284_vm0, %v527_v27  ;;  %v522_v31 = vld [vmem:[%s690_s1 + $0xd0] sm:$0xff]   ;;  %v529_v34 = vld [vmem:[%s691_s0 + $0x2c] ss:$16 sps:$4 sm:$0xff]   ;;  %v531_v35 = vld [vmem:[%s691_s0 + $0x28] ss:$16 sps:$4 sm:$0xff]  }
   0xd   :  { %470 = vmatprep.subr.bf16.mxu0 %v503_v11 }
   0xe   :  { %347 = vmatpush1.bf16.msra.mxu1 %v502_v10 }
   0xf   :  { %348 = vmatprep.subr.bf16.mxu1 %v532_v0 }
  0x10   :  { %471 = vmatpush3.bf16.msra.mxu0 %v504_v12 }
  0x11   :  { %472 = vmatprep.subr.bf16.mxu0 %v506_v13 }
  0x12   :  { %349 = vmatpush1.bf16.msra.mxu1 %v505_v14 }
  0x13   :  { %350 = vmatprep.subr.bf16.mxu1 %v532_v0 }
  0x14   :  { %473 = vmatpush3.bf16.msra.mxu0 %v507_v15 }
  0x15   :  { %474 = vmatprep.subr.bf16.mxu0 %v509_v16 }
  0x16   :  { %351 = vmatpush1.bf16.msra.mxu1 %v508_v17 }
  0x17   :  { %352 = vmatprep.subr.bf16.mxu1 %v532_v0 }
  0x18   :  { %475 = vmatpush3.bf16.msra.mxu0 %v510_v18 }
  0x19   :  { %476 = vmatprep.subr.bf16.mxu0 %v512_v19 }
  0x1a   :  { %353 = vmatpush1.bf16.msra.mxu1 %v511_v20 }
  0x1b   :  { %354 = vmatprep.subr.bf16.mxu1 %v532_v0 }
  0x1c   :  { %477 = vmatpush3.bf16.msra.mxu0 %v513_v21 }
  0x1d   :  { %478 = vmatprep.subr.bf16.mxu0 %v515_v23 }
  0x1e   :  { %355 = vmatpush1.bf16.msra.mxu1 %v514_v22 }
  0x1f   :  { %356 = vmatprep.subr.bf16.mxu1 %v532_v0 }
  0x20   :  { %479 = vmatpush3.bf16.msra.mxu0 %v516_v25 }
  0x22   :  { %357 = vmatpush1.bf16.msra.mxu1 %v517_v26 }
  0x23   :  { %324 = vmatmul.mubr.bf16.vlgmr.msra.gmra.mrb[0].mxu0 %v518_v28  ;;  %358 = vmatprep.subr.bf16.mxu1 %v532_v0 }
  0x24   :  { %331 = vmatprep.mubr.bf16.mxu0 %v523_v29 }
  0x26   :  { %359 = vmatpush1.bf16.msra.mxu1 %v521_v30 }
  0x27   :  { %360 = vmatprep.subr.bf16.mxu1 %v532_v0 }
  0x2a   :  { %361 = vmatpush1.bf16.msra.mxu1 %v522_v31 }
  0x2b   :  { %332 = vmatmul.mubr.bf16.gmra.mrb[4].mxu0 %v528_v32 }
  0x2d   :  { %373 = vmatmul.mubr.bf16.vlgmr.msra.gmra.mrb[0].mxu1 %v525_v33 }
  0x2e   :  { %455 = vmatprep.mubr.msk.bf16.mxu1 %vm284_vm0, %v529_v34 }
  0x35   :  { %381 = vmatmul.mubr.bf16.gmra.mrb[4].mxu1 %v531_v35 }
  0xf6   :  { %v480_v36 = vpop.f32.mrb[0].mxu0 }
  0xf7   :  { %v481_v37 = vpop.f32.mrb[1].mxu0 }
  0xf8   :  { %v482_v38 = vadd.f32 %v481_v37, %v480_v36  ;;  %v483_v39 = vpop.f32.mrb[2].mxu0 }
  0xf9   :  { %v484_v40 = vpop.f32.mrb[3].mxu0 }
  0xfa   :  { %v485_v41 = vadd.f32 %v484_v40, %v483_v39  ;;  %v326_v43 = vadd.f32 %v482_v38, %v418_v42 }
  0xfc   :  { %v329_v51 = vadd.f32 %v485_v41, %v418_v42 }
  0xfe   :  { %v486_v44 = vpop.f32.mrb[4].mxu0 }
  0xff   :  { %v487_v45 = vpop.f32.mrb[5].mxu0 }
 0x100   :  { %v374_v46 = vpop.f32.mrb[0].mxu1  ;;  %v488_v47 = vadd.f32 %v487_v45, %v486_v44  ;;  %v489_v48 = vpop.f32.mrb[6].mxu0 }
 0x101   :  { %v375_v49 = vadd.f32 %v374_v46, %v326_v43  ;;  %v376_v50 = vpop.f32.mrb[1].mxu1  ;;  %v490_v52 = vpop.f32.mrb[7].mxu0 }
 0x102   :  { %v377_v53 = vpop.f32.mrb[2].mxu1  ;;  %v491_v54 = vadd.f32 %v490_v52, %v489_v48  ;;  %v334_v60 = vadd.f32 %v488_v47, %v418_v42 }
 0x103   :  { %v389_v55 = vmax.f32 %v375_v49, 0.0  ;;  %v378_v56 = vadd.f32 %v377_v53, %v329_v51  ;;  %v379_v57 = vpop.f32.mrb[3].mxu1 }
 0x104   :  { %v337_v1 = vadd.f32 %v491_v54, %v418_v42 }
 0x105   :  { %v460_v58 = vpack.c.bf16 %v389_v55, %v389_v55  ;;  %v390_v59 = vmax.f32 %v378_v56, 0.0 }
 0x107   :  { %410 = vst.msk [vmem:[%s693_s3] sm:$0xf] %vm409_vm1, %v460_v58  ;;  %v461_v61 = vpack.c.bf16 %v390_v59, %v390_v59 }
 0x108   :  { %v382_v62 = vpop.f32.mrb[4].mxu1 }
 0x109   :  { %411 = vst.msk [vmem:[%s693_s3 + $0x4] sm:$0xf] %vm409_vm1, %v461_v61  ;;  %v383_v63 = vadd.f32 %v382_v62, %v334_v60  ;;  %v384_v0 = vpop.f32.mrb[5].mxu1 }
 0x10a   :  { %v385_v2 = vpop.f32.mrb[6].mxu1 }
 0x10b   :  { %v391_v3 = vmax.f32 %v383_v63, 0.0  ;;  %v386_v4 = vadd.f32 %v385_v2, %v337_v1  ;;  %v387_v5 = vpop.f32.mrb[7].mxu1 }
 0x10d   :  { %v462_v6 = vpack.c.bf16 %v391_v3, %v391_v3  ;;  %v392_v7 = vmax.f32 %v386_v4, 0.0 }
 0x10f   :  { %412 = vst.msk [vmem:[%s693_s3 + $0x8] sm:$0xf] %vm409_vm1, %v462_v6  ;;  %v463_v8 = vpack.c.bf16 %v392_v7, %v392_v7 }
 0x111   :  { %413 = vst.msk [vmem:[%s693_s3 + $0xc] sm:$0xf] %vm409_vm1, %v463_v8 }

// kernel: unipose_forward.31
= control target key start
LH: loop header
LB: loop body
LE: loop exit
PB: predicated region body
PF: predicated region fallthrough
CT: control target
= control target key end

     0   :  { %vm60_vm0 = vcmask 392192   ;;  %vm132_vm1 = vcmask 519168   ;;  %s227_s1 = inlined_call_operand.vmem [shape: bf16[48,64], index: 1, kind: input, shape index: {}]   ;;  %s228_s0 = inlined_call_operand.vmem [shape: bf16[32,48], index: 0, kind: input, shape index: {}]   ;;  %s229_s2 = inlined_call_operand.vmem [shape: f32[1,64], index: 2, kind: input, shape index: {}]   ;;  %s230_s3 = inlined_call_operand.vmem [shape: bf16[32,64], index: 3, kind: output, shape index: {}]  }
   0x1   :  { %v172_v0 = vld [vmem:[%s227_s1] sm:$0xff]   ;;  %v173_v1 = vld [vmem:[%s227_s1 + $0x8] sm:$0xff]   ;;  %v174_v3 = vld [vmem:[%s227_s1 + $0x10] sm:$0xff]  }
   0x2   :  { %162 = vmatprep.subr.bf16.mxu0 %v172_v0  ;;  %v175_v2 = vld [vmem:[%s228_s0] sm:$0xff]   ;;  %v176_v4 = vld [vmem:[%s228_s0 + $0x8] sm:$0xff]  }
   0x3   :  { %163 = vmatpush3.bf16.msra.mxu0 %v172_v0  ;;  %168 = vmatprep.mubr.msk.bf16.mxu0 %vm60_vm0, %v175_v2  ;;  %v141_v5 = vld [vmem:[%s229_s2] ss:$0 sm:$0xff] }
   0x4   :  { %164 = vmatprep.subr.bf16.mxu0 %v173_v1 }
   0x7   :  { %165 = vmatpush3.bf16.msra.mxu0 %v173_v1 }
   0x8   :  { %166 = vmatprep.subr.bf16.mxu0 %v174_v3 }
   0xb   :  { %167 = vmatpush3.bf16.msra.mxu0 %v174_v3 }
   0xe   :  { %169 = vmatmul.mubr.msk.bf16.vlgmr.msra.gmra.mrb[0].mxu0 %vm60_vm0, %v176_v4 }
  0xe1   :  { %v170_v6 = vpop.f32.mrb[0].mxu0 }
  0xe2   :  { %v110_v7 = vadd.f32 %v170_v6, %v141_v5  ;;  %v101_v8 = vpop.f32.mrb[1].mxu0 }
  0xe3   :  { %v102_v9 = vadd.f32 %v141_v5, %v101_v8  ;;  %v171_v10 = vpop.f32.mrb[2].mxu0 }
  0xe4   :  { %v155_v11 = vpack.c.bf16 %v110_v7, %v110_v7  ;;  %v113_v12 = vadd.f32 %v171_v10, %v141_v5  ;;  %v104_v13 = vpop.f32.mrb[3].mxu0 }
  0xe5   :  { %v153_v14 = vpack.c.bf16 %v102_v9, %v102_v9  ;;  %v105_v15 = vadd.f32 %v141_v5, %v104_v13 }
  0xe6   :  { %135 = vst.msk [vmem:[%s230_s3 + $0x8] sm:$0xf] %vm132_vm1, %v155_v11  ;;  %v156_v16 = vpack.c.bf16 %v113_v12, %v113_v12 }
  0xe7   :  { %133 = vst.msk [vmem:[%s230_s3] sm:$0xf] %vm132_vm1, %v153_v14  ;;  %v154_v17 = vpack.c.bf16 %v105_v15, %v105_v15 }
  0xe8   :  { %136 = vst.msk [vmem:[%s230_s3 + $0xc] sm:$0xf] %vm132_vm1, %v156_v16 }
  0xe9   :  { %134 = vst.msk [vmem:[%s230_s3 + $0x4] sm:$0xf] %vm132_vm1, %v154_v17 }

// kernel: unipose_forward.32
= control target key start
LH: loop header
LB: loop body
LE: loop exit
PB: predicated region body
PF: predicated region fallthrough
CT: control target
= control target key end

     0   :  { %vm375_vm0 = vcmask 523264   ;;  %vm561_vm1 = vcmask 519168   ;;  %s944_s1 = inlined_call_operand.vmem [shape: bf16[576,64], index: 1, kind: input, shape index: {}]   ;;  %s945_s0 = inlined_call_operand.vmem [shape: bf16[32,576], index: 0, kind: input, shape index: {}]   ;;  %s946_s2 = inlined_call_operand.vmem [shape: f32[1,64], index: 2, kind: input, shape index: {}]   ;;  %s947_s3 = inlined_call_operand.vmem [shape: bf16[32,64], index: 3, kind: input, shape index: {}]   ;;  %s948_s4 = inlined_call_operand.vmem [shape: bf16[32,64], index: 4, kind: output, shape index: {}]  }
   0x1   :  { %v710_v0 = vld [vmem:[%s944_s1 + $0x40] sm:$0xff]   ;;  %v714_v4 = vld [vmem:[%s944_s1 + $0x48] sm:$0xff]   ;;  %v718_v8 = vld [vmem:[%s944_s1 + $0x50] sm:$0xff]  }
   0x2   :  { %v711_v1 = vld [vmem:[%s944_s1] sm:$0xff]   ;;  %636 = vmatprep.subr.bf16.mxu0 %v710_v0  ;;  %v715_v5 = vld [vmem:[%s944_s1 + $0x8] sm:$0xff]   ;;  %v719_v9 = vld [vmem:[%s944_s1 + $0x10] sm:$0xff]  }
   0x3   :  { %v712_v2 = vld [vmem:[%s944_s1 + $0xc0] sm:$0xff]   ;;  %637 = vmatpush3.bf16.msra.mxu0 %v711_v1  ;;  %v716_v6 = vld [vmem:[%s944_s1 + $0xc8] sm:$0xff]   ;;  %v720_v10 = vld [vmem:[%s944_s1 + $0xd0] sm:$0xff]  }
   0x4   :  { %v713_v3 = vld [vmem:[%s944_s1 + $0x80] sm:$0xff]   ;;  %664 = vmatprep.subr.bf16.mxu1 %v712_v2  ;;  %638 = vmatprep.subr.bf16.mxu0 %v714_v4  ;;  %v717_v7 = vld [vmem:[%s944_s1 + $0x88] sm:$0xff]   ;;  %v721_v11 = vld [vmem:[%s944_s1 + $0x90] sm:$0xff]  }
   0x5   :  { %665 = vmatpush3.bf16.msra.mxu1 %v713_v3  ;;  %v722_v12 = vld [vmem:[%s944_s1 + $0x58] sm:$0xff]   ;;  %v726_v16 = vld [vmem:[%s944_s1 + $0x60] sm:$0xff]   ;;  %v730_v20 = vld [vmem:[%s944_s1 + $0x68] sm:$0xff]  }
   0x6   :  { %666 = vmatprep.subr.bf16.mxu1 %v716_v6  ;;  %v723_v13 = vld [vmem:[%s944_s1 + $0x18] sm:$0xff]   ;;  %v727_v17 = vld [vmem:[%s944_s1 + $0x20] sm:$0xff]   ;;  %v731_v21 = vld [vmem:[%s944_s1 + $0x28] sm:$0xff]  }
   0x7   :  { %639 = vmatpush3.bf16.msra.mxu0 %v715_v5  ;;  %v724_v14 = vld [vmem:[%s944_s1 + $0xd8] sm:$0xff]   ;;  %v728_v18 = vld [vmem:[%s944_s1 + $0xe0] sm:$0xff]   ;;  %v732_v22 = vld [vmem:[%s944_s1 + $0xe8] sm:$0xff]  }
   0x8   :  { %640 = vmatprep.subr.bf16.mxu0 %v718_v8  ;;  %v725_v15 = vld [vmem:[%s944_s1 + $0x98] sm:$0xff]   ;;  %v729_v19 = vld [vmem:[%s944_s1 + $0xa0] sm:$0xff]   ;;  %v733_v23 = vld [vmem:[%s944_s1 + $0xa8] sm:$0xff]  }
   0x9   :  { %667 = vmatpush3.bf16.msra.mxu1 %v717_v7  ;;  %v734_v24 = vld [vmem:[%s944_s1 + $0x70] sm:$0xff]   ;;  %v738_v28 = vld [vmem:[%s944_s1 + $0x78] sm:$0xff]   ;;  %v745_v34 = vld [vmem:[%s944_s1 + $0x100] sm:$0xff]  }
   0xa   :  { %668 = vmatprep.subr.bf16.mxu1 %v720_v10  ;;  %v735_v25 = vld [vmem:[%s944_s1 + $0x30] sm:$0xff]   ;;  %v739_v29 = vld [vmem:[%s944_s1 + $0x38] sm:$0xff]   ;;  %v748_v36 = vld [vmem:[%s945_s0 + $0xc] ss:$20 sps:$4 sm:$0xff]  }
   0xb   :  { %641 = vmatpush3.bf16.msra.mxu0 %v719_v9  ;;  %v736_v26 = vld [vmem:[%s944_s1 + $0xf0] sm:$0xff]   ;;  %v740_v30 = vld [vmem:[%s944_s1 + $0xf8] sm:$0xff]   ;;  %v749_v37 = vld [vmem:[%s944_s1 + $0x108] sm:$0xff]   ;;  %463 = vmatprep.mubr.bf16.mxu1 %v748_v36 }
   0xc   :  { %642 = vmatprep.subr.bf16.mxu0 %v722_v12  ;;  %v737_v27 = vld [vmem:[%s944_s1 + $0xb0] sm:$0xff]   ;;  %v743_v32 = vld [vmem:[%s945_s0 + $0x4] ss:$20 sps:$4 sm:$0xff]   ;;  %v746_v35 = vld [vmem:[%s945_s0 + $0x8] ss:$20 sps:$4 sm:$0xff]  }
   0xd   :  { %669 = vmatpush3.bf16.msra.mxu1 %v721_v11  ;;  %v741_v31 = vld [vmem:[%s945_s0] ss:$20 sps:$4 sm:$0xff]   ;;  %v744_v33 = vld [vmem:[%s944_s1 + $0xb8] sm:$0xff]   ;;  %414 = vmatprep.mubr.bf16.mxu0 %v743_v32  ;;  %v756_v42 = vld [vmem:[%s945_s0 + $0x30] ss:$20 sps:$4 sm:$0xff]  }
   0xe   :  { %670 = vmatprep.subr.bf16.mxu1 %v724_v14  ;;  %v750_v38 = vld [vmem:[%s945_s0 + $0x2c] ss:$20 sps:$4 sm:$0xff]   ;;  %v752_v39 = vld [vmem:[%s945_s0 + $0x28] ss:$20 sps:$4 sm:$0xff]   ;;  %v753_v40 = vld [vmem:[%s944_s1 + $0x110] sm:$0xff]  }
   0xf   :  { %643 = vmatpush3.bf16.msra.mxu0 %v723_v13  ;;  %v754_v41 = vld [vmem:[%s945_s0 + $0x34] ss:$20 sps:$4 sm:$0xff]   ;;  %v757_v43 = vld [vmem:[%s944_s1 + $0x118] sm:$0xff]   ;;  %v758_v44 = vld [vmem:[%s945_s0 + $0x10] ss:$20 sps:$4 sm:$0xff]  }
  0x10   :  { %644 = vmatprep.subr.bf16.mxu0 %v726_v16  ;;  %v759_v45 = vld [vmem:[%s945_s0 + $0x38] ss:$20 sps:$4 sm:$0xff]   ;;  %v570_v47 = vld [vmem:[%s946_s2] ss:$0 sm:$0xff] }
  0x11   :  { %671 = vmatpush3.bf16.msra.mxu1 %v725_v15  ;;  %v635_v10 = vld [vmem:[%s947_s3 + $0x8] sm:$0xff]   ;;  %v628_v13 = vld [vmem:[%s947_s3] sm:$0xff]  }
  0x12   :  { %672 = vmatprep.subr.bf16.mxu1 %v728_v18  ;;  %v633_v16 = vunpack.c.l.bf16 %v635_v10  ;;  %v629_v18 = vunpack.c.l.bf16 %v628_v13 }
  0x13   :  { %645 = vmatpush3.bf16.msra.mxu0 %v727_v17 }
  0x14   :  { %646 = vmatprep.subr.bf16.mxu0 %v730_v20 }
  0x15   :  { %673 = vmatpush3.bf16.msra.mxu1 %v729_v19 }
  0x16   :  { %674 = vmatprep.subr.bf16.mxu1 %v732_v22  ;;  %v634_v22 = vunpack.c.h.bf16 %v635_v10 }
  0x17   :  { %647 = vmatpush3.bf16.msra.mxu0 %v731_v21 }
  0x18   :  { %648 = vmatprep.subr.bf16.mxu0 %v734_v24 }
  0x19   :  { %675 = vmatpush3.bf16.msra.mxu1 %v733_v23 }
  0x1a   :  { %676 = vmatprep.subr.bf16.mxu1 %v736_v26 }
  0x1b   :  { %649 = vmatpush3.bf16.msra.mxu0 %v735_v25  ;;  %v630_v25 = vunpack.c.h.bf16 %v628_v13 }
  0x1c   :  { %650 = vmatprep.subr.bf16.mxu0 %v738_v28 }
  0x1d   :  { %677 = vmatpush3.bf16.msra.mxu1 %v737_v27 }
  0x1e   :  { %678 = vmatprep.subr.bf16.mxu1 %v740_v30 }
  0x1f   :  { %651 = vmatpush3.bf16.msra.mxu0 %v739_v29 }
  0x20   :  { %698 = vmatprep.subr.bf16.mxu0 %v745_v34 }
  0x21   :  { %679 = vmatpush3.bf16.msra.mxu1 %v744_v33 }
  0x22   :  { %415 = vmatmul.mubr.bf16.vlgmr.msra.gmra.mrb[0].mxu0 %v741_v31 }
  0x23   :  { %699 = vmatpush3.bf16.msra.mxu0 %v745_v34  ;;  %422 = vmatprep.mubr.bf16.mxu0 %v750_v38 }
  0x24   :  { %464 = vmatmul.mubr.bf16.vlgmr.msra.gmra.mrb[0].mxu1 %v746_v35  ;;  %700 = vmatprep.subr.bf16.mxu0 %v749_v37 }
  0x25   :  { %471 = vmatprep.mubr.bf16.mxu1 %v754_v41 }
  0x27   :  { %701 = vmatpush3.bf16.msra.mxu0 %v749_v37 }
  0x28   :  { %702 = vmatprep.subr.bf16.mxu0 %v753_v40 }
  0x2a   :  { %423 = vmatmul.mubr.bf16.gmra.mrb[4].mxu0 %v752_v39 }
  0x2b   :  { %706 = vmatprep.mubr.msk.bf16.mxu0 %vm375_vm0, %v758_v44  ;;  %703 = vmatpush3.bf16.msra.mxu0 %v753_v40 }
  0x2c   :  { %472 = vmatmul.mubr.bf16.gmra.mrb[4].mxu1 %v756_v42  ;;  %704 = vmatprep.subr.bf16.mxu0 %v757_v43 }
  0x2f   :  { %705 = vmatpush3.bf16.msra.mxu0 %v757_v43 }
  0x32   :  { %707 = vmatmul.mubr.msk.bf16.vlgmr.msra.gmra.mrb[8].mxu0 %vm375_vm0, %v759_v45 }
  0xf5   :  { %v652_v46 = vpop.f32.mrb[0].mxu0 }
  0xf6   :  { %v653_v48 = vpop.f32.mrb[1].mxu0 }
  0xf7   :  { %v654_v49 = vadd.f32 %v653_v48, %v652_v46  ;;  %v655_v50 = vpop.f32.mrb[2].mxu0  ;;  %v680_v51 = vpop.f32.mrb[0].mxu1 }
  0xf8   :  { %v656_v52 = vpop.f32.mrb[3].mxu0  ;;  %v681_v55 = vpop.f32.mrb[1].mxu1 }
  0xf9   :  { %v417_v53 = vadd.f32 %v654_v49, %v570_v47  ;;  %v657_v54 = vadd.f32 %v656_v52, %v655_v50  ;;  %v682_v56 = vadd.f32 %v681_v55, %v680_v51  ;;  %v683_v57 = vpop.f32.mrb[2].mxu1 }
  0xfa   :  { %v684_v59 = vpop.f32.mrb[3].mxu1 }
  0xfb   :  { %v420_v58 = vadd.f32 %v657_v54, %v570_v47  ;;  %v685_v60 = vadd.f32 %v684_v59, %v683_v57  ;;  %v466_v61 = vadd.f32 %v682_v56, %v417_v53 }
  0xfd   :  { %v658_v62 = vpop.f32.mrb[4].mxu0  ;;  %v469_v0 = vadd.f32 %v685_v60, %v420_v58 }
  0xfe   :  { %v659_v63 = vpop.f32.mrb[5].mxu0 }
  0xff   :  { %v660_v1 = vadd.f32 %v659_v63, %v658_v62  ;;  %v661_v2 = vpop.f32.mrb[6].mxu0  ;;  %v686_v3 = vpop.f32.mrb[4].mxu1 }
 0x100   :  { %v662_v4 = vpop.f32.mrb[7].mxu0  ;;  %v687_v7 = vpop.f32.mrb[5].mxu1 }
 0x101   :  { %v425_v5 = vadd.f32 %v660_v1, %v570_v47  ;;  %v663_v6 = vadd.f32 %v662_v4, %v661_v2  ;;  %v688_v8 = vadd.f32 %v687_v7, %v686_v3  ;;  %v689_v9 = vpop.f32.mrb[6].mxu1 }
 0x102   :  { %v690_v12 = vpop.f32.mrb[7].mxu1 }
 0x103   :  { %v428_v11 = vadd.f32 %v663_v6, %v570_v47  ;;  %v691_v14 = vadd.f32 %v690_v12, %v689_v9  ;;  %v474_v15 = vadd.f32 %v688_v8, %v425_v5 }
 0x105   :  { %v708_v17 = vpop.f32.mrb[8].mxu0  ;;  %v477_v19 = vadd.f32 %v691_v14, %v428_v11 }
 0x106   :  { %v523_v20 = vadd.f32 %v708_v17, %v474_v15  ;;  %v514_v21 = vpop.f32.mrb[9].mxu0 }
 0x107   :  { %v515_v23 = vadd.f32 %v514_v21, %v466_v61  ;;  %v709_v24 = vpop.f32.mrb[10].mxu0 }
 0x108   :  { %v539_v26 = vadd.f32 %v633_v16, %v523_v20  ;;  %v526_v27 = vadd.f32 %v709_v24, %v477_v19  ;;  %v517_v28 = vpop.f32.mrb[11].mxu0 }
 0x109   :  { %v537_v29 = vadd.f32 %v629_v18, %v515_v23  ;;  %v518_v30 = vadd.f32 %v517_v28, %v469_v0 }
 0x10a   :  { %v543_v31 = vmax.f32 %v539_v26, 0.0  ;;  %v540_v32 = vadd.f32 %v634_v22, %v526_v27 }
 0x10b   :  { %v541_v33 = vmax.f32 %v537_v29, 0.0  ;;  %v538_v34 = vadd.f32 %v630_v25, %v518_v30 }
 0x10c   :  { %v625_v35 = vpack.c.bf16 %v543_v31, %v543_v31  ;;  %v544_v36 = vmax.f32 %v540_v32, 0.0 }
 0x10d   :  { %v623_v37 = vpack.c.bf16 %v541_v33, %v541_v33  ;;  %v542_v38 = vmax.f32 %v538_v34, 0.0 }
 0x10e   :  { %564 = vst.msk [vmem:[%s948_s4 + $0x8] sm:$0xf] %vm561_vm1, %v625_v35  ;;  %v626_v39 = vpack.c.bf16 %v544_v36, %v544_v36 }
 0x10f   :  { %562 = vst.msk [vmem:[%s948_s4] sm:$0xf] %vm561_vm1, %v623_v37  ;;  %v624_v40 = vpack.c.bf16 %v542_v38, %v542_v38 }
 0x110   :  { %565 = vst.msk [vmem:[%s948_s4 + $0xc] sm:$0xf] %vm561_vm1, %v626_v39 }
 0x111   :  { %563 = vst.msk [vmem:[%s948_s4 + $0x4] sm:$0xf] %vm561_vm1, %v624_v40 }

// kernel: unipose_forward.33
= control target key start
LH: loop header
LB: loop body
LE: loop exit
PB: predicated region body
PF: predicated region fallthrough
CT: control target
= control target key end

     0   :  { %vm372_vm0 = vcmask 523264   ;;  %vm546_vm1 = vcmask 781312   ;;  %s909_s1 = inlined_call_operand.vmem [shape: bf16[576,96], index: 1, kind: input, shape index: {}]   ;;  %s910_s0 = inlined_call_operand.vmem [shape: bf16[32,576], index: 0, kind: input, shape index: {}]   ;;  %s911_s2 = inlined_call_operand.vmem [shape: f32[1,96], index: 2, kind: input, shape index: {}]   ;;  %s912_s3 = inlined_call_operand.vmem [shape: bf16[32,96], index: 3, kind: output, shape index: {}]  }
   0x1   :  { %v686_v0 = vld [vmem:[%s909_s1 + $0x40] sm:$0xff]   ;;  %v690_v4 = vld [vmem:[%s909_s1 + $0x48] sm:$0xff]   ;;  %v694_v8 = vld [vmem:[%s909_s1 + $0x50] sm:$0xff]  }
   0x2   :  { %v687_v1 = vld [vmem:[%s909_s1] sm:$0xff]   ;;  %612 = vmatprep.subr.bf16.mxu0 %v686_v0  ;;  %v691_v5 = vld [vmem:[%s909_s1 + $0x8] sm:$0xff]   ;;  %v695_v9 = vld [vmem:[%s909_s1 + $0x10] sm:$0xff]  }
   0x3   :  { %v688_v2 = vld [vmem:[%s909_s1 + $0xc0] sm:$0xff]   ;;  %613 = vmatpush3.bf16.msra.mxu0 %v687_v1  ;;  %v692_v6 = vld [vmem:[%s909_s1 + $0xc8] sm:$0xff]   ;;  %v696_v10 = vld [vmem:[%s909_s1 + $0xd0] sm:$0xff]  }
   0x4   :  { %v689_v3 = vld [vmem:[%s909_s1 + $0x80] sm:$0xff]   ;;  %640 = vmatprep.subr.bf16.mxu1 %v688_v2  ;;  %614 = vmatprep.subr.bf16.mxu0 %v690_v4  ;;  %v693_v7 = vld [vmem:[%s909_s1 + $0x88] sm:$0xff]   ;;  %v697_v11 = vld [vmem:[%s909_s1 + $0x90] sm:$0xff]  }
   0x5   :  { %641 = vmatpush3.bf16.msra.mxu1 %v689_v3  ;;  %v698_v12 = vld [vmem:[%s909_s1 + $0x58] sm:$0xff]   ;;  %v702_v16 = vld [vmem:[%s909_s1 + $0x60] sm:$0xff]   ;;  %v706_v20 = vld [vmem:[%s909_s1 + $0x68] sm:$0xff]  }
   0x6   :  { %642 = vmatprep.subr.bf16.mxu1 %v692_v6  ;;  %v699_v13 = vld [vmem:[%s909_s1 + $0x18] sm:$0xff]   ;;  %v703_v17 = vld [vmem:[%s909_s1 + $0x20] sm:$0xff]   ;;  %v707_v21 = vld [vmem:[%s909_s1 + $0x28] sm:$0xff]  }
   0x7   :  { %615 = vmatpush3.bf16.msra.mxu0 %v691_v5  ;;  %v700_v14 = vld [vmem:[%s909_s1 + $0xd8] sm:$0xff]   ;;  %v704_v18 = vld [vmem:[%s909_s1 + $0xe0] sm:$0xff]   ;;  %v708_v22 = vld [vmem:[%s909_s1 + $0xe8] sm:$0xff]  }
   0x8   :  { %616 = vmatprep.subr.bf16.mxu0 %v694_v8  ;;  %v701_v15 = vld [vmem:[%s909_s1 + $0x98] sm:$0xff]   ;;  %v705_v19 = vld [vmem:[%s909_s1 + $0xa0] sm:$0xff]   ;;  %v709_v23 = vld [vmem:[%s909_s1 + $0xa8] sm:$0xff]  }
   0x9   :  { %643 = vmatpush3.bf16.msra.mxu1 %v693_v7  ;;  %v710_v24 = vld [vmem:[%s909_s1 + $0x70] sm:$0xff]   ;;  %v714_v28 = vld [vmem:[%s909_s1 + $0x78] sm:$0xff]   ;;  %v721_v34 = vld [vmem:[%s909_s1 + $0x100] sm:$0xff]  }
   0xa   :  { %644 = vmatprep.subr.bf16.mxu1 %v696_v10  ;;  %v711_v25 = vld [vmem:[%s909_s1 + $0x30] sm:$0xff]   ;;  %v715_v29 = vld [vmem:[%s909_s1 + $0x38] sm:$0xff]   ;;  %v724_v36 = vld [vmem:[%s910_s0 + $0xc] ss:$20 sps:$4 sm:$0xff]  }
   0xb   :  { %617 = vmatpush3.bf16.msra.mxu0 %v695_v9  ;;  %v712_v26 = vld [vmem:[%s909_s1 + $0xf0] sm:$0xff]   ;;  %v716_v30 = vld [vmem:[%s909_s1 + $0xf8] sm:$0xff]   ;;  %v725_v37 = vld [vmem:[%s909_s1 + $0x108] sm:$0xff]   ;;  %460 = vmatprep.mubr.bf16.mxu1 %v724_v36 }
   0xc   :  { %618 = vmatprep.subr.bf16.mxu0 %v698_v12  ;;  %v713_v27 = vld [vmem:[%s909_s1 + $0xb0] sm:$0xff]   ;;  %v719_v32 = vld [vmem:[%s910_s0 + $0x4] ss:$20 sps:$4 sm:$0xff]   ;;  %v722_v35 = vld [vmem:[%s910_s0 + $0x8] ss:$20 sps:$4 sm:$0xff]  }
   0xd   :  { %645 = vmatpush3.bf16.msra.mxu1 %v697_v11  ;;  %v717_v31 = vld [vmem:[%s910_s0] ss:$20 sps:$4 sm:$0xff]   ;;  %v720_v33 = vld [vmem:[%s909_s1 + $0xb8] sm:$0xff]   ;;  %411 = vmatprep.mubr.bf16.mxu0 %v719_v32  ;;  %v732_v42 = vld [vmem:[%s910_s0 + $0x30] ss:$20 sps:$4 sm:$0xff]  }
   0xe   :  { %646 = vmatprep.subr.bf16.mxu1 %v700_v14  ;;  %v726_v38 = vld [vmem:[%s910_s0 + $0x2c] ss:$20 sps:$4 sm:$0xff]   ;;  %v728_v39 = vld [vmem:[%s910_s0 + $0x28] ss:$20 sps:$4 sm:$0xff]   ;;  %v729_v40 = vld [vmem:[%s909_s1 + $0x110] sm:$0xff]  }
   0xf   :  { %619 = vmatpush3.bf16.msra.mxu0 %v699_v13  ;;  %v730_v41 = vld [vmem:[%s910_s0 + $0x34] ss:$20 sps:$4 sm:$0xff]   ;;  %v733_v43 = vld [vmem:[%s909_s1 + $0x118] sm:$0xff]   ;;  %v734_v44 = vld [vmem:[%s910_s0 + $0x10] ss:$20 sps:$4 sm:$0xff]  }
  0x10   :  { %620 = vmatprep.subr.bf16.mxu0 %v702_v16  ;;  %v735_v45 = vld [vmem:[%s910_s0 + $0x38] ss:$20 sps:$4 sm:$0xff]   ;;  %v555_v47 = vld [vmem:[%s911_s2] ss:$0 sm:$0xff] }
  0x11   :  { %647 = vmatpush3.bf16.msra.mxu1 %v701_v15 }
  0x12   :  { %648 = vmatprep.subr.bf16.mxu1 %v704_v18 }
  0x13   :  { %621 = vmatpush3.bf16.msra.mxu0 %v703_v17 }
  0x14   :  { %622 = vmatprep.subr.bf16.mxu0 %v706_v20 }
  0x15   :  { %649 = vmatpush3.bf16.msra.mxu1 %v705_v19 }
  0x16   :  { %650 = vmatprep.subr.bf16.mxu1 %v708_v22 }
  0x17   :  { %623 = vmatpush3.bf16.msra.mxu0 %v707_v21 }
  0x18   :  { %624 = vmatprep.subr.bf16.mxu0 %v710_v24 }
  0x19   :  { %651 = vmatpush3.bf16.msra.mxu1 %v709_v23 }
  0x1a   :  { %652 = vmatprep.subr.bf16.mxu1 %v712_v26 }
  0x1b   :  { %625 = vmatpush3.bf16.msra.mxu0 %v711_v25 }
  0x1c   :  { %626 = vmatprep.subr.bf16.mxu0 %v714_v28 }
  0x1d   :  { %653 = vmatpush3.bf16.msra.mxu1 %v713_v27 }
  0x1e   :  { %654 = vmatprep.subr.bf16.mxu1 %v716_v30 }
  0x1f   :  { %627 = vmatpush3.bf16.msra.mxu0 %v715_v29 }
  0x20   :  { %674 = vmatprep.subr.bf16.mxu0 %v721_v34 }
  0x21   :  { %655 = vmatpush3.bf16.msra.mxu1 %v720_v33 }
  0x22   :  { %412 = vmatmul.mubr.bf16.vlgmr.msra.gmra.mrb[0].mxu0 %v717_v31 }
  0x23   :  { %675 = vmatpush3.bf16.msra.mxu0 %v721_v34  ;;  %419 = vmatprep.mubr.bf16.mxu0 %v726_v38 }
  0x24   :  { %461 = vmatmul.mubr.bf16.vlgmr.msra.gmra.mrb[0].mxu1 %v722_v35  ;;  %676 = vmatprep.subr.bf16.mxu0 %v725_v37 }
  0x25   :  { %468 = vmatprep.mubr.bf16.mxu1 %v730_v41 }
  0x27   :  { %677 = vmatpush3.bf16.msra.mxu0 %v725_v37 }
  0x28   :  { %678 = vmatprep.subr.bf16.mxu0 %v729_v40 }
  0x2a   :  { %420 = vmatmul.mubr.bf16.gmra.mrb[4].mxu0 %v728_v39 }
  0x2b   :  { %682 = vmatprep.mubr.msk.bf16.mxu0 %vm372_vm0, %v734_v44  ;;  %679 = vmatpush3.bf16.msra.mxu0 %v729_v40 }
  0x2c   :  { %469 = vmatmul.mubr.bf16.gmra.mrb[4].mxu1 %v732_v42  ;;  %680 = vmatprep.subr.bf16.mxu0 %v733_v43 }
  0x2f   :  { %681 = vmatpush3.bf16.msra.mxu0 %v733_v43 }
  0x32   :  { %683 = vmatmul.mubr.msk.bf16.vlgmr.msra.gmra.mrb[8].mxu0 %vm372_vm0, %v735_v45 }
  0xf5   :  { %v628_v46 = vpop.f32.mrb[0].mxu0 }
  0xf6   :  { %v629_v48 = vpop.f32.mrb[1].mxu0 }
  0xf7   :  { %v630_v49 = vadd.f32 %v629_v48, %v628_v46  ;;  %v631_v50 = vpop.f32.mrb[2].mxu0  ;;  %v656_v51 = vpop.f32.mrb[0].mxu1 }
  0xf8   :  { %v632_v52 = vpop.f32.mrb[3].mxu0  ;;  %v657_v55 = vpop.f32.mrb[1].mxu1 }
  0xf9   :  { %v414_v53 = vadd.f32 %v630_v49, %v555_v47  ;;  %v633_v54 = vadd.f32 %v632_v52, %v631_v50  ;;  %v658_v56 = vadd.f32 %v657_v55, %v656_v51  ;;  %v659_v57 = vpop.f32.mrb[2].mxu1 }
  0xfa   :  { %v660_v59 = vpop.f32.mrb[3].mxu1 }
  0xfb   :  { %v417_v58 = vadd.f32 %v633_v54, %v555_v47  ;;  %v661_v60 = vadd.f32 %v660_v59, %v659_v57  ;;  %v463_v61 = vadd.f32 %v658_v56, %v414_v53 }
  0xfd   :  { %v634_v62 = vpop.f32.mrb[4].mxu0  ;;  %v466_v0 = vadd.f32 %v661_v60, %v417_v58 }
  0xfe   :  { %v635_v63 = vpop.f32.mrb[5].mxu0 }
  0xff   :  { %v636_v1 = vadd.f32 %v635_v63, %v634_v62  ;;  %v637_v2 = vpop.f32.mrb[6].mxu0  ;;  %v662_v3 = vpop.f32.mrb[4].mxu1 }
 0x100   :  { %v638_v4 = vpop.f32.mrb[7].mxu0  ;;  %v663_v7 = vpop.f32.mrb[5].mxu1 }
 0x101   :  { %v422_v5 = vadd.f32 %v636_v1, %v555_v47  ;;  %v639_v6 = vadd.f32 %v638_v4, %v637_v2  ;;  %v664_v8 = vadd.f32 %v663_v7, %v662_v3  ;;  %v665_v9 = vpop.f32.mrb[6].mxu1 }
 0x102   :  { %v666_v11 = vpop.f32.mrb[7].mxu1 }
 0x103   :  { %v425_v10 = vadd.f32 %v639_v6, %v555_v47  ;;  %v667_v12 = vadd.f32 %v666_v11, %v665_v9  ;;  %v471_v13 = vadd.f32 %v664_v8, %v422_v5 }
 0x105   :  { %v684_v14 = vpop.f32.mrb[8].mxu0  ;;  %v474_v15 = vadd.f32 %v667_v12, %v425_v10 }
 0x106   :  { %v520_v16 = vadd.f32 %v684_v14, %v471_v13  ;;  %v511_v17 = vpop.f32.mrb[9].mxu0 }
 0x107   :  { %v512_v18 = vadd.f32 %v511_v17, %v463_v61  ;;  %v685_v19 = vpop.f32.mrb[10].mxu0 }
 0x108   :  { %v528_v20 = vmax.f32 %v520_v16, 0.0  ;;  %v523_v21 = vadd.f32 %v685_v19, %v474_v15  ;;  %v514_v22 = vpop.f32.mrb[11].mxu0 }
 0x109   :  { %v526_v23 = vmax.f32 %v512_v18, 0.0  ;;  %v515_v24 = vadd.f32 %v514_v22, %v466_v0 }
 0x10a   :  { %v610_v25 = vpack.c.bf16 %v528_v20, %v528_v20  ;;  %v529_v26 = vmax.f32 %v523_v21, 0.0 }
 0x10b   :  { %v608_v27 = vpack.c.bf16 %v526_v23, %v526_v23  ;;  %v527_v28 = vmax.f32 %v515_v24, 0.0 }
 0x10c   :  { %549 = vst.msk [vmem:[%s912_s3 + $0x8] sm:$0xf] %vm546_vm1, %v610_v25  ;;  %v611_v29 = vpack.c.bf16 %v529_v26, %v529_v26 }
 0x10d   :  { %547 = vst.msk [vmem:[%s912_s3] sm:$0xf] %vm546_vm1, %v608_v27  ;;  %v609_v30 = vpack.c.bf16 %v527_v28, %v527_v28 }
 0x10e   :  { %550 = vst.msk [vmem:[%s912_s3 + $0xc] sm:$0xf] %vm546_vm1, %v611_v29 }
 0x10f   :  { %548 = vst.msk [vmem:[%s912_s3 + $0x4] sm:$0xf] %vm546_vm1, %v609_v30 }

// kernel: unipose_forward.34
= control target key start
LH: loop header
LB: loop body
LE: loop exit
PB: predicated region body
PF: predicated region fallthrough
CT: control target
= control target key end

     0   :  { %vm68_vm0 = vcmask 523264   ;;  %vm140_vm1 = vcmask 781312   ;;  %s243_s1 = inlined_call_operand.vmem [shape: bf16[64,96], index: 1, kind: input, shape index: {}]   ;;  %s244_s0 = inlined_call_operand.vmem [shape: bf16[32,64], index: 0, kind: input, shape index: {}]   ;;  %s245_s2 = inlined_call_operand.vmem [shape: f32[1,96], index: 2, kind: input, shape index: {}]   ;;  %s246_s3 = inlined_call_operand.vmem [shape: bf16[32,96], index: 3, kind: output, shape index: {}]  }
   0x1   :  { %v184_v0 = vld [vmem:[%s243_s1] sm:$0xff]   ;;  %v185_v1 = vld [vmem:[%s243_s1 + $0x8] sm:$0xff]   ;;  %v186_v2 = vld [vmem:[%s243_s1 + $0x10] sm:$0xff]  }
   0x2   :  { %172 = vmatprep.subr.bf16.mxu0 %v184_v0  ;;  %v188_v3 = vld [vmem:[%s244_s0] sm:$0xff]   ;;  %v187_v4 = vld [vmem:[%s243_s1 + $0x18] sm:$0xff]   ;;  %v189_v5 = vld [vmem:[%s244_s0 + $0x8] sm:$0xff]  }
   0x3   :  { %173 = vmatpush3.bf16.msra.mxu0 %v184_v0  ;;  %180 = vmatprep.mubr.msk.bf16.mxu0 %vm68_vm0, %v188_v3  ;;  %v149_v6 = vld [vmem:[%s245_s2] ss:$0 sm:$0xff] }
   0x4   :  { %174 = vmatprep.subr.bf16.mxu0 %v185_v1 }
   0x7   :  { %175 = vmatpush3.bf16.msra.mxu0 %v185_v1 }
   0x8   :  { %176 = vmatprep.subr.bf16.mxu0 %v186_v2 }
   0xb   :  { %177 = vmatpush3.bf16.msra.mxu0 %v186_v2 }
   0xc   :  { %178 = vmatprep.subr.bf16.mxu0 %v187_v4 }
   0xf   :  { %179 = vmatpush3.bf16.msra.mxu0 %v187_v4 }
  0x12   :  { %181 = vmatmul.mubr.msk.bf16.vlgmr.msra.gmra.mrb[0].mxu0 %vm68_vm0, %v189_v5 }
  0xe5   :  { %v182_v7 = vpop.f32.mrb[0].mxu0 }
  0xe6   :  { %v118_v8 = vadd.f32 %v182_v7, %v149_v6  ;;  %v109_v9 = vpop.f32.mrb[1].mxu0 }
  0xe7   :  { %v110_v10 = vadd.f32 %v149_v6, %v109_v9  ;;  %v183_v11 = vpop.f32.mrb[2].mxu0 }
  0xe8   :  { %v164_v12 = vpack.c.bf16 %v118_v8, %v118_v8  ;;  %v121_v13 = vadd.f32 %v183_v11, %v149_v6  ;;  %v112_v14 = vpop.f32.mrb[3].mxu0 }
  0xe9   :  { %v162_v15 = vpack.c.bf16 %v110_v10, %v110_v10  ;;  %v113_v16 = vadd.f32 %v149_v6, %v112_v14 }
  0xea   :  { %143 = vst.msk [vmem:[%s246_s3 + $0x8] sm:$0xf] %vm140_vm1, %v164_v12  ;;  %v165_v17 = vpack.c.bf16 %v121_v13, %v121_v13 }
  0xeb   :  { %141 = vst.msk [vmem:[%s246_s3] sm:$0xf] %vm140_vm1, %v162_v15  ;;  %v163_v18 = vpack.c.bf16 %v113_v16, %v113_v16 }
  0xec   :  { %144 = vst.msk [vmem:[%s246_s3 + $0xc] sm:$0xf] %vm140_vm1, %v165_v17 }
  0xed   :  { %142 = vst.msk [vmem:[%s246_s3 + $0x4] sm:$0xf] %vm140_vm1, %v163_v18 }

// kernel: unipose_forward.36
= control target key start
LH: loop header
LB: loop body
LE: loop exit
PB: predicated region body
PF: predicated region fallthrough
CT: control target
= control target key end

     0   :  { %vm84_vm0 = vcmask 785408   ;;  %vm160_vm1 = vcmask 257024   ;;  %s281_s1 = inlined_call_operand.vmem [shape: bf16[96,32], index: 1, kind: input, shape index: {}]   ;;  %s282_s0 = inlined_call_operand.vmem [shape: bf16[32,96], index: 0, kind: input, shape index: {}]   ;;  %s283_s2 = inlined_call_operand.vmem [shape: f32[1,32], index: 2, kind: input, shape index: {}]   ;;  %s284_s3 = inlined_call_operand.vmem [shape: bf16[32,32], index: 3, kind: output, shape index: {}]  }
   0x1   :  { %v212_v0 = vld [vmem:[%s281_s1] sm:$0xff]   ;;  %v213_v1 = vld [vmem:[%s281_s1 + $0x8] sm:$0xff]   ;;  %v214_v2 = vld [vmem:[%s281_s1 + $0x10] sm:$0xff]  }
   0x2   :  { %196 = vmatprep.subr.bf16.mxu0 %v212_v0  ;;  %v218_v3 = vld [vmem:[%s282_s0] sm:$0xff]   ;;  %v215_v4 = vld [vmem:[%s281_s1 + $0x18] sm:$0xff]   ;;  %v217_v6 = vld [vmem:[%s281_s1 + $0x28] sm:$0xff]  }
   0x3   :  { %197 = vmatpush3.bf16.msra.mxu0 %v212_v0  ;;  %208 = vmatprep.mubr.msk.bf16.mxu0 %vm84_vm0, %v218_v3  ;;  %v216_v5 = vld [vmem:[%s281_s1 + $0x20] sm:$0xff]   ;;  %v219_v7 = vld [vmem:[%s282_s0 + $0x8] sm:$0xff]  }
   0x4   :  { %198 = vmatprep.subr.bf16.mxu0 %v213_v1  ;;  %v169_v8 = vld [vmem:[%s283_s2] ss:$0 sm:$0xff] }
   0x7   :  { %199 = vmatpush3.bf16.msra.mxu0 %v213_v1 }
   0x8   :  { %200 = vmatprep.subr.bf16.mxu0 %v214_v2 }
   0xb   :  { %201 = vmatpush3.bf16.msra.mxu0 %v214_v2 }
   0xc   :  { %202 = vmatprep.subr.bf16.mxu0 %v215_v4 }
   0xf   :  { %203 = vmatpush3.bf16.msra.mxu0 %v215_v4 }
  0x10   :  { %204 = vmatprep.subr.bf16.mxu0 %v216_v5 }
  0x13   :  { %205 = vmatpush3.bf16.msra.mxu0 %v216_v5 }
  0x14   :  { %206 = vmatprep.subr.bf16.mxu0 %v217_v6 }
  0x17   :  { %207 = vmatpush3.bf16.msra.mxu0 %v217_v6 }
  0x1a   :  { %209 = vmatmul.mubr.msk.bf16.vlgmr.msra.gmra.mrb[0].mxu0 %vm84_vm0, %v219_v7 }
  0xed   :  { %v210_v9 = vpop.f32.mrb[0].mxu0 }
  0xee   :  { %v134_v10 = vadd.f32 %v210_v9, %v169_v8  ;;  %v125_v11 = vpop.f32.mrb[1].mxu0 }
  0xef   :  { %v126_v12 = vadd.f32 %v169_v8, %v125_v11  ;;  %v211_v13 = vpop.f32.mrb[2].mxu0 }
  0xf0   :  { %v142_v14 = vmax.f32 %v134_v10, 0.0  ;;  %v137_v15 = vadd.f32 %v211_v13, %v169_v8  ;;  %v128_v16 = vpop.f32.mrb[3].mxu0 }
  0xf1   :  { %v140_v17 = vmax.f32 %v126_v12, 0.0  ;;  %v129_v18 = vadd.f32 %v169_v8, %v128_v16 }
  0xf2   :  { %v186_v19 = vpack.c.bf16 %v142_v14, %v142_v14  ;;  %v143_v20 = vmax.f32 %v137_v15, 0.0 }
  0xf3   :  { %v184_v21 = vpack.c.bf16 %v140_v17, %v140_v17  ;;  %v141_v22 = vmax.f32 %v129_v18, 0.0 }
  0xf4   :  { %163 = vst.msk [vmem:[%s284_s3 + $0x8] sm:$0xf] %vm160_vm1, %v186_v19  ;;  %v187_v23 = vpack.c.bf16 %v143_v20, %v143_v20 }
  0xf5   :  { %161 = vst.msk [vmem:[%s284_s3] sm:$0xf] %vm160_vm1, %v184_v21  ;;  %v185_v24 = vpack.c.bf16 %v141_v22, %v141_v22 }
  0xf6   :  { %164 = vst.msk [vmem:[%s284_s3 + $0xc] sm:$0xf] %vm160_vm1, %v187_v23 }
  0xf7   :  { %162 = vst.msk [vmem:[%s284_s3 + $0x4] sm:$0xf] %vm160_vm1, %v185_v24 }

// kernel: unipose_forward.35
= control target key start
LH: loop header
LB: loop body
LE: loop exit
PB: predicated region body
PF: predicated region fallthrough
CT: control target
= control target key end

     0   :  { %vm543_vm0 = vcmask 785408   ;;  %vm778_vm1 = vcmask 781312   ;;  %s1311_s1 = inlined_call_operand.vmem [shape: bf16[864,96], index: 1, kind: input, shape index: {}]   ;;  %s1312_s0 = inlined_call_operand.vmem [shape: bf16[32,864], index: 0, kind: input, shape index: {}]   ;;  %s1313_s2 = inlined_call_operand.vmem [shape: f32[1,96], index: 2, kind: input, shape index: {}]   ;;  %s1314_s3 = inlined_call_operand.vmem [shape: bf16[32,96], index: 3, kind: input, shape index: {}]   ;;  %s1315_s4 = inlined_call_operand.vmem [shape: bf16[32,96], index: 4, kind: output, shape index: {}]  }
   0x1   :  { %v983_v0 = vld [vmem:[%s1311_s1 + $0x40] sm:$0xff]   ;;  %v987_v4 = vld [vmem:[%s1311_s1 + $0x48] sm:$0xff]   ;;  %v991_v8 = vld [vmem:[%s1311_s1 + $0x50] sm:$0xff]  }
   0x2   :  { %v984_v1 = vld [vmem:[%s1311_s1] sm:$0xff]   ;;  %875 = vmatprep.subr.bf16.mxu0 %v983_v0  ;;  %v988_v5 = vld [vmem:[%s1311_s1 + $0x8] sm:$0xff]   ;;  %v992_v9 = vld [vmem:[%s1311_s1 + $0x10] sm:$0xff]  }
   0x3   :  { %v985_v2 = vld [vmem:[%s1311_s1 + $0xc0] sm:$0xff]   ;;  %876 = vmatpush3.bf16.msra.mxu0 %v984_v1  ;;  %v989_v6 = vld [vmem:[%s1311_s1 + $0xc8] sm:$0xff]   ;;  %v993_v10 = vld [vmem:[%s1311_s1 + $0xd0] sm:$0xff]  }
   0x4   :  { %v986_v3 = vld [vmem:[%s1311_s1 + $0x80] sm:$0xff]   ;;  %903 = vmatprep.subr.bf16.mxu1 %v985_v2  ;;  %877 = vmatprep.subr.bf16.mxu0 %v987_v4  ;;  %v990_v7 = vld [vmem:[%s1311_s1 + $0x88] sm:$0xff]   ;;  %v994_v11 = vld [vmem:[%s1311_s1 + $0x90] sm:$0xff]  }
   0x5   :  { %904 = vmatpush3.bf16.msra.mxu1 %v986_v3  ;;  %v995_v12 = vld [vmem:[%s1311_s1 + $0x58] sm:$0xff]   ;;  %v999_v16 = vld [vmem:[%s1311_s1 + $0x60] sm:$0xff]   ;;  %v1003_v20 = vld [vmem:[%s1311_s1 + $0x68] sm:$0xff]  }
   0x6   :  { %905 = vmatprep.subr.bf16.mxu1 %v989_v6  ;;  %v996_v13 = vld [vmem:[%s1311_s1 + $0x18] sm:$0xff]   ;;  %v1000_v17 = vld [vmem:[%s1311_s1 + $0x20] sm:$0xff]   ;;  %v1004_v21 = vld [vmem:[%s1311_s1 + $0x28] sm:$0xff]  }
   0x7   :  { %878 = vmatpush3.bf16.msra.mxu0 %v988_v5  ;;  %v997_v14 = vld [vmem:[%s1311_s1 + $0xd8] sm:$0xff]   ;;  %v1001_v18 = vld [vmem:[%s1311_s1 + $0xe0] sm:$0xff]   ;;  %v1005_v22 = vld [vmem:[%s1311_s1 + $0xe8] sm:$0xff]  }
   0x8   :  { %879 = vmatprep.subr.bf16.mxu0 %v991_v8  ;;  %v998_v15 = vld [vmem:[%s1311_s1 + $0x98] sm:$0xff]   ;;  %v1002_v19 = vld [vmem:[%s1311_s1 + $0xa0] sm:$0xff]   ;;  %v1006_v23 = vld [vmem:[%s1311_s1 + $0xa8] sm:$0xff]  }
   0x9   :  { %906 = vmatpush3.bf16.msra.mxu1 %v990_v7  ;;  %v1007_v24 = vld [vmem:[%s1311_s1 + $0x70] sm:$0xff]   ;;  %v1011_v28 = vld [vmem:[%s1311_s1 + $0x78] sm:$0xff]   ;;  %v1016_v32 = vld [vmem:[%s1312_s0 + $0x4] ss:$28 sps:$4 sm:$0xff]  }
   0xa   :  { %907 = vmatprep.subr.bf16.mxu1 %v993_v10  ;;  %v1008_v25 = vld [vmem:[%s1311_s1 + $0x30] sm:$0xff]   ;;  %v1012_v29 = vld [vmem:[%s1311_s1 + $0x38] sm:$0xff]   ;;  %582 = vmatprep.mubr.bf16.mxu0 %v1016_v32  ;;  %v1018_v34 = vld [vmem:[%s1311_s1 + $0x140] sm:$0xff]  }
   0xb   :  { %880 = vmatpush3.bf16.msra.mxu0 %v992_v9  ;;  %v1009_v26 = vld [vmem:[%s1311_s1 + $0xf0] sm:$0xff]   ;;  %v1013_v30 = vld [vmem:[%s1311_s1 + $0xf8] sm:$0xff]   ;;  %v1019_v35 = vld [vmem:[%s1312_s0 + $0x8] ss:$28 sps:$4 sm:$0xff]  }
   0xc   :  { %881 = vmatprep.subr.bf16.mxu0 %v995_v12  ;;  %v1010_v27 = vld [vmem:[%s1311_s1 + $0xb0] sm:$0xff]   ;;  %v1014_v31 = vld [vmem:[%s1312_s0] ss:$28 sps:$4 sm:$0xff]   ;;  %v1021_v36 = vld [vmem:[%s1312_s0 + $0xc] ss:$28 sps:$4 sm:$0xff]  }
   0xd   :  { %908 = vmatpush3.bf16.msra.mxu1 %v994_v11  ;;  %v1017_v33 = vld [vmem:[%s1311_s1 + $0xb8] sm:$0xff]   ;;  %v1022_v37 = vld [vmem:[%s1311_s1 + $0x100] sm:$0xff]   ;;  %631 = vmatprep.mubr.bf16.mxu1 %v1021_v36  ;;  %v1023_v38 = vld [vmem:[%s1311_s1 + $0x148] sm:$0xff]  }
   0xe   :  { %909 = vmatprep.subr.bf16.mxu1 %v997_v14  ;;  %v1024_v39 = vld [vmem:[%s1311_s1 + $0x108] sm:$0xff]   ;;  %v1025_v40 = vld [vmem:[%s1311_s1 + $0x150] sm:$0xff]   ;;  %v1028_v42 = vld [vmem:[%s1311_s1 + $0x180] sm:$0xff]  }
   0xf   :  { %882 = vmatpush3.bf16.msra.mxu0 %v996_v13  ;;  %v1026_v41 = vld [vmem:[%s1311_s1 + $0x110] sm:$0xff]   ;;  %v1027_v43 = vld [vmem:[%s1311_s1 + $0x158] sm:$0xff]   ;;  %v1031_v45 = vld [vmem:[%s1311_s1 + $0x188] sm:$0xff]  }
  0x10   :  { %883 = vmatprep.subr.bf16.mxu0 %v999_v16  ;;  %v1029_v44 = vld [vmem:[%s1311_s1 + $0x118] sm:$0xff]   ;;  %v1030_v46 = vld [vmem:[%s1311_s1 + $0x160] sm:$0xff]   ;;  %v1036_v49 = vld [vmem:[%s1311_s1 + $0x190] sm:$0xff]  }
  0x11   :  { %910 = vmatpush3.bf16.msra.mxu1 %v998_v15  ;;  %v1033_v47 = vld [vmem:[%s1312_s0 + $0x3c] ss:$28 sps:$4 sm:$0xff]   ;;  %v1032_v48 = vld [vmem:[%s1311_s1 + $0x120] sm:$0xff]   ;;  %v1035_v51 = vld [vmem:[%s1311_s1 + $0x168] sm:$0xff]  }
  0x12   :  { %911 = vmatprep.subr.bf16.mxu1 %v1001_v18  ;;  %v1037_v50 = vld [vmem:[%s1312_s0 + $0x38] ss:$28 sps:$4 sm:$0xff]   ;;  %v1039_v52 = vld [vmem:[%s1312_s0 + $0x44] ss:$28 sps:$4 sm:$0xff]   ;;  %v1038_v54 = vld [vmem:[%s1311_s1 + $0x128] sm:$0xff]  }
  0x13   :  { %884 = vmatpush3.bf16.msra.mxu0 %v1000_v17  ;;  %v1041_v53 = vld [vmem:[%s1312_s0 + $0x40] ss:$28 sps:$4 sm:$0xff]   ;;  %v1042_v56 = vld [vmem:[%s1311_s1 + $0x170] sm:$0xff]   ;;  %v1051_v61 = vld [vmem:[%s1311_s1 + $0x1a8] sm:$0xff]  }
  0x14   :  { %885 = vmatprep.subr.bf16.mxu0 %v1003_v20  ;;  %v1043_v55 = vld [vmem:[%s1311_s1 + $0x198] sm:$0xff]   ;;  %v1046_v57 = vld [vmem:[%s1311_s1 + $0x1a0] sm:$0xff]   ;;  %v1044_v58 = vld [vmem:[%s1311_s1 + $0x130] sm:$0xff]  }
  0x15   :  { %912 = vmatpush3.bf16.msra.mxu1 %v1002_v19  ;;  %v1045_v59 = vld [vmem:[%s1311_s1 + $0x178] sm:$0xff]   ;;  %v1050_v60 = vld [vmem:[%s1312_s0 + $0x14] ss:$28 sps:$4 sm:$0xff]   ;;  %v1054_v2 = vld [vmem:[%s1312_s0 + $0x4c] ss:$28 sps:$4 sm:$0xff]  }
  0x16   :  { %913 = vmatprep.subr.bf16.mxu1 %v1005_v22  ;;  %v1052_v62 = vld [vmem:[%s1312_s0 + $0x18] ss:$28 sps:$4 sm:$0xff]   ;;  %v1053_v0 = vld [vmem:[%s1312_s0 + $0x50] ss:$28 sps:$4 sm:$0xff]   ;;  %v1056_v3 = vld [vmem:[%s1312_s0 + $0x48] ss:$28 sps:$4 sm:$0xff]  }
  0x17   :  { %886 = vmatpush3.bf16.msra.mxu0 %v1004_v21  ;;  %v1047_v63 = vld [vmem:[%s1311_s1 + $0x138] sm:$0xff]   ;;  %v1048_v1 = vld [vmem:[%s1312_s0 + $0x10] ss:$28 sps:$4 sm:$0xff]   ;;  %v787_v5 = vld [vmem:[%s1313_s2] ss:$0 sm:$0xff] }
  0x18   :  { %887 = vmatprep.subr.bf16.mxu0 %v1007_v24 }
  0x19   :  { %914 = vmatpush3.bf16.msra.mxu1 %v1006_v23 }
  0x1a   :  { %915 = vmatprep.subr.bf16.mxu1 %v1009_v26 }
  0x1b   :  { %888 = vmatpush3.bf16.msra.mxu0 %v1008_v25 }
  0x1c   :  { %889 = vmatprep.subr.bf16.mxu0 %v1011_v28 }
  0x1d   :  { %916 = vmatpush3.bf16.msra.mxu1 %v1010_v27 }
  0x1e   :  { %917 = vmatprep.subr.bf16.mxu1 %v1013_v30 }
  0x1f   :  { %890 = vmatpush3.bf16.msra.mxu0 %v1012_v29 }
  0x20   :  { %931 = vmatprep.subr.bf16.mxu0 %v1018_v34 }
  0x21   :  { %918 = vmatpush3.bf16.msra.mxu1 %v1017_v33 }
  0x22   :  { %583 = vmatmul.mubr.bf16.vlgmr.msra.gmra.mrb[0].mxu0 %v1014_v31  ;;  %967 = vmatprep.subr.bf16.mxu1 %v1028_v42 }
  0x23   :  { %932 = vmatpush3.bf16.msra.mxu0 %v1022_v37  ;;  %590 = vmatprep.mubr.bf16.mxu0 %v1033_v47 }
  0x24   :  { %632 = vmatmul.mubr.bf16.vlgmr.msra.gmra.mrb[0].mxu1 %v1019_v35  ;;  %933 = vmatprep.subr.bf16.mxu0 %v1023_v38 }
  0x25   :  { %968 = vmatpush3.bf16.msra.mxu1 %v1028_v42  ;;  %639 = vmatprep.mubr.bf16.mxu1 %v1039_v52 }
  0x26   :  { %969 = vmatprep.subr.bf16.mxu1 %v1031_v45 }
  0x27   :  { %934 = vmatpush3.bf16.msra.mxu0 %v1024_v39 }
  0x28   :  { %935 = vmatprep.subr.bf16.mxu0 %v1025_v40 }
  0x29   :  { %970 = vmatpush3.bf16.msra.mxu1 %v1031_v45 }
  0x2a   :  { %971 = vmatprep.subr.bf16.mxu1 %v1036_v49  ;;  %591 = vmatmul.mubr.bf16.gmra.mrb[4].mxu0 %v1037_v50 }
  0x2b   :  { %936 = vmatpush3.bf16.msra.mxu0 %v1026_v41  ;;  %680 = vmatprep.mubr.bf16.mxu0 %v1050_v60  ;;  %v867_v41 = vld [vmem:[%s1314_s3] sm:$0xff]  }
  0x2c   :  { %937 = vmatprep.subr.bf16.mxu0 %v1027_v43  ;;  %640 = vmatmul.mubr.bf16.gmra.mrb[4].mxu1 %v1041_v53  ;;  %v869_v52 = vunpack.c.h.bf16 %v867_v41  ;;  %v874_v53 = vld [vmem:[%s1314_s3 + $0x8] sm:$0xff]  }
  0x2d   :  { %972 = vmatpush3.bf16.msra.mxu1 %v1036_v49  ;;  %979 = vmatprep.mubr.msk.bf16.mxu1 %vm543_vm0, %v1052_v62  ;;  %v868_v49 = vunpack.c.l.bf16 %v867_v41  ;;  %v872_v62 = vunpack.c.l.bf16 %v874_v53 }
  0x2e   :  { %973 = vmatprep.subr.bf16.mxu1 %v1043_v55 }
  0x2f   :  { %938 = vmatpush3.bf16.msra.mxu0 %v1029_v44 }
  0x30   :  { %939 = vmatprep.subr.bf16.mxu0 %v1030_v46 }
  0x31   :  { %974 = vmatpush3.bf16.msra.mxu1 %v1043_v55 }
  0x32   :  { %975 = vmatprep.subr.bf16.mxu1 %v1046_v57 }
  0x33   :  { %940 = vmatpush3.bf16.msra.mxu0 %v1032_v48 }
  0x34   :  { %941 = vmatprep.subr.bf16.mxu0 %v1035_v51 }
  0x35   :  { %976 = vmatpush3.bf16.msra.mxu1 %v1046_v57 }
  0x36   :  { %977 = vmatprep.subr.bf16.mxu1 %v1051_v61 }
  0x37   :  { %942 = vmatpush3.bf16.msra.mxu0 %v1038_v54 }
  0x38   :  { %943 = vmatprep.subr.bf16.mxu0 %v1042_v56 }
  0x39   :  { %978 = vmatpush3.bf16.msra.mxu1 %v1051_v61 }
  0x3b   :  { %944 = vmatpush3.bf16.msra.mxu0 %v1044_v58 }
  0x3c   :  { %945 = vmatprep.subr.bf16.mxu0 %v1045_v59  ;;  %980 = vmatmul.mubr.msk.bf16.vlgmr.msra.gmra.mrb[8].mxu1 %vm543_vm0, %v1053_v0 }
  0x3f   :  { %946 = vmatpush3.bf16.msra.mxu0 %v1047_v63 }
  0x42   :  { %681 = vmatmul.mubr.bf16.vlgmr.msra.gmra.mrb[8].mxu0 %v1048_v1 }
  0x43   :  { %688 = vmatprep.mubr.bf16.mxu0 %v1054_v2 }
  0x4a   :  { %689 = vmatmul.mubr.bf16.gmra.mrb[12].mxu0 %v1056_v3 }
  0xf5   :  { %v891_v4 = vpop.f32.mrb[0].mxu0 }
  0xf6   :  { %v892_v6 = vpop.f32.mrb[1].mxu0 }
  0xf7   :  { %v893_v7 = vadd.f32 %v892_v6, %v891_v4  ;;  %v894_v8 = vpop.f32.mrb[2].mxu0  ;;  %v919_v9 = vpop.f32.mrb[0].mxu1 }
  0xf8   :  { %v895_v10 = vpop.f32.mrb[3].mxu0  ;;  %v920_v13 = vpop.f32.mrb[1].mxu1 }
  0xf9   :  { %v585_v11 = vadd.f32 %v893_v7, %v787_v5  ;;  %v896_v12 = vadd.f32 %v895_v10, %v894_v8  ;;  %v921_v14 = vadd.f32 %v920_v13, %v919_v9  ;;  %v922_v15 = vpop.f32.mrb[2].mxu1  ;;  %v873_v7 = vunpack.c.h.bf16 %v874_v53 }
  0xfa   :  { %v923_v17 = vpop.f32.mrb[3].mxu1 }
  0xfb   :  { %v588_v16 = vadd.f32 %v896_v12, %v787_v5  ;;  %v634_v18 = vadd.f32 %v921_v14, %v585_v11  ;;  %v924_v19 = vadd.f32 %v923_v17, %v922_v15 }
  0xfd   :  { %v637_v20 = vadd.f32 %v924_v19, %v588_v16  ;;  %v897_v21 = vpop.f32.mrb[4].mxu0 }
  0xfe   :  { %v898_v22 = vpop.f32.mrb[5].mxu0 }
  0xff   :  { %v899_v23 = vadd.f32 %v898_v22, %v897_v21  ;;  %v900_v24 = vpop.f32.mrb[6].mxu0  ;;  %v925_v25 = vpop.f32.mrb[4].mxu1 }
 0x100   :  { %v901_v26 = vpop.f32.mrb[7].mxu0  ;;  %v926_v27 = vpop.f32.mrb[5].mxu1 }
 0x101   :  { %v593_v28 = vadd.f32 %v899_v23, %v787_v5  ;;  %v902_v29 = vadd.f32 %v901_v26, %v900_v24  ;;  %v927_v30 = vadd.f32 %v926_v27, %v925_v25  ;;  %v928_v31 = vpop.f32.mrb[6].mxu1 }
 0x102   :  { %v929_v32 = vpop.f32.mrb[7].mxu1 }
 0x103   :  { %v596_v33 = vadd.f32 %v902_v29, %v787_v5  ;;  %v642_v34 = vadd.f32 %v927_v30, %v593_v28  ;;  %v930_v35 = vadd.f32 %v929_v32, %v928_v31 }
 0x105   :  { %v645_v36 = vadd.f32 %v930_v35, %v596_v33 }
 0x10f   :  { %v981_v37 = vpop.f32.mrb[8].mxu1 }
 0x110   :  { %v731_v39 = vpop.f32.mrb[9].mxu1 }
 0x111   :  { %v982_v42 = vpop.f32.mrb[10].mxu1 }
 0x112   :  { %v734_v45 = vpop.f32.mrb[11].mxu1 }
 0x115   :  { %v947_v38 = vpop.f32.mrb[8].mxu0 }
 0x116   :  { %v948_v40 = vpop.f32.mrb[9].mxu0 }
 0x117   :  { %v949_v43 = vadd.f32 %v948_v40, %v947_v38  ;;  %v950_v44 = vpop.f32.mrb[10].mxu0 }
 0x118   :  { %v951_v46 = vpop.f32.mrb[11].mxu0 }
 0x119   :  { %v952_v47 = vadd.f32 %v951_v46, %v950_v44  ;;  %v683_v48 = vadd.f32 %v949_v43, %v634_v18 }
 0x11b   :  { %v732_v50 = vadd.f32 %v731_v39, %v683_v48  ;;  %v686_v51 = vadd.f32 %v952_v47, %v637_v20 }
 0x11d   :  { %v754_v54 = vadd.f32 %v868_v49, %v732_v50  ;;  %v735_v55 = vadd.f32 %v734_v45, %v686_v51  ;;  %v953_v56 = vpop.f32.mrb[12].mxu0 }
 0x11e   :  { %v954_v57 = vpop.f32.mrb[13].mxu0 }
 0x11f   :  { %v758_v58 = vmax.f32 %v754_v54, 0.0  ;;  %v755_v59 = vadd.f32 %v869_v52, %v735_v55  ;;  %v955_v60 = vadd.f32 %v954_v57, %v953_v56  ;;  %v956_v61 = vpop.f32.mrb[14].mxu0 }
 0x120   :  { %v957_v63 = vpop.f32.mrb[15].mxu0 }
 0x121   :  { %v862_v0 = vpack.c.bf16 %v758_v58, %v758_v58  ;;  %v759_v1 = vmax.f32 %v755_v59, 0.0  ;;  %v691_v2 = vadd.f32 %v955_v60, %v642_v34  ;;  %v958_v3 = vadd.f32 %v957_v63, %v956_v61 }
 0x123   :  { %779 = vst.msk [vmem:[%s1315_s4] sm:$0xf] %vm778_vm1, %v862_v0  ;;  %v863_v4 = vpack.c.bf16 %v759_v1, %v759_v1  ;;  %v740_v5 = vadd.f32 %v981_v37, %v691_v2  ;;  %v694_v6 = vadd.f32 %v958_v3, %v645_v36 }
 0x125   :  { %780 = vst.msk [vmem:[%s1315_s4 + $0x4] sm:$0xf] %vm778_vm1, %v863_v4  ;;  %v756_v8 = vadd.f32 %v872_v62, %v740_v5  ;;  %v743_v9 = vadd.f32 %v982_v42, %v694_v6 }
 0x127   :  { %v760_v10 = vmax.f32 %v756_v8, 0.0  ;;  %v757_v11 = vadd.f32 %v873_v7, %v743_v9 }
 0x129   :  { %v864_v12 = vpack.c.bf16 %v760_v10, %v760_v10  ;;  %v761_v13 = vmax.f32 %v757_v11, 0.0 }
 0x12b   :  { %781 = vst.msk [vmem:[%s1315_s4 + $0x8] sm:$0xf] %vm778_vm1, %v864_v12  ;;  %v865_v14 = vpack.c.bf16 %v761_v13, %v761_v13 }
 0x12d   :  { %782 = vst.msk [vmem:[%s1315_s4 + $0xc] sm:$0xf] %vm778_vm1, %v865_v14 }

// kernel: unipose_forward.40
= control target key start
LH: loop header
LB: loop body
LE: loop exit
PB: predicated region body
PF: predicated region fallthrough
CT: control target
= control target key end

     0   :  { %v162_v0 = vmov 0.0   ;;  %vm163_vm0 = vmmov 0   ;;  %vm71_vm1 = vcmask 785408   ;;  %vm117_vm2 = vcmask 257024   ;;  %s211_s1 = inlined_call_operand.vmem [shape: bf16[96,32], index: 1, kind: input, shape index: {}]   ;;  %s212_s0 = inlined_call_operand.vmem [shape: bf16[8,96], index: 0, kind: input, shape index: {}]   ;;  %s213_s2 = inlined_call_operand.vmem [shape: f32[1,32], index: 2, kind: input, shape index: {}]   ;;  %s214_s3 = inlined_call_operand.vmem [shape: bf16[8,32], index: 3, kind: output, shape index: {}]  }
   0x1   :  { %138 = vmatprep.subr.bf16.mxu0 %v162_v0  ;;  %v156_v1 = vld [vmem:[%s211_s1] sm:$0xff]   ;;  %150 = vmatprep.mubr.msk.bf16.mxu0 %vm163_vm0, %v162_v0  ;;  %v157_v2 = vld [vmem:[%s211_s1 + $0x8] sm:$0xff]   ;;  %v158_v3 = vld [vmem:[%s211_s1 + $0x10] sm:$0xff]  }
   0x2   :  { %139 = vmatpush3.bf16.msra.mxu0 %v156_v1  ;;  %v159_v4 = vld [vmem:[%s211_s1 + $0x18] sm:$0xff]   ;;  %v160_v5 = vld [vmem:[%s211_s1 + $0x20] sm:$0xff]   ;;  %v161_v6 = vld [vmem:[%s211_s1 + $0x28] sm:$0xff]  }
   0x3   :  { %140 = vmatprep.subr.bf16.mxu0 %v162_v0  ;;  %v15_v7 = vld [vmem:[%s212_s0] sm:$0xf] }
   0x4   :  { %v123_v8 = vld [vmem:[%s213_s2] ss:$0 sm:$0xff] }
   0x6   :  { %141 = vmatpush3.bf16.msra.mxu0 %v157_v2 }
   0x7   :  { %142 = vmatprep.subr.bf16.mxu0 %v162_v0 }
   0xa   :  { %143 = vmatpush3.bf16.msra.mxu0 %v158_v3 }
   0xb   :  { %144 = vmatprep.subr.bf16.mxu0 %v162_v0 }
   0xe   :  { %145 = vmatpush3.bf16.msra.mxu0 %v159_v4 }
   0xf   :  { %146 = vmatprep.subr.bf16.mxu0 %v162_v0 }
  0x12   :  { %147 = vmatpush3.bf16.msra.mxu0 %v160_v5 }
  0x13   :  { %148 = vmatprep.subr.bf16.mxu0 %v162_v0 }
  0x16   :  { %149 = vmatpush3.bf16.msra.mxu0 %v161_v6 }
  0x19   :  { %151 = vmatmul.mubr.msk.bf16.vlgmr.msra.gmra.mrb[0].mxu0 %vm71_vm1, %v15_v7 }
  0xec   :  { %v109_v9 = vpop.f32.mrb[0].mxu0 }
  0xed   :  { %v110_v10 = vadd.f32 %v123_v8, %v109_v9  ;;  %v152_v11 = vpop.f32.mrb[1].mxu0 }
  0xee   :  { %v112_v12 = vpop.f32.mrb[2].mxu0 }
  0xef   :  { %v115_v13 = vmax.f32 %v110_v10, 0.0  ;;  %v153_v14 = vpop.f32.mrb[3].mxu0 }
  0xf1   :  { %v116_v15 = vpack.c.bf16 %v115_v13, %v115_v13 }
  0xf3   :  { %118 = vst.msk [vmem:[%s214_s3] sm:$0xf] %vm117_vm2, %v116_v15 }

// kernel: unipose_forward.37
= control target key start
LH: loop header
LB: loop body
LE: loop exit
PB: predicated region body
PF: predicated region fallthrough
CT: control target
= control target key end

     0   :  { %vm204_vm0 = vcmask 261120   ;;  %vm329_vm1 = vcmask 257024   ;;  %s550_s1 = inlined_call_operand.vmem [shape: bf16[288,32], index: 1, kind: input, shape index: {}]   ;;  %s551_s0 = inlined_call_operand.vmem [shape: bf16[32,288], index: 0, kind: input, shape index: {}]   ;;  %s552_s2 = inlined_call_operand.vmem [shape: f32[1,32], index: 2, kind: input, shape index: {}]   ;;  %s553_s3 = inlined_call_operand.vmem [shape: bf16[32,32], index: 3, kind: output, shape index: {}]  }
   0x1   :  { %v413_v0 = vld [vmem:[%s550_s1 + $0x40] sm:$0xff]   ;;  %v415_v2 = vld [vmem:[%s550_s1 + $0x48] sm:$0xff]   ;;  %v417_v4 = vld [vmem:[%s550_s1 + $0x50] sm:$0xff]  }
   0x2   :  { %v414_v1 = vld [vmem:[%s550_s1] sm:$0xff]   ;;  %373 = vmatprep.subr.bf16.mxu0 %v413_v0  ;;  %v416_v3 = vld [vmem:[%s550_s1 + $0x8] sm:$0xff]   ;;  %v418_v5 = vld [vmem:[%s550_s1 + $0x10] sm:$0xff]  }
   0x3   :  { %374 = vmatpush3.bf16.msra.mxu0 %v414_v1  ;;  %v419_v6 = vld [vmem:[%s550_s1 + $0x58] sm:$0xff]   ;;  %v421_v8 = vld [vmem:[%s550_s1 + $0x60] sm:$0xff]   ;;  %v423_v11 = vld [vmem:[%s550_s1 + $0x68] sm:$0xff]  }
   0x4   :  { %375 = vmatprep.subr.bf16.mxu0 %v415_v2  ;;  %v420_v7 = vld [vmem:[%s550_s1 + $0x18] sm:$0xff]   ;;  %v422_v9 = vld [vmem:[%s550_s1 + $0x20] sm:$0xff]   ;;  %v424_v12 = vld [vmem:[%s550_s1 + $0x28] sm:$0xff]  }
   0x5   :  { %v428_v10 = vld [vmem:[%s550_s1 + $0x80] sm:$0xff]   ;;  %v425_v13 = vld [vmem:[%s550_s1 + $0x70] sm:$0xff]   ;;  %v433_v15 = vld [vmem:[%s550_s1 + $0x88] sm:$0xff]  }
   0x6   :  { %405 = vmatprep.subr.bf16.mxu1 %v428_v10  ;;  %v432_v14 = vld [vmem:[%s551_s0 + $0x4] ss:$12 sps:$4 sm:$0xff]   ;;  %v434_v16 = vld [vmem:[%s551_s0 + $0x8] ss:$12 sps:$4 sm:$0xff]   ;;  %v435_v17 = vld [vmem:[%s551_s0 + $0x20] ss:$12 sps:$4 sm:$0xff]  }
   0x7   :  { %376 = vmatpush3.bf16.msra.mxu0 %v416_v3  ;;  %406 = vmatpush3.bf16.msra.mxu1 %v428_v10  ;;  %v426_v18 = vld [vmem:[%s550_s1 + $0x30] sm:$0xff]   ;;  %v427_v19 = vld [vmem:[%s550_s1 + $0x78] sm:$0xff]   ;;  %v430_v21 = vld [vmem:[%s551_s0] ss:$12 sps:$4 sm:$0xff]  }
   0x8   :  { %377 = vmatprep.subr.bf16.mxu0 %v417_v4  ;;  %243 = vmatprep.mubr.bf16.mxu0 %v432_v14  ;;  %v429_v20 = vld [vmem:[%s550_s1 + $0x38] sm:$0xff]   ;;  %v338_v30 = vld [vmem:[%s552_s2] ss:$0 sm:$0xff] }
   0x9   :  { %407 = vmatprep.subr.bf16.mxu1 %v433_v15  ;;  %409 = vmatprep.mubr.msk.bf16.mxu1 %vm204_vm0, %v434_v16  ;;  %v436_v22 = vld [vmem:[%s551_s0 + $0x1c] ss:$12 sps:$4 sm:$0xff]   ;;  %v438_v23 = vld [vmem:[%s551_s0 + $0x18] ss:$12 sps:$4 sm:$0xff]  }
   0xb   :  { %378 = vmatpush3.bf16.msra.mxu0 %v418_v5  ;;  %408 = vmatpush3.bf16.msra.mxu1 %v433_v15 }
   0xc   :  { %379 = vmatprep.subr.bf16.mxu0 %v419_v6 }
   0xe   :  { %410 = vmatmul.mubr.msk.bf16.vlgmr.msra.gmra.mrb[0].mxu1 %vm204_vm0, %v435_v17 }
   0xf   :  { %380 = vmatpush3.bf16.msra.mxu0 %v420_v7 }
  0x10   :  { %381 = vmatprep.subr.bf16.mxu0 %v421_v8 }
  0x13   :  { %382 = vmatpush3.bf16.msra.mxu0 %v422_v9 }
  0x14   :  { %383 = vmatprep.subr.bf16.mxu0 %v423_v11 }
  0x17   :  { %384 = vmatpush3.bf16.msra.mxu0 %v424_v12 }
  0x18   :  { %385 = vmatprep.subr.bf16.mxu0 %v425_v13 }
  0x1b   :  { %386 = vmatpush3.bf16.msra.mxu0 %v426_v18 }
  0x1c   :  { %387 = vmatprep.subr.bf16.mxu0 %v427_v19 }
  0x1f   :  { %388 = vmatpush3.bf16.msra.mxu0 %v429_v20 }
  0x22   :  { %244 = vmatmul.mubr.bf16.vlgmr.msra.gmra.mrb[0].mxu0 %v430_v21 }
  0x23   :  { %251 = vmatprep.mubr.bf16.mxu0 %v436_v22 }
  0x2a   :  { %252 = vmatmul.mubr.bf16.gmra.mrb[4].mxu0 %v438_v23 }
  0xe1   :  { %v411_v24 = vpop.f32.mrb[0].mxu1 }
  0xe2   :  { %v294_v25 = vpop.f32.mrb[1].mxu1 }
  0xe3   :  { %v412_v26 = vpop.f32.mrb[2].mxu1 }
  0xe4   :  { %v297_v27 = vpop.f32.mrb[3].mxu1 }
  0xf5   :  { %v389_v28 = vpop.f32.mrb[0].mxu0 }
  0xf6   :  { %v390_v29 = vpop.f32.mrb[1].mxu0 }
  0xf7   :  { %v391_v31 = vadd.f32 %v390_v29, %v389_v28  ;;  %v392_v32 = vpop.f32.mrb[2].mxu0 }
  0xf8   :  { %v393_v33 = vpop.f32.mrb[3].mxu0 }
  0xf9   :  { %v394_v34 = vadd.f32 %v393_v33, %v392_v32  ;;  %v246_v35 = vadd.f32 %v391_v31, %v338_v30 }
  0xfb   :  { %v295_v36 = vadd.f32 %v294_v25, %v246_v35  ;;  %v249_v37 = vadd.f32 %v394_v34, %v338_v30 }
  0xfd   :  { %v309_v38 = vmax.f32 %v295_v36, 0.0  ;;  %v298_v39 = vadd.f32 %v297_v27, %v249_v37  ;;  %v395_v40 = vpop.f32.mrb[4].mxu0 }
  0xfe   :  { %v396_v41 = vpop.f32.mrb[5].mxu0 }
  0xff   :  { %v369_v42 = vpack.c.bf16 %v309_v38, %v309_v38  ;;  %v310_v43 = vmax.f32 %v298_v39, 0.0  ;;  %v397_v44 = vadd.f32 %v396_v41, %v395_v40  ;;  %v398_v45 = vpop.f32.mrb[6].mxu0 }
 0x100   :  { %v399_v46 = vpop.f32.mrb[7].mxu0 }
 0x101   :  { %330 = vst.msk [vmem:[%s553_s3] sm:$0xf] %vm329_vm1, %v369_v42  ;;  %v370_v47 = vpack.c.bf16 %v310_v43, %v310_v43  ;;  %v254_v48 = vadd.f32 %v397_v44, %v338_v30  ;;  %v400_v49 = vadd.f32 %v399_v46, %v398_v45 }
 0x103   :  { %331 = vst.msk [vmem:[%s553_s3 + $0x4] sm:$0xf] %vm329_vm1, %v370_v47  ;;  %v303_v50 = vadd.f32 %v411_v24, %v254_v48  ;;  %v257_v51 = vadd.f32 %v400_v49, %v338_v30 }
 0x105   :  { %v311_v52 = vmax.f32 %v303_v50, 0.0  ;;  %v306_v53 = vadd.f32 %v412_v26, %v257_v51 }
 0x107   :  { %v371_v54 = vpack.c.bf16 %v311_v52, %v311_v52  ;;  %v312_v55 = vmax.f32 %v306_v53, 0.0 }
 0x109   :  { %332 = vst.msk [vmem:[%s553_s3 + $0x8] sm:$0xf] %vm329_vm1, %v371_v54  ;;  %v372_v56 = vpack.c.bf16 %v312_v55, %v312_v55 }
 0x10b   :  { %333 = vst.msk [vmem:[%s553_s3 + $0xc] sm:$0xf] %vm329_vm1, %v372_v56 }

// kernel: unipose_forward.41
= control target key start
LH: loop header
LB: loop body
LE: loop exit
PB: predicated region body
PF: predicated region fallthrough
CT: control target
= control target key end

     0   :  { %v271_v0 = vmov 0   ;;  %vm124_vm0 = vcmask 261120   ;;  %vm200_vm1 = vcmask 257024   ;;  %s349_s1 = inlined_call_operand.vmem [shape: bf16[160,32], index: 1, kind: input, shape index: {}]   ;;  %s350_s0 = inlined_call_operand.vmem [shape: bf16[32,160], index: 0, kind: input, shape index: {}]   ;;  %s351_s2 = inlined_call_operand.vmem [shape: f32[1,32], index: 2, kind: input, shape index: {}]   ;;  %s352_s3 = inlined_call_operand.vmem [shape: bf16[32,32], index: 3, kind: output, shape index: {}]  }
   0x1   :  { %131 = vmatprep.subr.bf16.mxu0 %v271_v0  ;;  %234 = vmatprep.subr.bf16.mxu1 %v271_v0  ;;  %v255_v1 = vld [vmem:[%s349_s1] sm:$0xff]   ;;  %v256_v2 = vld [vmem:[%s349_s1 + $0x8] sm:$0xff]   ;;  %v257_v3 = vld [vmem:[%s349_s1 + $0x10] sm:$0xff]  }
   0x2   :  { %132 = vmatpush1.bf16.msra.mxu0 %v255_v1  ;;  %244 = vmatpush1.bf16.msra.mxu1 %v255_v1  ;;  %v258_v4 = vld [vmem:[%s349_s1 + $0x18] sm:$0xff]   ;;  %v267_v5 = vld [vmem:[%s350_s0 + $0x4] ss:$8 sps:$4 sm:$0xff]   ;;  %v261_v9 = vld [vmem:[%s349_s1 + $0x30] sm:$0xff]  }
   0x3   :  { %133 = vmatprep.subr.bf16.mxu0 %v271_v0  ;;  %235 = vmatprep.subr.bf16.mxu1 %v271_v0  ;;  %v270_v6 = vld [vmem:[%s350_s0 + $0x14] ss:$8 sps:$4 sm:$0xff]   ;;  %v259_v7 = vld [vmem:[%s349_s1 + $0x20] sm:$0xff]   ;;  %v260_v8 = vld [vmem:[%s349_s1 + $0x28] sm:$0xff]  }
   0x4   :  { %224 = vmatprep.mubr.msk.bf16.mxu0 %vm124_vm0, %v267_v5  ;;  %225 = vmatprep.mubr.msk.bf16.mxu1 %vm124_vm0, %v270_v6  ;;  %v262_v10 = vld [vmem:[%s349_s1 + $0x38] sm:$0xff]   ;;  %v263_v11 = vld [vmem:[%s349_s1 + $0x40] sm:$0xff]   ;;  %v264_v12 = vld [vmem:[%s349_s1 + $0x48] sm:$0xff]  }
   0x5   :  { %v265_v13 = vld [vmem:[%s350_s0] ss:$8 sps:$4 sm:$0xff]   ;;  %v268_v14 = vld [vmem:[%s350_s0 + $0x10] ss:$8 sps:$4 sm:$0xff]  }
   0x6   :  { %134 = vmatpush1.bf16.msra.mxu0 %v256_v2  ;;  %245 = vmatpush1.bf16.msra.mxu1 %v256_v2  ;;  %v209_v15 = vld [vmem:[%s351_s2] ss:$0 sm:$0xff] }
   0x7   :  { %135 = vmatprep.subr.bf16.mxu0 %v271_v0  ;;  %236 = vmatprep.subr.bf16.mxu1 %v271_v0 }
   0xa   :  { %136 = vmatpush1.bf16.msra.mxu0 %v257_v3  ;;  %246 = vmatpush1.bf16.msra.mxu1 %v257_v3 }
   0xb   :  { %137 = vmatprep.subr.bf16.mxu0 %v271_v0  ;;  %237 = vmatprep.subr.bf16.mxu1 %v271_v0 }
   0xe   :  { %138 = vmatpush1.bf16.msra.mxu0 %v258_v4  ;;  %247 = vmatpush1.bf16.msra.mxu1 %v258_v4 }
   0xf   :  { %139 = vmatprep.subr.bf16.mxu0 %v271_v0  ;;  %238 = vmatprep.subr.bf16.mxu1 %v271_v0 }
  0x12   :  { %140 = vmatpush1.bf16.msra.mxu0 %v259_v7  ;;  %248 = vmatpush1.bf16.msra.mxu1 %v259_v7 }
  0x13   :  { %141 = vmatprep.subr.bf16.mxu0 %v271_v0  ;;  %239 = vmatprep.subr.bf16.mxu1 %v271_v0 }
  0x16   :  { %142 = vmatpush1.bf16.msra.mxu0 %v260_v8  ;;  %249 = vmatpush1.bf16.msra.mxu1 %v260_v8 }
  0x17   :  { %143 = vmatprep.subr.bf16.mxu0 %v271_v0  ;;  %240 = vmatprep.subr.bf16.mxu1 %v271_v0 }
  0x1a   :  { %144 = vmatpush1.bf16.msra.mxu0 %v261_v9  ;;  %250 = vmatpush1.bf16.msra.mxu1 %v261_v9 }
  0x1b   :  { %145 = vmatprep.subr.bf16.mxu0 %v271_v0  ;;  %241 = vmatprep.subr.bf16.mxu1 %v271_v0 }
  0x1e   :  { %146 = vmatpush1.bf16.msra.mxu0 %v262_v10  ;;  %251 = vmatpush1.bf16.msra.mxu1 %v262_v10 }
  0x1f   :  { %147 = vmatprep.subr.bf16.mxu0 %v271_v0  ;;  %242 = vmatprep.subr.bf16.mxu1 %v271_v0 }
  0x22   :  { %148 = vmatpush1.bf16.msra.mxu0 %v263_v11  ;;  %252 = vmatpush1.bf16.msra.mxu1 %v263_v11 }
  0x23   :  { %149 = vmatprep.subr.bf16.mxu0 %v271_v0  ;;  %243 = vmatprep.subr.bf16.mxu1 %v271_v0 }
  0x26   :  { %150 = vmatpush1.bf16.msra.mxu0 %v264_v12  ;;  %253 = vmatpush1.bf16.msra.mxu1 %v264_v12 }
  0x29   :  { %164 = vmatmul.mubr.bf16.vlgmr.msra.gmra.mrb[0].mxu0 %v265_v13  ;;  %172 = vmatmul.mubr.bf16.vlgmr.msra.gmra.mrb[0].mxu1 %v268_v14 }
  0xfc   :  { %v165_v16 = vpop.f32.mrb[0].mxu0  ;;  %v173_v17 = vpop.f32.mrb[0].mxu1 }
  0xfd   :  { %v166_v18 = vadd.f32 %v209_v15, %v165_v16  ;;  %v174_v19 = vadd.f32 %v209_v15, %v173_v17  ;;  %v167_v20 = vpop.f32.mrb[1].mxu0  ;;  %v175_v21 = vpop.f32.mrb[1].mxu1 }
  0xfe   :  { %v168_v22 = vpop.f32.mrb[2].mxu0  ;;  %v176_v23 = vpop.f32.mrb[2].mxu1 }
  0xff   :  { %v180_v24 = vmax.f32 %v166_v18, 0.0  ;;  %v182_v25 = vmax.f32 %v174_v19, 0.0  ;;  %v169_v26 = vadd.f32 %v209_v15, %v168_v22  ;;  %v177_v27 = vadd.f32 %v209_v15, %v176_v23  ;;  %v170_v28 = vpop.f32.mrb[3].mxu0  ;;  %v178_v29 = vpop.f32.mrb[3].mxu1 }
 0x101   :  { %v230_v30 = vpack.c.bf16 %v180_v24, %v180_v24  ;;  %v232_v31 = vpack.c.bf16 %v182_v25, %v182_v25  ;;  %v181_v32 = vmax.f32 %v169_v26, 0.0  ;;  %v183_v33 = vmax.f32 %v177_v27, 0.0 }
 0x103   :  { %201 = vst.msk [vmem:[%s352_s3] sm:$0xf] %vm200_vm1, %v230_v30  ;;  %203 = vst.msk [vmem:[%s352_s3 + $0x8] sm:$0xf] %vm200_vm1, %v232_v31  ;;  %v231_v34 = vpack.c.bf16 %v181_v32, %v181_v32  ;;  %v233_v35 = vpack.c.bf16 %v183_v33, %v183_v33 }
 0x105   :  { %202 = vst.msk [vmem:[%s352_s3 + $0x4] sm:$0xf] %vm200_vm1, %v231_v34  ;;  %204 = vst.msk [vmem:[%s352_s3 + $0xc] sm:$0xf] %vm200_vm1, %v233_v35 }

// kernel: unipose_forward.42
= control target key start
LH: loop header
LB: loop body
LE: loop exit
PB: predicated region body
PF: predicated region fallthrough
CT: control target
= control target key end

     0   :  { %s991_s12 = smov 0   ;;  %s1158_s0 = inlined_call_operand.vmem [shape: bf16[512,32], index: 0, kind: input, shape index: {}]   ;;  %s1159_s1 = inlined_call_operand.vmem [shape: bf16[32,16], index: 1, kind: input, shape index: {}]   ;;  %s1160_s2 = inlined_call_operand.vmem [shape: f32[1,16], index: 2, kind: input, shape index: {}]   ;;  %s1161_s3 = inlined_call_operand.vmem [shape: bf16[512,16], index: 3, kind: output, shape index: {}]  }
   0x1 LB: > { %s769_s13 = sadd.s32 4294967295, %s969_s12   ;;  %p773_p0 = scmp.ge.s32.totalorder %s969_s12, 1  ;;  %s969_s12 = sphi %s991_s12, %s13_s12  }
   0x2   : > { %p138_p1 = scmp.lt.s32.totalorder %s969_s12, 3 }
   0x4   : > { %p139_p2 = pnand %p773_p0, %p138_p1 }
   0x5   : > { %v945_v0 = vld [vmem:[%s1159_s1] sm:$0xff] (!%p139_p2)   ;;  %s774_s16 = sshll.u32 (!%p139_p2), %s769_s13, 5  ;;  %v946_v1 = vld [vmem:[%s1159_s1 + $0x8] sm:$0xff] (!%p139_p2)   ;;  %vm310_vm0 = vcmask (!%p139_p2), 261120   ;;  %vm680_vm1 = vcmask (!%p139_p2), 125952  }
   0x6   : > { %142 = sbr.rel (%p139_p2) target bundleno = 265 (0x109), region = 32  ;;  %p163_p3 = scmp.lt.s32.totalorder (!%p139_p2), %s774_s16, 63  ;;  %897 = vmatprep.subr.bf16.mxu0 (!%p139_p2), %v945_v0  ;;  %933 = vmatprep.subr.bf16.mxu1 (!%p139_p2), %v945_v0  ;;  %v1050_v18 = vld [vmem:[%s1160_s2] ss:$0 sm:$0xff] (!%p139_p2) }
   0x7   : > { %898 = vmatpush3.bf16.msra.mxu0 (!%p139_p2), %v945_v0  ;;  %935 = vmatpush3.bf16.msra.mxu1 (!%p139_p2), %v945_v0 }
   0x8   : > { %899 = vmatprep.subr.bf16.mxu0 (!%p139_p2), %v946_v1  ;;  %934 = vmatprep.subr.bf16.mxu1 (!%p139_p2), %v946_v1 }
   0xb   : > { %900 = vmatpush3.bf16.msra.mxu0 (!%p139_p2), %v946_v1  ;;  %936 = vmatpush3.bf16.msra.mxu1 (!%p139_p2), %v946_v1 }
   0xd   : > { %s1163_s16 = smov (!%p163_p3, %s774_s16), 63 }
   0xe   : > { %s775_s19 = sshll.u32 %s1163_s16, 2 }
   0xf   : > { %s1013_s22 = scalar_lea.vmem %s1158_s0, %s775_s19  ;;  %s1062_s27 = scalar_lea.vmem %s1161_s3, %s775_s19 }
  0x10   : > { %v947_v2 = vld [vmem:[%s1013_s22] sm:$0xff]   ;;  %v949_v4 = vld [vmem:[%s1013_s22 + $0x8] sm:$0xff]   ;;  %v951_v6 = vld [vmem:[%s1013_s22 + $0x10] sm:$0xff]  }
  0x11   : > { %v948_v3 = vld [vmem:[%s1013_s22 + $0x40] sm:$0xff]   ;;  %901 = vmatprep.mubr.msk.bf16.mxu0 %vm310_vm0, %v947_v2  ;;  %v950_v5 = vld [vmem:[%s1013_s22 + $0x48] sm:$0xff]   ;;  %v952_v7 = vld [vmem:[%s1013_s22 + $0x50] sm:$0xff]  }
  0x12   : > { %917 = vmatprep.mubr.msk.bf16.mxu1 %vm310_vm0, %v948_v3  ;;  %902 = vmatmul.mubr.msk.bf16.vlgmr.msra.gmra.mrb[0].mxu0 %vm310_vm0, %v949_v4  ;;  %v953_v8 = vld [vmem:[%s1013_s22 + $0x18] sm:$0xff]   ;;  %v955_v10 = vld [vmem:[%s1013_s22 + $0x20] sm:$0xff]   ;;  %v957_v12 = vld [vmem:[%s1013_s22 + $0x28] sm:$0xff]  }
  0x13   : > { %918 = vmatmul.mubr.msk.bf16.vlgmr.msra.gmra.mrb[0].mxu1 %vm310_vm0, %v950_v5  ;;  %905 = vmatprep.mubr.msk.bf16.mxu0 %vm310_vm0, %v951_v6  ;;  %v954_v9 = vld [vmem:[%s1013_s22 + $0x58] sm:$0xff]   ;;  %v956_v11 = vld [vmem:[%s1013_s22 + $0x60] sm:$0xff]   ;;  %v958_v13 = vld [vmem:[%s1013_s22 + $0x68] sm:$0xff]  }
  0x14   : > { %921 = vmatprep.mubr.msk.bf16.mxu1 %vm310_vm0, %v952_v7  ;;  %v959_v14 = vld [vmem:[%s1013_s22 + $0x30] sm:$0xff]   ;;  %v961_v16 = vld [vmem:[%s1013_s22 + $0x38] sm:$0xff]  }
  0x15   : > { %v960_v15 = vld [vmem:[%s1013_s22 + $0x70] sm:$0xff]   ;;  %v962_v17 = vld [vmem:[%s1013_s22 + $0x78] sm:$0xff]  }
  0x1a   : > { %906 = vmatmul.mubr.msk.bf16.gmra.mrb[4].mxu0 %vm310_vm0, %v953_v8 }
  0x1b   : > { %922 = vmatmul.mubr.msk.bf16.gmra.mrb[4].mxu1 %vm310_vm0, %v954_v9  ;;  %909 = vmatprep.mubr.msk.bf16.mxu0 %vm310_vm0, %v955_v10 }
  0x1c   : > { %925 = vmatprep.mubr.msk.bf16.mxu1 %vm310_vm0, %v956_v11 }
  0x22   : > { %910 = vmatmul.mubr.msk.bf16.gmra.mrb[8].mxu0 %vm310_vm0, %v957_v12 }
  0x23   : > { %926 = vmatmul.mubr.msk.bf16.gmra.mrb[8].mxu1 %vm310_vm0, %v958_v13  ;;  %913 = vmatprep.mubr.msk.bf16.mxu0 %vm310_vm0, %v959_v14 }
  0x24   : > { %929 = vmatprep.mubr.msk.bf16.mxu1 %vm310_vm0, %v960_v15 }
  0x2a   : > { %914 = vmatmul.mubr.msk.bf16.gmra.mrb[12].mxu0 %vm310_vm0, %v961_v16 }
  0x2b   : > { %930 = vmatmul.mubr.msk.bf16.gmra.mrb[12].mxu1 %vm310_vm0, %v962_v17 }
  0xe5   : > { %v903_v19 = vpop.f32.mrb[0].mxu0 }
  0xe6   : > { %v402_v20 = vadd.f32 %v903_v19, %v1050_v18  ;;  %v919_v21 = vpop.f32.mrb[0].mxu1  ;;  %v393_v22 = vpop.f32.mrb[1].mxu0 }
  0xe7   : > { %v466_v23 = vadd.f32 %v919_v21, %v1050_v18  ;;  %v394_v24 = vadd.f32 %v1050_v18, %v393_v22  ;;  %v457_v25 = vpop.f32.mrb[1].mxu1  ;;  %v904_v26 = vpop.f32.mrb[2].mxu0 }
  0xe8   : > { %v522_v27 = vmax.f32 %v402_v20, 0.0  ;;  %v458_v28 = vadd.f32 %v1050_v18, %v457_v25  ;;  %v405_v29 = vadd.f32 %v904_v26, %v1050_v18  ;;  %v920_v30 = vpop.f32.mrb[2].mxu1  ;;  %v396_v31 = vpop.f32.mrb[3].mxu0 }
  0xe9   : > { %v538_v32 = vmax.f32 %v466_v23, 0.0  ;;  %v520_v33 = vmax.f32 %v394_v24, 0.0  ;;  %v469_v34 = vadd.f32 %v920_v30, %v1050_v18  ;;  %v397_v35 = vadd.f32 %v1050_v18, %v396_v31  ;;  %v460_v36 = vpop.f32.mrb[3].mxu1 }
  0xea   : > { %v849_v37 = vpack.c.bf16 %v522_v27, %v522_v27  ;;  %v536_v38 = vmax.f32 %v458_v28, 0.0  ;;  %v523_v39 = vmax.f32 %v405_v29, 0.0  ;;  %v461_v40 = vadd.f32 %v1050_v18, %v460_v36 }
  0xeb   : > { %v865_v41 = vpack.c.bf16 %v538_v32, %v538_v32  ;;  %v847_v42 = vpack.c.bf16 %v520_v33, %v520_v33  ;;  %v539_v43 = vmax.f32 %v469_v34, 0.0  ;;  %v521_v44 = vmax.f32 %v397_v35, 0.0 }
  0xec   : > { %683 = vst.msk [vmem:[%s1062_s27 + $0x8] sm:$0xf] %vm680_vm1, %v849_v37  ;;  %v863_v45 = vpack.c.bf16 %v536_v38, %v536_v38  ;;  %v850_v46 = vpack.c.bf16 %v523_v39, %v523_v39  ;;  %v537_v47 = vmax.f32 %v461_v40, 0.0 }
  0xed   : > { %699 = vst.msk [vmem:[%s1062_s27 + $0x48] sm:$0xf] %vm680_vm1, %v865_v41  ;;  %681 = vst.msk [vmem:[%s1062_s27] sm:$0xf] %vm680_vm1, %v847_v42  ;;  %v866_v48 = vpack.c.bf16 %v539_v43, %v539_v43  ;;  %v848_v49 = vpack.c.bf16 %v521_v44, %v521_v44  ;;  %v907_v50 = vpop.f32.mrb[4].mxu0 }
  0xee   : > { %697 = vst.msk [vmem:[%s1062_s27 + $0x40] sm:$0xf] %vm680_vm1, %v863_v45  ;;  %684 = vst.msk [vmem:[%s1062_s27 + $0xc] sm:$0xf] %vm680_vm1, %v850_v46  ;;  %v864_v51 = vpack.c.bf16 %v537_v47, %v537_v47  ;;  %v418_v52 = vadd.f32 %v907_v50, %v1050_v18  ;;  %v923_v53 = vpop.f32.mrb[4].mxu1  ;;  %v409_v54 = vpop.f32.mrb[5].mxu0 }
  0xef   : > { %700 = vst.msk [vmem:[%s1062_s27 + $0x4c] sm:$0xf] %vm680_vm1, %v866_v48  ;;  %682 = vst.msk [vmem:[%s1062_s27 + $0x4] sm:$0xf] %vm680_vm1, %v848_v49  ;;  %v482_v55 = vadd.f32 %v923_v53, %v1050_v18  ;;  %v410_v56 = vadd.f32 %v1050_v18, %v409_v54  ;;  %v473_v57 = vpop.f32.mrb[5].mxu1  ;;  %v908_v58 = vpop.f32.mrb[6].mxu0 }
  0xf0   : > { %698 = vst.msk [vmem:[%s1062_s27 + $0x44] sm:$0xf] %vm680_vm1, %v864_v51  ;;  %v526_v59 = vmax.f32 %v418_v52, 0.0  ;;  %v474_v60 = vadd.f32 %v1050_v18, %v473_v57  ;;  %v421_v61 = vadd.f32 %v908_v58, %v1050_v18  ;;  %v924_v62 = vpop.f32.mrb[6].mxu1  ;;  %v412_v63 = vpop.f32.mrb[7].mxu0 }
  0xf1   : > { %v542_v0 = vmax.f32 %v482_v55, 0.0  ;;  %v524_v1 = vmax.f32 %v410_v56, 0.0  ;;  %v485_v2 = vadd.f32 %v924_v62, %v1050_v18  ;;  %v413_v3 = vadd.f32 %v1050_v18, %v412_v63  ;;  %v476_v4 = vpop.f32.mrb[7].mxu1 }
  0xf2   : > { %v853_v5 = vpack.c.bf16 %v526_v59, %v526_v59  ;;  %v540_v6 = vmax.f32 %v474_v60, 0.0  ;;  %v527_v7 = vmax.f32 %v421_v61, 0.0  ;;  %v477_v8 = vadd.f32 %v1050_v18, %v476_v4 }
  0xf3   : > { %v869_v9 = vpack.c.bf16 %v542_v0, %v542_v0  ;;  %v851_v10 = vpack.c.bf16 %v524_v1, %v524_v1  ;;  %v543_v11 = vmax.f32 %v485_v2, 0.0  ;;  %v525_v12 = vmax.f32 %v413_v3, 0.0 }
  0xf4   : > { %687 = vst.msk [vmem:[%s1062_s27 + $0x18] sm:$0xf] %vm680_vm1, %v853_v5  ;;  %v867_v13 = vpack.c.bf16 %v540_v6, %v540_v6  ;;  %v854_v14 = vpack.c.bf16 %v527_v7, %v527_v7  ;;  %v541_v15 = vmax.f32 %v477_v8, 0.0 }
  0xf5   : > { %703 = vst.msk [vmem:[%s1062_s27 + $0x58] sm:$0xf] %vm680_vm1, %v869_v9  ;;  %685 = vst.msk [vmem:[%s1062_s27 + $0x10] sm:$0xf] %vm680_vm1, %v851_v10  ;;  %v870_v16 = vpack.c.bf16 %v543_v11, %v543_v11  ;;  %v852_v17 = vpack.c.bf16 %v525_v12, %v525_v12  ;;  %v911_v19 = vpop.f32.mrb[8].mxu0 }
  0xf6   : > { %701 = vst.msk [vmem:[%s1062_s27 + $0x50] sm:$0xf] %vm680_vm1, %v867_v13  ;;  %688 = vst.msk [vmem:[%s1062_s27 + $0x1c] sm:$0xf] %vm680_vm1, %v854_v14  ;;  %v868_v20 = vpack.c.bf16 %v541_v15, %v541_v15  ;;  %v434_v21 = vadd.f32 %v911_v19, %v1050_v18  ;;  %v927_v22 = vpop.f32.mrb[8].mxu1  ;;  %v425_v23 = vpop.f32.mrb[9].mxu0 }
  0xf7   : > { %704 = vst.msk [vmem:[%s1062_s27 + $0x5c] sm:$0xf] %vm680_vm1, %v870_v16  ;;  %686 = vst.msk [vmem:[%s1062_s27 + $0x14] sm:$0xf] %vm680_vm1, %v852_v17  ;;  %v498_v24 = vadd.f32 %v927_v22, %v1050_v18  ;;  %v426_v25 = vadd.f32 %v1050_v18, %v425_v23  ;;  %v489_v26 = vpop.f32.mrb[9].mxu1  ;;  %v912_v27 = vpop.f32.mrb[10].mxu0 }
  0xf8   : > { %702 = vst.msk [vmem:[%s1062_s27 + $0x54] sm:$0xf] %vm680_vm1, %v868_v20  ;;  %v530_v28 = vmax.f32 %v434_v21, 0.0  ;;  %v490_v29 = vadd.f32 %v1050_v18, %v489_v26  ;;  %v437_v30 = vadd.f32 %v912_v27, %v1050_v18  ;;  %v928_v31 = vpop.f32.mrb[10].mxu1  ;;  %v428_v32 = vpop.f32.mrb[11].mxu0 }
  0xf9   : > { %v546_v33 = vmax.f32 %v498_v24, 0.0  ;;  %v528_v34 = vmax.f32 %v426_v25, 0.0  ;;  %v501_v35 = vadd.f32 %v928_v31, %v1050_v18  ;;  %v429_v36 = vadd.f32 %v1050_v18, %v428_v32  ;;  %v492_v37 = vpop.f32.mrb[11].mxu1 }
  0xfa   : > { %v857_v38 = vpack.c.bf16 %v530_v28, %v530_v28  ;;  %v544_v39 = vmax.f32 %v490_v29, 0.0  ;;  %v531_v40 = vmax.f32 %v437_v30, 0.0  ;;  %v493_v41 = vadd.f32 %v1050_v18, %v492_v37 }
  0xfb   : > { %v873_v42 = vpack.c.bf16 %v546_v33, %v546_v33  ;;  %v855_v43 = vpack.c.bf16 %v528_v34, %v528_v34  ;;  %v547_v44 = vmax.f32 %v501_v35, 0.0  ;;  %v529_v45 = vmax.f32 %v429_v36, 0.0 }
  0xfc   : > { %691 = vst.msk [vmem:[%s1062_s27 + $0x28] sm:$0xf] %vm680_vm1, %v857_v38  ;;  %v871_v46 = vpack.c.bf16 %v544_v39, %v544_v39  ;;  %v858_v47 = vpack.c.bf16 %v531_v40, %v531_v40  ;;  %v545_v48 = vmax.f32 %v493_v41, 0.0 }
  0xfd   : > { %707 = vst.msk [vmem:[%s1062_s27 + $0x68] sm:$0xf] %vm680_vm1, %v873_v42  ;;  %689 = vst.msk [vmem:[%s1062_s27 + $0x20] sm:$0xf] %vm680_vm1, %v855_v43  ;;  %v874_v49 = vpack.c.bf16 %v547_v44, %v547_v44  ;;  %v856_v50 = vpack.c.bf16 %v529_v45, %v529_v45  ;;  %v915_v51 = vpop.f32.mrb[12].mxu0 }
  0xfe   : > { %705 = vst.msk [vmem:[%s1062_s27 + $0x60] sm:$0xf] %vm680_vm1, %v871_v46  ;;  %692 = vst.msk [vmem:[%s1062_s27 + $0x2c] sm:$0xf] %vm680_vm1, %v858_v47  ;;  %v872_v52 = vpack.c.bf16 %v545_v48, %v545_v48  ;;  %v450_v53 = vadd.f32 %v915_v51, %v1050_v18  ;;  %v931_v54 = vpop.f32.mrb[12].mxu1  ;;  %v441_v55 = vpop.f32.mrb[13].mxu0 }
  0xff   : > { %708 = vst.msk [vmem:[%s1062_s27 + $0x6c] sm:$0xf] %vm680_vm1, %v874_v49  ;;  %690 = vst.msk [vmem:[%s1062_s27 + $0x24] sm:$0xf] %vm680_vm1, %v856_v50  ;;  %v514_v56 = vadd.f32 %v931_v54, %v1050_v18  ;;  %v442_v57 = vadd.f32 %v1050_v18, %v441_v55  ;;  %v505_v58 = vpop.f32.mrb[13].mxu1  ;;  %v916_v59 = vpop.f32.mrb[14].mxu0 }
 0x100   : > { %706 = vst.msk [vmem:[%s1062_s27 + $0x64] sm:$0xf] %vm680_vm1, %v872_v52  ;;  %v534_v60 = vmax.f32 %v450_v53, 0.0  ;;  %v506_v61 = vadd.f32 %v1050_v18, %v505_v58  ;;  %v453_v62 = vadd.f32 %v916_v59, %v1050_v18  ;;  %v932_v63 = vpop.f32.mrb[14].mxu1  ;;  %v444_v0 = vpop.f32.mrb[15].mxu0 }
 0x101   : > { %v550_v1 = vmax.f32 %v514_v56, 0.0  ;;  %v532_v2 = vmax.f32 %v442_v57, 0.0  ;;  %v517_v3 = vadd.f32 %v932_v63, %v1050_v18  ;;  %v445_v4 = vadd.f32 %v1050_v18, %v444_v0  ;;  %v508_v5 = vpop.f32.mrb[15].mxu1 }
 0x102   : > { %v861_v6 = vpack.c.bf16 %v534_v60, %v534_v60  ;;  %v548_v7 = vmax.f32 %v506_v61, 0.0  ;;  %v535_v8 = vmax.f32 %v453_v62, 0.0  ;;  %v509_v9 = vadd.f32 %v1050_v18, %v508_v5 }
 0x103   : > { %v877_v10 = vpack.c.bf16 %v550_v1, %v550_v1  ;;  %v859_v11 = vpack.c.bf16 %v532_v2, %v532_v2  ;;  %v551_v12 = vmax.f32 %v517_v3, 0.0  ;;  %v533_v13 = vmax.f32 %v445_v4, 0.0 }
 0x104   : > { %695 = vst.msk [vmem:[%s1062_s27 + $0x38] sm:$0xf] %vm680_vm1, %v861_v6  ;;  %v875_v14 = vpack.c.bf16 %v548_v7, %v548_v7  ;;  %v862_v15 = vpack.c.bf16 %v535_v8, %v535_v8  ;;  %v549_v16 = vmax.f32 %v509_v9, 0.0 }
 0x105   : > { %711 = vst.msk [vmem:[%s1062_s27 + $0x78] sm:$0xf] %vm680_vm1, %v877_v10  ;;  %693 = vst.msk [vmem:[%s1062_s27 + $0x30] sm:$0xf] %vm680_vm1, %v859_v11  ;;  %v878_v17 = vpack.c.bf16 %v551_v12, %v551_v12  ;;  %v860_v19 = vpack.c.bf16 %v533_v13, %v533_v13 }
 0x106   : > { %709 = vst.msk [vmem:[%s1062_s27 + $0x70] sm:$0xf] %vm680_vm1, %v875_v14  ;;  %696 = vst.msk [vmem:[%s1062_s27 + $0x3c] sm:$0xf] %vm680_vm1, %v862_v15  ;;  %v876_v18 = vpack.c.bf16 %v549_v16, %v549_v16 }
 0x107   : > { %712 = vst.msk [vmem:[%s1062_s27 + $0x7c] sm:$0xf] %vm680_vm1, %v878_v17  ;;  %694 = vst.msk [vmem:[%s1062_s27 + $0x34] sm:$0xf] %vm680_vm1, %v860_v19 }
 0x108   : > { %710 = vst.msk [vmem:[%s1062_s27 + $0x74] sm:$0xf] %vm680_vm1, %v876_v18 }
 0x109 PF: > { %s13_s12 = sadd.s32 1, %s969_s12  }
 0x10a   : > { %p10_p4 = scmp.ge.s32.totalorder %s13_s12, 4  }
 0x10c   :  { %12 = sbr.rel (!%p10_p4) target bundleno = 1 (0x1), region = 62 }

// kernel: unipose_forward.43
= control target key start
LH: loop header
LB: loop body
LE: loop exit
PB: predicated region body
PF: predicated region fallthrough
CT: control target
= control target key end

     0   :  { %s1847_s12 = smov 0   ;;  %s2145_s0 = inlined_call_operand.vmem [shape: bf16[512,432], index: 0, kind: input, shape index: {}]   ;;  %s2146_s1 = inlined_call_operand.vmem [shape: bf16[432,32], index: 1, kind: input, shape index: {}]   ;;  %s2147_s2 = inlined_call_operand.vmem [shape: f32[1,32], index: 2, kind: input, shape index: {}]   ;;  %s2148_s3 = inlined_call_operand.vmem [shape: bf16[512,32], index: 3, kind: output, shape index: {}]  }
   0x1 LB: > { %s1389_s13 = sadd.s32 4294967295, %s1824_s12   ;;  %p1393_p0 = scmp.ge.s32.totalorder %s1824_s12, 1  ;;  %s1824_s12 = sphi %s1847_s12, %s13_s12  }
   0x2   : > { %p139_p1 = scmp.lt.s32.totalorder %s1824_s12, 3 }
   0x4   : > { %p140_p2 = pnand %p1393_p0, %p139_p1 }
   0x5   : > { %v1695_v0 = vld [vmem:[%s2146_s1 + $0x80] sm:$0xff] (!%p140_p2)   ;;  %v1826_v1 = vmov (!%p140_p2), 0   ;;  %v1698_v4 = vld [vmem:[%s2146_s1 + $0x88] sm:$0xff] (!%p140_p2)   ;;  %v1701_v7 = vld [vmem:[%s2146_s1 + $0x90] sm:$0xff] (!%p140_p2)   ;;  %s1394_s7 = sshll.u32 (!%p140_p2), %s1389_s13, 5  ;;  %vm769_vm0 = vcmask (!%p140_p2), 392192  }
   0x6   : > { %143 = sbr.rel (%p140_p2) target bundleno = 391 (0x187), region = 32  ;;  %979 = vmatprep.subr.bf16.mxu1 (!%p140_p2), %v1826_v1  ;;  %v1696_v2 = vld [vmem:[%s2146_s1 + $0x40] sm:$0xff] (!%p140_p2)   ;;  %v1699_v5 = vld [vmem:[%s2146_s1 + $0x48] sm:$0xff] (!%p140_p2)   ;;  %v1702_v8 = vld [vmem:[%s2146_s1 + $0x50] sm:$0xff] (!%p140_p2)   ;;  %p165_p3 = scmp.lt.s32.totalorder (!%p140_p2), %s1394_s7, 63  ;;  %vm1300_vm1 = vcmask (!%p140_p2), 257024  }
   0x7   : > { %980 = vmatpush1.bf16.msra.mxu1 (!%p140_p2), %v1695_v0  ;;  %v1697_v3 = vld [vmem:[%s2146_s1] sm:$0xff] (!%p140_p2)   ;;  %1574 = vmatprep.subr.bf16.mxu0 (!%p140_p2), %v1696_v2  ;;  %v1700_v6 = vld [vmem:[%s2146_s1 + $0x8] sm:$0xff] (!%p140_p2)   ;;  %v1703_v9 = vld [vmem:[%s2146_s1 + $0x10] sm:$0xff] (!%p140_p2)  }
   0x8   : > { %981 = vmatprep.subr.bf16.mxu1 (!%p140_p2), %v1826_v1  ;;  %1575 = vmatpush3.bf16.msra.mxu0 (!%p140_p2), %v1697_v3  ;;  %v1704_v10 = vld [vmem:[%s2146_s1 + $0x98] sm:$0xff] (!%p140_p2)   ;;  %v1708_v13 = vld [vmem:[%s2146_s1 + $0x60] sm:$0xff] (!%p140_p2)   ;;  %v1711_v16 = vld [vmem:[%s2146_s1 + $0x68] sm:$0xff] (!%p140_p2)  }
   0x9   : > { %1576 = vmatprep.subr.bf16.mxu0 (!%p140_p2), %v1699_v5  ;;  %v1705_v11 = vld [vmem:[%s2146_s1 + $0x58] sm:$0xff] (!%p140_p2)   ;;  %v1707_v14 = vld [vmem:[%s2146_s1 + $0xa0] sm:$0xff] (!%p140_p2)   ;;  %v1710_v17 = vld [vmem:[%s2146_s1 + $0xa8] sm:$0xff] (!%p140_p2)  }
   0xa   : > { %v1706_v12 = vld [vmem:[%s2146_s1 + $0x18] sm:$0xff] (!%p140_p2)   ;;  %v1709_v15 = vld [vmem:[%s2146_s1 + $0x20] sm:$0xff] (!%p140_p2)   ;;  %v1712_v18 = vld [vmem:[%s2146_s1 + $0x28] sm:$0xff] (!%p140_p2)  }
   0xb   : > { %982 = vmatpush1.bf16.msra.mxu1 (!%p140_p2), %v1698_v4  ;;  %v1714_v19 = vld [vmem:[%s2146_s1 + $0x70] sm:$0xff] (!%p140_p2)   ;;  %v1716_v22 = vld [vmem:[%s2146_s1 + $0xb8] sm:$0xff] (!%p140_p2)   ;;  %v1719_v26 = vld [vmem:[%s2146_s1 + $0xc0] sm:$0xff] (!%p140_p2)  }
   0xc   : > { %983 = vmatprep.subr.bf16.mxu1 (!%p140_p2), %v1826_v1  ;;  %1577 = vmatpush3.bf16.msra.mxu0 (!%p140_p2), %v1700_v6  ;;  %v1713_v20 = vld [vmem:[%s2146_s1 + $0xb0] sm:$0xff] (!%p140_p2)   ;;  %v1717_v23 = vld [vmem:[%s2146_s1 + $0x78] sm:$0xff] (!%p140_p2)   ;;  %v1723_v30 = vld [vmem:[%s2146_s1 + $0xc8] sm:$0xff] (!%p140_p2)  }
   0xd   : > { %1578 = vmatprep.subr.bf16.mxu0 %v1702_v8  ;;  %s2150_s7 = smov (!%p165_p3, %s1394_s7), 63  ;;  %v1715_v21 = vld [vmem:[%s2146_s1 + $0x30] sm:$0xff]   ;;  %v1718_v25 = vld [vmem:[%s2146_s1 + $0x38] sm:$0xff]  }
   0xe   : > { %s1541_s25 = sshll.u32 %s2150_s7, 4  ;;  %v1724_v31 = vld [vmem:[%s2146_s1 + $0xd0] sm:$0xff]   ;;  %s1398_s24 = sshll.u32 %s2150_s7, 2 }
   0xf   : > { %984 = vmatpush1.bf16.msra.mxu1 %v1701_v7  ;;  %s1931_s8 = scalar_lea.vmem %s2145_s0, %s1541_s25  ;;  %s2046_s27 = scalar_lea.vmem %s2148_s3, %s1398_s24 }
  0x10   : > { %985 = vmatprep.subr.bf16.mxu1 %v1826_v1  ;;  %1579 = vmatpush3.bf16.msra.mxu0 %v1703_v9  ;;  %v1722_v24 = vld [vmem:[%s1931_s8 + $0x4] ss:$16 sps:$4 sm:$0xff]   ;;  %v1729_v27 = vld [vmem:[%s1931_s8 + $0xc] ss:$16 sps:$4 sm:$0xff]   ;;  %v1720_v28 = vld [vmem:[%s1931_s8] ss:$16 sps:$4 sm:$0xff]  }
  0x11   : > { %1580 = vmatprep.subr.bf16.mxu0 %v1705_v11  ;;  %850 = vmatprep.mubr.bf16.mxu0 %v1722_v24  ;;  %v1725_v29 = vld [vmem:[%s1931_s8 + $0x24] ss:$16 sps:$4 sm:$0xff]   ;;  %v1730_v32 = vld [vmem:[%s1931_s8 + $0x20] ss:$16 sps:$4 sm:$0xff]   ;;  %v1727_v34 = vld [vmem:[%s1931_s8 + $0x8] ss:$16 sps:$4 sm:$0xff]  }
  0x12   : > { %1491 = vmatprep.mubr.msk.bf16.mxu1 %vm769_vm0, %v1729_v27  ;;  %v1731_v33 = vld [vmem:[%s1931_s8 + $0x44] ss:$16 sps:$4 sm:$0xff]   ;;  %v1733_v35 = vld [vmem:[%s1931_s8 + $0x2c] ss:$16 sps:$4 sm:$0xff]   ;;  %v1735_v36 = vld [vmem:[%s1931_s8 + $0x40] ss:$16 sps:$4 sm:$0xff]  }
  0x13   : > { %986 = vmatpush1.bf16.msra.mxu1 %v1704_v10  ;;  %v1737_v37 = vld [vmem:[%s1931_s8 + $0x64] ss:$16 sps:$4 sm:$0xff]   ;;  %v1736_v38 = vld [vmem:[%s1931_s8 + $0x28] ss:$16 sps:$4 sm:$0xff]   ;;  %v1739_v39 = vld [vmem:[%s1931_s8 + $0x4c] ss:$16 sps:$4 sm:$0xff]  }
  0x14   : > { %987 = vmatprep.subr.bf16.mxu1 %v1826_v1  ;;  %1581 = vmatpush3.bf16.msra.mxu0 %v1706_v12  ;;  %v1741_v40 = vld [vmem:[%s1931_s8 + $0x60] ss:$16 sps:$4 sm:$0xff]   ;;  %v1743_v41 = vld [vmem:[%s1931_s8 + $0x84] ss:$16 sps:$4 sm:$0xff]   ;;  %v1742_v42 = vld [vmem:[%s1931_s8 + $0x48] ss:$16 sps:$4 sm:$0xff]  }
  0x15   : > { %1582 = vmatprep.subr.bf16.mxu0 %v1708_v13  ;;  %v1745_v43 = vld [vmem:[%s1931_s8 + $0x6c] ss:$16 sps:$4 sm:$0xff]   ;;  %v1747_v44 = vld [vmem:[%s1931_s8 + $0x80] ss:$16 sps:$4 sm:$0xff]   ;;  %v1749_v45 = vld [vmem:[%s1931_s8 + $0xa4] ss:$16 sps:$4 sm:$0xff]  }
  0x16   : > { %v1748_v46 = vld [vmem:[%s1931_s8 + $0x68] ss:$16 sps:$4 sm:$0xff]   ;;  %v1751_v47 = vld [vmem:[%s1931_s8 + $0x8c] ss:$16 sps:$4 sm:$0xff]   ;;  %v1753_v48 = vld [vmem:[%s1931_s8 + $0xa0] ss:$16 sps:$4 sm:$0xff]  }
  0x17   : > { %988 = vmatpush1.bf16.msra.mxu1 %v1707_v14  ;;  %v1755_v49 = vld [vmem:[%s1931_s8 + $0xc4] ss:$16 sps:$4 sm:$0xff]   ;;  %v1754_v50 = vld [vmem:[%s1931_s8 + $0x88] ss:$16 sps:$4 sm:$0xff]   ;;  %v1757_v51 = vld [vmem:[%s1931_s8 + $0xac] ss:$16 sps:$4 sm:$0xff]  }
  0x18   : > { %989 = vmatprep.subr.bf16.mxu1 %v1826_v1  ;;  %1583 = vmatpush3.bf16.msra.mxu0 %v1709_v15  ;;  %v1759_v52 = vld [vmem:[%s1931_s8 + $0xc0] ss:$16 sps:$4 sm:$0xff]   ;;  %v1761_v53 = vld [vmem:[%s1931_s8 + $0xe4] ss:$16 sps:$4 sm:$0xff]   ;;  %v1760_v54 = vld [vmem:[%s1931_s8 + $0xa8] ss:$16 sps:$4 sm:$0xff]  }
  0x19   : > { %1584 = vmatprep.subr.bf16.mxu0 %v1711_v16  ;;  %v1763_v55 = vld [vmem:[%s1931_s8 + $0xcc] ss:$16 sps:$4 sm:$0xff]   ;;  %v1765_v56 = vld [vmem:[%s1931_s8 + $0xe0] ss:$16 sps:$4 sm:$0xff]   ;;  %v1767_v57 = vld [vmem:[%s1931_s8 + $0x104] ss:$16 sps:$4 sm:$0xff]  }
  0x1a   : > { %v1766_v58 = vld [vmem:[%s1931_s8 + $0xc8] ss:$16 sps:$4 sm:$0xff]   ;;  %v1769_v59 = vld [vmem:[%s1931_s8 + $0xec] ss:$16 sps:$4 sm:$0xff]   ;;  %v1771_v60 = vld [vmem:[%s1931_s8 + $0x100] ss:$16 sps:$4 sm:$0xff]  }
  0x1b   : > { %990 = vmatpush1.bf16.msra.mxu1 %v1710_v17  ;;  %v1773_v61 = vld [vmem:[%s1931_s8 + $0x124] ss:$16 sps:$4 sm:$0xff]   ;;  %v1772_v62 = vld [vmem:[%s1931_s8 + $0xe8] ss:$16 sps:$4 sm:$0xff]   ;;  %v1775_v63 = vld [vmem:[%s1931_s8 + $0x10c] ss:$16 sps:$4 sm:$0xff]  }
  0x1c   : > { %991 = vmatprep.subr.bf16.mxu1 %v1826_v1  ;;  %1585 = vmatpush3.bf16.msra.mxu0 %v1712_v18  ;;  %v1777_v0 = vld [vmem:[%s1931_s8 + $0x120] ss:$16 sps:$4 sm:$0xff]   ;;  %v1778_v2 = vld [vmem:[%s1931_s8 + $0x108] ss:$16 sps:$4 sm:$0xff]   ;;  %v1781_v3 = vld [vmem:[%s1931_s8 + $0x12c] ss:$16 sps:$4 sm:$0xff]  }
  0x1d   : > { %1586 = vmatprep.subr.bf16.mxu0 %v1714_v19  ;;  %v1783_v4 = vld [vmem:[%s1931_s8 + $0x140] ss:$16 sps:$4 sm:$0xff]   ;;  %v1785_v5 = vld [vmem:[%s1931_s8 + $0x164] ss:$16 sps:$4 sm:$0xff]   ;;  %v1784_v6 = vld [vmem:[%s1931_s8 + $0x128] ss:$16 sps:$4 sm:$0xff]  }
  0x1e   : > { %v1787_v7 = vld [vmem:[%s1931_s8 + $0x14c] ss:$16 sps:$4 sm:$0xff]   ;;  %v1789_v8 = vld [vmem:[%s1931_s8 + $0x160] ss:$16 sps:$4 sm:$0xff]   ;;  %v1791_v9 = vld [vmem:[%s1931_s8 + $0x184] ss:$16 sps:$4 sm:$0xff]  }
  0x1f   : > { %992 = vmatpush1.bf16.msra.mxu1 %v1713_v20  ;;  %v1790_v10 = vld [vmem:[%s1931_s8 + $0x148] ss:$16 sps:$4 sm:$0xff]   ;;  %v1793_v11 = vld [vmem:[%s1931_s8 + $0x16c] ss:$16 sps:$4 sm:$0xff]   ;;  %v1795_v12 = vld [vmem:[%s1931_s8 + $0x180] ss:$16 sps:$4 sm:$0xff]  }
  0x20   : > { %993 = vmatprep.subr.bf16.mxu1 %v1826_v1  ;;  %1587 = vmatpush3.bf16.msra.mxu0 %v1715_v21  ;;  %v1797_v13 = vld [vmem:[%s1931_s8 + $0x1a4] ss:$16 sps:$4 sm:$0xff]   ;;  %v1796_v14 = vld [vmem:[%s1931_s8 + $0x168] ss:$16 sps:$4 sm:$0xff]   ;;  %v1799_v15 = vld [vmem:[%s1931_s8 + $0x18c] ss:$16 sps:$4 sm:$0xff]  }
  0x21   : > { %1588 = vmatprep.subr.bf16.mxu0 %v1717_v23  ;;  %v1801_v16 = vld [vmem:[%s1931_s8 + $0x1a0] ss:$16 sps:$4 sm:$0xff]   ;;  %v1803_v17 = vld [vmem:[%s1931_s8 + $0x1c4] ss:$16 sps:$4 sm:$0xff]   ;;  %v1802_v18 = vld [vmem:[%s1931_s8 + $0x188] ss:$16 sps:$4 sm:$0xff]  }
  0x22   : > { %v1805_v19 = vld [vmem:[%s1931_s8 + $0x1ac] ss:$16 sps:$4 sm:$0xff]   ;;  %v1807_v20 = vld [vmem:[%s1931_s8 + $0x1c0] ss:$16 sps:$4 sm:$0xff]   ;;  %v1809_v21 = vld [vmem:[%s1931_s8 + $0x1e4] ss:$16 sps:$4 sm:$0xff]  }
  0x23   : > { %994 = vmatpush1.bf16.msra.mxu1 %v1716_v22  ;;  %v1808_v22 = vld [vmem:[%s1931_s8 + $0x1a8] ss:$16 sps:$4 sm:$0xff]   ;;  %v1811_v23 = vld [vmem:[%s1931_s8 + $0x1cc] ss:$16 sps:$4 sm:$0xff]   ;;  %v1813_v24 = vld [vmem:[%s1931_s8 + $0x1e0] ss:$16 sps:$4 sm:$0xff]  }
  0x24   : > { %995 = vmatprep.subr.bf16.mxu1 %v1826_v1  ;;  %1589 = vmatpush3.bf16.msra.mxu0 %v1718_v25  ;;  %v1814_v25 = vld [vmem:[%s1931_s8 + $0x1c8] ss:$16 sps:$4 sm:$0xff]  }
  0x25   : > { %v1817_v27 = vld [vmem:[%s1931_s8 + $0x1e8] ss:$16 sps:$4 sm:$0xff]  }
  0x27   : > { %996 = vmatpush1.bf16.msra.mxu1 %v1719_v26  ;;  %851 = vmatmul.mubr.bf16.vlgmr.msra.gmra.mrb[0].mxu0 %v1720_v28  ;;  %v1815_v26 = vld [vmem:[%s1931_s8 + $0x1ec] ss:$16 sps:$4 sm:$0xff]  }
  0x28   : > { %997 = vmatprep.subr.bf16.mxu1 %v1826_v1  ;;  %858 = vmatprep.mubr.bf16.mxu0 %v1725_v29 }
  0x2b   : > { %998 = vmatpush1.bf16.msra.mxu1 %v1723_v30 }
  0x2c   : > { %999 = vmatprep.subr.bf16.mxu1 %v1826_v1  ;;  %v1779_v1 = vld [vmem:[%s1931_s8 + $0x144] ss:$16 sps:$4 sm:$0xff]  }
  0x2f   : > { %1000 = vmatpush1.bf16.msra.mxu1 %v1724_v31  ;;  %859 = vmatmul.mubr.bf16.gmra.mrb[4].mxu0 %v1730_v32 }
  0x30   : > { %866 = vmatprep.mubr.bf16.mxu0 %v1731_v33 }
  0x32   : > { %1012 = vmatmul.mubr.bf16.vlgmr.msra.gmra.mrb[0].mxu1 %v1727_v34  ;;  %v2038_v34 = vld [vmem:[%s2147_s2] ss:$0 sm:$0xff] }
  0x33   : > { %1492 = vmatprep.mubr.msk.bf16.mxu1 %vm769_vm0, %v1733_v35 }
  0x37   : > { %867 = vmatmul.mubr.bf16.gmra.mrb[8].mxu0 %v1735_v36 }
  0x38   : > { %874 = vmatprep.mubr.bf16.mxu0 %v1737_v37 }
  0x3a   : > { %1020 = vmatmul.mubr.bf16.gmra.mrb[4].mxu1 %v1736_v38 }
  0x3b   : > { %1493 = vmatprep.mubr.msk.bf16.mxu1 %vm769_vm0, %v1739_v39 }
  0x3f   : > { %875 = vmatmul.mubr.bf16.gmra.mrb[12].mxu0 %v1741_v40 }
  0x40   : > { %882 = vmatprep.mubr.bf16.mxu0 %v1743_v41 }
  0x42   : > { %1028 = vmatmul.mubr.bf16.gmra.mrb[8].mxu1 %v1742_v42 }
  0x43   : > { %1494 = vmatprep.mubr.msk.bf16.mxu1 %vm769_vm0, %v1745_v43 }
  0x47   : > { %883 = vmatmul.mubr.bf16.gmra.mrb[16].mxu0 %v1747_v44 }
  0x48   : > { %890 = vmatprep.mubr.bf16.mxu0 %v1749_v45 }
  0x4a   : > { %1036 = vmatmul.mubr.bf16.gmra.mrb[12].mxu1 %v1748_v46 }
  0x4b   : > { %1495 = vmatprep.mubr.msk.bf16.mxu1 %vm769_vm0, %v1751_v47 }
  0x4f   : > { %891 = vmatmul.mubr.bf16.gmra.mrb[20].mxu0 %v1753_v48 }
  0x50   : > { %898 = vmatprep.mubr.bf16.mxu0 %v1755_v49 }
  0x52   : > { %1044 = vmatmul.mubr.bf16.gmra.mrb[16].mxu1 %v1754_v50 }
  0x53   : > { %1496 = vmatprep.mubr.msk.bf16.mxu1 %vm769_vm0, %v1757_v51 }
  0x57   : > { %899 = vmatmul.mubr.bf16.gmra.mrb[24].mxu0 %v1759_v52 }
  0x58   : > { %906 = vmatprep.mubr.bf16.mxu0 %v1761_v53 }
  0x5a   : > { %1052 = vmatmul.mubr.bf16.gmra.mrb[20].mxu1 %v1760_v54 }
  0x5b   : > { %1497 = vmatprep.mubr.msk.bf16.mxu1 %vm769_vm0, %v1763_v55 }
  0x5f   : > { %907 = vmatmul.mubr.bf16.gmra.mrb[28].mxu0 %v1765_v56 }
  0x60   : > { %914 = vmatprep.mubr.bf16.mxu0 %v1767_v57 }
  0x62   : > { %1060 = vmatmul.mubr.bf16.gmra.mrb[24].mxu1 %v1766_v58 }
  0x63   : > { %1498 = vmatprep.mubr.msk.bf16.mxu1 %vm769_vm0, %v1769_v59 }
  0x67   : > { %915 = vmatmul.mubr.bf16.gmra.mrb[32].mxu0 %v1771_v60 }
  0x68   : > { %922 = vmatprep.mubr.bf16.mxu0 %v1773_v61 }
  0x6a   : > { %1068 = vmatmul.mubr.bf16.gmra.mrb[28].mxu1 %v1772_v62 }
  0x6b   : > { %1499 = vmatprep.mubr.msk.bf16.mxu1 %vm769_vm0, %v1775_v63 }
  0x6f   : > { %923 = vmatmul.mubr.bf16.gmra.mrb[36].mxu0 %v1777_v0 }
  0x70   : > { %930 = vmatprep.mubr.bf16.mxu0 %v1779_v1 }
  0x72   : > { %1076 = vmatmul.mubr.bf16.gmra.mrb[32].mxu1 %v1778_v2 }
  0x73   : > { %1500 = vmatprep.mubr.msk.bf16.mxu1 %vm769_vm0, %v1781_v3 }
  0x77   : > { %931 = vmatmul.mubr.bf16.gmra.mrb[40].mxu0 %v1783_v4 }
  0x78   : > { %938 = vmatprep.mubr.bf16.mxu0 %v1785_v5 }
  0x7a   : > { %1084 = vmatmul.mubr.bf16.gmra.mrb[36].mxu1 %v1784_v6 }
  0x7b   : > { %1501 = vmatprep.mubr.msk.bf16.mxu1 %vm769_vm0, %v1787_v7 }
  0x7f   : > { %939 = vmatmul.mubr.bf16.gmra.mrb[44].mxu0 %v1789_v8 }
  0x80   : > { %946 = vmatprep.mubr.bf16.mxu0 %v1791_v9 }
  0x82   : > { %1092 = vmatmul.mubr.bf16.gmra.mrb[40].mxu1 %v1790_v10 }
  0x83   : > { %1502 = vmatprep.mubr.msk.bf16.mxu1 %vm769_vm0, %v1793_v11 }
  0x87   : > { %947 = vmatmul.mubr.bf16.gmra.mrb[48].mxu0 %v1795_v12 }
  0x88   : > { %954 = vmatprep.mubr.bf16.mxu0 %v1797_v13 }
  0x8a   : > { %1100 = vmatmul.mubr.bf16.gmra.mrb[44].mxu1 %v1796_v14 }
  0x8b   : > { %1503 = vmatprep.mubr.msk.bf16.mxu1 %vm769_vm0, %v1799_v15 }
  0x8f   : > { %955 = vmatmul.mubr.bf16.gmra.mrb[52].mxu0 %v1801_v16 }
  0x90   : > { %962 = vmatprep.mubr.bf16.mxu0 %v1803_v17 }
  0x92   : > { %1108 = vmatmul.mubr.bf16.gmra.mrb[48].mxu1 %v1802_v18 }
  0x93   : > { %1504 = vmatprep.mubr.msk.bf16.mxu1 %vm769_vm0, %v1805_v19 }
  0x97   : > { %963 = vmatmul.mubr.bf16.gmra.mrb[56].mxu0 %v1807_v20 }
  0x98   : > { %970 = vmatprep.mubr.bf16.mxu0 %v1809_v21 }
  0x9a   : > { %1116 = vmatmul.mubr.bf16.gmra.mrb[52].mxu1 %v1808_v22 }
  0x9b   : > { %1505 = vmatprep.mubr.msk.bf16.mxu1 %vm769_vm0, %v1811_v23 }
  0x9f   : > { %971 = vmatmul.mubr.bf16.gmra.mrb[60].mxu0 %v1813_v24 }
  0xa2   : > { %1124 = vmatmul.mubr.bf16.gmra.mrb[56].mxu1 %v1814_v25 }
  0xa3   : > { %1506 = vmatprep.mubr.msk.bf16.mxu1 %vm769_vm0, %v1815_v26 }
  0xaa   : > { %1132 = vmatmul.mubr.bf16.gmra.mrb[60].mxu1 %v1817_v27 }
  0xfa   : > { %v1590_v28 = vpop.f32.mrb[0].mxu0 }
  0xfb   : > { %v1591_v29 = vpop.f32.mrb[1].mxu0 }
  0xfc   : > { %v1592_v30 = vadd.f32 %v1591_v29, %v1590_v28  ;;  %v1593_v31 = vpop.f32.mrb[2].mxu0 }
  0xfd   : > { %v1594_v32 = vpop.f32.mrb[3].mxu0 }
  0xfe   : > { %v1595_v33 = vadd.f32 %v1594_v32, %v1593_v31  ;;  %v853_v35 = vadd.f32 %v1592_v30, %v2038_v34 }
 0x100   : > { %v856_v43 = vadd.f32 %v1595_v33, %v2038_v34 }
 0x102   : > { %v1596_v36 = vpop.f32.mrb[4].mxu0 }
 0x103   : > { %v1597_v37 = vpop.f32.mrb[5].mxu0 }
 0x104   : > { %v1598_v39 = vadd.f32 %v1597_v37, %v1596_v36  ;;  %v1599_v40 = vpop.f32.mrb[6].mxu0 }
 0x105   : > { %v1013_v38 = vpop.f32.mrb[0].mxu1  ;;  %v1600_v44 = vpop.f32.mrb[7].mxu0 }
 0x106   : > { %v1014_v41 = vadd.f32 %v1013_v38, %v853_v35  ;;  %v1015_v42 = vpop.f32.mrb[1].mxu1  ;;  %v1601_v46 = vadd.f32 %v1600_v44, %v1599_v40  ;;  %v861_v52 = vadd.f32 %v1598_v39, %v2038_v34 }
 0x107   : > { %v1016_v45 = vpop.f32.mrb[2].mxu1 }
 0x108   : > { %v1140_v47 = vmax.f32 %v1014_v41, 0.0  ;;  %v1017_v48 = vadd.f32 %v1016_v45, %v856_v43  ;;  %v1018_v49 = vpop.f32.mrb[3].mxu1  ;;  %v864_v61 = vadd.f32 %v1601_v46, %v2038_v34 }
 0x10a   : > { %v1542_v50 = vpack.c.bf16 %v1140_v47, %v1140_v47  ;;  %v1141_v51 = vmax.f32 %v1017_v48, 0.0  ;;  %v1602_v53 = vpop.f32.mrb[8].mxu0 }
 0x10b   : > { %v1603_v55 = vpop.f32.mrb[9].mxu0 }
 0x10c   : > { %1301 = vst.msk [vmem:[%s2046_s27] sm:$0xf] %vm1300_vm1, %v1542_v50  ;;  %v1543_v54 = vpack.c.bf16 %v1141_v51, %v1141_v51  ;;  %v1604_v57 = vadd.f32 %v1603_v55, %v1602_v53  ;;  %v1605_v58 = vpop.f32.mrb[10].mxu0 }
 0x10d   : > { %v1021_v56 = vpop.f32.mrb[4].mxu1  ;;  %v1606_v62 = vpop.f32.mrb[11].mxu0 }
 0x10e   : > { %1302 = vst.msk [vmem:[%s2046_s27 + $0x4] sm:$0xf] %vm1300_vm1, %v1543_v54  ;;  %v1022_v59 = vadd.f32 %v1021_v56, %v861_v52  ;;  %v1023_v60 = vpop.f32.mrb[5].mxu1  ;;  %v1607_v0 = vadd.f32 %v1606_v62, %v1605_v58  ;;  %v869_v6 = vadd.f32 %v1604_v57, %v2038_v34 }
 0x10f   : > { %v1024_v63 = vpop.f32.mrb[6].mxu1 }
 0x110   : > { %v1142_v1 = vmax.f32 %v1022_v59, 0.0  ;;  %v1025_v2 = vadd.f32 %v1024_v63, %v864_v61  ;;  %v1026_v3 = vpop.f32.mrb[7].mxu1  ;;  %v872_v15 = vadd.f32 %v1607_v0, %v2038_v34 }
 0x112   : > { %v1544_v4 = vpack.c.bf16 %v1142_v1, %v1142_v1  ;;  %v1143_v5 = vmax.f32 %v1025_v2, 0.0  ;;  %v1608_v7 = vpop.f32.mrb[12].mxu0 }
 0x113   : > { %v1609_v9 = vpop.f32.mrb[13].mxu0 }
 0x114   : > { %1303 = vst.msk [vmem:[%s2046_s27 + $0x8] sm:$0xf] %vm1300_vm1, %v1544_v4  ;;  %v1545_v8 = vpack.c.bf16 %v1143_v5, %v1143_v5  ;;  %v1610_v11 = vadd.f32 %v1609_v9, %v1608_v7  ;;  %v1611_v12 = vpop.f32.mrb[14].mxu0 }
 0x115   : > { %v1029_v10 = vpop.f32.mrb[8].mxu1  ;;  %v1612_v16 = vpop.f32.mrb[15].mxu0 }
 0x116   : > { %1304 = vst.msk [vmem:[%s2046_s27 + $0xc] sm:$0xf] %vm1300_vm1, %v1545_v8  ;;  %v1030_v13 = vadd.f32 %v1029_v10, %v869_v6  ;;  %v1031_v14 = vpop.f32.mrb[9].mxu1  ;;  %v1613_v18 = vadd.f32 %v1612_v16, %v1611_v12  ;;  %v877_v24 = vadd.f32 %v1610_v11, %v2038_v34 }
 0x117   : > { %v1032_v17 = vpop.f32.mrb[10].mxu1 }
 0x118   : > { %v1144_v19 = vmax.f32 %v1030_v13, 0.0  ;;  %v1033_v20 = vadd.f32 %v1032_v17, %v872_v15  ;;  %v1034_v21 = vpop.f32.mrb[11].mxu1  ;;  %v880_v33 = vadd.f32 %v1613_v18, %v2038_v34 }
 0x11a   : > { %v1546_v22 = vpack.c.bf16 %v1144_v19, %v1144_v19  ;;  %v1145_v23 = vmax.f32 %v1033_v20, 0.0  ;;  %v1614_v25 = vpop.f32.mrb[16].mxu0 }
 0x11b   : > { %v1615_v27 = vpop.f32.mrb[17].mxu0 }
 0x11c   : > { %1305 = vst.msk [vmem:[%s2046_s27 + $0x10] sm:$0xf] %vm1300_vm1, %v1546_v22  ;;  %v1547_v26 = vpack.c.bf16 %v1145_v23, %v1145_v23  ;;  %v1616_v29 = vadd.f32 %v1615_v27, %v1614_v25  ;;  %v1617_v30 = vpop.f32.mrb[18].mxu0 }
 0x11d   : > { %v1037_v28 = vpop.f32.mrb[12].mxu1  ;;  %v1618_v35 = vpop.f32.mrb[19].mxu0 }
 0x11e   : > { %1306 = vst.msk [vmem:[%s2046_s27 + $0x14] sm:$0xf] %vm1300_vm1, %v1547_v26  ;;  %v1038_v31 = vadd.f32 %v1037_v28, %v877_v24  ;;  %v1039_v32 = vpop.f32.mrb[13].mxu1  ;;  %v1619_v37 = vadd.f32 %v1618_v35, %v1617_v30  ;;  %v885_v43 = vadd.f32 %v1616_v29, %v2038_v34 }
 0x11f   : > { %v1040_v36 = vpop.f32.mrb[14].mxu1 }
 0x120   : > { %v1146_v38 = vmax.f32 %v1038_v31, 0.0  ;;  %v1041_v39 = vadd.f32 %v1040_v36, %v880_v33  ;;  %v1042_v40 = vpop.f32.mrb[15].mxu1  ;;  %v888_v52 = vadd.f32 %v1619_v37, %v2038_v34 }
 0x122   : > { %v1548_v41 = vpack.c.bf16 %v1146_v38, %v1146_v38  ;;  %v1147_v42 = vmax.f32 %v1041_v39, 0.0  ;;  %v1620_v44 = vpop.f32.mrb[20].mxu0 }
 0x123   : > { %v1621_v46 = vpop.f32.mrb[21].mxu0 }
 0x124   : > { %1307 = vst.msk [vmem:[%s2046_s27 + $0x18] sm:$0xf] %vm1300_vm1, %v1548_v41  ;;  %v1549_v45 = vpack.c.bf16 %v1147_v42, %v1147_v42  ;;  %v1622_v48 = vadd.f32 %v1621_v46, %v1620_v44  ;;  %v1623_v49 = vpop.f32.mrb[22].mxu0 }
 0x125   : > { %v1045_v47 = vpop.f32.mrb[16].mxu1  ;;  %v1624_v53 = vpop.f32.mrb[23].mxu0 }
 0x126   : > { %1308 = vst.msk [vmem:[%s2046_s27 + $0x1c] sm:$0xf] %vm1300_vm1, %v1549_v45  ;;  %v1046_v50 = vadd.f32 %v1045_v47, %v885_v43  ;;  %v1047_v51 = vpop.f32.mrb[17].mxu1  ;;  %v1625_v55 = vadd.f32 %v1624_v53, %v1623_v49  ;;  %v893_v61 = vadd.f32 %v1622_v48, %v2038_v34 }
 0x127   : > { %v1048_v54 = vpop.f32.mrb[18].mxu1 }
 0x128   : > { %v1148_v56 = vmax.f32 %v1046_v50, 0.0  ;;  %v1049_v57 = vadd.f32 %v1048_v54, %v888_v52  ;;  %v1050_v58 = vpop.f32.mrb[19].mxu1  ;;  %v896_v6 = vadd.f32 %v1625_v55, %v2038_v34 }
 0x12a   : > { %v1550_v59 = vpack.c.bf16 %v1148_v56, %v1148_v56  ;;  %v1149_v60 = vmax.f32 %v1049_v57, 0.0  ;;  %v1626_v62 = vpop.f32.mrb[24].mxu0 }
 0x12b   : > { %v1627_v0 = vpop.f32.mrb[25].mxu0 }
 0x12c   : > { %1309 = vst.msk [vmem:[%s2046_s27 + $0x20] sm:$0xf] %vm1300_vm1, %v1550_v59  ;;  %v1551_v63 = vpack.c.bf16 %v1149_v60, %v1149_v60  ;;  %v1628_v2 = vadd.f32 %v1627_v0, %v1626_v62  ;;  %v1629_v3 = vpop.f32.mrb[26].mxu0 }
 0x12d   : > { %v1053_v1 = vpop.f32.mrb[20].mxu1  ;;  %v1630_v7 = vpop.f32.mrb[27].mxu0 }
 0x12e   : > { %1310 = vst.msk [vmem:[%s2046_s27 + $0x24] sm:$0xf] %vm1300_vm1, %v1551_v63  ;;  %v1054_v4 = vadd.f32 %v1053_v1, %v893_v61  ;;  %v1055_v5 = vpop.f32.mrb[21].mxu1  ;;  %v1631_v9 = vadd.f32 %v1630_v7, %v1629_v3  ;;  %v901_v15 = vadd.f32 %v1628_v2, %v2038_v34 }
 0x12f   : > { %v1056_v8 = vpop.f32.mrb[22].mxu1 }
 0x130   : > { %v1150_v10 = vmax.f32 %v1054_v4, 0.0  ;;  %v1057_v11 = vadd.f32 %v1056_v8, %v896_v6  ;;  %v1058_v12 = vpop.f32.mrb[23].mxu1  ;;  %v904_v24 = vadd.f32 %v1631_v9, %v2038_v34 }
 0x132   : > { %v1552_v13 = vpack.c.bf16 %v1150_v10, %v1150_v10  ;;  %v1151_v14 = vmax.f32 %v1057_v11, 0.0  ;;  %v1632_v16 = vpop.f32.mrb[28].mxu0 }
 0x133   : > { %v1633_v18 = vpop.f32.mrb[29].mxu0 }
 0x134   : > { %1311 = vst.msk [vmem:[%s2046_s27 + $0x28] sm:$0xf] %vm1300_vm1, %v1552_v13  ;;  %v1553_v17 = vpack.c.bf16 %v1151_v14, %v1151_v14  ;;  %v1634_v20 = vadd.f32 %v1633_v18, %v1632_v16  ;;  %v1635_v21 = vpop.f32.mrb[30].mxu0 }
 0x135   : > { %v1061_v19 = vpop.f32.mrb[24].mxu1  ;;  %v1636_v25 = vpop.f32.mrb[31].mxu0 }
 0x136   : > { %1312 = vst.msk [vmem:[%s2046_s27 + $0x2c] sm:$0xf] %vm1300_vm1, %v1553_v17  ;;  %v1062_v22 = vadd.f32 %v1061_v19, %v901_v15  ;;  %v1063_v23 = vpop.f32.mrb[25].mxu1  ;;  %v1637_v27 = vadd.f32 %v1636_v25, %v1635_v21  ;;  %v909_v33 = vadd.f32 %v1634_v20, %v2038_v34 }
 0x137   : > { %v1064_v26 = vpop.f32.mrb[26].mxu1 }
 0x138   : > { %v1152_v28 = vmax.f32 %v1062_v22, 0.0  ;;  %v1065_v29 = vadd.f32 %v1064_v26, %v904_v24  ;;  %v1066_v30 = vpop.f32.mrb[27].mxu1  ;;  %v912_v43 = vadd.f32 %v1637_v27, %v2038_v34 }
 0x13a   : > { %v1554_v31 = vpack.c.bf16 %v1152_v28, %v1152_v28  ;;  %v1153_v32 = vmax.f32 %v1065_v29, 0.0  ;;  %v1638_v35 = vpop.f32.mrb[32].mxu0 }
 0x13b   : > { %v1639_v37 = vpop.f32.mrb[33].mxu0 }
 0x13c   : > { %1313 = vst.msk [vmem:[%s2046_s27 + $0x30] sm:$0xf] %vm1300_vm1, %v1554_v31  ;;  %v1555_v36 = vpack.c.bf16 %v1153_v32, %v1153_v32  ;;  %v1640_v39 = vadd.f32 %v1639_v37, %v1638_v35  ;;  %v1641_v40 = vpop.f32.mrb[34].mxu0 }
 0x13d   : > { %v1069_v38 = vpop.f32.mrb[28].mxu1  ;;  %v1642_v44 = vpop.f32.mrb[35].mxu0 }
 0x13e   : > { %1314 = vst.msk [vmem:[%s2046_s27 + $0x34] sm:$0xf] %vm1300_vm1, %v1555_v36  ;;  %v1070_v41 = vadd.f32 %v1069_v38, %v909_v33  ;;  %v1071_v42 = vpop.f32.mrb[29].mxu1  ;;  %v1643_v46 = vadd.f32 %v1642_v44, %v1641_v40  ;;  %v917_v52 = vadd.f32 %v1640_v39, %v2038_v34 }
 0x13f   : > { %v1072_v45 = vpop.f32.mrb[30].mxu1 }
 0x140   : > { %v1154_v47 = vmax.f32 %v1070_v41, 0.0  ;;  %v1073_v48 = vadd.f32 %v1072_v45, %v912_v43  ;;  %v1074_v49 = vpop.f32.mrb[31].mxu1  ;;  %v920_v61 = vadd.f32 %v1643_v46, %v2038_v34 }
 0x142   : > { %v1556_v50 = vpack.c.bf16 %v1154_v47, %v1154_v47  ;;  %v1155_v51 = vmax.f32 %v1073_v48, 0.0  ;;  %v1644_v53 = vpop.f32.mrb[36].mxu0 }
 0x143   : > { %v1645_v55 = vpop.f32.mrb[37].mxu0 }
 0x144   : > { %1315 = vst.msk [vmem:[%s2046_s27 + $0x38] sm:$0xf] %vm1300_vm1, %v1556_v50  ;;  %v1557_v54 = vpack.c.bf16 %v1155_v51, %v1155_v51  ;;  %v1646_v57 = vadd.f32 %v1645_v55, %v1644_v53  ;;  %v1647_v58 = vpop.f32.mrb[38].mxu0 }
 0x145   : > { %v1077_v56 = vpop.f32.mrb[32].mxu1  ;;  %v1648_v62 = vpop.f32.mrb[39].mxu0 }
 0x146   : > { %1316 = vst.msk [vmem:[%s2046_s27 + $0x3c] sm:$0xf] %vm1300_vm1, %v1557_v54  ;;  %v1078_v59 = vadd.f32 %v1077_v56, %v917_v52  ;;  %v1079_v60 = vpop.f32.mrb[33].mxu1  ;;  %v1649_v0 = vadd.f32 %v1648_v62, %v1647_v58  ;;  %v925_v6 = vadd.f32 %v1646_v57, %v2038_v34 }
 0x147   : > { %v1080_v63 = vpop.f32.mrb[34].mxu1 }
 0x148   : > { %v1156_v1 = vmax.f32 %v1078_v59, 0.0  ;;  %v1081_v2 = vadd.f32 %v1080_v63, %v920_v61  ;;  %v1082_v3 = vpop.f32.mrb[35].mxu1  ;;  %v928_v15 = vadd.f32 %v1649_v0, %v2038_v34 }
 0x14a   : > { %v1558_v4 = vpack.c.bf16 %v1156_v1, %v1156_v1  ;;  %v1157_v5 = vmax.f32 %v1081_v2, 0.0  ;;  %v1650_v7 = vpop.f32.mrb[40].mxu0 }
 0x14b   : > { %v1651_v9 = vpop.f32.mrb[41].mxu0 }
 0x14c   : > { %1317 = vst.msk [vmem:[%s2046_s27 + $0x40] sm:$0xf] %vm1300_vm1, %v1558_v4  ;;  %v1559_v8 = vpack.c.bf16 %v1157_v5, %v1157_v5  ;;  %v1652_v11 = vadd.f32 %v1651_v9, %v1650_v7  ;;  %v1653_v12 = vpop.f32.mrb[42].mxu0 }
 0x14d   : > { %v1085_v10 = vpop.f32.mrb[36].mxu1  ;;  %v1654_v16 = vpop.f32.mrb[43].mxu0 }
 0x14e   : > { %1318 = vst.msk [vmem:[%s2046_s27 + $0x44] sm:$0xf] %vm1300_vm1, %v1559_v8  ;;  %v1086_v13 = vadd.f32 %v1085_v10, %v925_v6  ;;  %v1087_v14 = vpop.f32.mrb[37].mxu1  ;;  %v1655_v18 = vadd.f32 %v1654_v16, %v1653_v12  ;;  %v933_v24 = vadd.f32 %v1652_v11, %v2038_v34 }
 0x14f   : > { %v1088_v17 = vpop.f32.mrb[38].mxu1 }
 0x150   : > { %v1158_v19 = vmax.f32 %v1086_v13, 0.0  ;;  %v1089_v20 = vadd.f32 %v1088_v17, %v928_v15  ;;  %v1090_v21 = vpop.f32.mrb[39].mxu1  ;;  %v936_v33 = vadd.f32 %v1655_v18, %v2038_v34 }
 0x152   : > { %v1560_v22 = vpack.c.bf16 %v1158_v19, %v1158_v19  ;;  %v1159_v23 = vmax.f32 %v1089_v20, 0.0  ;;  %v1656_v25 = vpop.f32.mrb[44].mxu0 }
 0x153   : > { %v1657_v27 = vpop.f32.mrb[45].mxu0 }
 0x154   : > { %1319 = vst.msk [vmem:[%s2046_s27 + $0x48] sm:$0xf] %vm1300_vm1, %v1560_v22  ;;  %v1561_v26 = vpack.c.bf16 %v1159_v23, %v1159_v23  ;;  %v1658_v29 = vadd.f32 %v1657_v27, %v1656_v25  ;;  %v1659_v30 = vpop.f32.mrb[46].mxu0 }
 0x155   : > { %v1093_v28 = vpop.f32.mrb[40].mxu1  ;;  %v1660_v35 = vpop.f32.mrb[47].mxu0 }
 0x156   : > { %1320 = vst.msk [vmem:[%s2046_s27 + $0x4c] sm:$0xf] %vm1300_vm1, %v1561_v26  ;;  %v1094_v31 = vadd.f32 %v1093_v28, %v933_v24  ;;  %v1095_v32 = vpop.f32.mrb[41].mxu1  ;;  %v1661_v37 = vadd.f32 %v1660_v35, %v1659_v30  ;;  %v941_v43 = vadd.f32 %v1658_v29, %v2038_v34 }
 0x157   : > { %v1096_v36 = vpop.f32.mrb[42].mxu1 }
 0x158   : > { %v1160_v38 = vmax.f32 %v1094_v31, 0.0  ;;  %v1097_v39 = vadd.f32 %v1096_v36, %v936_v33  ;;  %v1098_v40 = vpop.f32.mrb[43].mxu1  ;;  %v944_v52 = vadd.f32 %v1661_v37, %v2038_v34 }
 0x15a   : > { %v1562_v41 = vpack.c.bf16 %v1160_v38, %v1160_v38  ;;  %v1161_v42 = vmax.f32 %v1097_v39, 0.0  ;;  %v1662_v44 = vpop.f32.mrb[48].mxu0 }
 0x15b   : > { %v1663_v46 = vpop.f32.mrb[49].mxu0 }
 0x15c   : > { %1321 = vst.msk [vmem:[%s2046_s27 + $0x50] sm:$0xf] %vm1300_vm1, %v1562_v41  ;;  %v1563_v45 = vpack.c.bf16 %v1161_v42, %v1161_v42  ;;  %v1664_v48 = vadd.f32 %v1663_v46, %v1662_v44  ;;  %v1665_v49 = vpop.f32.mrb[50].mxu0 }
 0x15d   : > { %v1101_v47 = vpop.f32.mrb[44].mxu1  ;;  %v1666_v53 = vpop.f32.mrb[51].mxu0 }
 0x15e   : > { %1322 = vst.msk [vmem:[%s2046_s27 + $0x54] sm:$0xf] %vm1300_vm1, %v1563_v45  ;;  %v1102_v50 = vadd.f32 %v1101_v47, %v941_v43  ;;  %v1103_v51 = vpop.f32.mrb[45].mxu1  ;;  %v1667_v55 = vadd.f32 %v1666_v53, %v1665_v49  ;;  %v949_v61 = vadd.f32 %v1664_v48, %v2038_v34 }
 0x15f   : > { %v1104_v54 = vpop.f32.mrb[46].mxu1 }
 0x160   : > { %v1162_v56 = vmax.f32 %v1102_v50, 0.0  ;;  %v1105_v57 = vadd.f32 %v1104_v54, %v944_v52  ;;  %v1106_v58 = vpop.f32.mrb[47].mxu1  ;;  %v952_v6 = vadd.f32 %v1667_v55, %v2038_v34 }
 0x162   : > { %v1564_v59 = vpack.c.bf16 %v1162_v56, %v1162_v56  ;;  %v1163_v60 = vmax.f32 %v1105_v57, 0.0  ;;  %v1668_v62 = vpop.f32.mrb[52].mxu0 }
 0x163   : > { %v1669_v0 = vpop.f32.mrb[53].mxu0 }
 0x164   : > { %1323 = vst.msk [vmem:[%s2046_s27 + $0x58] sm:$0xf] %vm1300_vm1, %v1564_v59  ;;  %v1565_v63 = vpack.c.bf16 %v1163_v60, %v1163_v60  ;;  %v1670_v2 = vadd.f32 %v1669_v0, %v1668_v62  ;;  %v1671_v3 = vpop.f32.mrb[54].mxu0 }
 0x165   : > { %v1109_v1 = vpop.f32.mrb[48].mxu1  ;;  %v1672_v7 = vpop.f32.mrb[55].mxu0 }
 0x166   : > { %1324 = vst.msk [vmem:[%s2046_s27 + $0x5c] sm:$0xf] %vm1300_vm1, %v1565_v63  ;;  %v1110_v4 = vadd.f32 %v1109_v1, %v949_v61  ;;  %v1111_v5 = vpop.f32.mrb[49].mxu1  ;;  %v1673_v9 = vadd.f32 %v1672_v7, %v1671_v3  ;;  %v957_v15 = vadd.f32 %v1670_v2, %v2038_v34 }
 0x167   : > { %v1112_v8 = vpop.f32.mrb[50].mxu1 }
 0x168   : > { %v1164_v10 = vmax.f32 %v1110_v4, 0.0  ;;  %v1113_v11 = vadd.f32 %v1112_v8, %v952_v6  ;;  %v1114_v12 = vpop.f32.mrb[51].mxu1  ;;  %v960_v24 = vadd.f32 %v1673_v9, %v2038_v34 }
 0x16a   : > { %v1566_v13 = vpack.c.bf16 %v1164_v10, %v1164_v10  ;;  %v1165_v14 = vmax.f32 %v1113_v11, 0.0  ;;  %v1674_v16 = vpop.f32.mrb[56].mxu0 }
 0x16b   : > { %v1675_v18 = vpop.f32.mrb[57].mxu0 }
 0x16c   : > { %1325 = vst.msk [vmem:[%s2046_s27 + $0x60] sm:$0xf] %vm1300_vm1, %v1566_v13  ;;  %v1567_v17 = vpack.c.bf16 %v1165_v14, %v1165_v14  ;;  %v1676_v20 = vadd.f32 %v1675_v18, %v1674_v16  ;;  %v1677_v21 = vpop.f32.mrb[58].mxu0 }
 0x16d   : > { %v1117_v19 = vpop.f32.mrb[52].mxu1  ;;  %v1678_v25 = vpop.f32.mrb[59].mxu0 }
 0x16e   : > { %1326 = vst.msk [vmem:[%s2046_s27 + $0x64] sm:$0xf] %vm1300_vm1, %v1567_v17  ;;  %v1118_v22 = vadd.f32 %v1117_v19, %v957_v15  ;;  %v1119_v23 = vpop.f32.mrb[53].mxu1  ;;  %v1679_v27 = vadd.f32 %v1678_v25, %v1677_v21  ;;  %v965_v33 = vadd.f32 %v1676_v20, %v2038_v34 }
 0x16f   : > { %v1120_v26 = vpop.f32.mrb[54].mxu1 }
 0x170   : > { %v1166_v28 = vmax.f32 %v1118_v22, 0.0  ;;  %v1121_v29 = vadd.f32 %v1120_v26, %v960_v24  ;;  %v1122_v30 = vpop.f32.mrb[55].mxu1  ;;  %v968_v43 = vadd.f32 %v1679_v27, %v2038_v34 }
 0x172   : > { %v1568_v31 = vpack.c.bf16 %v1166_v28, %v1166_v28  ;;  %v1167_v32 = vmax.f32 %v1121_v29, 0.0  ;;  %v1680_v35 = vpop.f32.mrb[60].mxu0 }
 0x173   : > { %v1681_v37 = vpop.f32.mrb[61].mxu0 }
 0x174   : > { %1327 = vst.msk [vmem:[%s2046_s27 + $0x68] sm:$0xf] %vm1300_vm1, %v1568_v31  ;;  %v1569_v36 = vpack.c.bf16 %v1167_v32, %v1167_v32  ;;  %v1682_v39 = vadd.f32 %v1681_v37, %v1680_v35  ;;  %v1683_v40 = vpop.f32.mrb[62].mxu0 }
 0x175   : > { %v1125_v38 = vpop.f32.mrb[56].mxu1  ;;  %v1684_v44 = vpop.f32.mrb[63].mxu0 }
 0x176   : > { %1328 = vst.msk [vmem:[%s2046_s27 + $0x6c] sm:$0xf] %vm1300_vm1, %v1569_v36  ;;  %v1126_v41 = vadd.f32 %v1125_v38, %v965_v33  ;;  %v1127_v42 = vpop.f32.mrb[57].mxu1  ;;  %v1685_v46 = vadd.f32 %v1684_v44, %v1683_v40  ;;  %v973_v52 = vadd.f32 %v1682_v39, %v2038_v34 }
 0x177   : > { %v1128_v45 = vpop.f32.mrb[58].mxu1 }
 0x178   : > { %v1168_v47 = vmax.f32 %v1126_v41, 0.0  ;;  %v1129_v48 = vadd.f32 %v1128_v45, %v968_v43  ;;  %v1130_v49 = vpop.f32.mrb[59].mxu1  ;;  %v976_v57 = vadd.f32 %v1685_v46, %v2038_v34 }
 0x17a   : > { %v1570_v50 = vpack.c.bf16 %v1168_v47, %v1168_v47  ;;  %v1169_v51 = vmax.f32 %v1129_v48, 0.0 }
 0x17c   : > { %1329 = vst.msk [vmem:[%s2046_s27 + $0x70] sm:$0xf] %vm1300_vm1, %v1570_v50  ;;  %v1571_v53 = vpack.c.bf16 %v1169_v51, %v1169_v51 }
 0x17d   : > { %v1133_v54 = vpop.f32.mrb[60].mxu1 }
 0x17e   : > { %1330 = vst.msk [vmem:[%s2046_s27 + $0x74] sm:$0xf] %vm1300_vm1, %v1571_v53  ;;  %v1134_v55 = vadd.f32 %v1133_v54, %v973_v52  ;;  %v1135_v56 = vpop.f32.mrb[61].mxu1 }
 0x17f   : > { %v1136_v58 = vpop.f32.mrb[62].mxu1 }
 0x180   : > { %v1170_v59 = vmax.f32 %v1134_v55, 0.0  ;;  %v1137_v60 = vadd.f32 %v1136_v58, %v976_v57  ;;  %v1138_v61 = vpop.f32.mrb[63].mxu1 }
 0x182   : > { %v1572_v62 = vpack.c.bf16 %v1170_v59, %v1170_v59  ;;  %v1171_v63 = vmax.f32 %v1137_v60, 0.0 }
 0x184   : > { %1331 = vst.msk [vmem:[%s2046_s27 + $0x78] sm:$0xf] %vm1300_vm1, %v1572_v62  ;;  %v1573_v0 = vpack.c.bf16 %v1171_v63, %v1171_v63 }
 0x186   : > { %1332 = vst.msk [vmem:[%s2046_s27 + $0x7c] sm:$0xf] %vm1300_vm1, %v1573_v0 }
 0x187 PF: > { %s13_s12 = sadd.s32 1, %s1824_s12  }
 0x188   : > { %p10_p4 = scmp.ge.s32.totalorder %s13_s12, 4  }
 0x18a   :  { %12 = sbr.rel (!%p10_p4) target bundleno = 1 (0x1), region = 62 }

// kernel: unipose_forward.45
= control target key start
LH: loop header
LB: loop body
LE: loop exit
PB: predicated region body
PF: predicated region fallthrough
CT: control target
= control target key end

     0   :  { %s767_s12 = smov 0   ;;  %s931_s0 = inlined_call_operand.vmem [shape: bf16[512,32], index: 0, kind: input, shape index: {}]   ;;  %s932_s1 = inlined_call_operand.vmem [shape: bf16[32,15], index: 1, kind: input, shape index: {}]   ;;  %s933_s2 = inlined_call_operand.vmem [shape: f32[1,15], index: 2, kind: input, shape index: {}]   ;;  %s934_s3 = inlined_call_operand.vmem [shape: f32[512,15], index: 3, kind: output, shape index: {}]  }
   0x1 LB: > { %s609_s13 = sadd.s32 4294967295, %s745_s12   ;;  %p613_p0 = scmp.ge.s32.totalorder %s745_s12, 1  ;;  %s745_s12 = sphi %s767_s12, %s13_s12  }
   0x2   : > { %p138_p1 = scmp.lt.s32.totalorder %s745_s12, 3 }
   0x4   : > { %p139_p2 = pnand %p613_p0, %p138_p1 }
   0x5   : > { %v721_v0 = vld [vmem:[%s932_s1] sm:$0xff] (!%p139_p2)   ;;  %s614_s16 = sshll.u32 (!%p139_p2), %s609_s13, 5  ;;  %v722_v1 = vld [vmem:[%s932_s1 + $0x8] sm:$0xff] (!%p139_p2)   ;;  %vm310_vm0 = vcmask (!%p139_p2), 261120   ;;  %vm520_vm1 = vcmask (!%p139_p2), 121856  }
   0x6   : > { %142 = sbr.rel (%p139_p2) target bundleno = 261 (0x105), region = 32  ;;  %p163_p3 = scmp.lt.s32.totalorder (!%p139_p2), %s614_s16, 63  ;;  %673 = vmatprep.subr.bf16.mxu0 (!%p139_p2), %v721_v0  ;;  %709 = vmatprep.subr.bf16.mxu1 (!%p139_p2), %v721_v0  ;;  %v825_v18 = vld [vmem:[%s933_s2] ss:$0 sm:$0xff] (!%p139_p2) }
   0x7   : > { %674 = vmatpush3.bf16.msra.mxu0 (!%p139_p2), %v721_v0  ;;  %711 = vmatpush3.bf16.msra.mxu1 (!%p139_p2), %v721_v0 }
   0x8   : > { %675 = vmatprep.subr.bf16.mxu0 (!%p139_p2), %v722_v1  ;;  %710 = vmatprep.subr.bf16.mxu1 (!%p139_p2), %v722_v1 }
   0xb   : > { %676 = vmatpush3.bf16.msra.mxu0 (!%p139_p2), %v722_v1  ;;  %712 = vmatpush3.bf16.msra.mxu1 (!%p139_p2), %v722_v1 }
   0xd   : > { %s936_s16 = smov (!%p163_p3, %s614_s16), 63 }
   0xe   : > { %s615_s19 = sshll.u32 %s936_s16, 2  ;;  %s617_s23 = sshll.u32 %s936_s16, 3 }
   0xf   : > { %s787_s22 = scalar_lea.vmem %s931_s0, %s615_s19  ;;  %s830_s28 = scalar_lea.vmem %s934_s3, %s617_s23 }
  0x10   : > { %v723_v2 = vld [vmem:[%s787_s22] sm:$0xff]   ;;  %v725_v4 = vld [vmem:[%s787_s22 + $0x8] sm:$0xff]   ;;  %v727_v6 = vld [vmem:[%s787_s22 + $0x10] sm:$0xff]  }
  0x11   : > { %v724_v3 = vld [vmem:[%s787_s22 + $0x40] sm:$0xff]   ;;  %677 = vmatprep.mubr.msk.bf16.mxu0 %vm310_vm0, %v723_v2  ;;  %v726_v5 = vld [vmem:[%s787_s22 + $0x48] sm:$0xff]   ;;  %v728_v7 = vld [vmem:[%s787_s22 + $0x50] sm:$0xff]  }
  0x12   : > { %693 = vmatprep.mubr.msk.bf16.mxu1 %vm310_vm0, %v724_v3  ;;  %678 = vmatmul.mubr.msk.bf16.vlgmr.msra.gmra.mrb[0].mxu0 %vm310_vm0, %v725_v4  ;;  %v729_v8 = vld [vmem:[%s787_s22 + $0x18] sm:$0xff]   ;;  %v731_v10 = vld [vmem:[%s787_s22 + $0x20] sm:$0xff]   ;;  %v733_v12 = vld [vmem:[%s787_s22 + $0x28] sm:$0xff]  }
  0x13   : > { %694 = vmatmul.mubr.msk.bf16.vlgmr.msra.gmra.mrb[0].mxu1 %vm310_vm0, %v726_v5  ;;  %681 = vmatprep.mubr.msk.bf16.mxu0 %vm310_vm0, %v727_v6  ;;  %v730_v9 = vld [vmem:[%s787_s22 + $0x58] sm:$0xff]   ;;  %v732_v11 = vld [vmem:[%s787_s22 + $0x60] sm:$0xff]   ;;  %v734_v13 = vld [vmem:[%s787_s22 + $0x68] sm:$0xff]  }
  0x14   : > { %697 = vmatprep.mubr.msk.bf16.mxu1 %vm310_vm0, %v728_v7  ;;  %v735_v14 = vld [vmem:[%s787_s22 + $0x30] sm:$0xff]   ;;  %v737_v16 = vld [vmem:[%s787_s22 + $0x38] sm:$0xff]  }
  0x15   : > { %v736_v15 = vld [vmem:[%s787_s22 + $0x70] sm:$0xff]   ;;  %v738_v17 = vld [vmem:[%s787_s22 + $0x78] sm:$0xff]  }
  0x1a   : > { %682 = vmatmul.mubr.msk.bf16.gmra.mrb[4].mxu0 %vm310_vm0, %v729_v8 }
  0x1b   : > { %698 = vmatmul.mubr.msk.bf16.gmra.mrb[4].mxu1 %vm310_vm0, %v730_v9  ;;  %685 = vmatprep.mubr.msk.bf16.mxu0 %vm310_vm0, %v731_v10 }
  0x1c   : > { %701 = vmatprep.mubr.msk.bf16.mxu1 %vm310_vm0, %v732_v11 }
  0x22   : > { %686 = vmatmul.mubr.msk.bf16.gmra.mrb[8].mxu0 %vm310_vm0, %v733_v12 }
  0x23   : > { %702 = vmatmul.mubr.msk.bf16.gmra.mrb[8].mxu1 %vm310_vm0, %v734_v13  ;;  %689 = vmatprep.mubr.msk.bf16.mxu0 %vm310_vm0, %v735_v14 }
  0x24   : > { %705 = vmatprep.mubr.msk.bf16.mxu1 %vm310_vm0, %v736_v15 }
  0x2a   : > { %690 = vmatmul.mubr.msk.bf16.gmra.mrb[12].mxu0 %vm310_vm0, %v737_v16 }
  0x2b   : > { %706 = vmatmul.mubr.msk.bf16.gmra.mrb[12].mxu1 %vm310_vm0, %v738_v17 }
  0xe5   : > { %v679_v19 = vpop.f32.mrb[0].mxu0 }
  0xe6   : > { %v402_v20 = vadd.f32 %v679_v19, %v825_v18  ;;  %v695_v21 = vpop.f32.mrb[0].mxu1  ;;  %v393_v22 = vpop.f32.mrb[1].mxu0 }
  0xe7   : > { %v466_v23 = vadd.f32 %v695_v21, %v825_v18  ;;  %v394_v24 = vadd.f32 %v825_v18, %v393_v22  ;;  %v457_v25 = vpop.f32.mrb[1].mxu1  ;;  %v680_v26 = vpop.f32.mrb[2].mxu0 }
  0xe8   : > { %523 = vst.msk [vmem:[%s830_s28 + $0x10] sm:$0xff] %vm520_vm1, %v402_v20  ;;  %v458_v27 = vadd.f32 %v825_v18, %v457_v25  ;;  %v405_v28 = vadd.f32 %v680_v26, %v825_v18  ;;  %v696_v29 = vpop.f32.mrb[2].mxu1  ;;  %v396_v30 = vpop.f32.mrb[3].mxu0 }
  0xe9   : > { %539 = vst.msk [vmem:[%s830_s28 + $0x90] sm:$0xff] %vm520_vm1, %v466_v23  ;;  %521 = vst.msk [vmem:[%s830_s28] sm:$0xff] %vm520_vm1, %v394_v24  ;;  %v469_v31 = vadd.f32 %v696_v29, %v825_v18  ;;  %v397_v32 = vadd.f32 %v825_v18, %v396_v30  ;;  %v460_v33 = vpop.f32.mrb[3].mxu1 }
  0xea   : > { %537 = vst.msk [vmem:[%s830_s28 + $0x80] sm:$0xff] %vm520_vm1, %v458_v27  ;;  %524 = vst.msk [vmem:[%s830_s28 + $0x18] sm:$0xff] %vm520_vm1, %v405_v28  ;;  %v461_v34 = vadd.f32 %v825_v18, %v460_v33 }
  0xeb   : > { %540 = vst.msk [vmem:[%s830_s28 + $0x98] sm:$0xff] %vm520_vm1, %v469_v31  ;;  %522 = vst.msk [vmem:[%s830_s28 + $0x8] sm:$0xff] %vm520_vm1, %v397_v32 }
  0xec   : > { %538 = vst.msk [vmem:[%s830_s28 + $0x88] sm:$0xff] %vm520_vm1, %v461_v34 }
  0xed   : > { %v683_v35 = vpop.f32.mrb[4].mxu0 }
  0xee   : > { %v418_v36 = vadd.f32 %v683_v35, %v825_v18  ;;  %v699_v37 = vpop.f32.mrb[4].mxu1  ;;  %v409_v38 = vpop.f32.mrb[5].mxu0 }
  0xef   : > { %v482_v39 = vadd.f32 %v699_v37, %v825_v18  ;;  %v410_v40 = vadd.f32 %v825_v18, %v409_v38  ;;  %v473_v41 = vpop.f32.mrb[5].mxu1  ;;  %v684_v42 = vpop.f32.mrb[6].mxu0 }
  0xf0   : > { %527 = vst.msk [vmem:[%s830_s28 + $0x30] sm:$0xff] %vm520_vm1, %v418_v36  ;;  %v474_v43 = vadd.f32 %v825_v18, %v473_v41  ;;  %v421_v44 = vadd.f32 %v684_v42, %v825_v18  ;;  %v700_v45 = vpop.f32.mrb[6].mxu1  ;;  %v412_v46 = vpop.f32.mrb[7].mxu0 }
  0xf1   : > { %543 = vst.msk [vmem:[%s830_s28 + $0xb0] sm:$0xff] %vm520_vm1, %v482_v39  ;;  %525 = vst.msk [vmem:[%s830_s28 + $0x20] sm:$0xff] %vm520_vm1, %v410_v40  ;;  %v485_v47 = vadd.f32 %v700_v45, %v825_v18  ;;  %v413_v48 = vadd.f32 %v825_v18, %v412_v46  ;;  %v476_v49 = vpop.f32.mrb[7].mxu1 }
  0xf2   : > { %541 = vst.msk [vmem:[%s830_s28 + $0xa0] sm:$0xff] %vm520_vm1, %v474_v43  ;;  %528 = vst.msk [vmem:[%s830_s28 + $0x38] sm:$0xff] %vm520_vm1, %v421_v44  ;;  %v477_v50 = vadd.f32 %v825_v18, %v476_v49 }
  0xf3   : > { %544 = vst.msk [vmem:[%s830_s28 + $0xb8] sm:$0xff] %vm520_vm1, %v485_v47  ;;  %526 = vst.msk [vmem:[%s830_s28 + $0x28] sm:$0xff] %vm520_vm1, %v413_v48 }
  0xf4   : > { %542 = vst.msk [vmem:[%s830_s28 + $0xa8] sm:$0xff] %vm520_vm1, %v477_v50 }
  0xf5   : > { %v687_v51 = vpop.f32.mrb[8].mxu0 }
  0xf6   : > { %v434_v52 = vadd.f32 %v687_v51, %v825_v18  ;;  %v703_v53 = vpop.f32.mrb[8].mxu1  ;;  %v425_v54 = vpop.f32.mrb[9].mxu0 }
  0xf7   : > { %v498_v55 = vadd.f32 %v703_v53, %v825_v18  ;;  %v426_v56 = vadd.f32 %v825_v18, %v425_v54  ;;  %v489_v57 = vpop.f32.mrb[9].mxu1  ;;  %v688_v58 = vpop.f32.mrb[10].mxu0 }
  0xf8   : > { %531 = vst.msk [vmem:[%s830_s28 + $0x50] sm:$0xff] %vm520_vm1, %v434_v52  ;;  %v490_v59 = vadd.f32 %v825_v18, %v489_v57  ;;  %v437_v60 = vadd.f32 %v688_v58, %v825_v18  ;;  %v704_v61 = vpop.f32.mrb[10].mxu1  ;;  %v428_v62 = vpop.f32.mrb[11].mxu0 }
  0xf9   : > { %547 = vst.msk [vmem:[%s830_s28 + $0xd0] sm:$0xff] %vm520_vm1, %v498_v55  ;;  %529 = vst.msk [vmem:[%s830_s28 + $0x40] sm:$0xff] %vm520_vm1, %v426_v56  ;;  %v501_v63 = vadd.f32 %v704_v61, %v825_v18  ;;  %v429_v0 = vadd.f32 %v825_v18, %v428_v62  ;;  %v492_v1 = vpop.f32.mrb[11].mxu1 }
  0xfa   : > { %545 = vst.msk [vmem:[%s830_s28 + $0xc0] sm:$0xff] %vm520_vm1, %v490_v59  ;;  %532 = vst.msk [vmem:[%s830_s28 + $0x58] sm:$0xff] %vm520_vm1, %v437_v60  ;;  %v493_v2 = vadd.f32 %v825_v18, %v492_v1 }
  0xfb   : > { %548 = vst.msk [vmem:[%s830_s28 + $0xd8] sm:$0xff] %vm520_vm1, %v501_v63  ;;  %530 = vst.msk [vmem:[%s830_s28 + $0x48] sm:$0xff] %vm520_vm1, %v429_v0 }
  0xfc   : > { %546 = vst.msk [vmem:[%s830_s28 + $0xc8] sm:$0xff] %vm520_vm1, %v493_v2 }
  0xfd   : > { %v691_v3 = vpop.f32.mrb[12].mxu0 }
  0xfe   : > { %v450_v4 = vadd.f32 %v691_v3, %v825_v18  ;;  %v707_v5 = vpop.f32.mrb[12].mxu1  ;;  %v441_v6 = vpop.f32.mrb[13].mxu0 }
  0xff   : > { %v514_v7 = vadd.f32 %v707_v5, %v825_v18  ;;  %v442_v8 = vadd.f32 %v825_v18, %v441_v6  ;;  %v505_v9 = vpop.f32.mrb[13].mxu1  ;;  %v692_v10 = vpop.f32.mrb[14].mxu0 }
 0x100   : > { %535 = vst.msk [vmem:[%s830_s28 + $0x70] sm:$0xff] %vm520_vm1, %v450_v4  ;;  %v506_v11 = vadd.f32 %v825_v18, %v505_v9  ;;  %v453_v12 = vadd.f32 %v692_v10, %v825_v18  ;;  %v708_v13 = vpop.f32.mrb[14].mxu1  ;;  %v444_v14 = vpop.f32.mrb[15].mxu0 }
 0x101   : > { %551 = vst.msk [vmem:[%s830_s28 + $0xf0] sm:$0xff] %vm520_vm1, %v514_v7  ;;  %533 = vst.msk [vmem:[%s830_s28 + $0x60] sm:$0xff] %vm520_vm1, %v442_v8  ;;  %v517_v15 = vadd.f32 %v708_v13, %v825_v18  ;;  %v445_v16 = vadd.f32 %v825_v18, %v444_v14  ;;  %v508_v17 = vpop.f32.mrb[15].mxu1 }
 0x102   : > { %549 = vst.msk [vmem:[%s830_s28 + $0xe0] sm:$0xff] %vm520_vm1, %v506_v11  ;;  %536 = vst.msk [vmem:[%s830_s28 + $0x78] sm:$0xff] %vm520_vm1, %v453_v12  ;;  %v509_v19 = vadd.f32 %v825_v18, %v508_v17 }
 0x103   : > { %552 = vst.msk [vmem:[%s830_s28 + $0xf8] sm:$0xff] %vm520_vm1, %v517_v15  ;;  %534 = vst.msk [vmem:[%s830_s28 + $0x68] sm:$0xff] %vm520_vm1, %v445_v16 }
 0x104   : > { %550 = vst.msk [vmem:[%s830_s28 + $0xe8] sm:$0xff] %vm520_vm1, %v509_v19 }
 0x105 PF: > { %s13_s12 = sadd.s32 1, %s745_s12  }
 0x106   : > { %p10_p4 = scmp.ge.s32.totalorder %s13_s12, 4  }
 0x108   :  { %12 = sbr.rel (!%p10_p4) target bundleno = 1 (0x1), region = 62 }

// kernel: unipose_forward.44
= control target key start
LH: loop header
LB: loop body
LE: loop exit
PB: predicated region body
PF: predicated region fallthrough
CT: control target
= control target key end

     0   :  { %s1712_s12 = smov 0   ;;  %s1986_s0 = inlined_call_operand.vmem [shape: bf16[512,288], index: 0, kind: input, shape index: {}]   ;;  %s1987_s1 = inlined_call_operand.vmem [shape: bf16[288,32], index: 1, kind: input, shape index: {}]   ;;  %s1988_s2 = inlined_call_operand.vmem [shape: f32[1,32], index: 2, kind: input, shape index: {}]   ;;  %s1989_s3 = inlined_call_operand.vmem [shape: bf16[512,32], index: 3, kind: output, shape index: {}]  }
   0x1 LB: > { %s1253_s13 = sadd.s32 4294967295, %s1690_s12   ;;  %p1257_p0 = scmp.ge.s32.totalorder %s1690_s12, 1  ;;  %s1690_s12 = sphi %s1712_s12, %s13_s12  }
   0x2   : > { %p139_p1 = scmp.lt.s32.totalorder %s1690_s12, 3 }
   0x4   : > { %p140_p2 = pnand %p1257_p0, %p139_p1 }
   0x5   : > { %v1602_v0 = vld [vmem:[%s1987_s1 + $0x40] sm:$0xff] (!%p140_p2)   ;;  %s1258_s16 = sshll.u32 (!%p140_p2), %s1253_s13, 5  ;;  %v1604_v2 = vld [vmem:[%s1987_s1 + $0x48] sm:$0xff] (!%p140_p2)   ;;  %v1606_v4 = vld [vmem:[%s1987_s1 + $0x50] sm:$0xff] (!%p140_p2)   ;;  %vm633_vm0 = vcmask (!%p140_p2), 261120   ;;  %vm1164_vm1 = vcmask (!%p140_p2), 257024  }
   0x6   : > { %143 = sbr.rel (%p140_p2) target bundleno = 352 (0x160), region = 32  ;;  %v1603_v1 = vld [vmem:[%s1987_s1] sm:$0xff] (!%p140_p2)   ;;  %1411 = vmatprep.subr.bf16.mxu0 (!%p140_p2), %v1602_v0  ;;  %1577 = vmatprep.subr.bf16.mxu1 (!%p140_p2), %v1602_v0  ;;  %p165_p3 = scmp.lt.s32.totalorder (!%p140_p2), %s1258_s16, 63  ;;  %v1605_v3 = vld [vmem:[%s1987_s1 + $0x8] sm:$0xff] (!%p140_p2)   ;;  %v1607_v5 = vld [vmem:[%s1987_s1 + $0x10] sm:$0xff] (!%p140_p2)  }
   0x7   : > { %1412 = vmatpush3.bf16.msra.mxu0 (!%p140_p2), %v1603_v1  ;;  %1585 = vmatpush3.bf16.msra.mxu1 (!%p140_p2), %v1603_v1  ;;  %v1608_v6 = vld [vmem:[%s1987_s1 + $0x58] sm:$0xff] (!%p140_p2)   ;;  %v1610_v8 = vld [vmem:[%s1987_s1 + $0x60] sm:$0xff] (!%p140_p2)   ;;  %v1612_v10 = vld [vmem:[%s1987_s1 + $0x68] sm:$0xff] (!%p140_p2)  }
   0x8   : > { %1413 = vmatprep.subr.bf16.mxu0 (!%p140_p2), %v1604_v2  ;;  %1578 = vmatprep.subr.bf16.mxu1 (!%p140_p2), %v1604_v2  ;;  %v1609_v7 = vld [vmem:[%s1987_s1 + $0x18] sm:$0xff] (!%p140_p2)   ;;  %v1611_v9 = vld [vmem:[%s1987_s1 + $0x20] sm:$0xff] (!%p140_p2)   ;;  %v1613_v13 = vld [vmem:[%s1987_s1 + $0x28] sm:$0xff] (!%p140_p2)  }
   0x9   : > { %v1614_v14 = vld [vmem:[%s1987_s1 + $0x70] sm:$0xff] (!%p140_p2)   ;;  %v1616_v16 = vld [vmem:[%s1987_s1 + $0x78] sm:$0xff] (!%p140_p2)   ;;  %v1624_v18 = vld [vmem:[%s1987_s1 + $0x80] sm:$0xff] (!%p140_p2)  }
   0xa   : > { %v1615_v15 = vld [vmem:[%s1987_s1 + $0x30] sm:$0xff] (!%p140_p2)   ;;  %v1617_v17 = vld [vmem:[%s1987_s1 + $0x38] sm:$0xff] (!%p140_p2)   ;;  %v1637_v23 = vld [vmem:[%s1987_s1 + $0x88] sm:$0xff] (!%p140_p2)  }
   0xb   : > { %1414 = vmatpush3.bf16.msra.mxu0 (!%p140_p2), %v1605_v3  ;;  %1586 = vmatpush3.bf16.msra.mxu1 (!%p140_p2), %v1605_v3 }
   0xc   : > { %1415 = vmatprep.subr.bf16.mxu0 (!%p140_p2), %v1606_v4  ;;  %1579 = vmatprep.subr.bf16.mxu1 (!%p140_p2), %v1606_v4 }
   0xd   : > { %s1991_s16 = smov (!%p165_p3, %s1258_s16), 63 }
   0xe   : > { %s1593_s29 = smul.u32 12, %s1991_s16  ;;  %s1261_s5 = sshll.u32 %s1991_s16, 2 }
   0xf   : > { %1416 = vmatpush3.bf16.msra.mxu0 %v1607_v5  ;;  %1587 = vmatpush3.bf16.msra.mxu1 %v1607_v5  ;;  %s1875_s8 = scalar_lea.vmem %s1989_s3, %s1261_s5 }
  0x10   : > { %1417 = vmatprep.subr.bf16.mxu0 %v1608_v6  ;;  %1580 = vmatprep.subr.bf16.mxu1 %v1608_v6  ;;  %s1753_s9 = scalar_lea.vmem %s1986_s0, %s1593_s29 }
  0x11   : > { %v1620_v11 = vld [vmem:[%s1753_s9 + $0x4] ss:$12 sps:$4 sm:$0xff]   ;;  %v1618_v19 = vld [vmem:[%s1753_s9] ss:$12 sps:$4 sm:$0xff]   ;;  %v1625_v21 = vld [vmem:[%s1753_s9 + $0x1c] ss:$12 sps:$4 sm:$0xff]  }
  0x12   : > { %v1623_v12 = vld [vmem:[%s1753_s9 + $0x124] ss:$12 sps:$4 sm:$0xff]   ;;  %714 = vmatprep.mubr.bf16.mxu0 %v1620_v11  ;;  %v1621_v20 = vld [vmem:[%s1753_s9 + $0x120] ss:$12 sps:$4 sm:$0xff]   ;;  %v1627_v22 = vld [vmem:[%s1753_s9 + $0x13c] ss:$12 sps:$4 sm:$0xff]  }
  0x13   : > { %1418 = vmatpush3.bf16.msra.mxu0 %v1609_v7  ;;  %1588 = vmatpush3.bf16.msra.mxu1 %v1609_v7  ;;  %v1629_v24 = vld [vmem:[%s1753_s9 + $0x18] ss:$12 sps:$4 sm:$0xff]   ;;  %v1631_v26 = vld [vmem:[%s1753_s9 + $0x34] ss:$12 sps:$4 sm:$0xff]   ;;  %v1635_v28 = vld [vmem:[%s1753_s9 + $0x30] ss:$12 sps:$4 sm:$0xff]  }
  0x14   : > { %1419 = vmatprep.subr.bf16.mxu0 %v1610_v8  ;;  %1581 = vmatprep.subr.bf16.mxu1 %v1610_v8  ;;  %v1630_v25 = vld [vmem:[%s1753_s9 + $0x138] ss:$12 sps:$4 sm:$0xff]   ;;  %v1633_v27 = vld [vmem:[%s1753_s9 + $0x154] ss:$12 sps:$4 sm:$0xff]   ;;  %v1636_v29 = vld [vmem:[%s1753_s9 + $0x150] ss:$12 sps:$4 sm:$0xff]  }
  0x15   : > { %810 = vmatprep.mubr.bf16.mxu1 %v1623_v12  ;;  %v1638_v30 = vld [vmem:[%s1753_s9 + $0x4c] ss:$12 sps:$4 sm:$0xff]   ;;  %v1642_v32 = vld [vmem:[%s1753_s9 + $0x48] ss:$12 sps:$4 sm:$0xff]   ;;  %v1644_v34 = vld [vmem:[%s1753_s9 + $0x64] ss:$12 sps:$4 sm:$0xff]  }
  0x16   : > { %v1640_v31 = vld [vmem:[%s1753_s9 + $0x16c] ss:$12 sps:$4 sm:$0xff]   ;;  %v1643_v33 = vld [vmem:[%s1753_s9 + $0x168] ss:$12 sps:$4 sm:$0xff]   ;;  %v1653_v41 = vld [vmem:[%s1753_s9 + $0x50] ss:$12 sps:$4 sm:$0xff]  }
  0x17   : > { %1420 = vmatpush3.bf16.msra.mxu0 %v1611_v9  ;;  %1589 = vmatpush3.bf16.msra.mxu1 %v1611_v9  ;;  %v1646_v35 = vld [vmem:[%s1753_s9 + $0x8] ss:$12 sps:$4 sm:$0xff]   ;;  %v1647_v36 = vld [vmem:[%s1753_s9 + $0x60] ss:$12 sps:$4 sm:$0xff]   ;;  %v1651_v39 = vld [vmem:[%s1753_s9 + $0x38] ss:$12 sps:$4 sm:$0xff]  }
  0x18   : > { %1421 = vmatprep.subr.bf16.mxu0 %v1612_v10  ;;  %1582 = vmatprep.subr.bf16.mxu1 %v1612_v10  ;;  %v1648_v37 = vld [vmem:[%s1753_s9 + $0x20] ss:$12 sps:$4 sm:$0xff]   ;;  %v1649_v38 = vld [vmem:[%s1753_s9 + $0x7c] ss:$12 sps:$4 sm:$0xff]   ;;  %v1652_v40 = vld [vmem:[%s1753_s9 + $0x78] ss:$12 sps:$4 sm:$0xff]  }
  0x19   : > { %v1654_v42 = vld [vmem:[%s1753_s9 + $0x94] ss:$12 sps:$4 sm:$0xff]   ;;  %v1657_v44 = vld [vmem:[%s1753_s9 + $0x90] ss:$12 sps:$4 sm:$0xff]   ;;  %v1659_v46 = vld [vmem:[%s1753_s9 + $0xac] ss:$12 sps:$4 sm:$0xff]  }
  0x1a   : > { %v1656_v43 = vld [vmem:[%s1753_s9 + $0x68] ss:$12 sps:$4 sm:$0xff]   ;;  %v1658_v45 = vld [vmem:[%s1753_s9 + $0x80] ss:$12 sps:$4 sm:$0xff]   ;;  %v1661_v47 = vld [vmem:[%s1753_s9 + $0x98] ss:$12 sps:$4 sm:$0xff]  }
  0x1b   : > { %1422 = vmatpush3.bf16.msra.mxu0 %v1613_v13  ;;  %1590 = vmatpush3.bf16.msra.mxu1 %v1613_v13  ;;  %v1662_v48 = vld [vmem:[%s1753_s9 + $0xa8] ss:$12 sps:$4 sm:$0xff]   ;;  %v1663_v49 = vld [vmem:[%s1753_s9 + $0xb0] ss:$12 sps:$4 sm:$0xff]   ;;  %v1667_v52 = vld [vmem:[%s1753_s9 + $0xc0] ss:$12 sps:$4 sm:$0xff]  }
  0x1c   : > { %1423 = vmatprep.subr.bf16.mxu0 %v1614_v14  ;;  %1583 = vmatprep.subr.bf16.mxu1 %v1614_v14  ;;  %v1664_v50 = vld [vmem:[%s1753_s9 + $0xc4] ss:$12 sps:$4 sm:$0xff]   ;;  %v1666_v51 = vld [vmem:[%s1753_s9 + $0xc8] ss:$12 sps:$4 sm:$0xff]   ;;  %v1668_v53 = vld [vmem:[%s1753_s9 + $0xe0] ss:$12 sps:$4 sm:$0xff]  }
  0x1d   : > { %v1669_v54 = vld [vmem:[%s1753_s9 + $0xdc] ss:$12 sps:$4 sm:$0xff]   ;;  %v1671_v55 = vld [vmem:[%s1753_s9 + $0xf8] ss:$12 sps:$4 sm:$0xff]   ;;  %v1674_v58 = vld [vmem:[%s1753_s9 + $0xf4] ss:$12 sps:$4 sm:$0xff]  }
  0x1e   : > { %v1672_v56 = vld [vmem:[%s1753_s9 + $0xd8] ss:$12 sps:$4 sm:$0xff]   ;;  %v1673_v57 = vld [vmem:[%s1753_s9 + $0x110] ss:$12 sps:$4 sm:$0xff]   ;;  %v1676_v59 = vld [vmem:[%s1753_s9 + $0x128] ss:$12 sps:$4 sm:$0xff]  }
  0x1f   : > { %1424 = vmatpush3.bf16.msra.mxu0 %v1615_v15  ;;  %1591 = vmatpush3.bf16.msra.mxu1 %v1615_v15  ;;  %v1677_v60 = vld [vmem:[%s1753_s9 + $0xf0] ss:$12 sps:$4 sm:$0xff]   ;;  %v1678_v61 = vld [vmem:[%s1753_s9 + $0x140] ss:$12 sps:$4 sm:$0xff]   ;;  %v1681_v63 = vld [vmem:[%s1753_s9 + $0x158] ss:$12 sps:$4 sm:$0xff]  }
  0x20   : > { %1425 = vmatprep.subr.bf16.mxu0 %v1616_v16  ;;  %1584 = vmatprep.subr.bf16.mxu1 %v1616_v16  ;;  %v1679_v62 = vld [vmem:[%s1753_s9 + $0x10c] ss:$12 sps:$4 sm:$0xff]   ;;  %v1682_v0 = vld [vmem:[%s1753_s9 + $0x108] ss:$12 sps:$4 sm:$0xff]   ;;  %v1683_v1 = vld [vmem:[%s1753_s9 + $0x170] ss:$12 sps:$4 sm:$0xff]  }
  0x23   : > { %1426 = vmatpush3.bf16.msra.mxu0 %v1617_v17  ;;  %1592 = vmatpush3.bf16.msra.mxu1 %v1617_v17 }
  0x24   : > { %1541 = vmatprep.subr.bf16.mxu1 %v1624_v18 }
  0x26   : > { %715 = vmatmul.mubr.bf16.vlgmr.msra.gmra.mrb[0].mxu0 %v1618_v19  ;;  %811 = vmatmul.mubr.bf16.vlgmr.msra.gmra.mrb[0].mxu1 %v1621_v20 }
  0x27   : > { %1542 = vmatpush3.bf16.msra.mxu1 %v1624_v18  ;;  %722 = vmatprep.mubr.bf16.mxu0 %v1625_v21 }
  0x28   : > { %818 = vmatprep.mubr.bf16.mxu1 %v1627_v22  ;;  %1543 = vmatprep.subr.bf16.mxu1 %v1637_v23 }
  0x2b   : > { %1544 = vmatpush3.bf16.msra.mxu1 %v1637_v23 }
  0x2e   : > { %723 = vmatmul.mubr.bf16.gmra.mrb[4].mxu0 %v1629_v24  ;;  %819 = vmatmul.mubr.bf16.gmra.mrb[4].mxu1 %v1630_v25 }
  0x2f   : > { %730 = vmatprep.mubr.bf16.mxu0 %v1631_v26  ;;  %826 = vmatprep.mubr.bf16.mxu1 %v1633_v27 }
  0x36   : > { %731 = vmatmul.mubr.bf16.gmra.mrb[8].mxu0 %v1635_v28  ;;  %827 = vmatmul.mubr.bf16.gmra.mrb[8].mxu1 %v1636_v29 }
  0x37   : > { %738 = vmatprep.mubr.bf16.mxu0 %v1638_v30  ;;  %834 = vmatprep.mubr.bf16.mxu1 %v1640_v31 }
  0x3e   : > { %739 = vmatmul.mubr.bf16.gmra.mrb[12].mxu0 %v1642_v32  ;;  %835 = vmatmul.mubr.bf16.gmra.mrb[12].mxu1 %v1643_v33 }
  0x3f   : > { %746 = vmatprep.mubr.bf16.mxu0 %v1644_v34  ;;  %1545 = vmatprep.mubr.msk.bf16.mxu1 %vm633_vm0, %v1646_v35 }
  0x46   : > { %747 = vmatmul.mubr.bf16.gmra.mrb[16].mxu0 %v1647_v36  ;;  %1546 = vmatmul.mubr.msk.bf16.vlgmr.msra.gmra.mrb[16].mxu1 %vm633_vm0, %v1648_v37 }
  0x47   : > { %754 = vmatprep.mubr.bf16.mxu0 %v1649_v38  ;;  %1549 = vmatprep.mubr.msk.bf16.mxu1 %vm633_vm0, %v1651_v39 }
  0x4e   : > { %755 = vmatmul.mubr.bf16.gmra.mrb[20].mxu0 %v1652_v40  ;;  %1550 = vmatmul.mubr.msk.bf16.gmra.mrb[20].mxu1 %vm633_vm0, %v1653_v41 }
  0x4f   : > { %762 = vmatprep.mubr.bf16.mxu0 %v1654_v42  ;;  %1553 = vmatprep.mubr.msk.bf16.mxu1 %vm633_vm0, %v1656_v43 }
  0x56   : > { %763 = vmatmul.mubr.bf16.gmra.mrb[24].mxu0 %v1657_v44  ;;  %1554 = vmatmul.mubr.msk.bf16.gmra.mrb[24].mxu1 %vm633_vm0, %v1658_v45 }
  0x57   : > { %770 = vmatprep.mubr.bf16.mxu0 %v1659_v46  ;;  %1557 = vmatprep.mubr.msk.bf16.mxu1 %vm633_vm0, %v1661_v47 }
  0x5e   : > { %771 = vmatmul.mubr.bf16.gmra.mrb[28].mxu0 %v1662_v48  ;;  %1558 = vmatmul.mubr.msk.bf16.gmra.mrb[28].mxu1 %vm633_vm0, %v1663_v49 }
  0x5f   : > { %778 = vmatprep.mubr.bf16.mxu0 %v1664_v50  ;;  %1561 = vmatprep.mubr.msk.bf16.mxu1 %vm633_vm0, %v1666_v51  ;;  %v1865_v50 = vld [vmem:[%s1988_s2] ss:$0 sm:$0xff] }
  0x66   : > { %779 = vmatmul.mubr.bf16.gmra.mrb[32].mxu0 %v1667_v52  ;;  %1562 = vmatmul.mubr.msk.bf16.gmra.mrb[32].mxu1 %vm633_vm0, %v1668_v53 }
  0x67   : > { %786 = vmatprep.mubr.bf16.mxu0 %v1669_v54  ;;  %1565 = vmatprep.mubr.msk.bf16.mxu1 %vm633_vm0, %v1671_v55 }
  0x6e   : > { %787 = vmatmul.mubr.bf16.gmra.mrb[36].mxu0 %v1672_v56  ;;  %1566 = vmatmul.mubr.msk.bf16.gmra.mrb[36].mxu1 %vm633_vm0, %v1673_v57 }
  0x6f   : > { %794 = vmatprep.mubr.bf16.mxu0 %v1674_v58  ;;  %1569 = vmatprep.mubr.msk.bf16.mxu1 %vm633_vm0, %v1676_v59 }
  0x76   : > { %795 = vmatmul.mubr.bf16.gmra.mrb[40].mxu0 %v1677_v60  ;;  %1570 = vmatmul.mubr.msk.bf16.gmra.mrb[40].mxu1 %vm633_vm0, %v1678_v61 }
  0x77   : > { %802 = vmatprep.mubr.bf16.mxu0 %v1679_v62  ;;  %1573 = vmatprep.mubr.msk.bf16.mxu1 %vm633_vm0, %v1681_v63 }
  0x7e   : > { %803 = vmatmul.mubr.bf16.gmra.mrb[44].mxu0 %v1682_v0  ;;  %1574 = vmatmul.mubr.msk.bf16.gmra.mrb[44].mxu1 %vm633_vm0, %v1683_v1 }
  0xf9   : > { %v1427_v2 = vpop.f32.mrb[0].mxu0  ;;  %v1499_v3 = vpop.f32.mrb[0].mxu1 }
  0xfa   : > { %v1428_v4 = vpop.f32.mrb[1].mxu0  ;;  %v1500_v5 = vpop.f32.mrb[1].mxu1 }
  0xfb   : > { %v1429_v6 = vadd.f32 %v1428_v4, %v1427_v2  ;;  %v1430_v7 = vpop.f32.mrb[2].mxu0  ;;  %v1846_v8 = vadd.f32 %v1500_v5, %v1499_v3  ;;  %v1502_v9 = vpop.f32.mrb[2].mxu1 }
  0xfc   : > { %v1431_v10 = vpop.f32.mrb[3].mxu0  ;;  %v1503_v11 = vpop.f32.mrb[3].mxu1 }
  0xfd   : > { %v1432_v12 = vadd.f32 %v1431_v10, %v1430_v7  ;;  %v1848_v13 = vadd.f32 %v1503_v11, %v1502_v9  ;;  %v717_v54 = vadd.f32 %v1429_v6, %v1865_v50 }
  0xff   : > { %v720_v63 = vadd.f32 %v1432_v12, %v1865_v50 }
 0x101   : > { %v1433_v14 = vpop.f32.mrb[4].mxu0  ;;  %v1505_v15 = vpop.f32.mrb[4].mxu1 }
 0x102   : > { %v1434_v16 = vpop.f32.mrb[5].mxu0  ;;  %v1506_v17 = vpop.f32.mrb[5].mxu1 }
 0x103   : > { %v1435_v18 = vadd.f32 %v1434_v16, %v1433_v14  ;;  %v1436_v19 = vpop.f32.mrb[6].mxu0  ;;  %v1850_v20 = vadd.f32 %v1506_v17, %v1505_v15  ;;  %v1508_v21 = vpop.f32.mrb[6].mxu1 }
 0x104   : > { %v1437_v22 = vpop.f32.mrb[7].mxu0  ;;  %v1509_v23 = vpop.f32.mrb[7].mxu1 }
 0x105   : > { %v1438_v24 = vadd.f32 %v1437_v22, %v1436_v19  ;;  %v1852_v25 = vadd.f32 %v1509_v23, %v1508_v21  ;;  %v725_v51 = vadd.f32 %v1435_v18, %v1865_v50 }
 0x107   : > { %v728_v58 = vadd.f32 %v1438_v24, %v1865_v50 }
 0x109   : > { %v1439_v26 = vpop.f32.mrb[8].mxu0  ;;  %v1511_v27 = vpop.f32.mrb[8].mxu1 }
 0x10a   : > { %v1440_v28 = vpop.f32.mrb[9].mxu0  ;;  %v1512_v29 = vpop.f32.mrb[9].mxu1 }
 0x10b   : > { %v1441_v30 = vadd.f32 %v1440_v28, %v1439_v26  ;;  %v1442_v31 = vpop.f32.mrb[10].mxu0  ;;  %v1854_v32 = vadd.f32 %v1512_v29, %v1511_v27  ;;  %v1514_v33 = vpop.f32.mrb[10].mxu1 }
 0x10c   : > { %v1443_v34 = vpop.f32.mrb[11].mxu0  ;;  %v1515_v35 = vpop.f32.mrb[11].mxu1 }
 0x10d   : > { %v1444_v36 = vadd.f32 %v1443_v34, %v1442_v31  ;;  %v1856_v37 = vadd.f32 %v1515_v35, %v1514_v33  ;;  %v733_v18 = vadd.f32 %v1441_v30, %v1865_v50 }
 0x10f   : > { %v736_v29 = vadd.f32 %v1444_v36, %v1865_v50 }
 0x111   : > { %v1445_v38 = vpop.f32.mrb[12].mxu0  ;;  %v1517_v39 = vpop.f32.mrb[12].mxu1 }
 0x112   : > { %v1446_v40 = vpop.f32.mrb[13].mxu0  ;;  %v1518_v41 = vpop.f32.mrb[13].mxu1 }
 0x113   : > { %v1447_v42 = vadd.f32 %v1446_v40, %v1445_v38  ;;  %v1448_v43 = vpop.f32.mrb[14].mxu0  ;;  %v1858_v44 = vadd.f32 %v1518_v41, %v1517_v39  ;;  %v1520_v45 = vpop.f32.mrb[14].mxu1 }
 0x114   : > { %v1449_v46 = vpop.f32.mrb[15].mxu0  ;;  %v1521_v47 = vpop.f32.mrb[15].mxu1 }
 0x115   : > { %v1450_v48 = vadd.f32 %v1449_v46, %v1448_v43  ;;  %v1860_v49 = vadd.f32 %v1521_v47, %v1520_v45  ;;  %v741_v14 = vadd.f32 %v1447_v42, %v1865_v50 }
 0x117   : > { %v744_v23 = vadd.f32 %v1450_v48, %v1865_v50 }
 0x119   : > { %v1451_v52 = vpop.f32.mrb[16].mxu0  ;;  %v1547_v53 = vpop.f32.mrb[16].mxu1 }
 0x11a   : > { %v886_v55 = vadd.f32 %v1547_v53, %v725_v51  ;;  %v1452_v56 = vpop.f32.mrb[17].mxu0  ;;  %v877_v57 = vpop.f32.mrb[17].mxu1 }
 0x11b   : > { %v1453_v59 = vadd.f32 %v1452_v56, %v1451_v52  ;;  %v878_v60 = vadd.f32 %v877_v57, %v717_v54  ;;  %v1454_v61 = vpop.f32.mrb[18].mxu0  ;;  %v1548_v62 = vpop.f32.mrb[18].mxu1 }
 0x11c   : > { %v1006_v0 = vmax.f32 %v886_v55, 0.0  ;;  %v889_v1 = vadd.f32 %v1548_v62, %v728_v58  ;;  %v1455_v2 = vpop.f32.mrb[19].mxu0  ;;  %v880_v3 = vpop.f32.mrb[19].mxu1 }
 0x11d   : > { %v1004_v4 = vmax.f32 %v878_v60, 0.0  ;;  %v1456_v5 = vadd.f32 %v1455_v2, %v1454_v61  ;;  %v881_v6 = vadd.f32 %v880_v3, %v720_v63  ;;  %v749_v51 = vadd.f32 %v1453_v59, %v1865_v50 }
 0x11e   : > { %v1381_v7 = vpack.c.bf16 %v1006_v0, %v1006_v0  ;;  %v1007_v9 = vmax.f32 %v889_v1, 0.0 }
 0x11f   : > { %v1379_v10 = vpack.c.bf16 %v1004_v4, %v1004_v4  ;;  %v1005_v11 = vmax.f32 %v881_v6, 0.0  ;;  %v752_v61 = vadd.f32 %v1456_v5, %v1865_v50 }
 0x120   : > { %1167 = vst.msk [vmem:[%s1875_s8 + $0x8] sm:$0xf] %vm1164_vm1, %v1381_v7  ;;  %v1382_v12 = vpack.c.bf16 %v1007_v9, %v1007_v9 }
 0x121   : > { %1165 = vst.msk [vmem:[%s1875_s8] sm:$0xf] %vm1164_vm1, %v1379_v10  ;;  %v1380_v15 = vpack.c.bf16 %v1005_v11, %v1005_v11  ;;  %v1457_v16 = vpop.f32.mrb[20].mxu0  ;;  %v1551_v17 = vpop.f32.mrb[20].mxu1 }
 0x122   : > { %1168 = vst.msk [vmem:[%s1875_s8 + $0xc] sm:$0xf] %vm1164_vm1, %v1382_v12  ;;  %v902_v19 = vadd.f32 %v1551_v17, %v741_v14  ;;  %v1458_v21 = vpop.f32.mrb[21].mxu0  ;;  %v893_v22 = vpop.f32.mrb[21].mxu1 }
 0x123   : > { %1166 = vst.msk [vmem:[%s1875_s8 + $0x4] sm:$0xf] %vm1164_vm1, %v1380_v15  ;;  %v1459_v24 = vadd.f32 %v1458_v21, %v1457_v16  ;;  %v894_v26 = vadd.f32 %v893_v22, %v733_v18  ;;  %v1460_v27 = vpop.f32.mrb[22].mxu0  ;;  %v1552_v28 = vpop.f32.mrb[22].mxu1 }
 0x124   : > { %v1010_v31 = vmax.f32 %v902_v19, 0.0  ;;  %v905_v33 = vadd.f32 %v1552_v28, %v744_v23  ;;  %v1461_v30 = vpop.f32.mrb[23].mxu0  ;;  %v896_v34 = vpop.f32.mrb[23].mxu1 }
 0x125   : > { %v1008_v35 = vmax.f32 %v894_v26, 0.0  ;;  %v1462_v38 = vadd.f32 %v1461_v30, %v1460_v27  ;;  %v897_v39 = vadd.f32 %v896_v34, %v736_v29  ;;  %v757_v46 = vadd.f32 %v1459_v24, %v1865_v50 }
 0x126   : > { %v1385_v40 = vpack.c.bf16 %v1010_v31, %v1010_v31  ;;  %v1011_v41 = vmax.f32 %v905_v33, 0.0 }
 0x127   : > { %v1383_v42 = vpack.c.bf16 %v1008_v35, %v1008_v35  ;;  %v1009_v43 = vmax.f32 %v897_v39, 0.0  ;;  %v760_v55 = vadd.f32 %v1462_v38, %v1865_v50 }
 0x128   : > { %1171 = vst.msk [vmem:[%s1875_s8 + $0x18] sm:$0xf] %vm1164_vm1, %v1385_v40  ;;  %v1386_v45 = vpack.c.bf16 %v1011_v41, %v1011_v41 }
 0x129   : > { %1169 = vst.msk [vmem:[%s1875_s8 + $0x10] sm:$0xf] %vm1164_vm1, %v1383_v42  ;;  %v1384_v36 = vpack.c.bf16 %v1009_v43, %v1009_v43  ;;  %v1463_v47 = vpop.f32.mrb[24].mxu0  ;;  %v1555_v48 = vpop.f32.mrb[24].mxu1 }
 0x12a   : > { %1172 = vst.msk [vmem:[%s1875_s8 + $0x1c] sm:$0xf] %vm1164_vm1, %v1386_v45  ;;  %v918_v52 = vadd.f32 %v1555_v48, %v757_v46  ;;  %v1464_v53 = vpop.f32.mrb[25].mxu0  ;;  %v909_v54 = vpop.f32.mrb[25].mxu1 }
 0x12b   : > { %1170 = vst.msk [vmem:[%s1875_s8 + $0x14] sm:$0xf] %vm1164_vm1, %v1384_v36  ;;  %v1465_v56 = vadd.f32 %v1464_v53, %v1463_v47  ;;  %v910_v57 = vadd.f32 %v909_v54, %v749_v51  ;;  %v1466_v58 = vpop.f32.mrb[26].mxu0  ;;  %v1556_v60 = vpop.f32.mrb[26].mxu1 }
 0x12c   : > { %v1014_v62 = vmax.f32 %v918_v52, 0.0  ;;  %v921_v63 = vadd.f32 %v1556_v60, %v760_v55  ;;  %v1467_v59 = vpop.f32.mrb[27].mxu0  ;;  %v912_v0 = vpop.f32.mrb[27].mxu1 }
 0x12d   : > { %v1012_v1 = vmax.f32 %v910_v57, 0.0  ;;  %v1468_v2 = vadd.f32 %v1467_v59, %v1466_v58  ;;  %v913_v3 = vadd.f32 %v912_v0, %v752_v61  ;;  %v765_v14 = vadd.f32 %v1465_v56, %v1865_v50 }
 0x12e   : > { %v1389_v4 = vpack.c.bf16 %v1014_v62, %v1014_v62  ;;  %v1015_v6 = vmax.f32 %v921_v63, 0.0 }
 0x12f   : > { %v1387_v7 = vpack.c.bf16 %v1012_v1, %v1012_v1  ;;  %v1013_v9 = vmax.f32 %v913_v3, 0.0  ;;  %v768_v22 = vadd.f32 %v1468_v2, %v1865_v50 }
 0x130   : > { %1175 = vst.msk [vmem:[%s1875_s8 + $0x28] sm:$0xf] %vm1164_vm1, %v1389_v4  ;;  %v1390_v10 = vpack.c.bf16 %v1015_v6, %v1015_v6 }
 0x131   : > { %1173 = vst.msk [vmem:[%s1875_s8 + $0x20] sm:$0xf] %vm1164_vm1, %v1387_v7  ;;  %v1388_v11 = vpack.c.bf16 %v1013_v9, %v1013_v9  ;;  %v1469_v5 = vpop.f32.mrb[28].mxu0  ;;  %v1559_v12 = vpop.f32.mrb[28].mxu1 }
 0x132   : > { %1176 = vst.msk [vmem:[%s1875_s8 + $0x2c] sm:$0xf] %vm1164_vm1, %v1390_v10  ;;  %v1470_v15 = vpop.f32.mrb[29].mxu0  ;;  %v925_v16 = vpop.f32.mrb[29].mxu1 }
 0x133   : > { %1174 = vst.msk [vmem:[%s1875_s8 + $0x24] sm:$0xf] %vm1164_vm1, %v1388_v11  ;;  %v1471_v17 = vadd.f32 %v1470_v15, %v1469_v5  ;;  %v926_v18 = vadd.f32 %v925_v16, %v765_v14  ;;  %v1472_v19 = vpop.f32.mrb[30].mxu0  ;;  %v1560_v21 = vpop.f32.mrb[30].mxu1  ;;  %v821_v14 = vadd.f32 %v1850_v20, %v1865_v50 }
 0x134   : > { %v1473_v23 = vpop.f32.mrb[31].mxu0  ;;  %v928_v24 = vpop.f32.mrb[31].mxu1 }
 0x135   : > { %v773_v26 = vadd.f32 %v1471_v17, %v1865_v50  ;;  %v1016_v27 = vmax.f32 %v926_v18, 0.0  ;;  %v1474_v28 = vadd.f32 %v1473_v23, %v1472_v19  ;;  %v929_v29 = vadd.f32 %v928_v24, %v768_v22 }
 0x136   : > { %v813_v19 = vadd.f32 %v1846_v8, %v1865_v50  ;;  %v824_v24 = vadd.f32 %v1852_v25, %v1865_v50  ;;  %v816_v8 = vadd.f32 %v1848_v13, %v1865_v50 }
 0x137   : > { %v934_v31 = vadd.f32 %v1559_v12, %v773_v26  ;;  %v1391_v33 = vpack.c.bf16 %v1016_v27, %v1016_v27  ;;  %v776_v30 = vadd.f32 %v1474_v28, %v1865_v50  ;;  %v1017_v34 = vmax.f32 %v929_v29, 0.0 }
 0x139   : > { %v1018_v35 = vmax.f32 %v934_v31, 0.0  ;;  %1177 = vst.msk [vmem:[%s1875_s8 + $0x30] sm:$0xf] %vm1164_vm1, %v1391_v33  ;;  %v937_v38 = vadd.f32 %v1560_v21, %v776_v30  ;;  %v1392_v39 = vpack.c.bf16 %v1017_v34, %v1017_v34  ;;  %v1475_v40 = vpop.f32.mrb[32].mxu0  ;;  %v1563_v41 = vpop.f32.mrb[32].mxu1 }
 0x13a   : > { %v1476_v42 = vpop.f32.mrb[33].mxu0  ;;  %v941_v43 = vpop.f32.mrb[33].mxu1 }
 0x13b   : > { %v1393_v45 = vpack.c.bf16 %v1018_v35, %v1018_v35  ;;  %v1019_v46 = vmax.f32 %v937_v38, 0.0  ;;  %1178 = vst.msk [vmem:[%s1875_s8 + $0x34] sm:$0xf] %vm1164_vm1, %v1392_v39  ;;  %v1477_v36 = vadd.f32 %v1476_v42, %v1475_v40  ;;  %v1478_v47 = vpop.f32.mrb[34].mxu0  ;;  %v1564_v48 = vpop.f32.mrb[34].mxu1 }
 0x13c   : > { %v1479_v51 = vpop.f32.mrb[35].mxu0  ;;  %v944_v52 = vpop.f32.mrb[35].mxu1 }
 0x13d   : > { %1179 = vst.msk [vmem:[%s1875_s8 + $0x38] sm:$0xf] %vm1164_vm1, %v1393_v45  ;;  %v1394_v53 = vpack.c.bf16 %v1019_v46, %v1019_v46  ;;  %v781_v54 = vadd.f32 %v1477_v36, %v1865_v50  ;;  %v1480_v55 = vadd.f32 %v1479_v51, %v1478_v47 }
 0x13f   : > { %1180 = vst.msk [vmem:[%s1875_s8 + $0x3c] sm:$0xf] %vm1164_vm1, %v1394_v53  ;;  %v942_v56 = vadd.f32 %v941_v43, %v781_v54  ;;  %v784_v57 = vadd.f32 %v1480_v55, %v1865_v50  ;;  %v829_v55 = vadd.f32 %v1854_v32, %v1865_v50 }
 0x141   : > { %v1020_v58 = vmax.f32 %v942_v56, 0.0  ;;  %v945_v60 = vadd.f32 %v944_v52, %v784_v57  ;;  %v1481_v61 = vpop.f32.mrb[36].mxu0  ;;  %v1923_v62 = vpop.f32.mrb[36].mxu1 }
 0x142   : > { %v1482_v63 = vpop.f32.mrb[37].mxu0  ;;  %v957_v59 = vpop.f32.mrb[37].mxu1 }
 0x143   : > { %v1395_v0 = vpack.c.bf16 %v1020_v58, %v1020_v58  ;;  %v1021_v1 = vmax.f32 %v945_v60, 0.0  ;;  %v1483_v2 = vadd.f32 %v1482_v63, %v1481_v61  ;;  %v1484_v3 = vpop.f32.mrb[38].mxu0  ;;  %v1925_v4 = vpop.f32.mrb[38].mxu1 }
 0x144   : > { %v1485_v6 = vpop.f32.mrb[39].mxu0  ;;  %v960_v7 = vpop.f32.mrb[39].mxu1 }
 0x145   : > { %1181 = vst.msk [vmem:[%s1875_s8 + $0x40] sm:$0xf] %vm1164_vm1, %v1395_v0  ;;  %v1396_v9 = vpack.c.bf16 %v1021_v1, %v1021_v1  ;;  %v789_v10 = vadd.f32 %v1483_v2, %v1865_v50  ;;  %v1486_v11 = vadd.f32 %v1485_v6, %v1484_v3 }
 0x147   : > { %1182 = vst.msk [vmem:[%s1875_s8 + $0x44] sm:$0xf] %vm1164_vm1, %v1396_v9  ;;  %v950_v5 = vadd.f32 %v1563_v41, %v789_v10  ;;  %v792_v12 = vadd.f32 %v1486_v11, %v1865_v50 }
 0x149   : > { %v1022_v15 = vmax.f32 %v950_v5, 0.0  ;;  %v953_v16 = vadd.f32 %v1564_v48, %v792_v12  ;;  %v1487_v17 = vpop.f32.mrb[40].mxu0  ;;  %v1571_v18 = vpop.f32.mrb[40].mxu1  ;;  %v837_v48 = vadd.f32 %v1858_v44, %v1865_v50  ;;  %v840_v44 = vadd.f32 %v1860_v49, %v1865_v50 }
 0x14a   : > { %v982_v21 = vadd.f32 %v1571_v18, %v821_v14  ;;  %v1488_v22 = vpop.f32.mrb[41].mxu0  ;;  %v973_v23 = vpop.f32.mrb[41].mxu1 }
 0x14b   : > { %v1397_v26 = vpack.c.bf16 %v1022_v15, %v1022_v15  ;;  %v1023_v27 = vmax.f32 %v953_v16, 0.0  ;;  %v1489_v28 = vadd.f32 %v1488_v22, %v1487_v17  ;;  %v974_v29 = vadd.f32 %v973_v23, %v813_v19  ;;  %v1490_v20 = vpop.f32.mrb[42].mxu0  ;;  %v1572_v31 = vpop.f32.mrb[42].mxu1 }
 0x14c   : > { %v1030_v33 = vmax.f32 %v982_v21, 0.0  ;;  %v985_v30 = vadd.f32 %v1572_v31, %v824_v24  ;;  %v1491_v34 = vpop.f32.mrb[43].mxu0  ;;  %v976_v35 = vpop.f32.mrb[43].mxu1 }
 0x14d   : > { %1183 = vst.msk [vmem:[%s1875_s8 + $0x48] sm:$0xf] %vm1164_vm1, %v1397_v26  ;;  %v1398_v38 = vpack.c.bf16 %v1023_v27, %v1023_v27  ;;  %v797_v25 = vadd.f32 %v1489_v28, %v1865_v50  ;;  %v1028_v39 = vmax.f32 %v974_v29, 0.0  ;;  %v1492_v40 = vadd.f32 %v1491_v34, %v1490_v20 }
 0x14e   : > { %v1405_v41 = vpack.c.bf16 %v1030_v33, %v1030_v33  ;;  %v1031_v42 = vmax.f32 %v985_v30, 0.0  ;;  %v977_v43 = vadd.f32 %v976_v35, %v816_v8 }
 0x14f   : > { %1184 = vst.msk [vmem:[%s1875_s8 + $0x4c] sm:$0xf] %vm1164_vm1, %v1398_v38  ;;  %v958_v45 = vadd.f32 %v957_v59, %v797_v25  ;;  %v1403_v46 = vpack.c.bf16 %v1028_v39, %v1028_v39  ;;  %v800_v36 = vadd.f32 %v1492_v40, %v1865_v50 }
 0x150   : > { %1191 = vst.msk [vmem:[%s1875_s8 + $0x68] sm:$0xf] %vm1164_vm1, %v1405_v41  ;;  %v1406_v13 = vpack.c.bf16 %v1031_v42, %v1031_v42  ;;  %v1029_v47 = vmax.f32 %v977_v43, 0.0 }
 0x151   : > { %v1024_v51 = vmax.f32 %v958_v45, 0.0  ;;  %1189 = vst.msk [vmem:[%s1875_s8 + $0x60] sm:$0xf] %vm1164_vm1, %v1403_v46  ;;  %v961_v52 = vadd.f32 %v960_v7, %v800_v36  ;;  %v1493_v53 = vpop.f32.mrb[44].mxu0  ;;  %v1575_v54 = vpop.f32.mrb[44].mxu1  ;;  %v832_v7 = vadd.f32 %v1856_v37, %v1865_v50 }
 0x152   : > { %1192 = vst.msk [vmem:[%s1875_s8 + $0x6c] sm:$0xf] %vm1164_vm1, %v1406_v13  ;;  %v1404_v56 = vpack.c.bf16 %v1029_v47, %v1029_v47  ;;  %v998_v57 = vadd.f32 %v1575_v54, %v837_v48  ;;  %v1494_v58 = vpop.f32.mrb[45].mxu0  ;;  %v989_v60 = vpop.f32.mrb[45].mxu1 }
 0x153   : > { %v1399_v61 = vpack.c.bf16 %v1024_v51, %v1024_v51  ;;  %v1025_v63 = vmax.f32 %v961_v52, 0.0  ;;  %v1495_v59 = vadd.f32 %v1494_v58, %v1493_v53  ;;  %v990_v0 = vadd.f32 %v989_v60, %v829_v55  ;;  %v1496_v1 = vpop.f32.mrb[46].mxu0  ;;  %v1576_v2 = vpop.f32.mrb[46].mxu1 }
 0x154   : > { %1190 = vst.msk [vmem:[%s1875_s8 + $0x64] sm:$0xf] %vm1164_vm1, %v1404_v56  ;;  %v1034_v32 = vmax.f32 %v998_v57, 0.0  ;;  %v1001_v3 = vadd.f32 %v1576_v2, %v840_v44  ;;  %v1497_v6 = vpop.f32.mrb[47].mxu0  ;;  %v992_v9 = vpop.f32.mrb[47].mxu1 }
 0x155   : > { %1185 = vst.msk [vmem:[%s1875_s8 + $0x50] sm:$0xf] %vm1164_vm1, %v1399_v61  ;;  %v1400_v49 = vpack.c.bf16 %v1025_v63, %v1025_v63  ;;  %v805_v10 = vadd.f32 %v1495_v59, %v1865_v50  ;;  %v1032_v11 = vmax.f32 %v990_v0, 0.0  ;;  %v1498_v5 = vadd.f32 %v1497_v6, %v1496_v1 }
 0x156   : > { %v1409_v12 = vpack.c.bf16 %v1034_v32, %v1034_v32  ;;  %v1035_v14 = vmax.f32 %v1001_v3, 0.0  ;;  %v993_v15 = vadd.f32 %v992_v9, %v832_v7 }
 0x157   : > { %1186 = vst.msk [vmem:[%s1875_s8 + $0x54] sm:$0xf] %vm1164_vm1, %v1400_v49  ;;  %v966_v16 = vadd.f32 %v1923_v62, %v805_v10  ;;  %v1407_v37 = vpack.c.bf16 %v1032_v11, %v1032_v11  ;;  %v808_v17 = vadd.f32 %v1498_v5, %v1865_v50 }
 0x158   : > { %1195 = vst.msk [vmem:[%s1875_s8 + $0x78] sm:$0xf] %vm1164_vm1, %v1409_v12  ;;  %v1410_v18 = vpack.c.bf16 %v1035_v14, %v1035_v14  ;;  %v1033_v19 = vmax.f32 %v993_v15, 0.0 }
 0x159   : > { %v1026_v21 = vmax.f32 %v966_v16, 0.0  ;;  %1193 = vst.msk [vmem:[%s1875_s8 + $0x70] sm:$0xf] %vm1164_vm1, %v1407_v37  ;;  %v969_v22 = vadd.f32 %v1925_v4, %v808_v17 }
 0x15a   : > { %1196 = vst.msk [vmem:[%s1875_s8 + $0x7c] sm:$0xf] %vm1164_vm1, %v1410_v18  ;;  %v1408_v23 = vpack.c.bf16 %v1033_v19, %v1033_v19 }
 0x15b   : > { %v1401_v24 = vpack.c.bf16 %v1026_v21, %v1026_v21  ;;  %v1027_v26 = vmax.f32 %v969_v22, 0.0 }
 0x15c   : > { %1194 = vst.msk [vmem:[%s1875_s8 + $0x74] sm:$0xf] %vm1164_vm1, %v1408_v23 }
 0x15d   : > { %1187 = vst.msk [vmem:[%s1875_s8 + $0x58] sm:$0xf] %vm1164_vm1, %v1401_v24  ;;  %v1402_v62 = vpack.c.bf16 %v1027_v26, %v1027_v26 }
 0x15f   : > { %1188 = vst.msk [vmem:[%s1875_s8 + $0x5c] sm:$0xf] %vm1164_vm1, %v1402_v62 }
 0x160 PF: > { %s13_s12 = sadd.s32 1, %s1690_s12  }
 0x161   : > { %p10_p4 = scmp.ge.s32.totalorder %s13_s12, 4  }
 0x163   :  { %12 = sbr.rel (!%p10_p4) target bundleno = 1 (0x1), region = 62 }

</bundles_post_ra>
